<compile_context>
chip_gen: v7x
topology: tpu7x:2x2x1
jax: 0.10.0
libtpu: 0.0.40
codegen_flags: <defaults>
</compile_context>

<pallas_src>
import jax
import jax.numpy as jnp
from jax.experimental import pallas as pl
from jax.experimental.pallas import tpu as pltpu

_LN_EPS = 1e-5
# output-phase -> {input_offset: kernel_tap_index} for ConvTranspose2d(k4, s2, p1)
_TAP_MAP = ({0: 1, -1: 3}, {1: 0, 0: 2})
# input (H, W) of the four strided ConvT stages
_SIZES = ((4, 4), (8, 8), (16, 16), (32, 32))


# ------------------------------ fused kernel ------------------------------- #
def _make_fused_kernel(stage_cfg):
    """stage_cfg: tuple of (cin, cout, H, W, has_ln) for the 4 strided stages."""

    def kernel(*refs):
        x_ref, w1_ref, g1_ref, b1_ref, msel_ref, psel_ref = refs[:6]
        stage_refs = refs[6:-2]
        o_ref = refs[-2]
        rhs_ref = refs[-1]

        # ---- head: ConvT(k4,s1,p0) on a 1x1 input == dense matmul; LN + ReLU --
        xv = x_ref[0].astype(jnp.bfloat16)                          # (1, in_dim)
        h = jnp.dot(xv, w1_ref[...],
                    preferred_element_type=jnp.float32)             # (1, c1*16)
        mean = jnp.mean(h, axis=-1, keepdims=True)
        var = jnp.mean(jnp.square(h - mean), axis=-1, keepdims=True)
        y = (h - mean) * jax.lax.rsqrt(var + _LN_EPS) * g1_ref[...] + b1_ref[...]
        y = jnp.maximum(y, 0.0).astype(jnp.bfloat16)
        # lane -> (channel-sublane, spatial-lane) relayout via one-hot matmuls:
        #   f[c, s] = y[0, 16*c + s]
        f = jnp.dot(msel_ref[...] * y, psel_ref[...],
                    preferred_element_type=jnp.float32)             # (c1, 16) f32

        # ---- 4 strided ConvT stages; activations never leave VMEM ------------
        idx = 0
        for (cin, cout, H, W, has_ln) in stage_cfg:
            HW = H * W
            wbig_ref = stage_refs[idx]
            mask_ref = stage_refs[idx + 1]
            idx += 2
            if has_ln:
                g_ref = stage_refs[idx]
                b_ref = stage_refs[idx + 1]
                gmat_ref = stage_refs[idx + 2]
                idx += 3

            # Tap-stacked RHS (9*cin, HW): 9 lane-rolled, boundary-masked copies
            # of the flat (cin, H*W) input, staged through VMEM scratch.
            for dy in (-1, 0, 1):
                for dx in (-1, 0, 1):
                    t = (dy + 1) * 3 + (dx + 1)
                    sh = dy * W + dx
                    if sh == 0:
                        xs = f
                    else:
                        xs = pltpu.roll(f, (-sh) % HW, axis=1) * mask_ref[t]
                    rhs_ref[t * cin:(t + 1) * cin, 0:HW] = xs
            rhs = rhs_ref[0:9 * cin, 0:HW].astype(jnp.bfloat16)

            # One MXU matmul per stage: all 4 output phases stacked on sublanes.
            #   row (2*py+px)*cout + c  <->  output pixel (c, 2m+py, 2n+px), lane m*W+n
            yph = jnp.dot(wbig_ref[...], rhs,
                          preferred_element_type=jnp.float32)       # (4*cout, HW)

            if has_ln:
                # LayerNorm over (cout, 2H, 2W) == over the whole phase-stack.
                n_tot = float(4 * cout * HW)
                tot = jnp.sum(jnp.sum(yph, axis=1, keepdims=True),
                              axis=0, keepdims=True)
                cen = yph - tot / n_tot
                sq = jnp.sum(jnp.sum(cen * cen, axis=1, keepdims=True),
                             axis=0, keepdims=True)
                inv = jax.lax.rsqrt(sq / n_tot + _LN_EPS)
                act = jnp.maximum(cen * inv * g_ref[...] + b_ref[...], 0.0)
                # Pixel-shuffle the 4 phases back to a flat row-major
                # (cout, 2H*2W) image with one-hot scatter matmuls (MXU relayout).
                f = None
                for p in range(4):
                    part = jnp.dot(
                        act[p * cout:(p + 1) * cout].astype(jnp.bfloat16),
                        gmat_ref[p], preferred_element_type=jnp.float32)
                    f = part if f is None else f + part             # (cout, 4*HW)
            else:
                o_ref[0] = jnp.tanh(yph)                            # (12, 1024)

    return kernel


# --------------------------------- wrapper --------------------------------- #
def generator_forward(x, params):
    """x: (B, in_dim, 1, 1) f32 -> (B, 3, 64, 64) f32."""
    B, in_dim = x.shape[0], x.shape[1]
    x3 = x.reshape(B, 1, in_dim)

    stage_cfg, stage_args = [], []
    for si, st in enumerate(params["stages"]):
        wbig = st[0]
        cout, cin = wbig.shape[0] // 4, wbig.shape[1] // 9
        H, W = _SIZES[si]
        stage_cfg.append((cin, cout, H, W, len(st) == 5))
        stage_args += list(st)

    max_rows = max(9 * c[0] for c in stage_cfg)
    max_lanes = max(c[2] * c[3] for c in stage_cfg)
    cout_f, H_f, W_f = stage_cfg[-1][1], stage_cfg[-1][2], stage_cfg[-1][3]

    kernel = _make_fused_kernel(tuple(stage_cfg))

    def _const(a):
        nd = a.ndim
        return pl.BlockSpec(a.shape, lambda i, _n=nd: (0,) * _n)

    const_ops = [params["w1_flat"], params["g1_flat"], params["b1_flat"],
                 params["msel"], params["psel"]] + stage_args
    in_specs = [pl.BlockSpec((1, 1, in_dim), lambda i: (i, 0, 0))]
    in_specs += [_const(a) for a in const_ops]

    out_rows, out_lanes = 4 * cout_f, H_f * W_f
    out = pl.pallas_call(
        kernel,
        grid=(B,),
        out_shape=jax.ShapeDtypeStruct((B, out_rows, out_lanes), jnp.float32),
        in_specs=in_specs,
        out_specs=pl.BlockSpec((1, out_rows, out_lanes), lambda i: (i, 0, 0)),
        scratch_shapes=[pltpu.VMEM((max_rows, max_lanes), jnp.float32)],
        compiler_params=pltpu.CompilerParams(
            dimension_semantics=("parallel",)),
    )(x3, *const_ops)

    # Interleave the 4 phases of the final stage back to NCHW (layout plumbing).
    out = out.reshape(B, 2, 2, cout_f, H_f, W_f).transpose(0, 3, 4, 1, 5, 2)
    return out.reshape(B, cout_f, 2 * H_f, 2 * W_f)


# ---------------------------- parameter handling ---------------------------- #
def init_params(key, in_dim, dim):
    chans = [in_dim, dim * 8, dim * 4, dim * 2, dim, 3]
    keys = jax.random.split(key, 5 + 2 * 4)
    raw_w = []
    for li in range(5):
        ci, co = chans[li], chans[li + 1]
        bound = 1.0 / (co * 16) ** 0.5                  # PyTorch-style bound
        w = jax.random.uniform(keys[li], (ci, co, 4, 4), jnp.float32,
                               minval=-bound, maxval=bound)
        raw_w.append(w.astype(jnp.bfloat16))            # bf16 weight storage
    ln_g, ln_b = [], []
    sizes = [4, 8, 16, 32]
    for li in range(4):
        co, s = chans[li + 1], sizes[li]
        ln_g.append(1.0 + 0.1 * jax.random.normal(keys[5 + 2 * li], (co, s, s), jnp.float32))
        ln_b.append(0.1 * jax.random.normal(keys[6 + 2 * li], (co, s, s), jnp.float32))
    return raw_w, ln_g, ln_b


def _pack_ln(a):
    """(cout, 2H, 2W) -> phase-stacked (4*cout, H*W), row (2py+px)*cout + c."""
    co, OH, OW = a.shape
    H, W = OH // 2, OW // 2
    return (a.reshape(co, H, 2, W, 2).transpose(2, 4, 0, 1, 3)
             .reshape(4 * co, H * W).astype(jnp.float32))


def _make_masks(H, W):
    """(9, 1, H*W) f32 multiplicative boundary masks, tap t = (dy+1)*3 + (dx+1)."""
    r = jnp.arange(H * W)
    m, n = r // W, r % W
    rows = []
    for dy in (-1, 0, 1):
        for dx in (-1, 0, 1):
            ok = (m + dy >= 0) & (m + dy < H) & (n + dx >= 0) & (n + dx < W)
            rows.append(ok.astype(jnp.float32))
    return jnp.stack(rows).reshape(9, 1, H * W)


def _make_scatter(H, W):
    """(4, H*W, 4*H*W) bf16 one-hot pixel-shuffle matrices, phase p = 2*py+px."""
    HW = H * W
    r = jnp.arange(HW)
    m, n = r // W, r % W
    mats = []
    for py in range(2):
        for px in range(2):
            cols = (2 * m + py) * (2 * W) + (2 * n + px)
            mats.append(jax.nn.one_hot(cols, 4 * HW, dtype=jnp.bfloat16))
    return jnp.stack(mats)


def pack_params(raw_w, ln_g, ln_b):
    in_dim, c1 = raw_w[0].shape[0], raw_w[0].shape[1]
    p = {
        "w1_flat": raw_w[0].reshape(in_dim, c1 * 16),                        # bf16
        "g1_flat": ln_g[0].reshape(1, -1).astype(jnp.float32),
        "b1_flat": ln_b[0].reshape(1, -1).astype(jnp.float32),
        # lane -> (channel, spatial) relayout one-hots for the head output
        "msel": jnp.repeat(jnp.eye(c1, dtype=jnp.bfloat16), 16, axis=1),     # (c1, c1*16)
        "psel": jnp.tile(jnp.eye(16, dtype=jnp.bfloat16), (c1, 1)),          # (c1*16, 16)
    }
    stages = []
    for li in range(1, 5):
        H, W = _SIZES[li - 1]
        w = raw_w[li]                                    # (cin, cout, 4, 4) bf16
        cin, cout = w.shape[0], w.shape[1]
        wbig = jnp.zeros((4 * cout, 9 * cin), jnp.bfloat16)
        for py in range(2):
            for px in range(2):
                r0 = (2 * py + px) * cout
                for dy, ky in _TAP_MAP[py].items():
                    for dx, kx in _TAP_MAP[px].items():
                        t = (dy + 1) * 3 + (dx + 1)
                        wbig = wbig.at[r0:r0 + cout, t * cin:(t + 1) * cin].set(
                            w[:, :, ky, kx].T)
        mask = _make_masks(H, W)
        if li < 4:
            gp = _pack_ln(ln_g[li])
            bp = _pack_ln(ln_b[li])
            gmat = _make_scatter(H, W)
            stages.append((wbig, mask, gp, bp, gmat))
        else:
            stages.append((wbig, mask))
    p["stages"] = stages
    return p


# -------------------------------- reference -------------------------------- #
def reference_forward(x, raw_w, ln_g, ln_b):
    """Pure-JAX reference with PyTorch ConvTranspose2d / LayerNorm semantics
    (same bf16 weights, bf16 MXU inputs, f32 accumulation as the kernel)."""
    def convt(h, w, stride, padding):
        k = w.shape[-1]
        w2 = jnp.flip(w, axis=(2, 3)).transpose(1, 0, 2, 3)     # (cout, cin, k, k)
        pad = k - 1 - padding
        return jax.lax.conv_general_dilated(
            h.astype(jnp.bfloat16), w2,
            window_strides=(1, 1), padding=[(pad, pad), (pad, pad)],
            lhs_dilation=(stride, stride),
            dimension_numbers=("NCHW", "OIHW", "NCHW"),
            preferred_element_type=jnp.float32)

    def ln(h, g, b):
        mean = h.mean(axis=(1, 2, 3), keepdims=True)
        var = jnp.square(h - mean).mean(axis=(1, 2, 3), keepdims=True)
        return (h - mean) * jax.lax.rsqrt(var + _LN_EPS) * g[None] + b[None]

    h = jnp.maximum(ln(convt(x, raw_w[0], 1, 0), ln_g[0], ln_b[0]), 0.0)
    for li in range(1, 4):
        h = jnp.maximum(ln(convt(h, raw_w[li], 2, 1), ln_g[li], ln_b[li]), 0.0)
    return jnp.tanh(convt(h, raw_w[4], 2, 1))


# ----------------------------------- main ----------------------------------- #
if __name__ == "__main__":
    key = jax.random.PRNGKey(0)
    k_x, k_p = jax.random.split(key)

    B, IN_DIM, DIM = 2, 16, 8                           # small demo sizes
    x = jax.random.normal(k_x, (B, IN_DIM, 1, 1), jnp.float32)
    raw_w, ln_g, ln_b = init_params(k_p, IN_DIM, DIM)
    params = pack_params(raw_w, ln_g, ln_b)

    fwd = jax.jit(generator_forward)
    out = jax.block_until_ready(fwd(x, params))
    assert out.shape == (B, 3, 64, 64)

    ref = reference_forward(x, raw_w, ln_g, ln_b)
    max_err = float(jnp.max(jnp.abs(out - ref)))
    assert jnp.allclose(out, ref, atol=2e-2, rtol=2e-2), f"mismatch, max|diff|={max_err}"

    print("KERNEL_OK")
</pallas_src>

<mosaic_0001>
module attributes {stable_mosaic.version = 11 : i64} {
  func.func @kernel(%arg0: i32, %arg1: memref<1x1x16xf32, #tpu.memory_space<vmem>>, %arg2: memref<16x1024xbf16, #tpu.memory_space<vmem>>, %arg3: memref<1x1024xf32, #tpu.memory_space<vmem>>, %arg4: memref<1x1024xf32, #tpu.memory_space<vmem>>, %arg5: memref<64x1024xbf16, #tpu.memory_space<vmem>>, %arg6: memref<1024x16xbf16, #tpu.memory_space<vmem>>, %arg7: memref<128x576xbf16, #tpu.memory_space<vmem>>, %arg8: memref<9x1x16xf32, #tpu.memory_space<vmem>>, %arg9: memref<128x16xf32, #tpu.memory_space<vmem>>, %arg10: memref<128x16xf32, #tpu.memory_space<vmem>>, %arg11: memref<4x16x64xbf16, #tpu.memory_space<vmem>>, %arg12: memref<64x288xbf16, #tpu.memory_space<vmem>>, %arg13: memref<9x1x64xf32, #tpu.memory_space<vmem>>, %arg14: memref<64x64xf32, #tpu.memory_space<vmem>>, %arg15: memref<64x64xf32, #tpu.memory_space<vmem>>, %arg16: memref<4x64x256xbf16, #tpu.memory_space<vmem>>, %arg17: memref<32x144xbf16, #tpu.memory_space<vmem>>, %arg18: memref<9x1x256xf32, #tpu.memory_space<vmem>>, %arg19: memref<32x256xf32, #tpu.memory_space<vmem>>, %arg20: memref<32x256xf32, #tpu.memory_space<vmem>>, %arg21: memref<4x256x1024xbf16, #tpu.memory_space<vmem>>, %arg22: memref<12x72xbf16, #tpu.memory_space<vmem>>, %arg23: memref<9x1x1024xf32, #tpu.memory_space<vmem>>, %arg24: memref<1x12x1024xf32, #tpu.memory_space<vmem>>, %arg25: memref<576x1024xf32, #tpu.memory_space<vmem>>) attributes {dimension_semantics = [#tpu.dimension_semantics<parallel>], iteration_bounds = array<i64: 2>, scalar_prefetch = 0 : i64, scratch_operands = 1 : i64, tpu.core_type = #tpu.core_type<tc>, window_params = [{transform_indices = @transform_0, window_bounds = array<i64: 1, 1, 16>}, {pipeline_mode = #tpu.pipeline_mode<synchronous>, transform_indices = @transform_1, window_bounds = array<i64: 16, 1024>}, {pipeline_mode = #tpu.pipeline_mode<synchronous>, transform_indices = @transform_2, window_bounds = array<i64: 1, 1024>}, {pipeline_mode = #tpu.pipeline_mode<synchronous>, transform_indices = @transform_3, window_bounds = array<i64: 1, 1024>}, {pipeline_mode = #tpu.pipeline_mode<synchronous>, transform_indices = @transform_4, window_bounds = array<i64: 64, 1024>}, {pipeline_mode = #tpu.pipeline_mode<synchronous>, transform_indices = @transform_5, window_bounds = array<i64: 1024, 16>}, {pipeline_mode = #tpu.pipeline_mode<synchronous>, transform_indices = @transform_6, window_bounds = array<i64: 128, 576>}, {pipeline_mode = #tpu.pipeline_mode<synchronous>, transform_indices = @transform_7, window_bounds = array<i64: 9, 1, 16>}, {pipeline_mode = #tpu.pipeline_mode<synchronous>, transform_indices = @transform_8, window_bounds = array<i64: 128, 16>}, {pipeline_mode = #tpu.pipeline_mode<synchronous>, transform_indices = @transform_9, window_bounds = array<i64: 128, 16>}, {pipeline_mode = #tpu.pipeline_mode<synchronous>, transform_indices = @transform_10, window_bounds = array<i64: 4, 16, 64>}, {pipeline_mode = #tpu.pipeline_mode<synchronous>, transform_indices = @transform_11, window_bounds = array<i64: 64, 288>}, {pipeline_mode = #tpu.pipeline_mode<synchronous>, transform_indices = @transform_12, window_bounds = array<i64: 9, 1, 64>}, {pipeline_mode = #tpu.pipeline_mode<synchronous>, transform_indices = @transform_13, window_bounds = array<i64: 64, 64>}, {pipeline_mode = #tpu.pipeline_mode<synchronous>, transform_indices = @transform_14, window_bounds = array<i64: 64, 64>}, {pipeline_mode = #tpu.pipeline_mode<synchronous>, transform_indices = @transform_15, window_bounds = array<i64: 4, 64, 256>}, {pipeline_mode = #tpu.pipeline_mode<synchronous>, transform_indices = @transform_16, window_bounds = array<i64: 32, 144>}, {pipeline_mode = #tpu.pipeline_mode<synchronous>, transform_indices = @transform_17, window_bounds = array<i64: 9, 1, 256>}, {pipeline_mode = #tpu.pipeline_mode<synchronous>, transform_indices = @transform_18, window_bounds = array<i64: 32, 256>}, {pipeline_mode = #tpu.pipeline_mode<synchronous>, transform_indices = @transform_19, window_bounds = array<i64: 32, 256>}, {pipeline_mode = #tpu.pipeline_mode<synchronous>, transform_indices = @transform_20, window_bounds = array<i64: 4, 256, 1024>}, {pipeline_mode = #tpu.pipeline_mode<synchronous>, transform_indices = @transform_21, window_bounds = array<i64: 12, 72>}, {pipeline_mode = #tpu.pipeline_mode<synchronous>, transform_indices = @transform_22, window_bounds = array<i64: 9, 1, 1024>}, {transform_indices = @transform_23, window_bounds = array<i64: 1, 12, 1024>}]} {
    %c0 = arith.constant 0 : index
    %c0_0 = arith.constant 0 : index
    %c0_1 = arith.constant 0 : index
    %0 = vector.load %arg1[%c0, %c0_0, %c0_1] : memref<1x1x16xf32, #tpu.memory_space<vmem>>, vector<1x1x16xf32>
    %1 = vector.shape_cast %0 : vector<1x1x16xf32> to vector<1x16xf32>
    %2 = arith.truncf %1 : vector<1x16xf32> to vector<1x16xbf16>
    %c0_2 = arith.constant 0 : index
    %c0_3 = arith.constant 0 : index
    %3 = vector.load %arg2[%c0_2, %c0_3] : memref<16x1024xbf16, #tpu.memory_space<vmem>>, vector<16x1024xbf16>
    %cst = arith.constant dense<0.000000e+00> : vector<1x1024xf32>
    %4 = tpu.matmul %2, %3, %cst {dimension_numbers = #tpu.dot_dimension_numbers<[1], [0], [0], [1], [0, 0, 1, 1], [], []>} : vector<1x16xbf16>, vector<16x1024xbf16>, vector<1x1024xf32> -> vector<1x1024xf32>
    %cst_4 = arith.constant dense<0.000000e+00> : vector<1xf32>
    %5 = vector.multi_reduction <add>, %4, %cst_4 [1] : vector<1x1024xf32> to vector<1xf32>
    %6 = vector.shape_cast %5 : vector<1xf32> to vector<1x1xf32>
    %cst_5 = arith.constant 1.024000e+03 : f32
    %7 = vector.broadcast %cst_5 : f32 to vector<1x1xf32>
    %8 = arith.divf %6, %7 : vector<1x1xf32>
    %9 = vector.broadcast %8 : vector<1x1xf32> to vector<1x1024xf32>
    %10 = arith.subf %4, %9 : vector<1x1024xf32>
    %11 = arith.mulf %10, %10 : vector<1x1024xf32>
    %cst_6 = arith.constant dense<0.000000e+00> : vector<1xf32>
    %12 = vector.multi_reduction <add>, %11, %cst_6 [1] : vector<1x1024xf32> to vector<1xf32>
    %13 = vector.shape_cast %12 : vector<1xf32> to vector<1x1xf32>
    %cst_7 = arith.constant 1.024000e+03 : f32
    %14 = vector.broadcast %cst_7 : f32 to vector<1x1xf32>
    %15 = arith.divf %13, %14 : vector<1x1xf32>
    %16 = vector.broadcast %8 : vector<1x1xf32> to vector<1x1024xf32>
    %17 = arith.subf %4, %16 : vector<1x1024xf32>
    %cst_8 = arith.constant 9.99999974E-6 : f32
    %18 = vector.broadcast %cst_8 : f32 to vector<1x1xf32>
    %19 = arith.addf %15, %18 : vector<1x1xf32>
    %20 = math.rsqrt %19 : vector<1x1xf32>
    %21 = vector.broadcast %20 : vector<1x1xf32> to vector<1x1024xf32>
    %22 = arith.mulf %17, %21 : vector<1x1024xf32>
    %c0_9 = arith.constant 0 : index
    %c0_10 = arith.constant 0 : index
    %23 = vector.load %arg3[%c0_9, %c0_10] : memref<1x1024xf32, #tpu.memory_space<vmem>>, vector<1x1024xf32>
    %24 = arith.mulf %22, %23 : vector<1x1024xf32>
    %c0_11 = arith.constant 0 : index
    %c0_12 = arith.constant 0 : index
    %25 = vector.load %arg4[%c0_11, %c0_12] : memref<1x1024xf32, #tpu.memory_space<vmem>>, vector<1x1024xf32>
    %26 = arith.addf %24, %25 : vector<1x1024xf32>
    %cst_13 = arith.constant 0.000000e+00 : f32
    %27 = vector.broadcast %cst_13 : f32 to vector<1x1024xf32>
    %28 = arith.maximumf %26, %27 : vector<1x1024xf32>
    %29 = arith.truncf %28 : vector<1x1024xf32> to vector<1x1024xbf16>
    %c0_14 = arith.constant 0 : index
    %c0_15 = arith.constant 0 : index
    %30 = vector.load %arg5[%c0_14, %c0_15] : memref<64x1024xbf16, #tpu.memory_space<vmem>>, vector<64x1024xbf16>
    %31 = vector.broadcast %29 : vector<1x1024xbf16> to vector<64x1024xbf16>
    %32 = arith.mulf %30, %31 : vector<64x1024xbf16>
    %c0_16 = arith.constant 0 : index
    %c0_17 = arith.constant 0 : index
    %33 = vector.load %arg6[%c0_16, %c0_17] : memref<1024x16xbf16, #tpu.memory_space<vmem>>, vector<1024x16xbf16>
    %cst_18 = arith.constant dense<0.000000e+00> : vector<64x16xf32>
    %34 = tpu.matmul %32, %33, %cst_18 {dimension_numbers = #tpu.dot_dimension_numbers<[1], [0], [0], [1], [0, 0, 1, 1], [], []>} : vector<64x1024xbf16>, vector<1024x16xbf16>, vector<64x16xf32> -> vector<64x16xf32>
    %c5_i32 = arith.constant 5 : i32
    %35 = tpu.dynamic_rotate %34 by %c5_i32 dim 1 : vector<64x16xf32>, i32 -> vector<64x16xf32>
    %c0_19 = arith.constant 0 : index
    %c0_20 = arith.constant 0 : index
    %c0_21 = arith.constant 0 : index
    %36 = vector.load %arg8[%c0_19, %c0_20, %c0_21] : memref<9x1x16xf32, #tpu.memory_space<vmem>>, vector<1x1x16xf32>
    %37 = vector.shape_cast %36 : vector<1x1x16xf32> to vector<1x16xf32>
    %38 = vector.broadcast %37 : vector<1x16xf32> to vector<64x16xf32>
    %39 = arith.mulf %35, %38 : vector<64x16xf32>
    %c0_22 = arith.constant 0 : index
    %c0_23 = arith.constant 0 : index
    %40 = vector.load %arg25[%c0_22, %c0_23] : memref<576x1024xf32, #tpu.memory_space<vmem>>, vector<64x16xf32>
    tpu.vector_store %arg25[%c0_22, %c0_23], %39 {strides = array<i32>} : memref<576x1024xf32, #tpu.memory_space<vmem>>, vector<64x16xf32>,
    %c4_i32 = arith.constant 4 : i32
    %41 = tpu.dynamic_rotate %34 by %c4_i32 dim 1 : vector<64x16xf32>, i32 -> vector<64x16xf32>
    %c1 = arith.constant 1 : index
    %c0_24 = arith.constant 0 : index
    %c0_25 = arith.constant 0 : index
    %42 = vector.load %arg8[%c1, %c0_24, %c0_25] : memref<9x1x16xf32, #tpu.memory_space<vmem>>, vector<1x1x16xf32>
    %43 = vector.shape_cast %42 : vector<1x1x16xf32> to vector<1x16xf32>
    %44 = vector.broadcast %43 : vector<1x16xf32> to vector<64x16xf32>
    %45 = arith.mulf %41, %44 : vector<64x16xf32>
    %c64 = arith.constant 64 : index
    %c0_26 = arith.constant 0 : index
    %46 = vector.load %arg25[%c64, %c0_26] : memref<576x1024xf32, #tpu.memory_space<vmem>>, vector<64x16xf32>
    tpu.vector_store %arg25[%c64, %c0_26], %45 {strides = array<i32>} : memref<576x1024xf32, #tpu.memory_space<vmem>>, vector<64x16xf32>,
    %c3_i32 = arith.constant 3 : i32
    %47 = tpu.dynamic_rotate %34 by %c3_i32 dim 1 : vector<64x16xf32>, i32 -> vector<64x16xf32>
    %c2 = arith.constant 2 : index
    %c0_27 = arith.constant 0 : index
    %c0_28 = arith.constant 0 : index
    %48 = vector.load %arg8[%c2, %c0_27, %c0_28] : memref<9x1x16xf32, #tpu.memory_space<vmem>>, vector<1x1x16xf32>
    %49 = vector.shape_cast %48 : vector<1x1x16xf32> to vector<1x16xf32>
    %50 = vector.broadcast %49 : vector<1x16xf32> to vector<64x16xf32>
    %51 = arith.mulf %47, %50 : vector<64x16xf32>
    %c128 = arith.constant 128 : index
    %c0_29 = arith.constant 0 : index
    %52 = vector.load %arg25[%c128, %c0_29] : memref<576x1024xf32, #tpu.memory_space<vmem>>, vector<64x16xf32>
    tpu.vector_store %arg25[%c128, %c0_29], %51 {strides = array<i32>} : memref<576x1024xf32, #tpu.memory_space<vmem>>, vector<64x16xf32>,
    %c1_i32 = arith.constant 1 : i32
    %53 = tpu.dynamic_rotate %34 by %c1_i32 dim 1 : vector<64x16xf32>, i32 -> vector<64x16xf32>
    %c3 = arith.constant 3 : index
    %c0_30 = arith.constant 0 : index
    %c0_31 = arith.constant 0 : index
    %54 = vector.load %arg8[%c3, %c0_30, %c0_31] : memref<9x1x16xf32, #tpu.memory_space<vmem>>, vector<1x1x16xf32>
    %55 = vector.shape_cast %54 : vector<1x1x16xf32> to vector<1x16xf32>
    %56 = vector.broadcast %55 : vector<1x16xf32> to vector<64x16xf32>
    %57 = arith.mulf %53, %56 : vector<64x16xf32>
    %c192 = arith.constant 192 : index
    %c0_32 = arith.constant 0 : index
    %58 = vector.load %arg25[%c192, %c0_32] : memref<576x1024xf32, #tpu.memory_space<vmem>>, vector<64x16xf32>
    tpu.vector_store %arg25[%c192, %c0_32], %57 {strides = array<i32>} : memref<576x1024xf32, #tpu.memory_space<vmem>>, vector<64x16xf32>,
    %c256 = arith.constant 256 : index
    %c0_33 = arith.constant 0 : index
    %59 = vector.load %arg25[%c256, %c0_33] : memref<576x1024xf32, #tpu.memory_space<vmem>>, vector<64x16xf32>
    tpu.vector_store %arg25[%c256, %c0_33], %34 {strides = array<i32>} : memref<576x1024xf32, #tpu.memory_space<vmem>>, vector<64x16xf32>,
    %c15_i32 = arith.constant 15 : i32
    %60 = tpu.dynamic_rotate %34 by %c15_i32 dim 1 : vector<64x16xf32>, i32 -> vector<64x16xf32>
    %c5 = arith.constant 5 : index
    %c0_34 = arith.constant 0 : index
    %c0_35 = arith.constant 0 : index
    %61 = vector.load %arg8[%c5, %c0_34, %c0_35] : memref<9x1x16xf32, #tpu.memory_space<vmem>>, vector<1x1x16xf32>
    %62 = vector.shape_cast %61 : vector<1x1x16xf32> to vector<1x16xf32>
    %63 = vector.broadcast %62 : vector<1x16xf32> to vector<64x16xf32>
    %64 = arith.mulf %60, %63 : vector<64x16xf32>
    %c320 = arith.constant 320 : index
    %c0_36 = arith.constant 0 : index
    %65 = vector.load %arg25[%c320, %c0_36] : memref<576x1024xf32, #tpu.memory_space<vmem>>, vector<64x16xf32>
    tpu.vector_store %arg25[%c320, %c0_36], %64 {strides = array<i32>} : memref<576x1024xf32, #tpu.memory_space<vmem>>, vector<64x16xf32>,
    %c13_i32 = arith.constant 13 : i32
    %66 = tpu.dynamic_rotate %34 by %c13_i32 dim 1 : vector<64x16xf32>, i32 -> vector<64x16xf32>
    %c6 = arith.constant 6 : index
    %c0_37 = arith.constant 0 : index
    %c0_38 = arith.constant 0 : index
    %67 = vector.load %arg8[%c6, %c0_37, %c0_38] : memref<9x1x16xf32, #tpu.memory_space<vmem>>, vector<1x1x16xf32>
    %68 = vector.shape_cast %67 : vector<1x1x16xf32> to vector<1x16xf32>
    %69 = vector.broadcast %68 : vector<1x16xf32> to vector<64x16xf32>
    %70 = arith.mulf %66, %69 : vector<64x16xf32>
    %c384 = arith.constant 384 : index
    %c0_39 = arith.constant 0 : index
    %71 = vector.load %arg25[%c384, %c0_39] : memref<576x1024xf32, #tpu.memory_space<vmem>>, vector<64x16xf32>
    tpu.vector_store %arg25[%c384, %c0_39], %70 {strides = array<i32>} : memref<576x1024xf32, #tpu.memory_space<vmem>>, vector<64x16xf32>,
    %c12_i32 = arith.constant 12 : i32
    %72 = tpu.dynamic_rotate %34 by %c12_i32 dim 1 : vector<64x16xf32>, i32 -> vector<64x16xf32>
    %c7 = arith.constant 7 : index
    %c0_40 = arith.constant 0 : index
    %c0_41 = arith.constant 0 : index
    %73 = vector.load %arg8[%c7, %c0_40, %c0_41] : memref<9x1x16xf32, #tpu.memory_space<vmem>>, vector<1x1x16xf32>
    %74 = vector.shape_cast %73 : vector<1x1x16xf32> to vector<1x16xf32>
    %75 = vector.broadcast %74 : vector<1x16xf32> to vector<64x16xf32>
    %76 = arith.mulf %72, %75 : vector<64x16xf32>
    %c448 = arith.constant 448 : index
    %c0_42 = arith.constant 0 : index
    %77 = vector.load %arg25[%c448, %c0_42] : memref<576x1024xf32, #tpu.memory_space<vmem>>, vector<64x16xf32>
    tpu.vector_store %arg25[%c448, %c0_42], %76 {strides = array<i32>} : memref<576x1024xf32, #tpu.memory_space<vmem>>, vector<64x16xf32>,
    %c11_i32 = arith.constant 11 : i32
    %78 = tpu.dynamic_rotate %34 by %c11_i32 dim 1 : vector<64x16xf32>, i32 -> vector<64x16xf32>
    %c8 = arith.constant 8 : index
    %c0_43 = arith.constant 0 : index
    %c0_44 = arith.constant 0 : index
    %79 = vector.load %arg8[%c8, %c0_43, %c0_44] : memref<9x1x16xf32, #tpu.memory_space<vmem>>, vector<1x1x16xf32>
    %80 = vector.shape_cast %79 : vector<1x1x16xf32> to vector<1x16xf32>
    %81 = vector.broadcast %80 : vector<1x16xf32> to vector<64x16xf32>
    %82 = arith.mulf %78, %81 : vector<64x16xf32>
    %c512 = arith.constant 512 : index
    %c0_45 = arith.constant 0 : index
    %83 = vector.load %arg25[%c512, %c0_45] : memref<576x1024xf32, #tpu.memory_space<vmem>>, vector<64x16xf32>
    tpu.vector_store %arg25[%c512, %c0_45], %82 {strides = array<i32>} : memref<576x1024xf32, #tpu.memory_space<vmem>>, vector<64x16xf32>,
    %c0_46 = arith.constant 0 : index
    %c0_47 = arith.constant 0 : index
    %84 = vector.load %arg25[%c0_46, %c0_47] : memref<576x1024xf32, #tpu.memory_space<vmem>>, vector<576x16xf32>
    %85 = arith.truncf %84 : vector<576x16xf32> to vector<576x16xbf16>
    %c0_48 = arith.constant 0 : index
    %c0_49 = arith.constant 0 : index
    %86 = vector.load %arg7[%c0_48, %c0_49] : memref<128x576xbf16, #tpu.memory_space<vmem>>, vector<128x576xbf16>
    %cst_50 = arith.constant dense<0.000000e+00> : vector<128x16xf32>
    %87 = tpu.matmul %86, %85, %cst_50 {dimension_numbers = #tpu.dot_dimension_numbers<[1], [0], [0], [1], [0, 0, 1, 1], [], []>} : vector<128x576xbf16>, vector<576x16xbf16>, vector<128x16xf32> -> vector<128x16xf32>
    %cst_51 = arith.constant dense<0.000000e+00> : vector<128xf32>
    %88 = vector.multi_reduction <add>, %87, %cst_51 [1] : vector<128x16xf32> to vector<128xf32>
    %89 = vector.shape_cast %88 : vector<128xf32> to vector<128x1xf32>
    %cst_52 = arith.constant dense<0.000000e+00> : vector<1xf32>
    %90 = vector.multi_reduction <add>, %89, %cst_52 [0] : vector<128x1xf32> to vector<1xf32>
    %91 = vector.shape_cast %90 : vector<1xf32> to vector<1x1xf32>
    %cst_53 = arith.constant 2.048000e+03 : f32
    %92 = vector.broadcast %cst_53 : f32 to vector<1x1xf32>
    %93 = arith.divf %91, %92 : vector<1x1xf32>
    %94 = vector.broadcast %93 : vector<1x1xf32> to vector<128x16xf32>
    %95 = arith.subf %87, %94 : vector<128x16xf32>
    %96 = arith.mulf %95, %95 : vector<128x16xf32>
    %cst_54 = arith.constant dense<0.000000e+00> : vector<128xf32>
    %97 = vector.multi_reduction <add>, %96, %cst_54 [1] : vector<128x16xf32> to vector<128xf32>
    %98 = vector.shape_cast %97 : vector<128xf32> to vector<128x1xf32>
    %cst_55 = arith.constant dense<0.000000e+00> : vector<1xf32>
    %99 = vector.multi_reduction <add>, %98, %cst_55 [0] : vector<128x1xf32> to vector<1xf32>
    %100 = vector.shape_cast %99 : vector<1xf32> to vector<1x1xf32>
    %cst_56 = arith.constant 2.048000e+03 : f32
    %101 = vector.broadcast %cst_56 : f32 to vector<1x1xf32>
    %102 = arith.divf %100, %101 : vector<1x1xf32>
    %cst_57 = arith.constant 9.99999974E-6 : f32
    %103 = vector.broadcast %cst_57 : f32 to vector<1x1xf32>
    %104 = arith.addf %102, %103 : vector<1x1xf32>
    %105 = math.rsqrt %104 : vector<1x1xf32>
    %106 = vector.broadcast %105 : vector<1x1xf32> to vector<128x16xf32>
    %107 = arith.mulf %95, %106 : vector<128x16xf32>
    %c0_58 = arith.constant 0 : index
    %c0_59 = arith.constant 0 : index
    %108 = vector.load %arg9[%c0_58, %c0_59] : memref<128x16xf32, #tpu.memory_space<vmem>>, vector<128x16xf32>
    %109 = arith.mulf %107, %108 : vector<128x16xf32>
    %c0_60 = arith.constant 0 : index
    %c0_61 = arith.constant 0 : index
    %110 = vector.load %arg10[%c0_60, %c0_61] : memref<128x16xf32, #tpu.memory_space<vmem>>, vector<128x16xf32>
    %111 = arith.addf %109, %110 : vector<128x16xf32>
    %cst_62 = arith.constant 0.000000e+00 : f32
    %112 = vector.broadcast %cst_62 : f32 to vector<128x16xf32>
    %113 = arith.maximumf %111, %112 : vector<128x16xf32>
    %114 = vector.extract_strided_slice %113 {offsets = [0, 0], sizes = [32, 16], strides = [1, 1]} : vector<128x16xf32> to vector<32x16xf32>
    %115 = arith.truncf %114 : vector<32x16xf32> to vector<32x16xbf16>
    %c0_63 = arith.constant 0 : index
    %c0_64 = arith.constant 0 : index
    %c0_65 = arith.constant 0 : index
    %116 = vector.load %arg11[%c0_63, %c0_64, %c0_65] : memref<4x16x64xbf16, #tpu.memory_space<vmem>>, vector<1x16x64xbf16>
    %117 = vector.shape_cast %116 : vector<1x16x64xbf16> to vector<16x64xbf16>
    %cst_66 = arith.constant dense<0.000000e+00> : vector<32x64xf32>
    %118 = tpu.matmul %115, %117, %cst_66 {dimension_numbers = #tpu.dot_dimension_numbers<[1], [0], [0], [1], [0, 0, 1, 1], [], []>} : vector<32x16xbf16>, vector<16x64xbf16>, vector<32x64xf32> -> vector<32x64xf32>
    %119 = vector.extract_strided_slice %113 {offsets = [32, 0], sizes = [32, 16], strides = [1, 1]} : vector<128x16xf32> to vector<32x16xf32>
    %120 = arith.truncf %119 : vector<32x16xf32> to vector<32x16xbf16>
    %c1_67 = arith.constant 1 : index
    %c0_68 = arith.constant 0 : index
    %c0_69 = arith.constant 0 : index
    %121 = vector.load %arg11[%c1_67, %c0_68, %c0_69] : memref<4x16x64xbf16, #tpu.memory_space<vmem>>, vector<1x16x64xbf16>
    %122 = vector.shape_cast %121 : vector<1x16x64xbf16> to vector<16x64xbf16>
    %cst_70 = arith.constant dense<0.000000e+00> : vector<32x64xf32>
    %123 = tpu.matmul %120, %122, %cst_70 {dimension_numbers = #tpu.dot_dimension_numbers<[1], [0], [0], [1], [0, 0, 1, 1], [], []>} : vector<32x16xbf16>, vector<16x64xbf16>, vector<32x64xf32> -> vector<32x64xf32>
    %124 = arith.addf %118, %123 : vector<32x64xf32>
    %125 = vector.extract_strided_slice %113 {offsets = [64, 0], sizes = [32, 16], strides = [1, 1]} : vector<128x16xf32> to vector<32x16xf32>
    %126 = arith.truncf %125 : vector<32x16xf32> to vector<32x16xbf16>
    %c2_71 = arith.constant 2 : index
    %c0_72 = arith.constant 0 : index
    %c0_73 = arith.constant 0 : index
    %127 = vector.load %arg11[%c2_71, %c0_72, %c0_73] : memref<4x16x64xbf16, #tpu.memory_space<vmem>>, vector<1x16x64xbf16>
    %128 = vector.shape_cast %127 : vector<1x16x64xbf16> to vector<16x64xbf16>
    %cst_74 = arith.constant dense<0.000000e+00> : vector<32x64xf32>
    %129 = tpu.matmul %126, %128, %cst_74 {dimension_numbers = #tpu.dot_dimension_numbers<[1], [0], [0], [1], [0, 0, 1, 1], [], []>} : vector<32x16xbf16>, vector<16x64xbf16>, vector<32x64xf32> -> vector<32x64xf32>
    %130 = arith.addf %124, %129 : vector<32x64xf32>
    %131 = vector.extract_strided_slice %113 {offsets = [96, 0], sizes = [32, 16], strides = [1, 1]} : vector<128x16xf32> to vector<32x16xf32>
    %132 = arith.truncf %131 : vector<32x16xf32> to vector<32x16xbf16>
    %c3_75 = arith.constant 3 : index
    %c0_76 = arith.constant 0 : index
    %c0_77 = arith.constant 0 : index
    %133 = vector.load %arg11[%c3_75, %c0_76, %c0_77] : memref<4x16x64xbf16, #tpu.memory_space<vmem>>, vector<1x16x64xbf16>
    %134 = vector.shape_cast %133 : vector<1x16x64xbf16> to vector<16x64xbf16>
    %cst_78 = arith.constant dense<0.000000e+00> : vector<32x64xf32>
    %135 = tpu.matmul %132, %134, %cst_78 {dimension_numbers = #tpu.dot_dimension_numbers<[1], [0], [0], [1], [0, 0, 1, 1], [], []>} : vector<32x16xbf16>, vector<16x64xbf16>, vector<32x64xf32> -> vector<32x64xf32>
    %136 = arith.addf %130, %135 : vector<32x64xf32>
    %c9_i32 = arith.constant 9 : i32
    %137 = tpu.dynamic_rotate %136 by %c9_i32 dim 1 : vector<32x64xf32>, i32 -> vector<32x64xf32>
    %c0_79 = arith.constant 0 : index
    %c0_80 = arith.constant 0 : index
    %c0_81 = arith.constant 0 : index
    %138 = vector.load %arg13[%c0_79, %c0_80, %c0_81] : memref<9x1x64xf32, #tpu.memory_space<vmem>>, vector<1x1x64xf32>
    %139 = vector.shape_cast %138 : vector<1x1x64xf32> to vector<1x64xf32>
    %140 = vector.broadcast %139 : vector<1x64xf32> to vector<32x64xf32>
    %141 = arith.mulf %137, %140 : vector<32x64xf32>
    %c0_82 = arith.constant 0 : index
    %c0_83 = arith.constant 0 : index
    %142 = vector.load %arg25[%c0_82, %c0_83] : memref<576x1024xf32, #tpu.memory_space<vmem>>, vector<32x64xf32>
    tpu.vector_store %arg25[%c0_82, %c0_83], %141 {strides = array<i32>} : memref<576x1024xf32, #tpu.memory_space<vmem>>, vector<32x64xf32>,
    %c8_i32 = arith.constant 8 : i32
    %143 = tpu.dynamic_rotate %136 by %c8_i32 dim 1 : vector<32x64xf32>, i32 -> vector<32x64xf32>
    %c1_84 = arith.constant 1 : index
    %c0_85 = arith.constant 0 : index
    %c0_86 = arith.constant 0 : index
    %144 = vector.load %arg13[%c1_84, %c0_85, %c0_86] : memref<9x1x64xf32, #tpu.memory_space<vmem>>, vector<1x1x64xf32>
    %145 = vector.shape_cast %144 : vector<1x1x64xf32> to vector<1x64xf32>
    %146 = vector.broadcast %145 : vector<1x64xf32> to vector<32x64xf32>
    %147 = arith.mulf %143, %146 : vector<32x64xf32>
    %c32 = arith.constant 32 : index
    %c0_87 = arith.constant 0 : index
    %148 = vector.load %arg25[%c32, %c0_87] : memref<576x1024xf32, #tpu.memory_space<vmem>>, vector<32x64xf32>
    tpu.vector_store %arg25[%c32, %c0_87], %147 {strides = array<i32>} : memref<576x1024xf32, #tpu.memory_space<vmem>>, vector<32x64xf32>,
    %c7_i32 = arith.constant 7 : i32
    %149 = tpu.dynamic_rotate %136 by %c7_i32 dim 1 : vector<32x64xf32>, i32 -> vector<32x64xf32>
    %c2_88 = arith.constant 2 : index
    %c0_89 = arith.constant 0 : index
    %c0_90 = arith.constant 0 : index
    %150 = vector.load %arg13[%c2_88, %c0_89, %c0_90] : memref<9x1x64xf32, #tpu.memory_space<vmem>>, vector<1x1x64xf32>
    %151 = vector.shape_cast %150 : vector<1x1x64xf32> to vector<1x64xf32>
    %152 = vector.broadcast %151 : vector<1x64xf32> to vector<32x64xf32>
    %153 = arith.mulf %149, %152 : vector<32x64xf32>
    %c64_91 = arith.constant 64 : index
    %c0_92 = arith.constant 0 : index
    %154 = vector.load %arg25[%c64_91, %c0_92] : memref<576x1024xf32, #tpu.memory_space<vmem>>, vector<32x64xf32>
    tpu.vector_store %arg25[%c64_91, %c0_92], %153 {strides = array<i32>} : memref<576x1024xf32, #tpu.memory_space<vmem>>, vector<32x64xf32>,
    %c1_i32_93 = arith.constant 1 : i32
    %155 = tpu.dynamic_rotate %136 by %c1_i32_93 dim 1 : vector<32x64xf32>, i32 -> vector<32x64xf32>
    %c3_94 = arith.constant 3 : index
    %c0_95 = arith.constant 0 : index
    %c0_96 = arith.constant 0 : index
    %156 = vector.load %arg13[%c3_94, %c0_95, %c0_96] : memref<9x1x64xf32, #tpu.memory_space<vmem>>, vector<1x1x64xf32>
    %157 = vector.shape_cast %156 : vector<1x1x64xf32> to vector<1x64xf32>
    %158 = vector.broadcast %157 : vector<1x64xf32> to vector<32x64xf32>
    %159 = arith.mulf %155, %158 : vector<32x64xf32>
    %c96 = arith.constant 96 : index
    %c0_97 = arith.constant 0 : index
    %160 = vector.load %arg25[%c96, %c0_97] : memref<576x1024xf32, #tpu.memory_space<vmem>>, vector<32x64xf32>
    tpu.vector_store %arg25[%c96, %c0_97], %159 {strides = array<i32>} : memref<576x1024xf32, #tpu.memory_space<vmem>>, vector<32x64xf32>,
    %c128_98 = arith.constant 128 : index
    %c0_99 = arith.constant 0 : index
    %161 = vector.load %arg25[%c128_98, %c0_99] : memref<576x1024xf32, #tpu.memory_space<vmem>>, vector<32x64xf32>
    tpu.vector_store %arg25[%c128_98, %c0_99], %136 {strides = array<i32>} : memref<576x1024xf32, #tpu.memory_space<vmem>>, vector<32x64xf32>,
    %c63_i32 = arith.constant 63 : i32
    %162 = tpu.dynamic_rotate %136 by %c63_i32 dim 1 : vector<32x64xf32>, i32 -> vector<32x64xf32>
    %c5_100 = arith.constant 5 : index
    %c0_101 = arith.constant 0 : index
    %c0_102 = arith.constant 0 : index
    %163 = vector.load %arg13[%c5_100, %c0_101, %c0_102] : memref<9x1x64xf32, #tpu.memory_space<vmem>>, vector<1x1x64xf32>
    %164 = vector.shape_cast %163 : vector<1x1x64xf32> to vector<1x64xf32>
    %165 = vector.broadcast %164 : vector<1x64xf32> to vector<32x64xf32>
    %166 = arith.mulf %162, %165 : vector<32x64xf32>
    %c160 = arith.constant 160 : index
    %c0_103 = arith.constant 0 : index
    %167 = vector.load %arg25[%c160, %c0_103] : memref<576x1024xf32, #tpu.memory_space<vmem>>, vector<32x64xf32>
    tpu.vector_store %arg25[%c160, %c0_103], %166 {strides = array<i32>} : memref<576x1024xf32, #tpu.memory_space<vmem>>, vector<32x64xf32>,
    %c57_i32 = arith.constant 57 : i32
    %168 = tpu.dynamic_rotate %136 by %c57_i32 dim 1 : vector<32x64xf32>, i32 -> vector<32x64xf32>
    %c6_104 = arith.constant 6 : index
    %c0_105 = arith.constant 0 : index
    %c0_106 = arith.constant 0 : index
    %169 = vector.load %arg13[%c6_104, %c0_105, %c0_106] : memref<9x1x64xf32, #tpu.memory_space<vmem>>, vector<1x1x64xf32>
    %170 = vector.shape_cast %169 : vector<1x1x64xf32> to vector<1x64xf32>
    %171 = vector.broadcast %170 : vector<1x64xf32> to vector<32x64xf32>
    %172 = arith.mulf %168, %171 : vector<32x64xf32>
    %c192_107 = arith.constant 192 : index
    %c0_108 = arith.constant 0 : index
    %173 = vector.load %arg25[%c192_107, %c0_108] : memref<576x1024xf32, #tpu.memory_space<vmem>>, vector<32x64xf32>
    tpu.vector_store %arg25[%c192_107, %c0_108], %172 {strides = array<i32>} : memref<576x1024xf32, #tpu.memory_space<vmem>>, vector<32x64xf32>,
    %c56_i32 = arith.constant 56 : i32
    %174 = tpu.dynamic_rotate %136 by %c56_i32 dim 1 : vector<32x64xf32>, i32 -> vector<32x64xf32>
    %c7_109 = arith.constant 7 : index
    %c0_110 = arith.constant 0 : index
    %c0_111 = arith.constant 0 : index
    %175 = vector.load %arg13[%c7_109, %c0_110, %c0_111] : memref<9x1x64xf32, #tpu.memory_space<vmem>>, vector<1x1x64xf32>
    %176 = vector.shape_cast %175 : vector<1x1x64xf32> to vector<1x64xf32>
    %177 = vector.broadcast %176 : vector<1x64xf32> to vector<32x64xf32>
    %178 = arith.mulf %174, %177 : vector<32x64xf32>
    %c224 = arith.constant 224 : index
    %c0_112 = arith.constant 0 : index
    %179 = vector.load %arg25[%c224, %c0_112] : memref<576x1024xf32, #tpu.memory_space<vmem>>, vector<32x64xf32>
    tpu.vector_store %arg25[%c224, %c0_112], %178 {strides = array<i32>} : memref<576x1024xf32, #tpu.memory_space<vmem>>, vector<32x64xf32>,
    %c55_i32 = arith.constant 55 : i32
    %180 = tpu.dynamic_rotate %136 by %c55_i32 dim 1 : vector<32x64xf32>, i32 -> vector<32x64xf32>
    %c8_113 = arith.constant 8 : index
    %c0_114 = arith.constant 0 : index
    %c0_115 = arith.constant 0 : index
    %181 = vector.load %arg13[%c8_113, %c0_114, %c0_115] : memref<9x1x64xf32, #tpu.memory_space<vmem>>, vector<1x1x64xf32>
    %182 = vector.shape_cast %181 : vector<1x1x64xf32> to vector<1x64xf32>
    %183 = vector.broadcast %182 : vector<1x64xf32> to vector<32x64xf32>
    %184 = arith.mulf %180, %183 : vector<32x64xf32>
    %c256_116 = arith.constant 256 : index
    %c0_117 = arith.constant 0 : index
    %185 = vector.load %arg25[%c256_116, %c0_117] : memref<576x1024xf32, #tpu.memory_space<vmem>>, vector<32x64xf32>
    tpu.vector_store %arg25[%c256_116, %c0_117], %184 {strides = array<i32>} : memref<576x1024xf32, #tpu.memory_space<vmem>>, vector<32x64xf32>,
    %c0_118 = arith.constant 0 : index
    %c0_119 = arith.constant 0 : index
    %186 = vector.load %arg25[%c0_118, %c0_119] : memref<576x1024xf32, #tpu.memory_space<vmem>>, vector<288x64xf32>
    %187 = arith.truncf %186 : vector<288x64xf32> to vector<288x64xbf16>
    %c0_120 = arith.constant 0 : index
    %c0_121 = arith.constant 0 : index
    %188 = vector.load %arg12[%c0_120, %c0_121] : memref<64x288xbf16, #tpu.memory_space<vmem>>, vector<64x288xbf16>
    %cst_122 = arith.constant dense<0.000000e+00> : vector<64x64xf32>
    %189 = tpu.matmul %188, %187, %cst_122 {dimension_numbers = #tpu.dot_dimension_numbers<[1], [0], [0], [1], [0, 0, 1, 1], [], []>} : vector<64x288xbf16>, vector<288x64xbf16>, vector<64x64xf32> -> vector<64x64xf32>
    %cst_123 = arith.constant dense<0.000000e+00> : vector<64xf32>
    %190 = vector.multi_reduction <add>, %189, %cst_123 [1] : vector<64x64xf32> to vector<64xf32>
    %191 = vector.shape_cast %190 : vector<64xf32> to vector<64x1xf32>
    %cst_124 = arith.constant dense<0.000000e+00> : vector<1xf32>
    %192 = vector.multi_reduction <add>, %191, %cst_124 [0] : vector<64x1xf32> to vector<1xf32>
    %193 = vector.shape_cast %192 : vector<1xf32> to vector<1x1xf32>
    %cst_125 = arith.constant 4.096000e+03 : f32
    %194 = vector.broadcast %cst_125 : f32 to vector<1x1xf32>
    %195 = arith.divf %193, %194 : vector<1x1xf32>
    %196 = vector.broadcast %195 : vector<1x1xf32> to vector<64x64xf32>
    %197 = arith.subf %189, %196 : vector<64x64xf32>
    %198 = arith.mulf %197, %197 : vector<64x64xf32>
    %cst_126 = arith.constant dense<0.000000e+00> : vector<64xf32>
    %199 = vector.multi_reduction <add>, %198, %cst_126 [1] : vector<64x64xf32> to vector<64xf32>
    %200 = vector.shape_cast %199 : vector<64xf32> to vector<64x1xf32>
    %cst_127 = arith.constant dense<0.000000e+00> : vector<1xf32>
    %201 = vector.multi_reduction <add>, %200, %cst_127 [0] : vector<64x1xf32> to vector<1xf32>
    %202 = vector.shape_cast %201 : vector<1xf32> to vector<1x1xf32>
    %cst_128 = arith.constant 4.096000e+03 : f32
    %203 = vector.broadcast %cst_128 : f32 to vector<1x1xf32>
    %204 = arith.divf %202, %203 : vector<1x1xf32>
    %cst_129 = arith.constant 9.99999974E-6 : f32
    %205 = vector.broadcast %cst_129 : f32 to vector<1x1xf32>
    %206 = arith.addf %204, %205 : vector<1x1xf32>
    %207 = math.rsqrt %206 : vector<1x1xf32>
    %208 = vector.broadcast %207 : vector<1x1xf32> to vector<64x64xf32>
    %209 = arith.mulf %197, %208 : vector<64x64xf32>
    %c0_130 = arith.constant 0 : index
    %c0_131 = arith.constant 0 : index
    %210 = vector.load %arg14[%c0_130, %c0_131] : memref<64x64xf32, #tpu.memory_space<vmem>>, vector<64x64xf32>
    %211 = arith.mulf %209, %210 : vector<64x64xf32>
    %c0_132 = arith.constant 0 : index
    %c0_133 = arith.constant 0 : index
    %212 = vector.load %arg15[%c0_132, %c0_133] : memref<64x64xf32, #tpu.memory_space<vmem>>, vector<64x64xf32>
    %213 = arith.addf %211, %212 : vector<64x64xf32>
    %cst_134 = arith.constant 0.000000e+00 : f32
    %214 = vector.broadcast %cst_134 : f32 to vector<64x64xf32>
    %215 = arith.maximumf %213, %214 : vector<64x64xf32>
    %216 = vector.extract_strided_slice %215 {offsets = [0, 0], sizes = [16, 64], strides = [1, 1]} : vector<64x64xf32> to vector<16x64xf32>
    %217 = arith.truncf %216 : vector<16x64xf32> to vector<16x64xbf16>
    %c0_135 = arith.constant 0 : index
    %c0_136 = arith.constant 0 : index
    %c0_137 = arith.constant 0 : index
    %218 = vector.load %arg16[%c0_135, %c0_136, %c0_137] : memref<4x64x256xbf16, #tpu.memory_space<vmem>>, vector<1x64x256xbf16>
    %219 = vector.shape_cast %218 : vector<1x64x256xbf16> to vector<64x256xbf16>
    %cst_138 = arith.constant dense<0.000000e+00> : vector<16x256xf32>
    %220 = tpu.matmul %217, %219, %cst_138 {dimension_numbers = #tpu.dot_dimension_numbers<[1], [0], [0], [1], [0, 0, 1, 1], [], []>} : vector<16x64xbf16>, vector<64x256xbf16>, vector<16x256xf32> -> vector<16x256xf32>
    %221 = vector.extract_strided_slice %215 {offsets = [16, 0], sizes = [16, 64], strides = [1, 1]} : vector<64x64xf32> to vector<16x64xf32>
    %222 = arith.truncf %221 : vector<16x64xf32> to vector<16x64xbf16>
    %c1_139 = arith.constant 1 : index
    %c0_140 = arith.constant 0 : index
    %c0_141 = arith.constant 0 : index
    %223 = vector.load %arg16[%c1_139, %c0_140, %c0_141] : memref<4x64x256xbf16, #tpu.memory_space<vmem>>, vector<1x64x256xbf16>
    %224 = vector.shape_cast %223 : vector<1x64x256xbf16> to vector<64x256xbf16>
    %cst_142 = arith.constant dense<0.000000e+00> : vector<16x256xf32>
    %225 = tpu.matmul %222, %224, %cst_142 {dimension_numbers = #tpu.dot_dimension_numbers<[1], [0], [0], [1], [0, 0, 1, 1], [], []>} : vector<16x64xbf16>, vector<64x256xbf16>, vector<16x256xf32> -> vector<16x256xf32>
    %226 = arith.addf %220, %225 : vector<16x256xf32>
    %227 = vector.extract_strided_slice %215 {offsets = [32, 0], sizes = [16, 64], strides = [1, 1]} : vector<64x64xf32> to vector<16x64xf32>
    %228 = arith.truncf %227 : vector<16x64xf32> to vector<16x64xbf16>
    %c2_143 = arith.constant 2 : index
    %c0_144 = arith.constant 0 : index
    %c0_145 = arith.constant 0 : index
    %229 = vector.load %arg16[%c2_143, %c0_144, %c0_145] : memref<4x64x256xbf16, #tpu.memory_space<vmem>>, vector<1x64x256xbf16>
    %230 = vector.shape_cast %229 : vector<1x64x256xbf16> to vector<64x256xbf16>
    %cst_146 = arith.constant dense<0.000000e+00> : vector<16x256xf32>
    %231 = tpu.matmul %228, %230, %cst_146 {dimension_numbers = #tpu.dot_dimension_numbers<[1], [0], [0], [1], [0, 0, 1, 1], [], []>} : vector<16x64xbf16>, vector<64x256xbf16>, vector<16x256xf32> -> vector<16x256xf32>
    %232 = arith.addf %226, %231 : vector<16x256xf32>
    %233 = vector.extract_strided_slice %215 {offsets = [48, 0], sizes = [16, 64], strides = [1, 1]} : vector<64x64xf32> to vector<16x64xf32>
    %234 = arith.truncf %233 : vector<16x64xf32> to vector<16x64xbf16>
    %c3_147 = arith.constant 3 : index
    %c0_148 = arith.constant 0 : index
    %c0_149 = arith.constant 0 : index
    %235 = vector.load %arg16[%c3_147, %c0_148, %c0_149] : memref<4x64x256xbf16, #tpu.memory_space<vmem>>, vector<1x64x256xbf16>
    %236 = vector.shape_cast %235 : vector<1x64x256xbf16> to vector<64x256xbf16>
    %cst_150 = arith.constant dense<0.000000e+00> : vector<16x256xf32>
    %237 = tpu.matmul %234, %236, %cst_150 {dimension_numbers = #tpu.dot_dimension_numbers<[1], [0], [0], [1], [0, 0, 1, 1], [], []>} : vector<16x64xbf16>, vector<64x256xbf16>, vector<16x256xf32> -> vector<16x256xf32>
    %238 = arith.addf %232, %237 : vector<16x256xf32>
    %c17_i32 = arith.constant 17 : i32
    %239 = tpu.dynamic_rotate %238 by %c17_i32 dim 1 : vector<16x256xf32>, i32 -> vector<16x256xf32>
    %c0_151 = arith.constant 0 : index
    %c0_152 = arith.constant 0 : index
    %c0_153 = arith.constant 0 : index
    %240 = vector.load %arg18[%c0_151, %c0_152, %c0_153] : memref<9x1x256xf32, #tpu.memory_space<vmem>>, vector<1x1x256xf32>
    %241 = vector.shape_cast %240 : vector<1x1x256xf32> to vector<1x256xf32>
    %242 = vector.broadcast %241 : vector<1x256xf32> to vector<16x256xf32>
    %243 = arith.mulf %239, %242 : vector<16x256xf32>
    %c0_154 = arith.constant 0 : index
    %c0_155 = arith.constant 0 : index
    %244 = vector.load %arg25[%c0_154, %c0_155] : memref<576x1024xf32, #tpu.memory_space<vmem>>, vector<16x256xf32>
    tpu.vector_store %arg25[%c0_154, %c0_155], %243 {strides = array<i32>} : memref<576x1024xf32, #tpu.memory_space<vmem>>, vector<16x256xf32>,
    %c16_i32 = arith.constant 16 : i32
    %245 = tpu.dynamic_rotate %238 by %c16_i32 dim 1 : vector<16x256xf32>, i32 -> vector<16x256xf32>
    %c1_156 = arith.constant 1 : index
    %c0_157 = arith.constant 0 : index
    %c0_158 = arith.constant 0 : index
    %246 = vector.load %arg18[%c1_156, %c0_157, %c0_158] : memref<9x1x256xf32, #tpu.memory_space<vmem>>, vector<1x1x256xf32>
    %247 = vector.shape_cast %246 : vector<1x1x256xf32> to vector<1x256xf32>
    %248 = vector.broadcast %247 : vector<1x256xf32> to vector<16x256xf32>
    %249 = arith.mulf %245, %248 : vector<16x256xf32>
    %c16 = arith.constant 16 : index
    %c0_159 = arith.constant 0 : index
    %250 = vector.load %arg25[%c16, %c0_159] : memref<576x1024xf32, #tpu.memory_space<vmem>>, vector<16x256xf32>
    tpu.vector_store %arg25[%c16, %c0_159], %249 {strides = array<i32>} : memref<576x1024xf32, #tpu.memory_space<vmem>>, vector<16x256xf32>,
    %c15_i32_160 = arith.constant 15 : i32
    %251 = tpu.dynamic_rotate %238 by %c15_i32_160 dim 1 : vector<16x256xf32>, i32 -> vector<16x256xf32>
    %c2_161 = arith.constant 2 : index
    %c0_162 = arith.constant 0 : index
    %c0_163 = arith.constant 0 : index
    %252 = vector.load %arg18[%c2_161, %c0_162, %c0_163] : memref<9x1x256xf32, #tpu.memory_space<vmem>>, vector<1x1x256xf32>
    %253 = vector.shape_cast %252 : vector<1x1x256xf32> to vector<1x256xf32>
    %254 = vector.broadcast %253 : vector<1x256xf32> to vector<16x256xf32>
    %255 = arith.mulf %251, %254 : vector<16x256xf32>
    %c32_164 = arith.constant 32 : index
    %c0_165 = arith.constant 0 : index
    %256 = vector.load %arg25[%c32_164, %c0_165] : memref<576x1024xf32, #tpu.memory_space<vmem>>, vector<16x256xf32>
    tpu.vector_store %arg25[%c32_164, %c0_165], %255 {strides = array<i32>} : memref<576x1024xf32, #tpu.memory_space<vmem>>, vector<16x256xf32>,
    %c1_i32_166 = arith.constant 1 : i32
    %257 = tpu.dynamic_rotate %238 by %c1_i32_166 dim 1 : vector<16x256xf32>, i32 -> vector<16x256xf32>
    %c3_167 = arith.constant 3 : index
    %c0_168 = arith.constant 0 : index
    %c0_169 = arith.constant 0 : index
    %258 = vector.load %arg18[%c3_167, %c0_168, %c0_169] : memref<9x1x256xf32, #tpu.memory_space<vmem>>, vector<1x1x256xf32>
    %259 = vector.shape_cast %258 : vector<1x1x256xf32> to vector<1x256xf32>
    %260 = vector.broadcast %259 : vector<1x256xf32> to vector<16x256xf32>
    %261 = arith.mulf %257, %260 : vector<16x256xf32>
    %c48 = arith.constant 48 : index
    %c0_170 = arith.constant 0 : index
    %262 = vector.load %arg25[%c48, %c0_170] : memref<576x1024xf32, #tpu.memory_space<vmem>>, vector<16x256xf32>
    tpu.vector_store %arg25[%c48, %c0_170], %261 {strides = array<i32>} : memref<576x1024xf32, #tpu.memory_space<vmem>>, vector<16x256xf32>,
    %c64_171 = arith.constant 64 : index
    %c0_172 = arith.constant 0 : index
    %263 = vector.load %arg25[%c64_171, %c0_172] : memref<576x1024xf32, #tpu.memory_space<vmem>>, vector<16x256xf32>
    tpu.vector_store %arg25[%c64_171, %c0_172], %238 {strides = array<i32>} : memref<576x1024xf32, #tpu.memory_space<vmem>>, vector<16x256xf32>,
    %c255_i32 = arith.constant 255 : i32
    %264 = tpu.dynamic_rotate %238 by %c255_i32 dim 1 : vector<16x256xf32>, i32 -> vector<16x256xf32>
    %c5_173 = arith.constant 5 : index
    %c0_174 = arith.constant 0 : index
    %c0_175 = arith.constant 0 : index
    %265 = vector.load %arg18[%c5_173, %c0_174, %c0_175] : memref<9x1x256xf32, #tpu.memory_space<vmem>>, vector<1x1x256xf32>
    %266 = vector.shape_cast %265 : vector<1x1x256xf32> to vector<1x256xf32>
    %267 = vector.broadcast %266 : vector<1x256xf32> to vector<16x256xf32>
    %268 = arith.mulf %264, %267 : vector<16x256xf32>
    %c80 = arith.constant 80 : index
    %c0_176 = arith.constant 0 : index
    %269 = vector.load %arg25[%c80, %c0_176] : memref<576x1024xf32, #tpu.memory_space<vmem>>, vector<16x256xf32>
    tpu.vector_store %arg25[%c80, %c0_176], %268 {strides = array<i32>} : memref<576x1024xf32, #tpu.memory_space<vmem>>, vector<16x256xf32>,
    %c241_i32 = arith.constant 241 : i32
    %270 = tpu.dynamic_rotate %238 by %c241_i32 dim 1 : vector<16x256xf32>, i32 -> vector<16x256xf32>
    %c6_177 = arith.constant 6 : index
    %c0_178 = arith.constant 0 : index
    %c0_179 = arith.constant 0 : index
    %271 = vector.load %arg18[%c6_177, %c0_178, %c0_179] : memref<9x1x256xf32, #tpu.memory_space<vmem>>, vector<1x1x256xf32>
    %272 = vector.shape_cast %271 : vector<1x1x256xf32> to vector<1x256xf32>
    %273 = vector.broadcast %272 : vector<1x256xf32> to vector<16x256xf32>
    %274 = arith.mulf %270, %273 : vector<16x256xf32>
    %c96_180 = arith.constant 96 : index
    %c0_181 = arith.constant 0 : index
    %275 = vector.load %arg25[%c96_180, %c0_181] : memref<576x1024xf32, #tpu.memory_space<vmem>>, vector<16x256xf32>
    tpu.vector_store %arg25[%c96_180, %c0_181], %274 {strides = array<i32>} : memref<576x1024xf32, #tpu.memory_space<vmem>>, vector<16x256xf32>,
    %c240_i32 = arith.constant 240 : i32
    %276 = tpu.dynamic_rotate %238 by %c240_i32 dim 1 : vector<16x256xf32>, i32 -> vector<16x256xf32>
    %c7_182 = arith.constant 7 : index
    %c0_183 = arith.constant 0 : index
    %c0_184 = arith.constant 0 : index
    %277 = vector.load %arg18[%c7_182, %c0_183, %c0_184] : memref<9x1x256xf32, #tpu.memory_space<vmem>>, vector<1x1x256xf32>
    %278 = vector.shape_cast %277 : vector<1x1x256xf32> to vector<1x256xf32>
    %279 = vector.broadcast %278 : vector<1x256xf32> to vector<16x256xf32>
    %280 = arith.mulf %276, %279 : vector<16x256xf32>
    %c112 = arith.constant 112 : index
    %c0_185 = arith.constant 0 : index
    %281 = vector.load %arg25[%c112, %c0_185] : memref<576x1024xf32, #tpu.memory_space<vmem>>, vector<16x256xf32>
    tpu.vector_store %arg25[%c112, %c0_185], %280 {strides = array<i32>} : memref<576x1024xf32, #tpu.memory_space<vmem>>, vector<16x256xf32>,
    %c239_i32 = arith.constant 239 : i32
    %282 = tpu.dynamic_rotate %238 by %c239_i32 dim 1 : vector<16x256xf32>, i32 -> vector<16x256xf32>
    %c8_186 = arith.constant 8 : index
    %c0_187 = arith.constant 0 : index
    %c0_188 = arith.constant 0 : index
    %283 = vector.load %arg18[%c8_186, %c0_187, %c0_188] : memref<9x1x256xf32, #tpu.memory_space<vmem>>, vector<1x1x256xf32>
    %284 = vector.shape_cast %283 : vector<1x1x256xf32> to vector<1x256xf32>
    %285 = vector.broadcast %284 : vector<1x256xf32> to vector<16x256xf32>
    %286 = arith.mulf %282, %285 : vector<16x256xf32>
    %c128_189 = arith.constant 128 : index
    %c0_190 = arith.constant 0 : index
    %287 = vector.load %arg25[%c128_189, %c0_190] : memref<576x1024xf32, #tpu.memory_space<vmem>>, vector<16x256xf32>
    tpu.vector_store %arg25[%c128_189, %c0_190], %286 {strides = array<i32>} : memref<576x1024xf32, #tpu.memory_space<vmem>>, vector<16x256xf32>,
    %c0_191 = arith.constant 0 : index
    %c0_192 = arith.constant 0 : index
    %288 = vector.load %arg25[%c0_191, %c0_192] : memref<576x1024xf32, #tpu.memory_space<vmem>>, vector<144x256xf32>
    %289 = arith.truncf %288 : vector<144x256xf32> to vector<144x256xbf16>
    %c0_193 = arith.constant 0 : index
    %c0_194 = arith.constant 0 : index
    %290 = vector.load %arg17[%c0_193, %c0_194] : memref<32x144xbf16, #tpu.memory_space<vmem>>, vector<32x144xbf16>
    %cst_195 = arith.constant dense<0.000000e+00> : vector<32x256xf32>
    %291 = tpu.matmul %290, %289, %cst_195 {dimension_numbers = #tpu.dot_dimension_numbers<[1], [0], [0], [1], [0, 0, 1, 1], [], []>} : vector<32x144xbf16>, vector<144x256xbf16>, vector<32x256xf32> -> vector<32x256xf32>
    %cst_196 = arith.constant dense<0.000000e+00> : vector<32xf32>
    %292 = vector.multi_reduction <add>, %291, %cst_196 [1] : vector<32x256xf32> to vector<32xf32>
    %293 = vector.shape_cast %292 : vector<32xf32> to vector<32x1xf32>
    %cst_197 = arith.constant dense<0.000000e+00> : vector<1xf32>
    %294 = vector.multi_reduction <add>, %293, %cst_197 [0] : vector<32x1xf32> to vector<1xf32>
    %295 = vector.shape_cast %294 : vector<1xf32> to vector<1x1xf32>
    %cst_198 = arith.constant 8.192000e+03 : f32
    %296 = vector.broadcast %cst_198 : f32 to vector<1x1xf32>
    %297 = arith.divf %295, %296 : vector<1x1xf32>
    %298 = vector.broadcast %297 : vector<1x1xf32> to vector<32x256xf32>
    %299 = arith.subf %291, %298 : vector<32x256xf32>
    %300 = arith.mulf %299, %299 : vector<32x256xf32>
    %cst_199 = arith.constant dense<0.000000e+00> : vector<32xf32>
    %301 = vector.multi_reduction <add>, %300, %cst_199 [1] : vector<32x256xf32> to vector<32xf32>
    %302 = vector.shape_cast %301 : vector<32xf32> to vector<32x1xf32>
    %cst_200 = arith.constant dense<0.000000e+00> : vector<1xf32>
    %303 = vector.multi_reduction <add>, %302, %cst_200 [0] : vector<32x1xf32> to vector<1xf32>
    %304 = vector.shape_cast %303 : vector<1xf32> to vector<1x1xf32>
    %cst_201 = arith.constant 8.192000e+03 : f32
    %305 = vector.broadcast %cst_201 : f32 to vector<1x1xf32>
    %306 = arith.divf %304, %305 : vector<1x1xf32>
    %cst_202 = arith.constant 9.99999974E-6 : f32
    %307 = vector.broadcast %cst_202 : f32 to vector<1x1xf32>
    %308 = arith.addf %306, %307 : vector<1x1xf32>
    %309 = math.rsqrt %308 : vector<1x1xf32>
    %310 = vector.broadcast %309 : vector<1x1xf32> to vector<32x256xf32>
    %311 = arith.mulf %299, %310 : vector<32x256xf32>
    %c0_203 = arith.constant 0 : index
    %c0_204 = arith.constant 0 : index
    %312 = vector.load %arg19[%c0_203, %c0_204] : memref<32x256xf32, #tpu.memory_space<vmem>>, vector<32x256xf32>
    %313 = arith.mulf %311, %312 : vector<32x256xf32>
    %c0_205 = arith.constant 0 : index
    %c0_206 = arith.constant 0 : index
    %314 = vector.load %arg20[%c0_205, %c0_206] : memref<32x256xf32, #tpu.memory_space<vmem>>, vector<32x256xf32>
    %315 = arith.addf %313, %314 : vector<32x256xf32>
    %cst_207 = arith.constant 0.000000e+00 : f32
    %316 = vector.broadcast %cst_207 : f32 to vector<32x256xf32>
    %317 = arith.maximumf %315, %316 : vector<32x256xf32>
    %318 = vector.extract_strided_slice %317 {offsets = [0, 0], sizes = [8, 256], strides = [1, 1]} : vector<32x256xf32> to vector<8x256xf32>
    %319 = arith.truncf %318 : vector<8x256xf32> to vector<8x256xbf16>
    %c0_208 = arith.constant 0 : index
    %c0_209 = arith.constant 0 : index
    %c0_210 = arith.constant 0 : index
    %320 = vector.load %arg21[%c0_208, %c0_209, %c0_210] : memref<4x256x1024xbf16, #tpu.memory_space<vmem>>, vector<1x256x1024xbf16>
    %321 = vector.shape_cast %320 : vector<1x256x1024xbf16> to vector<256x1024xbf16>
    %cst_211 = arith.constant dense<0.000000e+00> : vector<8x1024xf32>
    %322 = tpu.matmul %319, %321, %cst_211 {dimension_numbers = #tpu.dot_dimension_numbers<[1], [0], [0], [1], [0, 0, 1, 1], [], []>} : vector<8x256xbf16>, vector<256x1024xbf16>, vector<8x1024xf32> -> vector<8x1024xf32>
    %323 = vector.extract_strided_slice %317 {offsets = [8, 0], sizes = [8, 256], strides = [1, 1]} : vector<32x256xf32> to vector<8x256xf32>
    %324 = arith.truncf %323 : vector<8x256xf32> to vector<8x256xbf16>
    %c1_212 = arith.constant 1 : index
    %c0_213 = arith.constant 0 : index
    %c0_214 = arith.constant 0 : index
    %325 = vector.load %arg21[%c1_212, %c0_213, %c0_214] : memref<4x256x1024xbf16, #tpu.memory_space<vmem>>, vector<1x256x1024xbf16>
    %326 = vector.shape_cast %325 : vector<1x256x1024xbf16> to vector<256x1024xbf16>
    %cst_215 = arith.constant dense<0.000000e+00> : vector<8x1024xf32>
    %327 = tpu.matmul %324, %326, %cst_215 {dimension_numbers = #tpu.dot_dimension_numbers<[1], [0], [0], [1], [0, 0, 1, 1], [], []>} : vector<8x256xbf16>, vector<256x1024xbf16>, vector<8x1024xf32> -> vector<8x1024xf32>
    %328 = arith.addf %322, %327 : vector<8x1024xf32>
    %329 = vector.extract_strided_slice %317 {offsets = [16, 0], sizes = [8, 256], strides = [1, 1]} : vector<32x256xf32> to vector<8x256xf32>
    %330 = arith.truncf %329 : vector<8x256xf32> to vector<8x256xbf16>
    %c2_216 = arith.constant 2 : index
    %c0_217 = arith.constant 0 : index
    %c0_218 = arith.constant 0 : index
    %331 = vector.load %arg21[%c2_216, %c0_217, %c0_218] : memref<4x256x1024xbf16, #tpu.memory_space<vmem>>, vector<1x256x1024xbf16>
    %332 = vector.shape_cast %331 : vector<1x256x1024xbf16> to vector<256x1024xbf16>
    %cst_219 = arith.constant dense<0.000000e+00> : vector<8x1024xf32>
    %333 = tpu.matmul %330, %332, %cst_219 {dimension_numbers = #tpu.dot_dimension_numbers<[1], [0], [0], [1], [0, 0, 1, 1], [], []>} : vector<8x256xbf16>, vector<256x1024xbf16>, vector<8x1024xf32> -> vector<8x1024xf32>
    %334 = arith.addf %328, %333 : vector<8x1024xf32>
    %335 = vector.extract_strided_slice %317 {offsets = [24, 0], sizes = [8, 256], strides = [1, 1]} : vector<32x256xf32> to vector<8x256xf32>
    %336 = arith.truncf %335 : vector<8x256xf32> to vector<8x256xbf16>
    %c3_220 = arith.constant 3 : index
    %c0_221 = arith.constant 0 : index
    %c0_222 = arith.constant 0 : index
    %337 = vector.load %arg21[%c3_220, %c0_221, %c0_222] : memref<4x256x1024xbf16, #tpu.memory_space<vmem>>, vector<1x256x1024xbf16>
    %338 = vector.shape_cast %337 : vector<1x256x1024xbf16> to vector<256x1024xbf16>
    %cst_223 = arith.constant dense<0.000000e+00> : vector<8x1024xf32>
    %339 = tpu.matmul %336, %338, %cst_223 {dimension_numbers = #tpu.dot_dimension_numbers<[1], [0], [0], [1], [0, 0, 1, 1], [], []>} : vector<8x256xbf16>, vector<256x1024xbf16>, vector<8x1024xf32> -> vector<8x1024xf32>
    %340 = arith.addf %334, %339 : vector<8x1024xf32>
    %c33_i32 = arith.constant 33 : i32
    %341 = tpu.dynamic_rotate %340 by %c33_i32 dim 1 : vector<8x1024xf32>, i32 -> vector<8x1024xf32>
    %c0_224 = arith.constant 0 : index
    %c0_225 = arith.constant 0 : index
    %c0_226 = arith.constant 0 : index
    %342 = vector.load %arg23[%c0_224, %c0_225, %c0_226] : memref<9x1x1024xf32, #tpu.memory_space<vmem>>, vector<1x1x1024xf32>
    %343 = vector.shape_cast %342 : vector<1x1x1024xf32> to vector<1x1024xf32>
    %344 = vector.broadcast %343 : vector<1x1024xf32> to vector<8x1024xf32>
    %345 = arith.mulf %341, %344 : vector<8x1024xf32>
    %c0_227 = arith.constant 0 : index
    %c0_228 = arith.constant 0 : index
    %346 = vector.load %arg25[%c0_227, %c0_228] : memref<576x1024xf32, #tpu.memory_space<vmem>>, vector<8x1024xf32>
    tpu.vector_store %arg25[%c0_227, %c0_228], %345 {strides = array<i32>} : memref<576x1024xf32, #tpu.memory_space<vmem>>, vector<8x1024xf32>,
    %c32_i32 = arith.constant 32 : i32
    %347 = tpu.dynamic_rotate %340 by %c32_i32 dim 1 : vector<8x1024xf32>, i32 -> vector<8x1024xf32>
    %c1_229 = arith.constant 1 : index
    %c0_230 = arith.constant 0 : index
    %c0_231 = arith.constant 0 : index
    %348 = vector.load %arg23[%c1_229, %c0_230, %c0_231] : memref<9x1x1024xf32, #tpu.memory_space<vmem>>, vector<1x1x1024xf32>
    %349 = vector.shape_cast %348 : vector<1x1x1024xf32> to vector<1x1024xf32>
    %350 = vector.broadcast %349 : vector<1x1024xf32> to vector<8x1024xf32>
    %351 = arith.mulf %347, %350 : vector<8x1024xf32>
    %c8_232 = arith.constant 8 : index
    %c0_233 = arith.constant 0 : index
    %352 = vector.load %arg25[%c8_232, %c0_233] : memref<576x1024xf32, #tpu.memory_space<vmem>>, vector<8x1024xf32>
    tpu.vector_store %arg25[%c8_232, %c0_233], %351 {strides = array<i32>} : memref<576x1024xf32, #tpu.memory_space<vmem>>, vector<8x1024xf32>,
    %c31_i32 = arith.constant 31 : i32
    %353 = tpu.dynamic_rotate %340 by %c31_i32 dim 1 : vector<8x1024xf32>, i32 -> vector<8x1024xf32>
    %c2_234 = arith.constant 2 : index
    %c0_235 = arith.constant 0 : index
    %c0_236 = arith.constant 0 : index
    %354 = vector.load %arg23[%c2_234, %c0_235, %c0_236] : memref<9x1x1024xf32, #tpu.memory_space<vmem>>, vector<1x1x1024xf32>
    %355 = vector.shape_cast %354 : vector<1x1x1024xf32> to vector<1x1024xf32>
    %356 = vector.broadcast %355 : vector<1x1024xf32> to vector<8x1024xf32>
    %357 = arith.mulf %353, %356 : vector<8x1024xf32>
    %c16_237 = arith.constant 16 : index
    %c0_238 = arith.constant 0 : index
    %358 = vector.load %arg25[%c16_237, %c0_238] : memref<576x1024xf32, #tpu.memory_space<vmem>>, vector<8x1024xf32>
    tpu.vector_store %arg25[%c16_237, %c0_238], %357 {strides = array<i32>} : memref<576x1024xf32, #tpu.memory_space<vmem>>, vector<8x1024xf32>,
    %c1_i32_239 = arith.constant 1 : i32
    %359 = tpu.dynamic_rotate %340 by %c1_i32_239 dim 1 : vector<8x1024xf32>, i32 -> vector<8x1024xf32>
    %c3_240 = arith.constant 3 : index
    %c0_241 = arith.constant 0 : index
    %c0_242 = arith.constant 0 : index
    %360 = vector.load %arg23[%c3_240, %c0_241, %c0_242] : memref<9x1x1024xf32, #tpu.memory_space<vmem>>, vector<1x1x1024xf32>
    %361 = vector.shape_cast %360 : vector<1x1x1024xf32> to vector<1x1024xf32>
    %362 = vector.broadcast %361 : vector<1x1024xf32> to vector<8x1024xf32>
    %363 = arith.mulf %359, %362 : vector<8x1024xf32>
    %c24 = arith.constant 24 : index
    %c0_243 = arith.constant 0 : index
    %364 = vector.load %arg25[%c24, %c0_243] : memref<576x1024xf32, #tpu.memory_space<vmem>>, vector<8x1024xf32>
    tpu.vector_store %arg25[%c24, %c0_243], %363 {strides = array<i32>} : memref<576x1024xf32, #tpu.memory_space<vmem>>, vector<8x1024xf32>,
    %c32_244 = arith.constant 32 : index
    %c0_245 = arith.constant 0 : index
    %365 = vector.load %arg25[%c32_244, %c0_245] : memref<576x1024xf32, #tpu.memory_space<vmem>>, vector<8x1024xf32>
    tpu.vector_store %arg25[%c32_244, %c0_245], %340 {strides = array<i32>} : memref<576x1024xf32, #tpu.memory_space<vmem>>, vector<8x1024xf32>,
    %c1023_i32 = arith.constant 1023 : i32
    %366 = tpu.dynamic_rotate %340 by %c1023_i32 dim 1 : vector<8x1024xf32>, i32 -> vector<8x1024xf32>
    %c5_246 = arith.constant 5 : index
    %c0_247 = arith.constant 0 : index
    %c0_248 = arith.constant 0 : index
    %367 = vector.load %arg23[%c5_246, %c0_247, %c0_248] : memref<9x1x1024xf32, #tpu.memory_space<vmem>>, vector<1x1x1024xf32>
    %368 = vector.shape_cast %367 : vector<1x1x1024xf32> to vector<1x1024xf32>
    %369 = vector.broadcast %368 : vector<1x1024xf32> to vector<8x1024xf32>
    %370 = arith.mulf %366, %369 : vector<8x1024xf32>
    %c40 = arith.constant 40 : index
    %c0_249 = arith.constant 0 : index
    %371 = vector.load %arg25[%c40, %c0_249] : memref<576x1024xf32, #tpu.memory_space<vmem>>, vector<8x1024xf32>
    tpu.vector_store %arg25[%c40, %c0_249], %370 {strides = array<i32>} : memref<576x1024xf32, #tpu.memory_space<vmem>>, vector<8x1024xf32>,
    %c993_i32 = arith.constant 993 : i32
    %372 = tpu.dynamic_rotate %340 by %c993_i32 dim 1 : vector<8x1024xf32>, i32 -> vector<8x1024xf32>
    %c6_250 = arith.constant 6 : index
    %c0_251 = arith.constant 0 : index
    %c0_252 = arith.constant 0 : index
    %373 = vector.load %arg23[%c6_250, %c0_251, %c0_252] : memref<9x1x1024xf32, #tpu.memory_space<vmem>>, vector<1x1x1024xf32>
    %374 = vector.shape_cast %373 : vector<1x1x1024xf32> to vector<1x1024xf32>
    %375 = vector.broadcast %374 : vector<1x1024xf32> to vector<8x1024xf32>
    %376 = arith.mulf %372, %375 : vector<8x1024xf32>
    %c48_253 = arith.constant 48 : index
    %c0_254 = arith.constant 0 : index
    %377 = vector.load %arg25[%c48_253, %c0_254] : memref<576x1024xf32, #tpu.memory_space<vmem>>, vector<8x1024xf32>
    tpu.vector_store %arg25[%c48_253, %c0_254], %376 {strides = array<i32>} : memref<576x1024xf32, #tpu.memory_space<vmem>>, vector<8x1024xf32>,
    %c992_i32 = arith.constant 992 : i32
    %378 = tpu.dynamic_rotate %340 by %c992_i32 dim 1 : vector<8x1024xf32>, i32 -> vector<8x1024xf32>
    %c7_255 = arith.constant 7 : index
    %c0_256 = arith.constant 0 : index
    %c0_257 = arith.constant 0 : index
    %379 = vector.load %arg23[%c7_255, %c0_256, %c0_257] : memref<9x1x1024xf32, #tpu.memory_space<vmem>>, vector<1x1x1024xf32>
    %380 = vector.shape_cast %379 : vector<1x1x1024xf32> to vector<1x1024xf32>
    %381 = vector.broadcast %380 : vector<1x1024xf32> to vector<8x1024xf32>
    %382 = arith.mulf %378, %381 : vector<8x1024xf32>
    %c56 = arith.constant 56 : index
    %c0_258 = arith.constant 0 : index
    %383 = vector.load %arg25[%c56, %c0_258] : memref<576x1024xf32, #tpu.memory_space<vmem>>, vector<8x1024xf32>
    tpu.vector_store %arg25[%c56, %c0_258], %382 {strides = array<i32>} : memref<576x1024xf32, #tpu.memory_space<vmem>>, vector<8x1024xf32>,
    %c991_i32 = arith.constant 991 : i32
    %384 = tpu.dynamic_rotate %340 by %c991_i32 dim 1 : vector<8x1024xf32>, i32 -> vector<8x1024xf32>
    %c8_259 = arith.constant 8 : index
    %c0_260 = arith.constant 0 : index
    %c0_261 = arith.constant 0 : index
    %385 = vector.load %arg23[%c8_259, %c0_260, %c0_261] : memref<9x1x1024xf32, #tpu.memory_space<vmem>>, vector<1x1x1024xf32>
    %386 = vector.shape_cast %385 : vector<1x1x1024xf32> to vector<1x1024xf32>
    %387 = vector.broadcast %386 : vector<1x1024xf32> to vector<8x1024xf32>
    %388 = arith.mulf %384, %387 : vector<8x1024xf32>
    %c64_262 = arith.constant 64 : index
    %c0_263 = arith.constant 0 : index
    %389 = vector.load %arg25[%c64_262, %c0_263] : memref<576x1024xf32, #tpu.memory_space<vmem>>, vector<8x1024xf32>
    tpu.vector_store %arg25[%c64_262, %c0_263], %388 {strides = array<i32>} : memref<576x1024xf32, #tpu.memory_space<vmem>>, vector<8x1024xf32>,
    %c0_264 = arith.constant 0 : index
    %c0_265 = arith.constant 0 : index
    %390 = vector.load %arg25[%c0_264, %c0_265] : memref<576x1024xf32, #tpu.memory_space<vmem>>, vector<72x1024xf32>
    %391 = arith.truncf %390 : vector<72x1024xf32> to vector<72x1024xbf16>
    %c0_266 = arith.constant 0 : index
    %c0_267 = arith.constant 0 : index
    %392 = vector.load %arg22[%c0_266, %c0_267] : memref<12x72xbf16, #tpu.memory_space<vmem>>, vector<12x72xbf16>
    %cst_268 = arith.constant dense<0.000000e+00> : vector<12x1024xf32>
    %393 = tpu.matmul %392, %391, %cst_268 {dimension_numbers = #tpu.dot_dimension_numbers<[1], [0], [0], [1], [0, 0, 1, 1], [], []>} : vector<12x72xbf16>, vector<72x1024xbf16>, vector<12x1024xf32> -> vector<12x1024xf32>
    %394 = math.tanh %393 : vector<12x1024xf32>
    %c0_269 = arith.constant 0 : index
    %c0_270 = arith.constant 0 : index
    %c0_271 = arith.constant 0 : index
    %395 = vector.load %arg24[%c0_269, %c0_270, %c0_271] : memref<1x12x1024xf32, #tpu.memory_space<vmem>>, vector<1x12x1024xf32>
    %396 = vector.shape_cast %395 : vector<1x12x1024xf32> to vector<12x1024xf32>
    %397 = vector.shape_cast %394 : vector<12x1024xf32> to vector<1x12x1024xf32>
    tpu.vector_store %arg24[%c0_269, %c0_270, %c0_271], %397 {strides = array<i32>} : memref<1x12x1024xf32, #tpu.memory_space<vmem>>, vector<1x12x1024xf32>,
    return
  }
  func.func @transform_0(%arg0: i32) -> (i32, i32, i32) {
    %c0_i32 = arith.constant 0 : i32
    %c0_i32_0 = arith.constant 0 : i32
    %c0_i32_1 = arith.constant 0 : i32
    return %arg0, %c0_i32, %c0_i32_0 : i32, i32, i32
  }
  func.func @transform_1(%arg0: i32) -> (i32, i32) {
    %c0_i32 = arith.constant 0 : i32
    %c0_i32_0 = arith.constant 0 : i32
    %c0_i32_1 = arith.constant 0 : i32
    return %c0_i32, %c0_i32_0 : i32, i32
  }
  func.func @transform_2(%arg0: i32) -> (i32, i32) {
    %c0_i32 = arith.constant 0 : i32
    %c0_i32_0 = arith.constant 0 : i32
    %c0_i32_1 = arith.constant 0 : i32
    return %c0_i32, %c0_i32_0 : i32, i32
  }
  func.func @transform_3(%arg0: i32) -> (i32, i32) {
    %c0_i32 = arith.constant 0 : i32
    %c0_i32_0 = arith.constant 0 : i32
    %c0_i32_1 = arith.constant 0 : i32
    return %c0_i32, %c0_i32_0 : i32, i32
  }
  func.func @transform_4(%arg0: i32) -> (i32, i32) {
    %c0_i32 = arith.constant 0 : i32
    %c0_i32_0 = arith.constant 0 : i32
    %c0_i32_1 = arith.constant 0 : i32
    return %c0_i32, %c0_i32_0 : i32, i32
  }
  func.func @transform_5(%arg0: i32) -> (i32, i32) {
    %c0_i32 = arith.constant 0 : i32
    %c0_i32_0 = arith.constant 0 : i32
    %c0_i32_1 = arith.constant 0 : i32
    return %c0_i32, %c0_i32_0 : i32, i32
  }
  func.func @transform_6(%arg0: i32) -> (i32, i32) {
    %c0_i32 = arith.constant 0 : i32
    %c0_i32_0 = arith.constant 0 : i32
    %c0_i32_1 = arith.constant 0 : i32
    return %c0_i32, %c0_i32_0 : i32, i32
  }
  func.func @transform_7(%arg0: i32) -> (i32, i32, i32) {
    %c0_i32 = arith.constant 0 : i32
    %c0_i32_0 = arith.constant 0 : i32
    %c0_i32_1 = arith.constant 0 : i32
    %c0_i32_2 = arith.constant 0 : i32
    return %c0_i32, %c0_i32_0, %c0_i32_1 : i32, i32, i32
  }
  func.func @transform_8(%arg0: i32) -> (i32, i32) {
    %c0_i32 = arith.constant 0 : i32
    %c0_i32_0 = arith.constant 0 : i32
    %c0_i32_1 = arith.constant 0 : i32
    return %c0_i32, %c0_i32_0 : i32, i32
  }
  func.func @transform_9(%arg0: i32) -> (i32, i32) {
    %c0_i32 = arith.constant 0 : i32
    %c0_i32_0 = arith.constant 0 : i32
    %c0_i32_1 = arith.constant 0 : i32
    return %c0_i32, %c0_i32_0 : i32, i32
  }
  func.func @transform_10(%arg0: i32) -> (i32, i32, i32) {
    %c0_i32 = arith.constant 0 : i32
    %c0_i32_0 = arith.constant 0 : i32
    %c0_i32_1 = arith.constant 0 : i32
    %c0_i32_2 = arith.constant 0 : i32
    return %c0_i32, %c0_i32_0, %c0_i32_1 : i32, i32, i32
  }
  func.func @transform_11(%arg0: i32) -> (i32, i32) {
    %c0_i32 = arith.constant 0 : i32
    %c0_i32_0 = arith.constant 0 : i32
    %c0_i32_1 = arith.constant 0 : i32
    return %c0_i32, %c0_i32_0 : i32, i32
  }
  func.func @transform_12(%arg0: i32) -> (i32, i32, i32) {
    %c0_i32 = arith.constant 0 : i32
    %c0_i32_0 = arith.constant 0 : i32
    %c0_i32_1 = arith.constant 0 : i32
    %c0_i32_2 = arith.constant 0 : i32
    return %c0_i32, %c0_i32_0, %c0_i32_1 : i32, i32, i32
  }
  func.func @transform_13(%arg0: i32) -> (i32, i32) {
    %c0_i32 = arith.constant 0 : i32
    %c0_i32_0 = arith.constant 0 : i32
    %c0_i32_1 = arith.constant 0 : i32
    return %c0_i32, %c0_i32_0 : i32, i32
  }
  func.func @transform_14(%arg0: i32) -> (i32, i32) {
    %c0_i32 = arith.constant 0 : i32
    %c0_i32_0 = arith.constant 0 : i32
    %c0_i32_1 = arith.constant 0 : i32
    return %c0_i32, %c0_i32_0 : i32, i32
  }
  func.func @transform_15(%arg0: i32) -> (i32, i32, i32) {
    %c0_i32 = arith.constant 0 : i32
    %c0_i32_0 = arith.constant 0 : i32
    %c0_i32_1 = arith.constant 0 : i32
    %c0_i32_2 = arith.constant 0 : i32
    return %c0_i32, %c0_i32_0, %c0_i32_1 : i32, i32, i32
  }
  func.func @transform_16(%arg0: i32) -> (i32, i32) {
    %c0_i32 = arith.constant 0 : i32
    %c0_i32_0 = arith.constant 0 : i32
    %c0_i32_1 = arith.constant 0 : i32
    return %c0_i32, %c0_i32_0 : i32, i32
  }
  func.func @transform_17(%arg0: i32) -> (i32, i32, i32) {
    %c0_i32 = arith.constant 0 : i32
    %c0_i32_0 = arith.constant 0 : i32
    %c0_i32_1 = arith.constant 0 : i32
    %c0_i32_2 = arith.constant 0 : i32
    return %c0_i32, %c0_i32_0, %c0_i32_1 : i32, i32, i32
  }
  func.func @transform_18(%arg0: i32) -> (i32, i32) {
    %c0_i32 = arith.constant 0 : i32
    %c0_i32_0 = arith.constant 0 : i32
    %c0_i32_1 = arith.constant 0 : i32
    return %c0_i32, %c0_i32_0 : i32, i32
  }
  func.func @transform_19(%arg0: i32) -> (i32, i32) {
    %c0_i32 = arith.constant 0 : i32
    %c0_i32_0 = arith.constant 0 : i32
    %c0_i32_1 = arith.constant 0 : i32
    return %c0_i32, %c0_i32_0 : i32, i32
  }
  func.func @transform_20(%arg0: i32) -> (i32, i32, i32) {
    %c0_i32 = arith.constant 0 : i32
    %c0_i32_0 = arith.constant 0 : i32
    %c0_i32_1 = arith.constant 0 : i32
    %c0_i32_2 = arith.constant 0 : i32
    return %c0_i32, %c0_i32_0, %c0_i32_1 : i32, i32, i32
  }
  func.func @transform_21(%arg0: i32) -> (i32, i32) {
    %c0_i32 = arith.constant 0 : i32
    %c0_i32_0 = arith.constant 0 : i32
    %c0_i32_1 = arith.constant 0 : i32
    return %c0_i32, %c0_i32_0 : i32, i32
  }
  func.func @transform_22(%arg0: i32) -> (i32, i32, i32) {
    %c0_i32 = arith.constant 0 : i32
    %c0_i32_0 = arith.constant 0 : i32
    %c0_i32_1 = arith.constant 0 : i32
    %c0_i32_2 = arith.constant 0 : i32
    return %c0_i32, %c0_i32_0, %c0_i32_1 : i32, i32, i32
  }
  func.func @transform_23(%arg0: i32) -> (i32, i32, i32) {
    %c0_i32 = arith.constant 0 : i32
    %c0_i32_0 = arith.constant 0 : i32
    %c0_i32_1 = arith.constant 0 : i32
    return %arg0, %c0_i32, %c0_i32_0 : i32, i32, i32
  }
}

</mosaic_0001>

<bundles_post_ra>
// kernel: generator_forward.1
= control target key start
LH: loop header
LB: loop body
LE: loop exit
PB: predicated region body
PF: predicated region fallthrough
CT: control target
= control target key end

     0   :  { %s16475_s0 = inlined_call_operand.hbm [shape: f32[2,1,16], index: 0, kind: input, shape index: {}]   ;;  %s16476_s1 = inlined_call_operand.hbm [shape: bf16[16,1024], index: 1, kind: input, shape index: {}]   ;;  %s16477_s2 = inlined_call_operand.hbm [shape: f32[1,1024], index: 2, kind: input, shape index: {}]   ;;  %s16478_s3 = inlined_call_operand.hbm [shape: f32[1,1024], index: 3, kind: input, shape index: {}]   ;;  %s16479_s4 = inlined_call_operand.hbm [shape: bf16[64,1024], index: 4, kind: input, shape index: {}]   ;;  %s16480_s5 = inlined_call_operand.vmem [shape: bf16[1024,16], index: 5, kind: input, shape index: {}]   ;;  %s16481_s6 = inlined_call_operand.vmem [shape: bf16[128,576], index: 6, kind: input, shape index: {}]   ;;  %s16482_s7 = inlined_call_operand.hbm [shape: f32[9,1,16], index: 7, kind: input, shape index: {}]   ;;  %s16483_s8 = inlined_call_operand.vmem [shape: f32[128,16], index: 8, kind: input, shape index: {}]   ;;  %s16484_s9 = inlined_call_operand.vmem [shape: f32[128,16], index: 9, kind: input, shape index: {}]   ;;  %s16485_s10 = inlined_call_operand.hbm [shape: bf16[4,16,64], index: 10, kind: input, shape index: {}]   ;;  %s16486_s11 = inlined_call_operand.hbm [shape: bf16[64,288], index: 11, kind: input, shape index: {}]   ;;  %s16487_s12 = inlined_call_operand.hbm [shape: f32[9,1,64], index: 12, kind: input, shape index: {}]   ;;  %s16488_s13 = inlined_call_operand.hbm [shape: f32[64,64], index: 13, kind: input, shape index: {}]   ;;  %s16489_s14 = inlined_call_operand.hbm [shape: f32[64,64], index: 14, kind: input, shape index: {}]   ;;  %s16490_s15 = inlined_call_operand.hbm [shape: bf16[4,64,256], index: 15, kind: input, shape index: {}]   ;;  %s16491_s16 = inlined_call_operand.hbm [shape: bf16[32,144], index: 16, kind: input, shape index: {}]   ;;  %s16492_s17 = inlined_call_operand.hbm [shape: f32[9,1,256], index: 17, kind: input, shape index: {}]   ;;  %s16493_s18 = inlined_call_operand.hbm [shape: f32[32,256], index: 18, kind: input, shape index: {}]   ;;  %s16494_s19 = inlined_call_operand.hbm [shape: f32[32,256], index: 19, kind: input, shape index: {}]   ;;  %s16495_s20 = inlined_call_operand.hbm [shape: bf16[4,256,1024], index: 20, kind: input, shape index: {}]   ;;  %s16496_s21 = inlined_call_operand.hbm [shape: bf16[12,72], index: 21, kind: input, shape index: {}]   ;;  %s16497_s22 = inlined_call_operand.hbm [shape: f32[9,1,1024], index: 22, kind: input, shape index: {}]   ;;  %s16498_s23 = inlined_call_operand.vmem [shape: f32[2,12,1024], index: 23, kind: output, shape index: {}]  }
   0x1   :  { %16558 = sst [smem:[#allocation62_spill]] %s16475_s0 }
   0x2   :  { %16559 = sst [smem:[#allocation63_spill]] %s16476_s1 }
   0x3   :  { %16560 = sst [smem:[#allocation64_spill]] %s16477_s2 }
   0x4   :  { %16561 = sst [smem:[#allocation65_spill]] %s16478_s3 }
   0x5   :  { %16562 = sst [smem:[#allocation66_spill]] %s16479_s4 }
   0x6   :  { %16563 = sst [smem:[#allocation67_spill]] %s16480_s5 }
   0x7   :  { %16564 = sst [smem:[#allocation68_spill]] %s16481_s6 }
   0x8   :  { %16565 = sst [smem:[#allocation69_spill]] %s16482_s7 }
   0x9   :  { %16566 = sst [smem:[#allocation70_spill]] %s16483_s8 }
   0xa   :  { %16567 = sst [smem:[#allocation71_spill]] %s16484_s9 }
   0xb   :  { %16568 = sst [smem:[#allocation72_spill]] %s16485_s10 }
   0xc   :  { %16569 = sst [smem:[#allocation73_spill]] %s16486_s11 }
   0xd   :  { %16570 = sst [smem:[#allocation74_spill]] %s16488_s13 }
   0xe   :  { %16571 = sst [smem:[#allocation75_spill]] %s16498_s23 }
   0xf   :  { %28 = vsyncpa [#allocation4], 0 }
  0x10   :  { %30 = vsyncpa [#allocation4 + $0x1], 0 }
  0x11   :  { %31 = vsyncpa [#allocation6], 0 }
  0x12   :  { %32 = vsyncpa [#allocation9], 0 }
  0x13   :  { %33 = vsyncpa [#allocation12], 0 }
  0x14   :  { %34 = vsyncpa [#allocation15], 0 }
  0x15   :  { %35 = vsyncpa [#allocation18], 0 }
  0x16   :  { %36 = vsyncpa [#allocation21], 0 }
  0x17   :  { %37 = vsyncpa [#allocation24], 0 }
  0x18   :  { %38 = vsyncpa [#allocation27], 0 }
  0x19   :  { %39 = vsyncpa [#allocation30], 0  ;;  %s13451_s4 = smov 0   ;;  %s13453_s30 = smov 0  }
  0x1a   :  { %s13455_s24 = smov 0   ;;  %s13457_s25 = smov 0  }
  0x1b LB: > { %16572 = sst [smem:[#allocation42_spill]] %s13244_s4  ;;  %s13258_s5 = smov [#allocation5]   ;;  %s13256_s25 = sphi %s13457_s25, %s16669_s25   ;;  %s13252_s24 = sphi %s13455_s24, %s16668_s24   ;;  %s13248_s30 = sphi %s13453_s30, %s16667_s30   ;;  %s13244_s4 = sphi %s13451_s4, %s16666_s4  }
  0x1c   : > { %16573 = sst [smem:[#allocation43_spill]] %s13248_s30  ;;  %s576_s1 = sshll.u32 %s13258_s5, 4  ;;  %s13477_s1 = int_to_ptr.vmem [resolvable:$true] %s576_s1 }
  0x1d   : > { %16574 = sst [smem:[#allocation44_spill]] %s13252_s24  ;;  %s13472_s26 = sadd.s32 4294967295, %s13256_s25  }
  0x1e   : > { %16575 = sst [smem:[#allocation45_spill]] %s13256_s25  ;;  %p10841_p0 = scmp.ge.s32.totalorder %s13256_s25, 1 }
  0x1f   : > { %16576 = sst [smem:[#allocation46_spill]] %s13472_s26  ;;  %p16521_p1 = scmp.eq.s32.totalorder %s13472_s26, 0 }
  0x20   : > { %p564_p2 = scmp.lt.s32.totalorder %s13256_s25, 3  ;;  %s13259_s6 = smov [#allocation8]  }
  0x21   : > { %s601_s27 = sshll.u32 %s13259_s6, 4  ;;  %s13260_s28 = smov [#allocation11]   ;;  %s13491_s27 = int_to_ptr.vmem [resolvable:$true] %s601_s27 }
  0x22   : > { %p13479_p3 = pnand %p10841_p0, %p564_p2  ;;  %s630_s29 = sshll.u32 %s13260_s28, 4  ;;  %s13493_s29 = int_to_ptr.vmem [resolvable:$true] %s630_s29 }
  0x23   : > { %s16580_s5 = sld [smem:[#allocation63_spill]] }
  0x24   : > { %s16577_s2 = scalar_select %p13479_p3, 1, 0 }
  0x25   : > { %p12217_p4 = pneg %p13479_p3 }
  0x26   : > { %16578 = sst [smem:[#allocation47_spill]] %s16577_s2 }
  0x27   : > { %p13487_p5 = pnand %p12217_p4, %p16521_p1 }
  0x29   : > { %s12652_s23 = scalar_lea.hbm %s16580_s5, 1024  ;;  %p13503_p7 = pneg %p13487_p5 }
  0x2a   : > { %p12653_p6 = scmp.ne.s32.totalorder %s16580_s5, %s12652_s23  ;;  %p12659_p10 = scmp.lt.u32.totalorder %s12652_s23, %s16580_s5 }
  0x2c   : > { %p12655_p8 = pnand %p13503_p7, %p12653_p6 }
  0x2e   : > { %p12656_p9 = pneg %p12655_p8 }
  0x30   : > { %p12661_p11 = pnand %p12659_p10, %p12656_p9 }
  0x32   : > { %12664 = shalt.err (!%p12661_p11)
}
  0x33   : > { %s12665_s8 = scalar_lea.vmem %s13477_s1, 1024  ;;  %p12673_p2 = scmp.lt.s32.totalorder %s13477_s1, %s13477_s1 }
  0x34   : > { %p12666_p12 = scmp.ne.s32.totalorder %s13477_s1, %s12665_s8  ;;  %p12674_p4 = scmp.lt.s32.totalorder %s12665_s8, %s12665_s8 }
  0x36   : > { %p12668_p13 = pnand %p12666_p12, %p13503_p7  ;;  %p12675_p6 = por %p12674_p4, %p12673_p2 }
  0x38   : > { %p12669_p0 = pneg %p12668_p13 }
  0x3a   : > { %p12676_p8 = pnand %p12675_p6, %p12669_p0 }
  0x3c   : > { %12679 = shalt.err (!%p12676_p8)
}
  0x3d   : > { %s16516_s9 = smov 512   ;;  %s16518_s23 = smov 32  }
  0x3e   : > { %12220 = dma.hbm_to_vmem [thread:$0]  (!%p13487_p5), %s16580_s5, 1024, %s13477_s1, [#allocation6], %s16516_s9, %s16516_s9, %s16518_s23  }
  0x3f   : > { %s16582_s26 = sld [smem:[#allocation65_spill]] }
  0x45   : > { %s12680_s8 = scalar_lea.hbm %s16582_s26, 128 }
  0x46   : > { %p12681_p9 = scmp.ne.s32.totalorder %s16582_s26, %s12680_s8  ;;  %p12687_p12 = scmp.lt.u32.totalorder %s12680_s8, %s16582_s26 }
  0x48   : > { %p12683_p10 = pnand %p12681_p9, %p13503_p7 }
  0x4a   : > { %p12684_p11 = pneg %p12683_p10 }
  0x4c   : > { %p12689_p13 = pnand %p12687_p12, %p12684_p11 }
  0x4e   : > { %12692 = shalt.err (!%p12689_p13)
}
  0x4f   : > { %s12693_s1 = scalar_lea.vmem %s13491_s27, 128  ;;  %p12701_p6 = scmp.lt.s32.totalorder %s13491_s27, %s13491_s27 }
  0x50   : > { %p12694_p0 = scmp.ne.s32.totalorder %s13491_s27, %s12693_s1  ;;  %p12702_p8 = scmp.lt.s32.totalorder %s12693_s1, %s12693_s1 }
  0x52   : > { %p12696_p2 = pnand %p12694_p0, %p13503_p7  ;;  %p12703_p9 = por %p12702_p8, %p12701_p6 }
  0x54   : > { %p12697_p4 = pneg %p12696_p2 }
  0x56   : > { %p12704_p10 = pnand %p12703_p9, %p12697_p4 }
  0x58   : > { %12707 = shalt.err (!%p12704_p10)
}
  0x59   : > { %12226 = dma.hbm_to_vmem [thread:$0]  (!%p13487_p5), %s16582_s26, 128, %s13491_s27, [#allocation9]  }
  0x5a   : > { %s16583_s2 = sld [smem:[#allocation69_spill]] }
  0x60   : > { %s12708_s3 = scalar_lea.hbm %s16583_s2, 144 }
  0x61   : > { %p12709_p11 = scmp.ne.s32.totalorder %s16583_s2, %s12708_s3  ;;  %p12715_p0 = scmp.lt.u32.totalorder %s12708_s3, %s16583_s2 }
  0x63   : > { %p12711_p12 = pnand %p12709_p11, %p13503_p7 }
  0x65   : > { %p12712_p13 = pneg %p12711_p12 }
  0x67   : > { %p12717_p2 = pnand %p12715_p0, %p12712_p13 }
  0x69   : > { %12720 = shalt.err (!%p12717_p2)
}
  0x6a   : > { %s12721_s27 = scalar_lea.vmem %s13493_s29, 144  ;;  %s12728_s4 = scalar_lea.vmem %s13493_s29, 160 }
  0x6b   : > { %p12722_p4 = scmp.ne.s32.totalorder %s13493_s29, %s12721_s27  ;;  %p12729_p9 = scmp.lt.s32.totalorder %s13493_s29, %s13493_s29 }
  0x6c   : > { %p12730_p10 = scmp.lt.s32.totalorder %s12728_s4, %s12721_s27 }
  0x6d   : > { %p12724_p6 = pnand %p12722_p4, %p13503_p7 }
  0x6e   : > { %p12731_p11 = por %p12730_p10, %p12729_p9 }
  0x6f   : > { %p12725_p8 = pneg %p12724_p6 }
  0x71   : > { %p12732_p12 = pnand %p12731_p11, %p12725_p8 }
  0x73   : > { %12735 = shalt.err (!%p12732_p12)
}
  0x74   : > { %s16524_s30 = smov 16   ;;  %s16523_s24 = smov 1  }
  0x75   : > { %12232 = dma.hbm_to_vmem [thread:$0]  (!%p13487_p5), %s16583_s2, 144, %s13493_s29, [#allocation12], %s16524_s30, %s16524_s30, %s16523_s24  }
  0x76   : > { %s13265_s0 = smov [#allocation14]   ;;  %s16584_s11 = sld [smem:[#allocation73_spill]] }
  0x77   : > { %s662_s28 = sshll.u32 %s13265_s0, 4  ;;  %s663_s28 = int_to_ptr.vmem [resolvable:$true] %s662_s28 }
  0x7c   : > { %s12736_s27 = scalar_lea.hbm %s16584_s11, 1536 }
  0x7d   : > { %p12737_p13 = scmp.ne.s32.totalorder %s16584_s11, %s12736_s27  ;;  %p12743_p4 = scmp.lt.u32.totalorder %s12736_s27, %s16584_s11 }
  0x7f   : > { %p12739_p0 = pnand %p12737_p13, %p13503_p7 }
  0x81   : > { %p12740_p2 = pneg %p12739_p0 }
  0x83   : > { %p12745_p6 = pnand %p12743_p4, %p12740_p2 }
  0x85   : > { %12748 = shalt.err (!%p12745_p6)
}
  0x86   : > { %s12749_s29 = scalar_lea.vmem %s663_s28, 1536  ;;  %p12757_p11 = scmp.lt.s32.totalorder %s663_s28, %s663_s28 }
  0x87   : > { %p12750_p8 = scmp.ne.s32.totalorder %s663_s28, %s12749_s29  ;;  %p12758_p12 = scmp.lt.s32.totalorder %s12749_s29, %s12749_s29 }
  0x89   : > { %p12752_p9 = pnand %p12750_p8, %p13503_p7  ;;  %p12759_p1 = por %p12758_p12, %p12757_p11 }
  0x8b   : > { %p12753_p10 = pneg %p12752_p9 }
  0x8d   : > { %p12760_p3 = pnand %p12759_p1, %p12753_p10 }
  0x8f   : > { %12763 = shalt.err (!%p12760_p3)
}
  0x90   : > { %s13266_s9 = smov 192   ;;  %s13267_s25 = smov 12  }
  0x91   : > { %12238 = dma.hbm_to_vmem [thread:$0]  (!%p13487_p5), %s16584_s11, 1536, %s663_s28, [#allocation15], %s13266_s9, %s13266_s9, %s13267_s25  }
  0x92   : > { %s13268_s3 = smov [#allocation17]   ;;  %s16585_s13 = sld [smem:[#allocation74_spill]] }
  0x93   : > { %s688_s0 = sshll.u32 %s13268_s3, 4  ;;  %s689_s0 = int_to_ptr.vmem [resolvable:$true] %s688_s0 }
  0x98   : > { %s12764_s27 = scalar_lea.hbm %s16585_s13, 1024 }
  0x99   : > { %p12765_p1 = scmp.ne.s32.totalorder %s16585_s13, %s12764_s27  ;;  %p12771_p0 = scmp.lt.u32.totalorder %s12764_s27, %s16585_s13 }
  0x9b   : > { %p12767_p3 = pnand %p12765_p1, %p13503_p7 }
  0x9d   : > { %p12768_p13 = pneg %p12767_p3 }
  0x9f   : > { %p12773_p2 = pnand %p12771_p0, %p12768_p13 }
  0xa1   : > { %12776 = shalt.err (!%p12773_p2)
}
  0xa2   : > { %s12777_s28 = scalar_lea.vmem %s689_s0, 1024  ;;  %p12785_p9 = scmp.lt.s32.totalorder %s689_s0, %s689_s0 }
  0xa3   : > { %p12778_p4 = scmp.ne.s32.totalorder %s689_s0, %s12777_s28  ;;  %p12786_p10 = scmp.lt.s32.totalorder %s12777_s28, %s12777_s28 }
  0xa5   : > { %p12780_p6 = pnand %p12778_p4, %p13503_p7  ;;  %p12787_p11 = por %p12786_p10, %p12785_p9 }
  0xa7   : > { %p12781_p8 = pneg %p12780_p6 }
  0xa9   : > { %p12788_p12 = pnand %p12787_p11, %p12781_p8 }
  0xab   : > { %12791 = shalt.err (!%p12788_p12)
}
  0xac   : > { %s16527_s9 = smov 128   ;;  %s16530_s25 = smov 8  }
  0xad   : > { %12244 = dma.hbm_to_vmem [thread:$0]  (!%p13487_p5), %s16585_s13, 1024, %s689_s0, [#allocation18], %s16527_s9, %s16527_s9, %s16530_s25  }
  0xae   : > { %s13271_s5 = smov [#allocation20]   ;;  %s13272_s3 = smov [#allocation23]  }
  0xaf   : > { %s714_s23 = sshll.u32 %s13271_s5, 4  ;;  %s740_s8 = sshll.u32 %s13272_s3, 4  ;;  %s715_s23 = int_to_ptr.vmem [resolvable:$true] %s714_s23  ;;  %s741_s8 = int_to_ptr.vmem [resolvable:$true] %s740_s8 }
  0xb0   : > { %s12792_s4 = scalar_lea.hbm %s16490_s15, 4096 }
  0xb1   : > { %p12793_p1 = scmp.ne.s32.totalorder %s16490_s15, %s12792_s4  ;;  %p12799_p0 = scmp.lt.u32.totalorder %s12792_s4, %s16490_s15 }
  0xb3   : > { %p12795_p3 = pnand %p12793_p1, %p13503_p7 }
  0xb5   : > { %p12796_p13 = pneg %p12795_p3 }
  0xb7   : > { %p12801_p2 = pnand %p12799_p0, %p12796_p13 }
  0xb9   : > { %12804 = shalt.err (!%p12801_p2)
}
  0xba   : > { %s12805_s0 = scalar_lea.vmem %s715_s23, 4096  ;;  %p12813_p9 = scmp.lt.s32.totalorder %s715_s23, %s715_s23 }
  0xbb   : > { %p12806_p4 = scmp.ne.s32.totalorder %s715_s23, %s12805_s0  ;;  %p12814_p10 = scmp.lt.s32.totalorder %s12805_s0, %s12805_s0 }
  0xbd   : > { %p12808_p6 = pnand %p12806_p4, %p13503_p7  ;;  %p12815_p11 = por %p12814_p10, %p12813_p9 }
  0xbf   : > { %p12809_p8 = pneg %p12808_p6 }
  0xc1   : > { %p12816_p12 = pnand %p12815_p11, %p12809_p8 }
  0xc3   : > { %12819 = shalt.err (!%p12816_p12)
}
  0xc4   : > { %12250 = dma.hbm_to_vmem [thread:$0]  (!%p13487_p5), %s16490_s15, 4096, %s715_s23, [#allocation21], %s16527_s9, %s16527_s9, %s16530_s25  }
  0xc5   : > { %s12820_s5 = scalar_lea.hbm %s16492_s17, 288 }
  0xc6   : > { %p12821_p1 = scmp.ne.s32.totalorder %s16492_s17, %s12820_s5  ;;  %p12827_p0 = scmp.lt.u32.totalorder %s12820_s5, %s16492_s17 }
  0xc8   : > { %p12823_p3 = pnand %p12821_p1, %p13503_p7 }
  0xca   : > { %p12824_p13 = pneg %p12823_p3 }
  0xcc   : > { %p12829_p2 = pnand %p12827_p0, %p12824_p13 }
  0xce   : > { %12832 = shalt.err (!%p12829_p2)
}
  0xcf   : > { %s12833_s29 = scalar_lea.vmem %s741_s8, 288  ;;  %p12841_p9 = scmp.lt.s32.totalorder %s741_s8, %s741_s8 }
  0xd0   : > { %p12834_p4 = scmp.ne.s32.totalorder %s741_s8, %s12833_s29  ;;  %p12842_p10 = scmp.lt.s32.totalorder %s12833_s29, %s12833_s29 }
  0xd2   : > { %p12836_p6 = pnand %p12834_p4, %p13503_p7  ;;  %p12843_p11 = por %p12842_p10, %p12841_p9 }
  0xd4   : > { %p12837_p8 = pneg %p12836_p6 }
  0xd6   : > { %p12844_p12 = pnand %p12843_p11, %p12837_p8 }
  0xd8   : > { %12847 = shalt.err (!%p12844_p12)
}
  0xd9   : > { %s13273_s23 = smov 2   ;;  %s16586_s28 = smov 32  }
  0xda   : > { %12256 = dma.hbm_to_vmem [thread:$0]  (!%p13487_p5), %s16492_s17, 288, %s741_s8, [#allocation24], %s16586_s28, %s16586_s28, %s13273_s23  }
  0xdb   : > { %s13274_s2 = smov [#allocation26]   ;;  %s12848_s3 = scalar_lea.hbm %s16494_s19, 1024 }
  0xdc   : > { %s766_s30 = sshll.u32 %s13274_s2, 4  ;;  %p12849_p1 = scmp.ne.s32.totalorder %s16494_s19, %s12848_s3  ;;  %s767_s30 = int_to_ptr.vmem [resolvable:$true] %s766_s30 }
  0xdd   : > { %p12855_p0 = scmp.lt.u32.totalorder %s12848_s3, %s16494_s19 }
  0xde   : > { %p12851_p3 = pnand %p12849_p1, %p13503_p7 }
  0xe0   : > { %p12852_p13 = pneg %p12851_p3 }
  0xe2   : > { %p12857_p2 = pnand %p12855_p0, %p12852_p13 }
  0xe4   : > { %12860 = shalt.err (!%p12857_p2)
}
  0xe5   : > { %s12861_s8 = scalar_lea.vmem %s767_s30, 1024  ;;  %p12869_p9 = scmp.lt.s32.totalorder %s767_s30, %s767_s30 }
  0xe6   : > { %p12862_p4 = scmp.ne.s32.totalorder %s767_s30, %s12861_s8  ;;  %p12870_p10 = scmp.lt.s32.totalorder %s12861_s8, %s12861_s8 }
  0xe8   : > { %p12864_p6 = pnand %p12862_p4, %p13503_p7  ;;  %p12871_p11 = por %p12870_p10, %p12869_p9 }
  0xea   : > { %p12865_p8 = pneg %p12864_p6 }
  0xec   : > { %p12872_p12 = pnand %p12871_p11, %p12865_p8 }
  0xee   : > { %12875 = shalt.err (!%p12872_p12)
}
  0xef   : > { %s16529_s23 = smov 256   ;;  %s16587_s0 = smov 16  }
  0xf0   : > { %12262 = dma.hbm_to_vmem [thread:$0]  (!%p13487_p5), %s16494_s19, 1024, %s767_s30, [#allocation27], %s16529_s23, %s16529_s23, %s16587_s0  }
  0xf1   : > { %s13276_s24 = smov [#allocation29]   ;;  %s13277_s3 = smov [#allocation7]  }
  0xf2   : > { %s792_s5 = sshll.u32 %s13276_s24, 4  ;;  %s590_s1 = sshll.u32 %s13277_s3, 4  ;;  %s793_s5 = int_to_ptr.vmem [resolvable:$true] %s792_s5  ;;  %s13678_s1 = int_to_ptr.vmem [resolvable:$true] %s590_s1 }
  0xf3   : > { %s12876_s29 = scalar_lea.hbm %s16496_s21, 128 }
  0xf4   : > { %p12877_p1 = scmp.ne.s32.totalorder %s16496_s21, %s12876_s29  ;;  %p12883_p0 = scmp.lt.u32.totalorder %s12876_s29, %s16496_s21 }
  0xf6   : > { %p12879_p3 = pnand %p12877_p1, %p13503_p7 }
  0xf8   : > { %p12880_p13 = pneg %p12879_p3 }
  0xfa   : > { %p12885_p2 = pnand %p12883_p0, %p12880_p13 }
  0xfc   : > { %12888 = shalt.err (!%p12885_p2)
}
  0xfd   : > { %s12889_s2 = scalar_lea.vmem %s793_s5, 128  ;;  %p12897_p9 = scmp.lt.s32.totalorder %s793_s5, %s793_s5 }
  0xfe   : > { %p12890_p4 = scmp.ne.s32.totalorder %s793_s5, %s12889_s2  ;;  %p12898_p10 = scmp.lt.s32.totalorder %s12889_s2, %s12889_s2 }
 0x100   : > { %p12892_p6 = pnand %p12890_p4, %p13503_p7  ;;  %p12899_p11 = por %p12898_p10, %p12897_p9 }
 0x102   : > { %p12893_p8 = pneg %p12892_p6 }
 0x104   : > { %p12900_p12 = pnand %p12899_p11, %p12893_p8 }
 0x106   : > { %12903 = shalt.err (!%p12900_p12)
}
 0x107   : > { %s16532_s9 = smov 64   ;;  %s16533_s24 = smov 4  }
 0x108   : > { %12268 = dma.hbm_to_vmem [thread:$0]  (!%p13487_p5), %s16496_s21, 128, %s793_s5, [#allocation30], %s16532_s9, %s16532_s9, %s16533_s24  }
 0x109   : > { %s16588_s8 = sld [smem:[#allocation64_spill]] }
 0x10f   : > { %s12904_s11 = scalar_lea.hbm %s16588_s8, 128 }
 0x110   : > { %p12905_p1 = scmp.ne.s32.totalorder %s16588_s8, %s12904_s11  ;;  %p12911_p0 = scmp.lt.u32.totalorder %s12904_s11, %s16588_s8 }
 0x112   : > { %p12907_p3 = pnand %p12905_p1, %p13503_p7 }
 0x114   : > { %p12908_p13 = pneg %p12907_p3 }
 0x116   : > { %p12913_p2 = pnand %p12911_p0, %p12908_p13 }
 0x118   : > { %12916 = shalt.err (!%p12913_p2)
}
 0x119   : > { %s12917_s5 = scalar_lea.vmem %s13678_s1, 128  ;;  %p12925_p9 = scmp.lt.s32.totalorder %s13678_s1, %s13678_s1 }
 0x11a   : > { %p12918_p4 = scmp.ne.s32.totalorder %s13678_s1, %s12917_s5  ;;  %p12926_p10 = scmp.lt.s32.totalorder %s12917_s5, %s12917_s5 }
 0x11c   : > { %p12920_p6 = pnand %p12918_p4, %p13503_p7  ;;  %p12927_p11 = por %p12926_p10, %p12925_p9 }
 0x11e   : > { %p12921_p8 = pneg %p12920_p6 }
 0x120   : > { %p12928_p12 = pnand %p12927_p11, %p12921_p8 }
 0x122   : > { %12931 = shalt.err (!%p12928_p12)
}
 0x123   : > { %12223 = dma.hbm_to_vmem [thread:$0]  (!%p13487_p5), %s16588_s8, 128, %s13678_s1, [#allocation6]  }
 0x124   : > { %s13280_s3 = smov [#allocation10]   ;;  %s13281_s4 = smov [#allocation13]  }
 0x125   : > { %s611_s27 = sshll.u32 %s13280_s3, 4  ;;  %s649_s29 = sshll.u32 %s13281_s4, 4  ;;  %s612_s27 = int_to_ptr.vmem [resolvable:$true] %s611_s27  ;;  %s13724_s29 = int_to_ptr.vmem [resolvable:$true] %s649_s29 }
 0x126   : > { %s16589_s2 = sld [smem:[#allocation66_spill]] }
 0x12c   : > { %s12932_s5 = scalar_lea.hbm %s16589_s2, 4096 }
 0x12d   : > { %p12933_p1 = scmp.ne.s32.totalorder %s16589_s2, %s12932_s5  ;;  %p12939_p0 = scmp.lt.u32.totalorder %s12932_s5, %s16589_s2 }
 0x12f   : > { %p12935_p3 = pnand %p12933_p1, %p13503_p7 }
 0x131   : > { %p12936_p13 = pneg %p12935_p3 }
 0x133   : > { %p12941_p2 = pnand %p12939_p0, %p12936_p13 }
 0x135   : > { %12944 = shalt.err (!%p12941_p2)
}
 0x136   : > { %s12945_s23 = scalar_lea.vmem %s612_s27, 4096  ;;  %p12953_p9 = scmp.lt.s32.totalorder %s612_s27, %s612_s27 }
 0x137   : > { %p12946_p4 = scmp.ne.s32.totalorder %s612_s27, %s12945_s23  ;;  %p12954_p10 = scmp.lt.s32.totalorder %s12945_s23, %s12945_s23 }
 0x139   : > { %p12948_p6 = pnand %p12946_p4, %p13503_p7  ;;  %p12955_p11 = por %p12954_p10, %p12953_p9 }
 0x13b   : > { %p12949_p8 = pneg %p12948_p6 }
 0x13d   : > { %p12956_p12 = pnand %p12955_p11, %p12949_p8 }
 0x13f   : > { %12959 = shalt.err (!%p12956_p12)
}
 0x140   : > { %s16590_s9 = smov 512   ;;  %s16591_s10 = sld [smem:[#allocation72_spill]] }
 0x141   : > { %12229 = dma.hbm_to_vmem [thread:$0]  (!%p13487_p5), %s16589_s2, 4096, %s612_s27, [#allocation9], %s16590_s9, %s16590_s9, %s16586_s28  }
 0x146   : > { %s12960_s30 = scalar_lea.hbm %s16591_s10, 512 }
 0x147   : > { %p12961_p1 = scmp.ne.s32.totalorder %s16591_s10, %s12960_s30  ;;  %p12967_p0 = scmp.lt.u32.totalorder %s12960_s30, %s16591_s10 }
 0x149   : > { %p12963_p3 = pnand %p12961_p1, %p13503_p7 }
 0x14b   : > { %p12964_p13 = pneg %p12963_p3 }
 0x14d   : > { %p12969_p2 = pnand %p12967_p0, %p12964_p13 }
 0x14f   : > { %12972 = shalt.err (!%p12969_p2)
}
 0x150   : > { %s12973_s27 = scalar_lea.vmem %s13724_s29, 512  ;;  %p12981_p9 = scmp.lt.s32.totalorder %s13724_s29, %s13724_s29 }
 0x151   : > { %p12974_p4 = scmp.ne.s32.totalorder %s13724_s29, %s12973_s27  ;;  %p12982_p10 = scmp.lt.s32.totalorder %s12973_s27, %s12973_s27 }
 0x153   : > { %p12976_p6 = pnand %p12974_p4, %p13503_p7  ;;  %p12983_p11 = por %p12982_p10, %p12981_p9 }
 0x155   : > { %p12977_p8 = pneg %p12976_p6 }
 0x157   : > { %p12984_p12 = pnand %p12983_p11, %p12977_p8 }
 0x159   : > { %12987 = shalt.err (!%p12984_p12)
}
 0x15a   : > { %s16592_s24 = smov 4   ;;  %s16593_s3 = smov 64  }
 0x15b   : > { %12235 = dma.hbm_to_vmem [thread:$0]  (!%p13487_p5), %s16591_s10, 512, %s13724_s29, [#allocation12], %s16593_s3, %s16593_s3, %s16592_s24  }
 0x15c   : > { %s13282_s30 = smov [#allocation16]   ;;  %s13283_s25 = smov [#allocation19]  }
 0x15d   : > { %s675_s5 = sshll.u32 %s13282_s30, 4  ;;  %s701_s1 = sshll.u32 %s13283_s25, 4  ;;  %s676_s5 = int_to_ptr.vmem [resolvable:$true] %s675_s5  ;;  %s13773_s1 = int_to_ptr.vmem [resolvable:$true] %s701_s1 }
 0x15e   : > { %s12988_s2 = scalar_lea.hbm %s16487_s12, 144 }
 0x15f   : > { %p12989_p1 = scmp.ne.s32.totalorder %s16487_s12, %s12988_s2  ;;  %p12995_p0 = scmp.lt.u32.totalorder %s12988_s2, %s16487_s12 }
 0x161   : > { %p12991_p3 = pnand %p12989_p1, %p13503_p7 }
 0x163   : > { %p12992_p13 = pneg %p12991_p3 }
 0x165   : > { %p12997_p2 = pnand %p12995_p0, %p12992_p13 }
 0x167   : > { %13000 = shalt.err (!%p12997_p2)
}
 0x168   : > { %s13001_s24 = scalar_lea.vmem %s676_s5, 144  ;;  %s13008_s3 = scalar_lea.vmem %s676_s5, 160 }
 0x169   : > { %p13002_p4 = scmp.ne.s32.totalorder %s676_s5, %s13001_s24  ;;  %p13009_p9 = scmp.lt.s32.totalorder %s676_s5, %s676_s5 }
 0x16a   : > { %p13010_p10 = scmp.lt.s32.totalorder %s13008_s3, %s13001_s24 }
 0x16b   : > { %p13004_p6 = pnand %p13002_p4, %p13503_p7 }
 0x16c   : > { %p13011_p11 = por %p13010_p10, %p13009_p9 }
 0x16d   : > { %p13005_p8 = pneg %p13004_p6 }
 0x16f   : > { %p13012_p12 = pnand %p13011_p11, %p13005_p8 }
 0x171   : > { %13015 = shalt.err (!%p13012_p12)
}
 0x172   : > { %s16594_s13 = smov 1   ;;  %s13016_s25 = scalar_lea.hbm %s16489_s14, 1024 }
 0x173   : > { %12241 = dma.hbm_to_vmem [thread:$0]  (!%p13487_p5), %s16487_s12, 144, %s676_s5, [#allocation15], %s16587_s0, %s16587_s0, %s16594_s13  }
 0x174   : > { %p13017_p1 = scmp.ne.s32.totalorder %s16489_s14, %s13016_s25  ;;  %p13023_p0 = scmp.lt.u32.totalorder %s13016_s25, %s16489_s14 }
 0x176   : > { %p13019_p3 = pnand %p13017_p1, %p13503_p7 }
 0x178   : > { %p13020_p13 = pneg %p13019_p3 }
 0x17a   : > { %p13025_p2 = pnand %p13023_p0, %p13020_p13 }
 0x17c   : > { %13028 = shalt.err (!%p13025_p2)
}
 0x17d   : > { %s13029_s5 = scalar_lea.vmem %s13773_s1, 1024  ;;  %p13037_p9 = scmp.lt.s32.totalorder %s13773_s1, %s13773_s1 }
 0x17e   : > { %p13030_p4 = scmp.ne.s32.totalorder %s13773_s1, %s13029_s5  ;;  %p13038_p10 = scmp.lt.s32.totalorder %s13029_s5, %s13029_s5 }
 0x180   : > { %p13032_p6 = pnand %p13030_p4, %p13503_p7  ;;  %p13039_p11 = por %p13038_p10, %p13037_p9 }
 0x182   : > { %p13033_p8 = pneg %p13032_p6 }
 0x184   : > { %p13040_p12 = pnand %p13039_p11, %p13033_p8 }
 0x186   : > { %13043 = shalt.err (!%p13040_p12)
}
 0x187   : > { %s16595_s24 = smov 8   ;;  %s16596_s3 = smov 128  }
 0x188   : > { %12247 = dma.hbm_to_vmem [thread:$0]  (!%p13487_p5), %s16489_s14, 1024, %s13773_s1, [#allocation18], %s16596_s3, %s16596_s3, %s16595_s24  }
 0x189   : > { %s13284_s2 = smov [#allocation22]   ;;  %s13285_s30 = smov [#allocation25]  }
 0x18a   : > { %s727_s11 = sshll.u32 %s13284_s2, 4  ;;  %s753_s25 = sshll.u32 %s13285_s30, 4  ;;  %s728_s11 = int_to_ptr.vmem [resolvable:$true] %s727_s11  ;;  %s13822_s25 = int_to_ptr.vmem [resolvable:$true] %s753_s25 }
 0x18b   : > { %s13044_s4 = scalar_lea.hbm %s16491_s16, 512 }
 0x18c   : > { %p13045_p1 = scmp.ne.s32.totalorder %s16491_s16, %s13044_s4  ;;  %p13051_p0 = scmp.lt.u32.totalorder %s13044_s4, %s16491_s16 }
 0x18e   : > { %p13047_p3 = pnand %p13045_p1, %p13503_p7 }
 0x190   : > { %p13048_p13 = pneg %p13047_p3 }
 0x192   : > { %p13053_p2 = pnand %p13051_p0, %p13048_p13 }
 0x194   : > { %13056 = shalt.err (!%p13053_p2)
}
 0x195   : > { %s13057_s8 = scalar_lea.vmem %s728_s11, 512  ;;  %p13065_p9 = scmp.lt.s32.totalorder %s728_s11, %s728_s11 }
 0x196   : > { %p13058_p4 = scmp.ne.s32.totalorder %s728_s11, %s13057_s8  ;;  %p13066_p10 = scmp.lt.s32.totalorder %s13057_s8, %s13057_s8 }
 0x198   : > { %p13060_p6 = pnand %p13058_p4, %p13503_p7  ;;  %p13067_p11 = por %p13066_p10, %p13065_p9 }
 0x19a   : > { %p13061_p8 = pneg %p13060_p6 }
 0x19c   : > { %p13068_p12 = pnand %p13067_p11, %p13061_p8 }
 0x19e   : > { %13071 = shalt.err (!%p13068_p12)
}
 0x19f   : > { %12253 = dma.hbm_to_vmem [thread:$0]  (!%p13487_p5), %s16491_s16, 512, %s728_s11, [#allocation21], %s16596_s3, %s16596_s3, %s16595_s24  }
 0x1a0   : > { %s13072_s4 = scalar_lea.hbm %s16493_s18, 1024 }
 0x1a1   : > { %p13073_p1 = scmp.ne.s32.totalorder %s16493_s18, %s13072_s4  ;;  %p13079_p0 = scmp.lt.u32.totalorder %s13072_s4, %s16493_s18 }
 0x1a3   : > { %p13075_p3 = pnand %p13073_p1, %p13503_p7 }
 0x1a5   : > { %p13076_p13 = pneg %p13075_p3 }
 0x1a7   : > { %p13081_p2 = pnand %p13079_p0, %p13076_p13 }
 0x1a9   : > { %13084 = shalt.err (!%p13081_p2)
}
 0x1aa   : > { %s13085_s11 = scalar_lea.vmem %s13822_s25, 1024  ;;  %p13093_p9 = scmp.lt.s32.totalorder %s13822_s25, %s13822_s25 }
 0x1ab   : > { %p13086_p4 = scmp.ne.s32.totalorder %s13822_s25, %s13085_s11  ;;  %p13094_p10 = scmp.lt.s32.totalorder %s13085_s11, %s13085_s11 }
 0x1ad   : > { %p13088_p6 = pnand %p13086_p4, %p13503_p7  ;;  %p13095_p11 = por %p13094_p10, %p13093_p9 }
 0x1af   : > { %p13089_p8 = pneg %p13088_p6 }
 0x1b1   : > { %p13096_p12 = pnand %p13095_p11, %p13089_p8 }
 0x1b3   : > { %13099 = shalt.err (!%p13096_p12)
}
 0x1b4   : > { %s16597_s8 = smov 256   ;;  %s13286_s23 = smov [#allocation28]  }
 0x1b5   : > { %12259 = dma.hbm_to_vmem [thread:$0]  (!%p13487_p5), %s16493_s18, 1024, %s13822_s25, [#allocation24], %s16597_s8, %s16597_s8, %s16587_s0  }
 0x1b6   : > { %s779_s27 = sshll.u32 %s13286_s23, 4  ;;  %s13287_s4 = smov [#allocation31]   ;;  %s780_s27 = int_to_ptr.vmem [resolvable:$true] %s779_s27 }
 0x1b7   : > { %s805_s29 = sshll.u32 %s13287_s4, 4  ;;  %s13100_s1 = scalar_lea.hbm %s16495_s20, 65536  ;;  %s13871_s29 = int_to_ptr.vmem [resolvable:$true] %s805_s29 }
 0x1b8   : > { %p13101_p1 = scmp.ne.s32.totalorder %s16495_s20, %s13100_s1  ;;  %p13107_p0 = scmp.lt.u32.totalorder %s13100_s1, %s16495_s20 }
 0x1ba   : > { %p13103_p3 = pnand %p13101_p1, %p13503_p7 }
 0x1bc   : > { %p13104_p13 = pneg %p13103_p3 }
 0x1be   : > { %p13109_p2 = pnand %p13107_p0, %p13104_p13 }
 0x1c0   : > { %13112 = shalt.err (!%p13109_p2)
}
 0x1c1   : > { %s13113_s25 = scalar_lea.vmem %s780_s27, 65536  ;;  %p13121_p9 = scmp.lt.s32.totalorder %s780_s27, %s780_s27 }
 0x1c2   : > { %p13114_p4 = scmp.ne.s32.totalorder %s780_s27, %s13113_s25  ;;  %p13122_p10 = scmp.lt.s32.totalorder %s13113_s25, %s13113_s25 }
 0x1c4   : > { %p13116_p6 = pnand %p13114_p4, %p13503_p7  ;;  %p13123_p11 = por %p13122_p10, %p13121_p9 }
 0x1c6   : > { %p13117_p8 = pneg %p13116_p6 }
 0x1c8   : > { %p13124_p12 = pnand %p13123_p11, %p13117_p8 }
 0x1ca   : > { %13127 = shalt.err (!%p13124_p12)
}
 0x1cb   : > { %12265 = dma.hbm_to_vmem [thread:$0]  (!%p13487_p5), %s16495_s20, 65536, %s780_s27, [#allocation27], %s16590_s9, %s16590_s9, %s16586_s28  }
 0x1cc   : > { %s13128_s4 = scalar_lea.hbm %s16497_s22, 1152 }
 0x1cd   : > { %p13129_p1 = scmp.ne.s32.totalorder %s16497_s22, %s13128_s4  ;;  %p13135_p0 = scmp.lt.u32.totalorder %s13128_s4, %s16497_s22 }
 0x1cf   : > { %p13131_p3 = pnand %p13129_p1, %p13503_p7 }
 0x1d1   : > { %p13132_p13 = pneg %p13131_p3 }
 0x1d3   : > { %p13137_p2 = pnand %p13135_p0, %p13132_p13 }
 0x1d5   : > { %13140 = shalt.err (!%p13137_p2)
}
 0x1d6   : > { %s13141_s28 = scalar_lea.vmem %s13871_s29, 1152  ;;  %p13149_p9 = scmp.lt.s32.totalorder %s13871_s29, %s13871_s29 }
 0x1d7   : > { %p13142_p4 = scmp.ne.s32.totalorder %s13871_s29, %s13141_s28  ;;  %p13150_p10 = scmp.lt.s32.totalorder %s13141_s28, %s13141_s28 }
 0x1d9   : > { %p13144_p6 = pnand %p13142_p4, %p13503_p7  ;;  %p13151_p11 = por %p13150_p10, %p13149_p9 }
 0x1db   : > { %p13145_p8 = pneg %p13144_p6 }
 0x1dd   : > { %p13152_p12 = pnand %p13151_p11, %p13145_p8 }
 0x1df   : > { %13155 = shalt.err (!%p13152_p12)
}
 0x1e0   : > { %s16598_s2 = sld [smem:[#allocation45_spill]]  ;;  %s16599_s0 = sld [smem:[#allocation44_spill]] }
 0x1e1   : > { %s16600_s6 = sld [smem:[#allocation43_spill]]  ;;  %s16601_s25 = sld [smem:[#allocation42_spill]] }
 0x1e2   : > { %s16602_s10 = sld [smem:[#allocation46_spill]]  ;;  %s16605_s13 = sld [smem:[#allocation62_spill]] }
 0x1e3   : > { %12271 = dma.hbm_to_vmem [thread:$0]  (!%p13487_p5), %s16497_s22, 1152, %s13871_s29, [#allocation30], %s16596_s3, %s16596_s3, %s16595_s24  }
 0x1e6   : > { %s13921_s7 = sadd.s32 1, %s16598_s2   ;;  %s52_s8 = sadd.s32 1, %s16599_s0 }
 0x1e7   : > { %s49_s30 = ssub.s32 %s16598_s2, %s13921_s7  ;;  %p59_p7 = scmp.ne.s32.totalorder %s16599_s0, %s16600_s6 }
 0x1e8   : > { %p50_p1 = scmp.eq.s32.totalorder %s49_s30, 0  ;;  %p60_p3 = scmp.eq.s32.totalorder %s16598_s2, 0 }
 0x1e9   : > { %p65_p13 = scmp.ne.s32.totalorder %s16600_s6, %s16601_s25  ;;  %p12294_p0 = scmp.lt.s32.totalorder %s16598_s2, 2 }
 0x1ea   : > { %s13933_s23 = scalar_select %p50_p1, %s16599_s0, %s52_s8  }
 0x1eb   : > { %p61_p2 = por %p60_p3, %p59_p7  ;;  %p16603_p4 = scmp.eq.s32.totalorder %s16602_s10, 0 }
 0x1ec   : > { %s819_s5 = sand.u32 1, %s16599_s0   ;;  %s10861_s24 = sshll.u32 %s16598_s2, 4 }
 0x1ed   : > { %p13937_p6 = por %p16603_p4, %p65_p13  ;;  %s13946_s1 = scalar_lea.hbm %s16605_s13, %s10861_s24 }
 0x1ee   : > { %s822_s11 = scalar_lea.vmem [#allocation3], %s819_s5  ;;  %p13950_p5 = pnand %p12294_p0, %p61_p2 }
 0x1ef   : > { %s829_s28 = sshll.u32 %s822_s11, 4  ;;  %s820_s27 = scalar_lea.sflag [#allocation4], %s819_s5  ;;  %s13948_s28 = int_to_ptr.vmem [resolvable:$true] %s829_s28 }
 0x1f0   : > { %s13156_s2 = scalar_lea.hbm %s13946_s1, 16  ;;  %p13158_p9 = pneg %p13950_p5 }
 0x1f1   : > { %p13157_p8 = scmp.ne.s32.totalorder %s13946_s1, %s13156_s2  ;;  %s13161_s25 = scalar_lea.hbm %s16605_s13, 32 }
 0x1f2   : > { %p13162_p12 = scmp.lt.u32.totalorder %s13946_s1, %s16605_s13  ;;  %p13163_p7 = scmp.lt.u32.totalorder %s13161_s25, %s13156_s2 }
 0x1f3   : > { %p13159_p10 = pnand %p13158_p9, %p13157_p8  ;;  %p13165_p3 = scmp.lt.u32.totalorder %s13156_s2, %s13946_s1 }
 0x1f4   : > { %p13164_p1 = por %p13163_p7, %p13162_p12 }
 0x1f5   : > { %p13160_p11 = pneg %p13159_p10 }
 0x1f6   : > { %p13166_p13 = por %p13165_p3, %p13164_p1 }
 0x1f8   : > { %p13167_p0 = pnand %p13166_p13, %p13160_p11 }
 0x1fa   : > { %13170 = shalt.err (!%p13167_p0)
}
 0x1fb   : > { %s13171_s30 = scalar_lea.vmem %s13948_s28, 16  ;;  %s13288_s5 = smov [#allocation3]  }
 0x1fc   : > { %p13172_p2 = scmp.ne.s32.totalorder %s13948_s28, %s13171_s30  ;;  %s13176_s24 = sshll.u32 %s13288_s5, 4  ;;  %s13177_s24 = int_to_ptr.vmem [resolvable:$false] %s13176_s24 }
 0x1fd   : > { %s13178_s3 = scalar_lea.vmem %s13177_s24, 32  ;;  %p13179_p10 = scmp.lt.s32.totalorder %s13948_s28, %s13177_s24 }
 0x1fe   : > { %p13174_p4 = pnand %p13172_p2, %p13158_p9  ;;  %p13180_p12 = scmp.lt.s32.totalorder %s13178_s3, %s13171_s30 }
 0x200   : > { %p13175_p8 = pneg %p13174_p4  ;;  %p13181_p7 = por %p13180_p12, %p13179_p10 }
 0x202   : > { %p13182_p1 = pnand %p13181_p7, %p13175_p8 }
 0x204   : > { %13185 = shalt.err (!%p13182_p1)
}
 0x205   : > { %12275 = dma.hbm_to_vmem [thread:$0]  (!%p13950_p5), %s13946_s1, 16, %s13948_s28, %s820_s27  }
 0x206   : > { %s16607_s29 = sld [smem:[#allocation47_spill]] }
 0x20c   : > { %p16608_p11 = scmp.ne.s32.totalorder %s16607_s29, 0 }
 0x20e   : > { %838 = sbr.rel (%p16608_p11) target bundleno = 5911 (0x1717), region = 112 }
 0x215   : > { %s16609_s11 = sld [smem:[#allocation43_spill]] }
 0x21b   : > { %s840_s2 = sand.u32 1, %s16609_s11  }
 0x21c   : > { %s841_s0 = scalar_lea.sflag [#allocation4], %s840_s2  ;;  %s843_s6 = scalar_lea.vmem [#allocation3], %s840_s2 }
 0x21d   : > { %13203 = dma.done.wait (%p13937_p6), %s841_s0, 16  }
 0x21e   : > { %13205 = vsyncadd (%p13937_p6), %s841_s0, 4294967280  ;;  %s16610_s25 = sld [smem:[#allocation46_spill]] }
 0x224   : > { %p16611_p9 = scmp.eq.s32.totalorder %s16610_s25, 0 }
 0x226   : > { %13207 = dma.done.wait (%p16611_p9), [#allocation6], 1152   ;;  %p16612_p3 = pmov %p16611_p9 }
 0x228   : > { %13209 = vsyncadd (%p16612_p3), [#allocation6], 4294966144  ;;  %p16613_p5 = pmov %p16612_p3 }
 0x229   : > { %p16614_p13 = pmov %p16612_p3 }
 0x22a   : > { %13211 = dma.done.wait (%p16613_p5), [#allocation9], 4224  }
 0x22b   : > { %13213 = vsyncadd (%p16614_p13), [#allocation9], 4294963072  ;;  %p16615_p0 = pmov %p16612_p3 }
 0x22d   : > { %13215 = dma.done.wait (%p16615_p0), [#allocation12], 656   ;;  %p16616_p2 = pmov %p16615_p0 }
 0x22e   : > { %p16617_p6 = pmov %p16615_p0 }
 0x22f   : > { %13217 = vsyncadd (%p16616_p2), [#allocation12], 4294966640 }
 0x230   : > { %13219 = dma.done.wait (%p16617_p6), [#allocation15], 1680   ;;  %p16618_p4 = pmov %p16615_p0 }
 0x231   : > { %p16619_p8 = pmov %p16615_p0 }
 0x232   : > { %13221 = vsyncadd (%p16618_p4), [#allocation15], 4294965616 }
 0x233   : > { %13223 = dma.done.wait (%p16619_p8), [#allocation18], 2048   ;;  %p16620_p10 = pmov %p16615_p0 }
 0x234   : > { %p16621_p12 = pmov %p16615_p0 }
 0x235   : > { %13225 = vsyncadd (%p16620_p10), [#allocation18], 4294965248 }
 0x236   : > { %13227 = dma.done.wait (%p16621_p12), [#allocation21], 4608   ;;  %p16622_p7 = pmov %p16615_p0 }
 0x237   : > { %p16623_p1 = pmov %p16615_p0 }
 0x238   : > { %13229 = vsyncadd (%p16622_p7), [#allocation21], 4294962688 }
 0x239   : > { %13231 = dma.done.wait (%p16623_p1), [#allocation24], 1312   ;;  %p16624_p11 = pmov %p16615_p0 }
 0x23a   : > { %p16625_p9 = pmov %p16615_p0 }
 0x23b   : > { %13233 = vsyncadd (%p16624_p11), [#allocation24], 4294965984 }
 0x23c   : > { %13235 = dma.done.wait (%p16625_p9), [#allocation27], 66560   ;;  %p16626_p3 = pmov %p16615_p0 }
 0x23d   : > { %p16627_p5 = pmov %p16615_p0 }
 0x23e   : > { %13237 = vsyncadd (%p16626_p3), [#allocation27], 4294900736 }
 0x23f   : > { %13239 = dma.done.wait (%p16627_p5), [#allocation30], 1280   ;;  %p16628_p13 = pmov %p16615_p0 }
 0x240   : > { %v16542_v0 = vmov 0   ;;  %v985_v1 = vld [vmem:[#allocation5] sm:$0xff]  ;;  %v983_v3 = vld [vmem:[%s843_s6] sm:$0x1]  ;;  %v986_v6 = vld [vmem:[#allocation5 + $0x8] sm:$0xff]  ;;  %vm1033_vm0 = vcmask 130048  }
 0x241   : > { %13241 = vsyncadd (%p16628_p13), [#allocation30], 4294966016  ;;  %1069 = vmatprep.mubr.bf16.mxu1 %v16542_v0  ;;  %1151 = vmatprep.mubr.bf16.mxu0 %v16542_v0  ;;  %v989_v2 = vld [vmem:[#allocation5 + $0x20] sm:$0xff]  ;;  %v990_v7 = vld [vmem:[#allocation5 + $0x28] sm:$0xff]  ;;  %v984_v13 = vpack.c.bf16 %v983_v3, %v983_v3  ;;  %vm1201_vm1 = vcmask 1040384   ;;  %s16629_s28 = sld [smem:[#allocation67_spill]] }
 0x242   : > { %v10884_v4 = vcombine.high %v985_v1, %v989_v2  ;;  %v10883_v5 = vcombine.low %v985_v1, %v989_v2  ;;  %v987_v8 = vld [vmem:[#allocation5 + $0x10] sm:$0xff]  ;;  %v10886_v9 = vcombine.high %v986_v6, %v990_v7  ;;  %v988_v11 = vld [vmem:[#allocation5 + $0x18] sm:$0xff]  ;;  %v10885_v16 = vcombine.low %v986_v6, %v990_v7  ;;  %s16540_s24 = smov 16   ;;  %s13291_s3 = smov 11  }
 0x243   : > { %v991_v10 = vld [vmem:[#allocation5 + $0x30] sm:$0xff]  ;;  %v992_v12 = vld [vmem:[#allocation5 + $0x38] sm:$0xff]  ;;  %s13292_s29 = smov 12   ;;  %s13293_s11 = smov 4   ;;  %vm2457_vm2 = vcmask 1047680   ;;  %vm3333_vm3 = vcmask 523264  }
 0x244   : > { %1037 = vmatprep.subr.bf16.mxu1 %v10884_v4  ;;  %v10888_v14 = vcombine.high %v987_v8, %v991_v10  ;;  %v10887_v15 = vcombine.low %v987_v8, %v991_v10  ;;  %v10890_v17 = vcombine.high %v988_v11, %v992_v12  ;;  %v10889_v18 = vcombine.low %v988_v11, %v992_v12  ;;  %s13294_s2 = smov 5   ;;  %s13295_s0 = smov 13  }
 0x245   : > { %1038 = vmatpush1.bf16.msra.mxu1 %v10883_v5  ;;  %s16538_s6 = smov 15   ;;  %s13297_s4 = smov 3   ;;  %vm4191_vm4 = vcmask 1048064   ;;  %vm4621_vm5 = vcmask 261120  }
 0x246   : > { %1078 = vmatprep.subr.bf16.mxu1 %v10886_v9  ;;  %1119 = vmatprep.subr.bf16.mxu0 %v10888_v14  ;;  %s13298_s1 = smov 1   ;;  %s13299_s9 = smov 115  }
 0x247   : > { %1120 = vmatpush1.bf16.msra.mxu0 %v10887_v15  ;;  %s13300_s27 = smov 117   ;;  %s16536_s10 = smov 113  }
 0x248   : > { %10891 = vmatmul.mubr.msk.bf16.vlgmr.msra.gmra.mrb[0].mxu1 %vm1033_vm0, %v984_v13  ;;  %s13302_s8 = smov 116   ;;  %s13303_s30 = smov 125  }
 0x249   : > { %1079 = vmatpush1.bf16.msra.mxu1 %v10885_v16  ;;  %1110 = vmatprep.mubr.bf16.mxu1 %v16542_v0  ;;  %s13304_s5 = smov 124   ;;  %p977_p0 = scmp.lt.s32.totalorder %s16610_s25, 1 }
 0x24a   : > { %10893 = vmatmul.mubr.msk.bf16.vlgmr.msra.gmra.mrb[0].mxu0 %vm1033_vm0, %v984_v13  ;;  %1160 = vmatprep.subr.bf16.mxu1 %v10890_v17 }
 0x24b   : > { %s16671_s25 = smov (!%p977_p0, %s16610_s25), 1 }
 0x250   : > { %10892 = vmatmul.mubr.msk.bf16.vlgmr.msra.gmra.mrb[4].mxu1 %vm1033_vm0, %v984_v13 }
 0x251   : > { %1161 = vmatpush1.bf16.msra.mxu1 %v10889_v18  ;;  %1192 = vmatprep.mubr.bf16.mxu1 %v16542_v0 }
 0x258   : > { %10894 = vmatmul.mubr.msk.bf16.vlgmr.msra.gmra.mrb[8].mxu1 %vm1033_vm0, %v984_v13 }
 0x31b   : > { %v1071_v19 = vpop.f32.mrb[0].mxu1 }
 0x31c   : > { %v1202_v20 = vsel %vm1201_vm1, %v1071_v19, 0.0  ;;  %v1073_v21 = vpop.f32.mrb[1].mxu1 }
 0x31d   : > { %v1203_v22 = vsel %vm1201_vm1, %v1073_v21, 0.0  ;;  %v1075_v23 = vpop.f32.mrb[2].mxu1  ;;  %v1153_v24 = vpop.f32.mrb[0].mxu0 }
 0x31e   : > { %v1204_v25 = vadd.f32 %v1203_v22, %v1202_v20  ;;  %v1076_v26 = vpop.f32.mrb[3].mxu1  ;;  %v1155_v27 = vpop.f32.mrb[1].mxu0  ;;  %v1209_v36 = vsel %vm1201_vm1, %v1153_v24, 0.0  ;;  %v12417_v20 = vld [vmem:[%s16629_s28 + $0x40] sm:$0xff]  }
 0x31f   : > { %v1157_v28 = vpop.f32.mrb[2].mxu0  ;;  %v1211_v40 = vsel %vm1201_vm1, %v1155_v27, 0.0  ;;  %v12419_v22 = vld [vmem:[%s16629_s28] sm:$0xff]   ;;  %11653 = vmatprep.subr.bf16.mxu0 %v12417_v20  ;;  %v12423_v26 = vld [vmem:[%s16629_s28 + $0x8] sm:$0xff]  }
 0x320   : > { %v1158_v29 = vpop.f32.mrb[3].mxu0  ;;  %v12420_v23 = vld [vmem:[%s16629_s28 + $0x80] sm:$0xff]   ;;  %11654 = vmatpush3.bf16.msra.mxu0 %v12419_v22  ;;  %v12425_v28 = vld [vmem:[%s16629_s28 + $0x50] sm:$0xff]  }
 0x321   : > { %v12426_v29 = vld [vmem:[%s16629_s28 + $0xd0] sm:$0xff]  }
 0x323   : > { %v1112_v30 = vpop.f32.mrb[4].mxu1 }
 0x324   : > { %v1205_v31 = vsel %vm1201_vm1, %v1112_v30, 0.0  ;;  %v1114_v32 = vpop.f32.mrb[5].mxu1 }
 0x325   : > { %v1206_v33 = vadd.f32 %v1205_v31, %v1204_v25  ;;  %v1207_v34 = vsel %vm1201_vm1, %v1114_v32, 0.0  ;;  %v1116_v35 = vpop.f32.mrb[6].mxu1  ;;  %v12422_v25 = vld [vmem:[%s16629_s28 + $0xc8] sm:$0xff]   ;;  %v12428_v31 = vld [vmem:[%s16629_s28 + $0x90] sm:$0xff]  }
 0x326   : > { %v1117_v37 = vpop.f32.mrb[7].mxu1  ;;  %v12432_v35 = vld [vmem:[%s16629_s28 + $0x98] sm:$0xff]  }
 0x327   : > { %v1208_v38 = vadd.f32 %v1207_v34, %v1206_v33  ;;  %v12430_v33 = vld [vmem:[%s16629_s28 + $0xd8] sm:$0xff]   ;;  %v12434_v37 = vld [vmem:[%s16629_s28 + $0xe0] sm:$0xff]  }
 0x328   : > { %v12431_v34 = vld [vmem:[%s16629_s28 + $0x18] sm:$0xff]  }
 0x329   : > { %v1210_v39 = vadd.f32 %v1209_v36, %v1208_v38  ;;  %v12433_v36 = vld [vmem:[%s16629_s28 + $0x60] sm:$0xff]  }
 0x32a   : > { %v12435_v38 = vld [vmem:[%s16629_s28 + $0x20] sm:$0xff]  }
 0x32b   : > { %v1212_v41 = vadd.f32 %v1211_v40, %v1210_v39  ;;  %v1194_v42 = vpop.f32.mrb[8].mxu1  ;;  %v12436_v39 = vld [vmem:[%s16629_s28 + $0xa0] sm:$0xff]   ;;  %v12437_v40 = vld [vmem:[%s16629_s28 + $0x68] sm:$0xff]  }
 0x32c   : > { %v1213_v43 = vsel %vm1201_vm1, %v1194_v42, 0.0  ;;  %v1196_v44 = vpop.f32.mrb[9].mxu1 }
 0x32d   : > { %v1198_v45 = vpop.f32.mrb[10].mxu1  ;;  %v1214_v46 = vadd.f32 %v1213_v43, %v1212_v41  ;;  %v1215_v47 = vsel %vm1201_vm1, %v1196_v44, 0.0  ;;  %v12438_v41 = vld [vmem:[%s16629_s28 + $0xe8] sm:$0xff]  }
 0x32e   : > { %v1199_v48 = vpop.f32.mrb[11].mxu1  ;;  %v12440_v43 = vld [vmem:[%s16629_s28 + $0xa8] sm:$0xff]   ;;  %v12442_v45 = vld [vmem:[%s16629_s28 + $0xf0] sm:$0xff]  }
 0x32f   : > { %v1216_v49 = vadd.f32 %v1215_v47, %v1214_v46  ;;  %v12443_v46 = vld [vmem:[%s16629_s28 + $0x30] sm:$0xff]   ;;  %v12445_v48 = vld [vmem:[%s16629_s28 + $0x78] sm:$0xff]  }
 0x330   : > { %v12444_v47 = vld [vmem:[%s16629_s28 + $0xb0] sm:$0xff]  }
 0x331   : > { %1217 = vadd.xlane.f32.xlu0 %v1216_v49  ;;  %v12446_v49 = vld [vmem:[%s16629_s28 + $0xf8] sm:$0xff]  }
 0x3be   : > { %v1218_v50 = vpop.xlane.xlu0 %1217 }
 0x3bf   : > { %v1220_v51 = vmul.f32 0.0009765625, %v1218_v50  ;;  %v12447_v50 = vld [vmem:[%s16629_s28 + $0x38] sm:$0xff]  }
 0x3c1   : > { %v14038_v52 = vsub.f32 %v1071_v19, %v1220_v51  ;;  %v14040_v53 = vsub.f32 %v1073_v21, %v1220_v51  ;;  %v14042_v54 = vsub.f32 %v1112_v30, %v1220_v51  ;;  %v14044_v55 = vsub.f32 %v1114_v32, %v1220_v51  ;;  %v12418_v21 = vld [vmem:[%s16629_s28 + $0xc0] sm:$0xff]   ;;  %v12427_v30 = vld [vmem:[%s16629_s28 + $0x10] sm:$0xff]   ;;  %v12429_v32 = vld [vmem:[%s16629_s28 + $0x58] sm:$0xff]  }
 0x3c2   : > { %v14046_v56 = vsub.f32 %v1153_v24, %v1220_v51  ;;  %v14054_v60 = vsub.f32 %v1155_v27, %v1220_v51  ;;  %v14060_v2 = vsub.f32 %v1194_v42, %v1220_v51  ;;  %v14065_v6 = vsub.f32 %v1196_v44, %v1220_v51  ;;  %v12421_v24 = vld [vmem:[%s16629_s28 + $0x48] sm:$0xff]   ;;  %11693 = vmatprep.subr.bf16.mxu1 %v12418_v21  ;;  %v12441_v44 = vld [vmem:[%s16629_s28 + $0x70] sm:$0xff]   ;;  %v12448_v51 = vld [vmem:[%s16629_s28 + $0xb8] sm:$0xff]  }
 0x3c3   : > { %v1229_v57 = vmul.f32 %v14038_v52, %v14038_v52  ;;  %v1230_v58 = vmul.f32 %v14040_v53, %v14040_v53  ;;  %v1231_v59 = vmul.f32 %v14042_v54, %v14042_v54  ;;  %v1232_v61 = vmul.f32 %v14044_v55, %v14044_v55  ;;  %11694 = vmatpush3.bf16.msra.mxu1 %v12420_v23  ;;  %v12424_v27 = vld [vmem:[%s16629_s28 + $0x88] sm:$0xff]  }
 0x3c4   : > { %v1233_v3 = vmul.f32 %v14046_v56, %v14046_v56  ;;  %v1234_v7 = vmul.f32 %v14054_v60, %v14054_v60  ;;  %v1235_v10 = vmul.f32 %v14060_v2, %v14060_v2  ;;  %v1236_v13 = vmul.f32 %v14065_v6, %v14065_v6  ;;  %11655 = vmatprep.subr.bf16.mxu0 %v12421_v24  ;;  %v12439_v42 = vld [vmem:[%s16629_s28 + $0x28] sm:$0xff]  }
 0x3c5   : > { %v1237_v62 = vsel %vm1201_vm1, %v1229_v57, 0.0  ;;  %v1238_v63 = vsel %vm1201_vm1, %v1230_v58, 0.0  ;;  %v1240_v4 = vsel %vm1201_vm1, %v1231_v59, 0.0  ;;  %v1242_v8 = vsel %vm1201_vm1, %v1232_v61, 0.0  ;;  %11695 = vmatprep.subr.bf16.mxu1 %v12422_v25  ;;  %11656 = vmatpush3.bf16.msra.mxu0 %v12423_v26  ;;  %v12449_v57 = vld [vmem:[%s16629_s28 + $0x140] sm:$0xff]  }
 0x3c6   : > { %v1239_v1 = vadd.f32 %v1238_v63, %v1237_v62  ;;  %v1244_v11 = vsel %vm1201_vm1, %v1233_v3, 0.0  ;;  %v1246_v14 = vsel %vm1201_vm1, %v1234_v7, 0.0  ;;  %v1248_v16 = vsel %vm1201_vm1, %v1235_v10, 0.0  ;;  %11657 = vmatprep.subr.bf16.mxu0 %v12425_v28  ;;  %v12450_v58 = vld [vmem:[%s16629_s28 + $0x1c0] sm:$0xff]  }
 0x3c7   : > { %v1250_v18 = vsel %vm1201_vm1, %v1236_v13, 0.0  ;;  %11696 = vmatpush3.bf16.msra.mxu1 %v12424_v27  ;;  %v1267_v62 = vlaneseq }
 0x3c8   : > { %v1241_v5 = vadd.f32 %v1240_v4, %v1239_v1  ;;  %11697 = vmatprep.subr.bf16.mxu1 %v12426_v29  ;;  %v1265_v4 = vld [vmem:[#allocation7] sm:$0xff] }
 0x3c9   : > { %11658 = vmatpush3.bf16.msra.mxu0 %v12427_v30  ;;  %v1268_v1 = vshrl.u32 %v1267_v62, 7 }
 0x3ca   : > { %v1243_v9 = vadd.f32 %v1242_v8, %v1241_v5  ;;  %11659 = vmatprep.subr.bf16.mxu0 %v12429_v32 }
 0x3cb   : > { %11698 = vmatpush3.bf16.msra.mxu1 %v12428_v31  ;;  %v14181_v3 = vsub.s32 0, %v1268_v1  ;;  %v14183_v5 = vsub.s32 1, %v1268_v1  ;;  %v14185_v7 = vsub.s32 2, %v1268_v1  ;;  %v14187_v8 = vsub.s32 3, %v1268_v1 }
 0x3cc   : > { %v1245_v12 = vadd.f32 %v1244_v11, %v1243_v9  ;;  %11699 = vmatprep.subr.bf16.mxu1 %v12430_v33  ;;  %v14189_v9 = vld [vmem:[#allocation8] sm:$0xff]  ;;  %v14192_v11 = vsub.s32 4, %v1268_v1  ;;  %v14207_v21 = vsub.s32 6, %v1268_v1  ;;  %v14215_v28 = vsub.s32 7, %v1268_v1 }
 0x3cd   : > { %11660 = vmatpush3.bf16.msra.mxu0 %v12431_v34  ;;  %v1270_v10 = vrot.slane %v1265_v4, %v14181_v3  ;;  %v1274_v13 = vrot.slane %v1265_v4, %v14183_v5  ;;  %v1332_v20 = vrot.slane %v14189_v9, %v14187_v8 }
 0x3ce   : > { %v1247_v15 = vadd.f32 %v1246_v14, %v1245_v12  ;;  %11661 = vmatprep.subr.bf16.mxu0 %v12433_v36  ;;  %v14194_v12 = vsub.s32 5, %v1268_v1  ;;  %v1320_v14 = vrot.slane %v14189_v9, %v14181_v3  ;;  %v1286_v26 = vrot.slane %v1265_v4, %v14192_v11 }
 0x3cf   : > { %11700 = vmatpush3.bf16.msra.mxu1 %v12432_v35 }
 0x3d0   : > { %v1249_v17 = vadd.f32 %v1248_v16, %v1247_v15  ;;  %11701 = vmatprep.subr.bf16.mxu1 %v12434_v37  ;;  %v1278_v15 = vrot.slane %v1265_v4, %v14185_v7  ;;  %v1282_v16 = vrot.slane %v1265_v4, %v14187_v8  ;;  %v1290_v27 = vrot.slane %v1265_v4, %v14194_v12 }
 0x3d1   : > { %11662 = vmatpush3.bf16.msra.mxu0 %v12435_v38  ;;  %v1336_v37 = vrot.slane %v14189_v9, %v14192_v11  ;;  %v1340_v38 = vrot.slane %v14189_v9, %v14194_v12 }
 0x3d2   : > { %v1251_v19 = vadd.f32 %v1250_v18, %v1249_v17  ;;  %11663 = vmatprep.subr.bf16.mxu0 %v12437_v40  ;;  %v1324_v18 = vrot.slane %v14189_v9, %v14183_v5 }
 0x3d3   : > { %11702 = vmatpush3.bf16.msra.mxu1 %v12436_v39  ;;  %v1298_v39 = vrot.slane %v1265_v4, %v14215_v28 }
 0x3d4   : > { %1252 = vadd.xlane.f32.xlu0 %v1251_v19  ;;  %11703 = vmatprep.subr.bf16.mxu1 %v12438_v41  ;;  %v1328_v19 = vrot.slane %v14189_v9, %v14185_v7 }
 0x3d5   : > { %11664 = vmatpush3.bf16.msra.mxu0 %v12439_v42 }
 0x3d6   : > { %11665 = vmatprep.subr.bf16.mxu0 %v12441_v44 }
 0x3d7   : > { %11704 = vmatpush3.bf16.msra.mxu1 %v12440_v43 }
 0x3d8   : > { %11705 = vmatprep.subr.bf16.mxu1 %v12442_v45 }
 0x3d9   : > { %11666 = vmatpush3.bf16.msra.mxu0 %v12443_v46 }
 0x3da   : > { %11667 = vmatprep.subr.bf16.mxu0 %v12445_v48 }
 0x3db   : > { %11706 = vmatpush3.bf16.msra.mxu1 %v12444_v47 }
 0x3dc   : > { %11707 = vmatprep.subr.bf16.mxu1 %v12446_v49 }
 0x3dd   : > { %11668 = vmatpush3.bf16.msra.mxu0 %v12447_v50  ;;  %v1348_v50 = vrot.slane %v14189_v9, %v14215_v28 }
 0x3de   : > { %11733 = vmatprep.subr.bf16.mxu0 %v12449_v57 }
 0x3df   : > { %11708 = vmatpush3.bf16.msra.mxu1 %v12448_v51 }
 0x3e0   : > { %11773 = vmatprep.subr.bf16.mxu1 %v12450_v58 }
 0x461   : > { %v1253_v59 = vpop.xlane.xlu0 %1252 }
 0x462   : > { %v1254_v61 = vmul.f32 0.0009765625, %v1253_v59 }
 0x464   : > { %v1255_v63 = vadd.f32 1e-05, %v1254_v61 }
 0x466   : > { %12612 = vrsqrt.f32 %v1255_v63 }
 0x470   : > { %v12613_v17 = vpop.eup %12612 }
 0x471   : > { %v1257_v22 = vmul.f32 %v12613_v17, %v14038_v52  ;;  %v1258_v23 = vmul.f32 %v12613_v17, %v14040_v53  ;;  %v1259_v24 = vmul.f32 %v12613_v17, %v14042_v54  ;;  %v1260_v25 = vmul.f32 %v12613_v17, %v14044_v55 }
 0x472   : > { %v1261_v33 = vmul.f32 %v12613_v17, %v14046_v56  ;;  %v1262_v52 = vmul.f32 %v12613_v17, %v14054_v60  ;;  %v1263_v53 = vmul.f32 %v12613_v17, %v14060_v2  ;;  %v1294_v54 = vrot.slane %v1265_v4, %v14207_v21 }
 0x473   : > { %v1307_v29 = vmul.f32 %v1270_v10, %v1257_v22  ;;  %v1308_v30 = vmul.f32 %v1274_v13, %v1258_v23  ;;  %v1309_v31 = vmul.f32 %v1278_v15, %v1259_v24  ;;  %v1310_v32 = vmul.f32 %v1282_v16, %v1260_v25  ;;  %v1381_v10 = vld [vmem:[#allocation10] sm:$0xff]  ;;  %v1390_v23 = vld [vmem:[#allocation10 + $0x48] sm:$0xff] }
 0x474   : > { %v1344_v56 = vrot.slane %v14189_v9, %v14207_v21  ;;  %v1311_v42 = vmul.f32 %v1286_v26, %v1261_v33  ;;  %v1312_v43 = vmul.f32 %v1290_v27, %v1262_v52  ;;  %v1264_v44 = vmul.f32 %v12613_v17, %v14065_v6  ;;  %v1385_v13 = vld [vmem:[#allocation10 + $0x20] sm:$0xff]  ;;  %v1382_v17 = vld [vmem:[#allocation10 + $0x8] sm:$0xff] }
 0x475   : > { %v1357_v34 = vadd.f32 %v1320_v14, %v1307_v29  ;;  %v1358_v55 = vadd.f32 %v1324_v18, %v1308_v30  ;;  %v1359_v35 = vadd.f32 %v1328_v19, %v1309_v31  ;;  %v1360_v36 = vadd.f32 %v1332_v20, %v1310_v32  ;;  %v1386_v9 = vld [vmem:[#allocation10 + $0x28] sm:$0xff]  ;;  %v1389_v18 = vld [vmem:[#allocation10 + $0x40] sm:$0xff] }
 0x476   : > { %v1313_v45 = vmul.f32 %v1294_v54, %v1263_v53  ;;  %v1361_v61 = vadd.f32 %v1336_v37, %v1311_v42  ;;  %v1362_v63 = vadd.f32 %v1340_v38, %v1312_v43  ;;  %v1314_v1 = vmul.f32 %v1298_v39, %v1264_v44  ;;  %v1393_v22 = vld [vmem:[#allocation10 + $0x60] sm:$0xff]  ;;  %v1394_v24 = vld [vmem:[#allocation10 + $0x68] sm:$0xff] }
 0x477   : > { %v1365_v60 = vmax.f32 %v1357_v34, 0.0  ;;  %v1366_v40 = vmax.f32 %v1358_v55, 0.0  ;;  %v1367_v2 = vmax.f32 %v1359_v35, 0.0  ;;  %v1368_v41 = vmax.f32 %v1360_v36, 0.0  ;;  %v12451_v38 = vld [vmem:[%s16629_s28 + $0x100] sm:$0xff]   ;;  %v1397_v42 = vld [vmem:[#allocation10 + $0x80] sm:$0xff] }
 0x478   : > { %v1363_v4 = vadd.f32 %v1344_v56, %v1313_v45  ;;  %v1369_v25 = vmax.f32 %v1361_v61, 0.0  ;;  %v1370_v26 = vmax.f32 %v1362_v63, 0.0  ;;  %v1364_v27 = vadd.f32 %v1348_v50, %v1314_v1  ;;  %v12452_v39 = vld [vmem:[%s16629_s28 + $0x180] sm:$0xff]   ;;  %v1401_v43 = vld [vmem:[#allocation10 + $0xa0] sm:$0xff]  ;;  %v12456_v50 = vld [vmem:[%s16629_s28 + $0x188] sm:$0xff]  }
 0x479   : > { %v1373_v46 = vpack.c.bf16 %v1365_v60, %v1365_v60  ;;  %v1374_v47 = vpack.c.bf16 %v1366_v40, %v1366_v40  ;;  %v1375_v48 = vpack.c.bf16 %v1367_v2, %v1367_v2  ;;  %v1376_v49 = vpack.c.bf16 %v1368_v41, %v1368_v41  ;;  %v12453_v2 = vld [vmem:[%s16629_s28 + $0x148] sm:$0xff]   ;;  %v1398_v44 = vld [vmem:[#allocation10 + $0x88] sm:$0xff] }
 0x47a   : > { %v1371_v29 = vmax.f32 %v1363_v4, 0.0  ;;  %v1372_v56 = vmax.f32 %v1364_v27, 0.0  ;;  %v12454_v41 = vld [vmem:[%s16629_s28 + $0x1c8] sm:$0xff]   ;;  %v1402_v45 = vld [vmem:[#allocation10 + $0xa8] sm:$0xff] }
 0x47b   : > { %v1414_v51 = vpack.i.b16 %v1373_v46, %v1373_v46  ;;  %v1421_v57 = vpack.i.b16 %v1374_v47, %v1374_v47  ;;  %v1428_v58 = vpack.i.b16 %v1375_v48, %v1375_v48  ;;  %v1435_v59 = vpack.i.b16 %v1376_v49, %v1376_v49  ;;  %v12455_v49 = vld [vmem:[%s16629_s28 + $0x108] sm:$0xff]   ;;  %v1410_v27 = vld [vmem:[#allocation10 + $0xe8] sm:$0xff] }
 0x47c   : > { %v1377_v46 = vpack.c.bf16 %v1369_v25, %v1369_v25  ;;  %v1378_v47 = vpack.c.bf16 %v1370_v26, %v1370_v26  ;;  %v1379_v48 = vpack.c.bf16 %v1371_v29, %v1371_v29  ;;  %v1409_v25 = vld [vmem:[#allocation10 + $0xe0] sm:$0xff]  ;;  %v1406_v26 = vld [vmem:[#allocation10 + $0xc8] sm:$0xff] }
 0x47d   : > { %v1419_v6 = vrot.slane %v1414_v51, %v14181_v3  ;;  %v1426_v14 = vrot.slane %v1421_v57, %v14181_v3  ;;  %v1433_v15 = vrot.slane %v1428_v58, %v14181_v3  ;;  %v1440_v16 = vrot.slane %v1435_v59, %v14181_v3  ;;  %v12457_v58 = vld [vmem:[%s16629_s28 + $0x150] sm:$0xff]  }
 0x47e   : > { %v1380_v57 = vpack.c.bf16 %v1372_v56, %v1372_v56  ;;  %v12458_v59 = vld [vmem:[%s16629_s28 + $0x1d0] sm:$0xff]   ;;  %v1442_v4 = vpack.i.b16 %v1377_v46, %v1377_v46  ;;  %v12468_v56 = vld [vmem:[%s16629_s28 + $0x1a0] sm:$0xff]   ;;  %v12471_v46 = vld [vmem:[%s16629_s28 + $0x128] sm:$0xff]  }
 0x47f   : > { %v14235_v19 = vcombine.low %v1419_v6, %v1426_v14  ;;  %v14237_v20 = vcombine.low %v1433_v15, %v1440_v16  ;;  %v12459_v15 = vld [vmem:[%s16629_s28 + $0x110] sm:$0xff]  }
 0x480   : > { %v12460_v16 = vld [vmem:[%s16629_s28 + $0x190] sm:$0xff]   ;;  %v1447_v29 = vrot.slane %v1442_v4, %v14181_v3 }
 0x481   : > { %v1493_v30 = vmul.bf16 %v14235_v19, %v1381_v10  ;;  %v1497_v31 = vmul.bf16 %v14235_v19, %v1385_v13  ;;  %v1494_v32 = vmul.bf16 %v14237_v20, %v1382_v17  ;;  %v1498_v33 = vmul.bf16 %v14237_v20, %v1386_v9 }
 0x482   : > { %v1501_v52 = vmul.bf16 %v14235_v19, %v1389_v18  ;;  %v1505_v53 = vmul.bf16 %v14235_v19, %v1393_v22  ;;  %v1502_v54 = vmul.bf16 %v14237_v20, %v1390_v23  ;;  %v1506_v34 = vmul.bf16 %v14237_v20, %v1394_v24  ;;  %v12461_v22 = vld [vmem:[%s16629_s28 + $0x158] sm:$0xff]  }
 0x483   : > { %v10900_v55 = vcombine.high %v1493_v30, %v1497_v31  ;;  %v10902_v35 = vcombine.high %v1494_v32, %v1498_v33  ;;  %v10899_v36 = vcombine.low %v1493_v30, %v1497_v31  ;;  %v10901_v37 = vcombine.low %v1494_v32, %v1498_v33  ;;  %v12462_v23 = vld [vmem:[%s16629_s28 + $0x1d8] sm:$0xff]  }
 0x484   : > { %v10908_v60 = vcombine.high %v1501_v52, %v1505_v53  ;;  %v10910_v40 = vcombine.high %v1502_v54, %v1506_v34  ;;  %v14266_v51 = vmul.bf16 %v14235_v19, %v1397_v42  ;;  %v1513_v61 = vmul.bf16 %v14235_v19, %v1401_v43  ;;  %v1405_v24 = vld [vmem:[#allocation10 + $0xc0] sm:$0xff]  ;;  %v1387_v43 = vld [vmem:[#allocation10 + $0x30] sm:$0xff] }
 0x485   : > { %2229 = vmatprep.mubr.bf16.mxu0 %v10900_v55  ;;  %2294 = vmatprep.mubr.bf16.mxu1 %v10902_v35  ;;  %v1510_v63 = vmul.bf16 %v14237_v20, %v1398_v44  ;;  %v1514_v1 = vmul.bf16 %v14237_v20, %v1402_v45  ;;  %v1449_v10 = vpack.i.b16 %v1378_v47, %v1378_v47  ;;  %v12463_v31 = vld [vmem:[%s16629_s28 + $0x118] sm:$0xff]   ;;  %v1384_v44 = vld [vmem:[#allocation10 + $0x18] sm:$0xff] }
 0x486   : > { %2230 = vmatmul.mubr.bf16.vlgmr.msra.gmra.mrb[4].mxu0 %v10899_v36  ;;  %2295 = vmatmul.mubr.bf16.vlgmr.msra.gmra.mrb[12].mxu1 %v10901_v37  ;;  %v1456_v13 = vpack.i.b16 %v1379_v48, %v1379_v48  ;;  %v10907_v6 = vcombine.low %v1501_v52, %v1505_v53  ;;  %v10909_v14 = vcombine.low %v1502_v54, %v1506_v34  ;;  %v12464_v32 = vld [vmem:[%s16629_s28 + $0x198] sm:$0xff]   ;;  %v12465_v54 = vld [vmem:[%s16629_s28 + $0x160] sm:$0xff]   ;;  %v1388_v45 = vld [vmem:[#allocation10 + $0x38] sm:$0xff] }
 0x487   : > { %2237 = vmatprep.mubr.bf16.mxu0 %v10908_v60  ;;  %2302 = vmatprep.mubr.bf16.mxu1 %v10910_v40  ;;  %v1463_v17 = vpack.i.b16 %v1380_v57, %v1380_v57  ;;  %v10916_v9 = vcombine.high %v14266_v51, %v1513_v61  ;;  %v10918_v18 = vcombine.high %v1510_v63, %v1514_v1  ;;  %v12466_v34 = vld [vmem:[%s16629_s28 + $0x1e0] sm:$0xff]   ;;  %v12472_v47 = vld [vmem:[%s16629_s28 + $0x1a8] sm:$0xff]  }
 0x488   : > { %11734 = vmatpush3.bf16.msra.mxu0 %v12451_v38  ;;  %11774 = vmatpush3.bf16.msra.mxu1 %v12452_v39  ;;  %v1454_v30 = vrot.slane %v1449_v10, %v14181_v3  ;;  %v1517_v33 = vmul.bf16 %v14235_v19, %v1405_v24  ;;  %v1461_v52 = vrot.slane %v1456_v13, %v14181_v3  ;;  %v12467_v39 = vld [vmem:[%s16629_s28 + $0x120] sm:$0xff]   ;;  %v12477_v13 = vld [vmem:[%s16629_s28 + $0x178] sm:$0xff]  }
 0x489   : > { %11735 = vmatprep.subr.bf16.mxu0 %v12453_v2  ;;  %11775 = vmatprep.subr.bf16.mxu1 %v12454_v41  ;;  %v1468_v53 = vrot.slane %v1463_v17, %v14181_v3  ;;  %v1521_v55 = vmul.bf16 %v14235_v19, %v1409_v25  ;;  %v1518_v35 = vmul.bf16 %v14237_v20, %v1406_v26  ;;  %v12470_v2 = vld [vmem:[%s16629_s28 + $0x1e8] sm:$0xff]  }
 0x48a   : > { %v1522_v36 = vmul.bf16 %v14237_v20, %v1410_v27  ;;  %v10915_v37 = vcombine.low %v14266_v51, %v1513_v61  ;;  %v10917_v38 = vcombine.low %v1510_v63, %v1514_v1  ;;  %v14317_v60 = vcombine.low %v1447_v29, %v1454_v30  ;;  %v12469_v20 = vld [vmem:[%s16629_s28 + $0x168] sm:$0xff]   ;;  %v12475_v63 = vld [vmem:[%s16629_s28 + $0x130] sm:$0xff]  }
 0x48b   : > { %v10924_v19 = vcombine.high %v1517_v33, %v1521_v55  ;;  %v1383_v41 = vld [vmem:[#allocation10 + $0x10] sm:$0xff]  ;;  %v14325_v42 = vcombine.low %v1461_v52, %v1468_v53  ;;  %v12476_v1 = vld [vmem:[%s16629_s28 + $0x1b0] sm:$0xff]  }
 0x48c   : > { %11736 = vmatpush3.bf16.msra.mxu0 %v12455_v49  ;;  %11776 = vmatpush3.bf16.msra.mxu1 %v12456_v50  ;;  %v10926_v40 = vcombine.high %v1518_v35, %v1522_v36  ;;  %v1495_v48 = vmul.bf16 %v14317_v60, %v1383_v41  ;;  %v12473_v49 = vld [vmem:[%s16629_s28 + $0x170] sm:$0xff]   ;;  %v1499_v51 = vmul.bf16 %v14317_v60, %v1387_v43 }
 0x48d   : > { %11737 = vmatprep.subr.bf16.mxu0 %v12457_v58  ;;  %11777 = vmatprep.subr.bf16.mxu1 %v12458_v59  ;;  %v12474_v50 = vld [vmem:[%s16629_s28 + $0x1f0] sm:$0xff]   ;;  %v1496_v57 = vmul.bf16 %v14325_v42, %v1384_v44  ;;  %v1500_v58 = vmul.bf16 %v14325_v42, %v1388_v45  ;;  %v10923_v59 = vcombine.low %v1517_v33, %v1521_v55 }
 0x48e   : > { %2238 = vmatmul.mubr.bf16.gmra.mrb[8].mxu0 %v10907_v6  ;;  %2303 = vmatmul.mubr.bf16.gmra.mrb[16].mxu1 %v10909_v14  ;;  %v10925_v61 = vcombine.low %v1518_v35, %v1522_v36  ;;  %v10904_v4 = vcombine.high %v1495_v48, %v1499_v51  ;;  %v12478_v6 = vld [vmem:[%s16629_s28 + $0x1f8] sm:$0xff]   ;;  %v1391_v14 = vld [vmem:[#allocation10 + $0x50] sm:$0xff]  ;;  %v1396_v17 = vld [vmem:[#allocation10 + $0x78] sm:$0xff]  ;;  %v10903_v26 = vcombine.low %v1495_v48, %v1499_v51 }
 0x48f   : > { %2245 = vmatprep.mubr.bf16.mxu0 %v10916_v9  ;;  %2310 = vmatprep.mubr.bf16.mxu1 %v10918_v18  ;;  %v10906_v10 = vcombine.high %v1496_v57, %v1500_v58  ;;  %v12479_v9 = vld [vmem:[%s16629_s28 + $0x138] sm:$0xff]   ;;  %v1508_v25 = vmul.bf16 %v14325_v42, %v1396_v17  ;;  %v10905_v27 = vcombine.low %v1496_v57, %v1500_v58  ;;  %v1400_v33 = vld [vmem:[#allocation10 + $0x98] sm:$0xff] }
 0x490   : > { %11738 = vmatpush3.bf16.msra.mxu0 %v12459_v15  ;;  %11778 = vmatpush3.bf16.msra.mxu1 %v12460_v16  ;;  %v1395_v15 = vld [vmem:[#allocation10 + $0x70] sm:$0xff]  ;;  %v1392_v16 = vld [vmem:[#allocation10 + $0x58] sm:$0xff]  ;;  %v12480_v18 = vld [vmem:[%s16629_s28 + $0x1b8] sm:$0xff]  }
 0x491   : > { %11739 = vmatprep.subr.bf16.mxu0 %v12461_v22  ;;  %11779 = vmatprep.subr.bf16.mxu1 %v12462_v23  ;;  %v1503_v22 = vmul.bf16 %v14317_v60, %v1391_v14  ;;  %v1507_v23 = vmul.bf16 %v14317_v60, %v1395_v15  ;;  %v1504_v24 = vmul.bf16 %v14325_v42, %v1392_v16  ;;  %v1404_v52 = vld [vmem:[#allocation10 + $0xb8] sm:$0xff] }
 0x492   : > { %v1516_v55 = vmul.bf16 %v14325_v42, %v1404_v52 }
 0x493   : > { %v10912_v29 = vcombine.high %v1503_v22, %v1507_v23  ;;  %v10914_v30 = vcombine.high %v1504_v24, %v1508_v25  ;;  %v10911_v35 = vcombine.low %v1503_v22, %v1507_v23  ;;  %v10913_v36 = vcombine.low %v1504_v24, %v1508_v25 }
 0x494   : > { %11740 = vmatpush3.bf16.msra.mxu0 %v12463_v31  ;;  %11780 = vmatpush3.bf16.msra.mxu1 %v12464_v32  ;;  %v1399_v31 = vld [vmem:[#allocation10 + $0x90] sm:$0xff] }
 0x495   : > { %11741 = vmatprep.subr.bf16.mxu0 %v12465_v54  ;;  %11781 = vmatprep.subr.bf16.mxu1 %v12466_v34  ;;  %v1403_v32 = vld [vmem:[#allocation10 + $0xb0] sm:$0xff]  ;;  %v1511_v53 = vmul.bf16 %v14317_v60, %v1399_v31  ;;  %v1512_v34 = vmul.bf16 %v14325_v42, %v1400_v33 }
 0x496   : > { %2246 = vmatmul.mubr.bf16.gmra.mrb[12].mxu0 %v10915_v37  ;;  %2311 = vmatmul.mubr.bf16.gmra.mrb[20].mxu1 %v10917_v38  ;;  %v1515_v54 = vmul.bf16 %v14317_v60, %v1403_v32 }
 0x497   : > { %2253 = vmatprep.mubr.bf16.mxu0 %v10924_v19  ;;  %2318 = vmatprep.mubr.bf16.mxu1 %v10926_v40  ;;  %v10922_v38 = vcombine.high %v1512_v34, %v1516_v55  ;;  %v1408_v19 = vld [vmem:[#allocation10 + $0xd8] sm:$0xff]  ;;  %v10921_v45 = vcombine.low %v1512_v34, %v1516_v55 }
 0x498   : > { %11742 = vmatpush3.bf16.msra.mxu0 %v12467_v39  ;;  %11782 = vmatpush3.bf16.msra.mxu1 %v12468_v56  ;;  %v10920_v37 = vcombine.high %v1511_v53, %v1515_v54  ;;  %v1407_v39 = vld [vmem:[#allocation10 + $0xd0] sm:$0xff]  ;;  %v1412_v40 = vld [vmem:[#allocation10 + $0xf8] sm:$0xff]  ;;  %v1520_v41 = vmul.bf16 %v14325_v42, %v1408_v19  ;;  %v10919_v44 = vcombine.low %v1511_v53, %v1515_v54 }
 0x499   : > { %11743 = vmatprep.subr.bf16.mxu0 %v12469_v20  ;;  %11783 = vmatprep.subr.bf16.mxu1 %v12470_v2  ;;  %v1411_v56 = vld [vmem:[#allocation10 + $0xf0] sm:$0xff]  ;;  %v1519_v20 = vmul.bf16 %v14317_v60, %v1407_v39  ;;  %v1524_v43 = vmul.bf16 %v14325_v42, %v1412_v40 }
 0x49a   : > { %v1523_v2 = vmul.bf16 %v14317_v60, %v1411_v56 }
 0x49c   : > { %11744 = vmatpush3.bf16.msra.mxu0 %v12471_v46  ;;  %11784 = vmatpush3.bf16.msra.mxu1 %v12472_v47  ;;  %v10928_v46 = vcombine.high %v1519_v20, %v1523_v2  ;;  %v10930_v47 = vcombine.high %v1520_v41, %v1524_v43  ;;  %v10927_v48 = vcombine.low %v1519_v20, %v1523_v2 }
 0x49d   : > { %11745 = vmatprep.subr.bf16.mxu0 %v12473_v49  ;;  %11785 = vmatprep.subr.bf16.mxu1 %v12474_v50  ;;  %v10929_v49 = vcombine.low %v1520_v41, %v1524_v43 }
 0x49e   : > { %2254 = vmatmul.mubr.bf16.gmra.mrb[16].mxu0 %v10923_v59  ;;  %2319 = vmatmul.mubr.bf16.gmra.mrb[24].mxu1 %v10925_v61 }
 0x49f   : > { %2359 = vmatprep.mubr.bf16.mxu0 %v10904_v4  ;;  %2424 = vmatprep.mubr.bf16.mxu1 %v10906_v10 }
 0x4a0   : > { %11746 = vmatpush3.bf16.msra.mxu0 %v12475_v63  ;;  %11786 = vmatpush3.bf16.msra.mxu1 %v12476_v1 }
 0x4a1   : > { %11747 = vmatprep.subr.bf16.mxu0 %v12477_v13  ;;  %11787 = vmatprep.subr.bf16.mxu1 %v12478_v6 }
 0x4a4   : > { %11748 = vmatpush3.bf16.msra.mxu0 %v12479_v9  ;;  %11788 = vmatpush3.bf16.msra.mxu1 %v12480_v18 }
 0x4a7   : > { %2360 = vmatmul.mubr.bf16.vlgmr.msra.gmra.mrb[20].mxu0 %v10903_v26  ;;  %2425 = vmatmul.mubr.bf16.vlgmr.msra.gmra.mrb[28].mxu1 %v10905_v27 }
 0x4a8   : > { %2367 = vmatprep.mubr.bf16.mxu0 %v10912_v29  ;;  %2432 = vmatprep.mubr.bf16.mxu1 %v10914_v30 }
 0x4af   : > { %2368 = vmatmul.mubr.bf16.gmra.mrb[24].mxu0 %v10911_v35  ;;  %2433 = vmatmul.mubr.bf16.gmra.mrb[32].mxu1 %v10913_v36 }
 0x4b0   : > { %2375 = vmatprep.mubr.bf16.mxu0 %v10920_v37  ;;  %2440 = vmatprep.mubr.bf16.mxu1 %v10922_v38 }
 0x4b7   : > { %2376 = vmatmul.mubr.bf16.gmra.mrb[28].mxu0 %v10919_v44  ;;  %2441 = vmatmul.mubr.bf16.gmra.mrb[36].mxu1 %v10921_v45 }
 0x4b8   : > { %2383 = vmatprep.mubr.bf16.mxu0 %v10928_v46  ;;  %2448 = vmatprep.mubr.bf16.mxu1 %v10930_v47 }
 0x4bf   : > { %2384 = vmatmul.mubr.bf16.gmra.mrb[32].mxu0 %v10927_v48  ;;  %2449 = vmatmul.mubr.bf16.gmra.mrb[40].mxu1 %v10929_v49 }
 0x559   : > { %v11669_v50 = vpop.f32.mrb[4].mxu0  ;;  %v11709_v51 = vpop.f32.mrb[12].mxu1 }
 0x55a   : > { %v11670_v57 = vpop.f32.mrb[5].mxu0  ;;  %v11710_v60 = vpop.f32.mrb[13].mxu1 }
 0x55b   : > { %v11671_v58 = vadd.f32 %v11670_v57, %v11669_v50  ;;  %v11711_v59 = vadd.f32 %v11710_v60, %v11709_v51  ;;  %v11672_v61 = vpop.f32.mrb[6].mxu0  ;;  %v11712_v42 = vpop.f32.mrb[14].mxu1 }
 0x55c   : > { %v11673_v63 = vpop.f32.mrb[7].mxu0  ;;  %v11713_v1 = vpop.f32.mrb[15].mxu1 }
 0x55d   : > { %v2297_v4 = vadd.f32 %v11711_v59, %v11671_v58  ;;  %v11674_v10 = vadd.f32 %v11673_v63, %v11672_v61  ;;  %v11714_v13 = vadd.f32 %v11713_v1, %v11712_v42 }
 0x55f   : > { %v2300_v6 = vadd.f32 %v11714_v13, %v11674_v10 }
 0x561   : > { %v11675_v14 = vpop.f32.mrb[8].mxu0  ;;  %v11715_v15 = vpop.f32.mrb[16].mxu1 }
 0x562   : > { %v11676_v16 = vpop.f32.mrb[9].mxu0  ;;  %v11716_v17 = vpop.f32.mrb[17].mxu1 }
 0x563   : > { %v11677_v9 = vadd.f32 %v11676_v16, %v11675_v14  ;;  %v11717_v18 = vadd.f32 %v11716_v17, %v11715_v15  ;;  %v11678_v22 = vpop.f32.mrb[10].mxu0  ;;  %v11718_v23 = vpop.f32.mrb[18].mxu1 }
 0x564   : > { %v11679_v24 = vpop.f32.mrb[11].mxu0  ;;  %v11719_v25 = vpop.f32.mrb[19].mxu1 }
 0x565   : > { %v2305_v26 = vadd.f32 %v11717_v18, %v11677_v9  ;;  %v11680_v27 = vadd.f32 %v11679_v24, %v11678_v22  ;;  %v11720_v29 = vadd.f32 %v11719_v25, %v11718_v23 }
 0x567   : > { %v14373_v30 = vadd.f32 %v11720_v29, %v11680_v27 }
 0x569   : > { %v11681_v31 = vpop.f32.mrb[12].mxu0  ;;  %v11721_v32 = vpop.f32.mrb[20].mxu1 }
 0x56a   : > { %v11682_v33 = vpop.f32.mrb[13].mxu0  ;;  %v11722_v52 = vpop.f32.mrb[21].mxu1 }
 0x56b   : > { %v11683_v53 = vadd.f32 %v11682_v33, %v11681_v31  ;;  %v11723_v54 = vadd.f32 %v11722_v52, %v11721_v32  ;;  %v11684_v34 = vpop.f32.mrb[14].mxu0  ;;  %v11724_v55 = vpop.f32.mrb[22].mxu1 }
 0x56c   : > { %v11685_v35 = vpop.f32.mrb[15].mxu0  ;;  %v11725_v36 = vpop.f32.mrb[23].mxu1 }
 0x56d   : > { %v14375_v37 = vadd.f32 %v11723_v54, %v11683_v53  ;;  %v11686_v38 = vadd.f32 %v11685_v35, %v11684_v34  ;;  %v11726_v39 = vadd.f32 %v11725_v36, %v11724_v55 }
 0x56f   : > { %v14377_v56 = vadd.f32 %v11726_v39, %v11686_v38  ;;  %v10995_v39 = vld [vmem:[#allocation11] ss:$0 sm:$0xff] }
 0x571   : > { %v11687_v19 = vpop.f32.mrb[16].mxu0  ;;  %v11727_v40 = vpop.f32.mrb[24].mxu1 }
 0x572   : > { %v11688_v20 = vpop.f32.mrb[17].mxu0  ;;  %v11728_v2 = vpop.f32.mrb[25].mxu1 }
 0x573   : > { %v11689_v41 = vadd.f32 %v11688_v20, %v11687_v19  ;;  %v11729_v43 = vadd.f32 %v11728_v2, %v11727_v40  ;;  %v11690_v44 = vpop.f32.mrb[18].mxu0  ;;  %v11730_v45 = vpop.f32.mrb[26].mxu1 }
 0x574   : > { %v11691_v46 = vpop.f32.mrb[19].mxu0  ;;  %v11731_v47 = vpop.f32.mrb[27].mxu1 }
 0x575   : > { %v14379_v48 = vadd.f32 %v11729_v43, %v11689_v41  ;;  %v11692_v49 = vadd.f32 %v11691_v46, %v11690_v44  ;;  %v11732_v50 = vadd.f32 %v11731_v47, %v11730_v45  ;;  %v10996_v46 = vld [vmem:[#allocation11 + $0x1] ss:$0 sm:$0xff] }
 0x577   : > { %v14381_v51 = vadd.f32 %v11732_v50, %v11692_v49 }
 0x57a   : > { %v11749_v57 = vpop.f32.mrb[20].mxu0  ;;  %v11789_v60 = vpop.f32.mrb[28].mxu1 }
 0x57b   : > { %v11750_v58 = vpop.f32.mrb[21].mxu0  ;;  %v11790_v59 = vpop.f32.mrb[29].mxu1 }
 0x57c   : > { %v11751_v61 = vadd.f32 %v11750_v58, %v11749_v57  ;;  %v11791_v42 = vadd.f32 %v11790_v59, %v11789_v60  ;;  %v11752_v63 = vpop.f32.mrb[22].mxu0  ;;  %v11792_v1 = vpop.f32.mrb[30].mxu1  ;;  %v11001_v59 = vld [vmem:[#allocation11 + $0x7] ss:$0 sm:$0xff] }
 0x57d   : > { %v11753_v10 = vpop.f32.mrb[23].mxu0  ;;  %v11793_v13 = vpop.f32.mrb[31].mxu1 }
 0x57e   : > { %v2362_v14 = vadd.f32 %v11751_v61, %v2297_v4  ;;  %v11754_v15 = vadd.f32 %v11753_v10, %v11752_v63  ;;  %v11794_v16 = vadd.f32 %v11793_v13, %v11792_v1 }
 0x580   : > { %v14383_v17 = vadd.f32 %v11791_v42, %v2362_v14  ;;  %v2365_v9 = vadd.f32 %v11754_v15, %v2300_v6 }
 0x582   : > { %2737 = vst.msk [vmem:[#allocation2 + $0x800] sm:$0xff] %vm1033_vm0, %v14383_v17  ;;  %v14387_v18 = vadd.f32 %v11794_v16, %v2365_v9  ;;  %v11755_v22 = vpop.f32.mrb[24].mxu0  ;;  %v11795_v23 = vpop.f32.mrb[32].mxu1  ;;  %2458 = vrot.lane.b32.xlu1 %v14383_v17, %s16540_s24  ;;  %v11002_v16 = vld [vmem:[#allocation11 + $0x8] ss:$0 sm:$0xff] }
 0x583   : > { %v11756_v24 = vpop.f32.mrb[25].mxu0  ;;  %v11796_v25 = vpop.f32.mrb[33].mxu1 }
 0x584   : > { %2738 = vst.msk [vmem:[#allocation2 + $0x840] sm:$0xff] %vm1033_vm0, %v14387_v18  ;;  %v11757_v4 = vadd.f32 %v11756_v24, %v11755_v22  ;;  %v11797_v27 = vadd.f32 %v11796_v25, %v11795_v23  ;;  %v11758_v29 = vpop.f32.mrb[26].mxu0  ;;  %v11798_v6 = vpop.f32.mrb[34].mxu1  ;;  %v11000_v24 = vld [vmem:[#allocation11 + $0x6] ss:$0 sm:$0xff] }
 0x585   : > { %v11759_v31 = vpop.f32.mrb[27].mxu0  ;;  %v11799_v32 = vpop.f32.mrb[35].mxu1  ;;  %v10999_v25 = vld [vmem:[#allocation11 + $0x5] ss:$0 sm:$0xff] }
 0x586   : > { %v2370_v33 = vadd.f32 %v11757_v4, %v2305_v26  ;;  %v11760_v52 = vadd.f32 %v11759_v31, %v11758_v29  ;;  %v11800_v53 = vadd.f32 %v11799_v32, %v11798_v6  ;;  %2461 = vrot.lane.b32.xlu1 %v14387_v18, %s16540_s24 }
 0x588   : > { %v14395_v54 = vadd.f32 %v11797_v27, %v2370_v33  ;;  %v2373_v34 = vadd.f32 %v11760_v52, %v14373_v30 }
 0x58a   : > { %2739 = vst.msk [vmem:[#allocation2 + $0x880] sm:$0xff] %vm1033_vm0, %v14395_v54  ;;  %v14400_v55 = vadd.f32 %v11800_v53, %v2373_v34  ;;  %v11761_v35 = vpop.f32.mrb[28].mxu0  ;;  %v11801_v36 = vpop.f32.mrb[36].mxu1  ;;  %2464 = vrot.lane.b32.xlu0 %v14395_v54, %s16540_s24 }
 0x58b   : > { %v11762_v26 = vpop.f32.mrb[29].mxu0  ;;  %v11802_v38 = vpop.f32.mrb[37].mxu1 }
 0x58c   : > { %2740 = vst.msk [vmem:[#allocation2 + $0x8c0] sm:$0xff] %vm1033_vm0, %v14400_v55  ;;  %v11763_v19 = vadd.f32 %v11762_v26, %v11761_v35  ;;  %v11803_v40 = vadd.f32 %v11802_v38, %v11801_v36  ;;  %v11764_v20 = vpop.f32.mrb[30].mxu0  ;;  %v11804_v30 = vpop.f32.mrb[38].mxu1  ;;  %2467 = vrot.lane.b32.xlu1 %v14400_v55, %s16540_s24 }
 0x58d   : > { %v11765_v2 = vpop.f32.mrb[31].mxu0  ;;  %v11805_v41 = vpop.f32.mrb[39].mxu1 }
 0x58e   : > { %v2378_v43 = vadd.f32 %v11763_v19, %v14375_v37  ;;  %v11766_v44 = vadd.f32 %v11765_v2, %v11764_v20  ;;  %v11806_v45 = vadd.f32 %v11805_v41, %v11804_v30  ;;  %2512 = vrot.lane.b32.xlu0 %v10995_v39, %s13291_s3  ;;  %s13311_s3 = smov 7  }
 0x590   : > { %v14409_v47 = vadd.f32 %v11803_v40, %v2378_v43  ;;  %v2381_v49 = vadd.f32 %v11766_v44, %v14377_v56 }
 0x592   : > { %2741 = vst.msk [vmem:[#allocation2 + $0x900] sm:$0xff] %vm1033_vm0, %v14409_v47  ;;  %v14414_v50 = vadd.f32 %v11806_v45, %v2381_v49  ;;  %v11767_v57 = vpop.f32.mrb[32].mxu0  ;;  %v11807_v60 = vpop.f32.mrb[40].mxu1  ;;  %2470 = vrot.lane.b32.xlu1 %v14409_v47, %s16540_s24  ;;  %2570 = vrot.lane.b32.xlu0 %v10996_v46, %s13292_s29  ;;  %s13312_s29 = smov 63  }
 0x593   : > { %v11768_v37 = vpop.f32.mrb[33].mxu0  ;;  %v11808_v58 = vpop.f32.mrb[41].mxu1 }
 0x594   : > { %2742 = vst.msk [vmem:[#allocation2 + $0x940] sm:$0xff] %vm1033_vm0, %v14414_v50  ;;  %v11769_v61 = vadd.f32 %v11768_v37, %v11767_v57  ;;  %v11809_v56 = vadd.f32 %v11808_v58, %v11807_v60  ;;  %v11770_v42 = vpop.f32.mrb[34].mxu0  ;;  %v11810_v63 = vpop.f32.mrb[42].mxu1 }
 0x595   : > { %v11771_v1 = vpop.f32.mrb[35].mxu0  ;;  %v11811_v10 = vpop.f32.mrb[43].mxu1 }
 0x596   : > { %v2386_v13 = vadd.f32 %v11769_v61, %v14379_v48  ;;  %v11772_v14 = vadd.f32 %v11771_v1, %v11770_v42  ;;  %v11812_v15 = vadd.f32 %v11811_v10, %v11810_v63  ;;  %2473 = vrot.lane.b32.xlu1 %v14414_v50, %s16540_s24  ;;  %2868 = vrot.lane.b32.xlu0 %v11001_v59, %s13293_s11  ;;  %v10997_v48 = vld [vmem:[#allocation11 + $0x2] ss:$0 sm:$0xff]  ;;  %s16630_s11 = sld [smem:[#allocation68_spill]] }
 0x598   : > { %v14423_v9 = vadd.f32 %v11809_v56, %v2386_v13  ;;  %v2389_v22 = vadd.f32 %v11772_v14, %v14381_v51  ;;  %v10998_v51 = vld [vmem:[#allocation11 + $0x3] ss:$0 sm:$0xff] }
 0x59a   : > { %2743 = vst.msk [vmem:[#allocation2 + $0x980] sm:$0xff] %vm1033_vm0, %v14423_v9  ;;  %v14428_v23 = vadd.f32 %v11812_v15, %v2389_v22  ;;  %2476 = vrot.lane.b32.xlu1 %v14423_v9, %s16540_s24  ;;  %2926 = vrot.lane.b32.xlu0 %v11002_v16, %s13294_s2  ;;  %s13305_s2 = smov 127  }
 0x59c   : > { %2744 = vst.msk [vmem:[#allocation2 + $0x9c0] sm:$0xff] %vm1033_vm0, %v14428_v23 }
 0x59e   : > { %2479 = vrot.lane.b32.xlu1 %v14428_v23, %s16540_s24 }
 0x5a2   : > { %2628 = vrot.lane.b32.xlu1 %v10997_v48, %s13295_s0  ;;  %s16631_s0 = sld [smem:[#allocation70_spill]] }
 0x5a6   : > { %2686 = vrot.lane.b32.xlu1 %v10998_v51, %s16538_s6  ;;  %s13308_s6 = smov 55  }
 0x5aa   : > { %2810 = vrot.lane.b32.xlu1 %v11000_v24, %s13297_s4  ;;  %s13313_s4 = smov 8  }
 0x5ae   : > { %2752 = vrot.lane.b32.xlu1 %v10999_v25, %s13298_s1 }
 0x5f4   : > { %v2459_v4 = vpop.permute.xlu1 %2458 }
 0x5f5   : > { %v2460_v27 = vsel %vm2457_vm2, %v2459_v4, %v14383_v17 }
 0x5f6   : > { %2482 = vrot.lane.b32.xlu1 %v2460_v27, %s16540_s24 }
 0x5f8   : > { %v2462_v29 = vpop.permute.xlu1 %2461 }
 0x5f9   : > { %v2463_v6 = vsel %vm2457_vm2, %v2462_v29, %v14387_v18 }
 0x5fa   : > { %2484 = vrot.lane.b32.xlu0 %v2463_v6, %s16540_s24 }
 0x5fc   : > { %v2465_v31 = vpop.permute.xlu0 %2464 }
 0x5fd   : > { %v2466_v32 = vsel %vm2457_vm2, %v2465_v31, %v14395_v54 }
 0x5fe   : > { %2486 = vrot.lane.b32.xlu1 %v2466_v32, %s16540_s24  ;;  %v2468_v33 = vpop.permute.xlu1 %2467 }
 0x5ff   : > { %v2469_v52 = vsel %vm2457_vm2, %v2468_v33, %v14400_v55 }
 0x600   : > { %2488 = vrot.lane.b32.xlu0 %v2469_v52, %s16540_s24  ;;  %v14464_v20 = vpop.permute.xlu0 %2512 }
 0x604   : > { %v2471_v53 = vpop.permute.xlu1 %2470  ;;  %v14468_v2 = vpop.permute.xlu0 %2570 }
 0x605   : > { %v2472_v34 = vsel %vm2457_vm2, %v2471_v53, %v14409_v47 }
 0x606   : > { %2490 = vrot.lane.b32.xlu1 %v2472_v34, %s16540_s24 }
 0x608   : > { %v2474_v35 = vpop.permute.xlu1 %2473  ;;  %v14472_v43 = vpop.permute.xlu0 %2868 }
 0x609   : > { %v2475_v36 = vsel %vm2457_vm2, %v2474_v35, %v14414_v50 }
 0x60a   : > { %2492 = vrot.lane.b32.xlu0 %v2475_v36, %s16540_s24 }
 0x60c   : > { %v2477_v26 = vpop.permute.xlu1 %2476  ;;  %v14476_v45 = vpop.permute.xlu0 %2926 }
 0x60d   : > { %v2478_v38 = vsel %vm2457_vm2, %v2477_v26, %v14423_v9 }
 0x60e   : > { %2494 = vrot.lane.b32.xlu1 %v2478_v38, %s16540_s24 }
 0x610   : > { %v2480_v39 = vpop.permute.xlu1 %2479 }
 0x611   : > { %v2481_v19 = vsel %vm2457_vm2, %v2480_v39, %v14428_v23 }
 0x612   : > { %2496 = vrot.lane.b32.xlu0 %v2481_v19, %s16540_s24  ;;  %s13307_s24 = smov 64  }
 0x614   : > { %v14462_v40 = vpop.permute.xlu1 %2628 }
 0x618   : > { %v14466_v30 = vpop.permute.xlu1 %2686 }
 0x61c   : > { %v14470_v41 = vpop.permute.xlu1 %2810 }
 0x620   : > { %v14474_v44 = vpop.permute.xlu1 %2752 }
 0x668   : > { %v2483_v46 = vpop.permute.xlu1 %2482 }
 0x669   : > { %v14480_v49 = vsel %vm2457_vm2, %v2483_v46, %v14383_v17 }
 0x66a   : > { %v2631_v57 = vmul.f32 %v14462_v40, %v14480_v49  ;;  %v2515_v59 = vmul.f32 %v14464_v20, %v14480_v49  ;;  %v2689_v61 = vmul.f32 %v14466_v30, %v14480_v49  ;;  %v2573_v42 = vmul.f32 %v14468_v2, %v14480_v49 }
 0x66c   : > { %v2485_v60 = vpop.permute.xlu0 %2484  ;;  %2647 = vrot.lane.b32.xlu0 %v2631_v57, %s13299_s9 }
 0x66d   : > { %v14487_v37 = vsel %vm2457_vm2, %v2485_v60, %v14387_v18 }
 0x66e   : > { %v2632_v58 = vmul.f32 %v14462_v40, %v14487_v37  ;;  %v2516_v17 = vmul.f32 %v14464_v20, %v14487_v37  ;;  %v2690_v18 = vmul.f32 %v14466_v30, %v14487_v37  ;;  %v2574_v1 = vmul.f32 %v14468_v2, %v14487_v37 }
 0x66f   : > { %v2814_v39 = vmul.f32 %v14470_v41, %v14487_v37 }
 0x670   : > { %2649 = vrot.lane.b32.xlu1 %v2632_v58, %s13299_s9  ;;  %2531 = vrot.lane.b32.xlu0 %v2515_v59, %s13300_s27  ;;  %v2487_v56 = vpop.permute.xlu1 %2486  ;;  %v2872_v58 = vmul.f32 %v14472_v43, %v14487_v37 }
 0x671   : > { %v14507_v63 = vsel %vm2457_vm2, %v2487_v56, %v14395_v54 }
 0x672   : > { %v2633_v10 = vmul.f32 %v14462_v40, %v14507_v63  ;;  %v2489_v13 = vpop.permute.xlu0 %2488  ;;  %v2575_v54 = vmul.f32 %v14468_v2, %v14507_v63  ;;  %v2517_v14 = vmul.f32 %v14464_v20, %v14507_v63  ;;  %v2691_v22 = vmul.f32 %v14466_v30, %v14507_v63 }
 0x673   : > { %v14523_v15 = vsel %vm2457_vm2, %v2489_v13, %v14400_v55  ;;  %v2873_v13 = vmul.f32 %v14472_v43, %v14507_v63 }
 0x674   : > { %2533 = vrot.lane.b32.xlu1 %v2516_v17, %s13300_s27  ;;  %2705 = vrot.lane.b32.xlu0 %v2689_v61, %s16536_s10  ;;  %v2634_v16 = vmul.f32 %v14462_v40, %v14523_v15  ;;  %v2518_v51 = vmul.f32 %v14464_v20, %v14523_v15  ;;  %v2576_v55 = vmul.f32 %v14468_v2, %v14523_v15 }
 0x675   : > { %v2692_v25 = vmul.f32 %v14466_v30, %v14523_v15  ;;  %v2816_v57 = vmul.f32 %v14470_v41, %v14523_v15 }
 0x678   : > { %2707 = vrot.lane.b32.xlu1 %v2690_v18, %s16536_s10  ;;  %2589 = vrot.lane.b32.xlu0 %v2573_v42, %s13302_s8  ;;  %v2491_v48 = vpop.permute.xlu1 %2490  ;;  %v12483_v18 = vld [vmem:[%s16630_s11 + $0x4] ss:$20 sps:$4 sm:$0xff]   ;;  %v2874_v42 = vmul.f32 %v14472_v43, %v14523_v15 }
 0x679   : > { %v14539_v24 = vsel %vm2457_vm2, %v2491_v48, %v14409_v47  ;;  %3390 = vmatprep.mubr.bf16.mxu0 %v12483_v18 }
 0x67a   : > { %v2635_v4 = vmul.f32 %v14462_v40, %v14539_v24  ;;  %v2693_v29 = vmul.f32 %v14466_v30, %v14539_v24  ;;  %v2519_v47 = vmul.f32 %v14464_v20, %v14539_v24  ;;  %v2577_v31 = vmul.f32 %v14468_v2, %v14539_v24 }
 0x67b   : > { %v2817_v17 = vmul.f32 %v14470_v41, %v14539_v24  ;;  %v2759_v48 = vmul.f32 %v14474_v44, %v14539_v24 }
 0x67c   : > { %2591 = vrot.lane.b32.xlu1 %v2574_v1, %s13302_s8  ;;  %2651 = vrot.lane.b32.xlu0 %v2633_v10, %s13299_s9  ;;  %v2493_v27 = vpop.permute.xlu0 %2492  ;;  %v2755_v1 = vmul.f32 %v14474_v44, %v14480_v49 }
 0x67d   : > { %v14555_v6 = vsel %vm2457_vm2, %v2493_v27, %v14414_v50  ;;  %v2930_v27 = vmul.f32 %v14476_v45, %v14487_v37 }
 0x67e   : > { %v2694_v32 = vmul.f32 %v14466_v30, %v14555_v6  ;;  %v2636_v52 = vmul.f32 %v14462_v40, %v14555_v6  ;;  %v2578_v50 = vmul.f32 %v14468_v2, %v14555_v6  ;;  %v2520_v34 = vmul.f32 %v14464_v20, %v14555_v6 }
 0x680   : > { %2593 = vrot.lane.b32.xlu1 %v2575_v54, %s13302_s8  ;;  %2535 = vrot.lane.b32.xlu0 %v2517_v14, %s13300_s27  ;;  %v2495_v33 = vpop.permute.xlu1 %2494  ;;  %v2758_v54 = vmul.f32 %v14474_v44, %v14523_v15  ;;  %v2757_v14 = vmul.f32 %v14474_v44, %v14507_v63 }
 0x681   : > { %v14571_v53 = vsel %vm2457_vm2, %v2495_v33, %v14423_v9  ;;  %v2934_v33 = vmul.f32 %v14476_v45, %v14555_v6 }
 0x682   : > { %v2637_v35 = vmul.f32 %v14462_v40, %v14571_v53  ;;  %v2695_v36 = vmul.f32 %v14466_v30, %v14571_v53  ;;  %v2521_v9 = vmul.f32 %v14464_v20, %v14571_v53  ;;  %v2579_v38 = vmul.f32 %v14468_v2, %v14571_v53 }
 0x683   : > { %v2819_v56 = vmul.f32 %v14470_v41, %v14571_v53 }
 0x684   : > { %2653 = vrot.lane.b32.xlu1 %v2634_v16, %s13299_s9  ;;  %2709 = vrot.lane.b32.xlu0 %v2691_v22, %s16536_s10  ;;  %v2497_v26 = vpop.permute.xlu0 %2496  ;;  %v2875_v16 = vmul.f32 %v14472_v43, %v14539_v24  ;;  %v2760_v22 = vmul.f32 %v14474_v44, %v14555_v6 }
 0x685   : > { %v14593_v19 = vsel %vm2457_vm2, %v2497_v26, %v14428_v23  ;;  %v2818_v23 = vmul.f32 %v14470_v41, %v14555_v6 }
 0x686   : > { %v2638_v46 = vmul.f32 %v14462_v40, %v14593_v19  ;;  %v2522_v60 = vmul.f32 %v14464_v20, %v14593_v19  ;;  %v2813_v40 = vmul.f32 %v14470_v41, %v14480_v49  ;;  %v2815_v20 = vmul.f32 %v14470_v41, %v14507_v63 }
 0x687   : > { %v2696_v59 = vmul.f32 %v14466_v30, %v14593_v19  ;;  %v2580_v61 = vmul.f32 %v14468_v2, %v14593_v19  ;;  %v2756_v30 = vmul.f32 %v14474_v44, %v14487_v37  ;;  %v2871_v2 = vmul.f32 %v14472_v43, %v14480_v49 }
 0x688   : > { %2537 = vrot.lane.b32.xlu1 %v2518_v51, %s13300_s27  ;;  %2595 = vrot.lane.b32.xlu0 %v2576_v55, %s13302_s8  ;;  %v2820_v10 = vmul.f32 %v14470_v41, %v14593_v19  ;;  %v2876_v41 = vmul.f32 %v14472_v43, %v14555_v6  ;;  %v2878_v51 = vmul.f32 %v14472_v43, %v14593_v19 }
 0x689   : > { %v2877_v55 = vmul.f32 %v14472_v43, %v14571_v53 }
 0x68c   : > { %2711 = vrot.lane.b32.xlu1 %v2692_v25, %s16536_s10  ;;  %2655 = vrot.lane.b32.xlu0 %v2635_v4, %s13299_s9  ;;  %v2762_v25 = vmul.f32 %v14474_v44, %v14593_v19  ;;  %v2761_v4 = vmul.f32 %v14474_v44, %v14571_v53  ;;  %v2932_v44 = vmul.f32 %v14476_v45, %v14523_v15 }
 0x690   : > { %2713 = vrot.lane.b32.xlu1 %v2693_v29, %s16536_s10  ;;  %2539 = vrot.lane.b32.xlu0 %v2519_v47, %s13300_s27  ;;  %v12497_v29 = vld [vmem:[%s16630_s11 + $0xc] ss:$20 sps:$4 sm:$0xff]   ;;  %v2929_v47 = vmul.f32 %v14476_v45, %v14480_v49 }
 0x691   : > { %3487 = vmatprep.mubr.bf16.mxu1 %v12497_v29 }
 0x694   : > { %2597 = vrot.lane.b32.xlu1 %v2577_v31, %s13302_s8  ;;  %2715 = vrot.lane.b32.xlu0 %v2694_v32, %s16536_s10  ;;  %v2931_v32 = vmul.f32 %v14476_v45, %v14507_v63 }
 0x698   : > { %2657 = vrot.lane.b32.xlu1 %v2636_v52, %s13299_s9  ;;  %2599 = vrot.lane.b32.xlu0 %v2578_v50, %s13302_s8  ;;  %v2933_v52 = vmul.f32 %v14476_v45, %v14539_v24  ;;  %v2936_v50 = vmul.f32 %v14476_v45, %v14593_v19 }
 0x69c   : > { %2541 = vrot.lane.b32.xlu1 %v2520_v34, %s13300_s27  ;;  %2659 = vrot.lane.b32.xlu0 %v2637_v35, %s13299_s9  ;;  %v2935_v34 = vmul.f32 %v14476_v45, %v14571_v53 }
 0x6a0   : > { %2717 = vrot.lane.b32.xlu1 %v2695_v36, %s16536_s10  ;;  %2543 = vrot.lane.b32.xlu0 %v2521_v9, %s13300_s27 }
 0x6a4   : > { %2601 = vrot.lane.b32.xlu1 %v2579_v38, %s13302_s8  ;;  %2831 = vrot.lane.b32.xlu0 %v2814_v39, %s13303_s30 }
 0x6a8   : > { %2661 = vrot.lane.b32.xlu1 %v2638_v46, %s13299_s9  ;;  %2835 = vrot.lane.b32.xlu0 %v2816_v57, %s13303_s30  ;;  %s13306_s9 = smov 123  }
 0x6ac   : > { %2545 = vrot.lane.b32.xlu1 %v2522_v60, %s13300_s27  ;;  %2839 = vrot.lane.b32.xlu0 %v2818_v23, %s13303_s30  ;;  %s13315_s27 = smov 73  }
 0x6b0   : > { %2829 = vrot.lane.b32.xlu1 %v2813_v40, %s13303_s30  ;;  %2889 = vrot.lane.b32.xlu0 %v2872_v58, %s13304_s5 }
 0x6b4   : > { %2833 = vrot.lane.b32.xlu1 %v2815_v20, %s13303_s30  ;;  %2719 = vrot.lane.b32.xlu0 %v2696_v59, %s16536_s10  ;;  %s16632_s10 = sld [smem:[#allocation71_spill]] }
 0x6b8   : > { %2837 = vrot.lane.b32.xlu1 %v2817_v17, %s13303_s30  ;;  %2603 = vrot.lane.b32.xlu0 %v2580_v61, %s13302_s8  ;;  %s13316_s8 = smov 72  }
 0x6bc   : > { %2841 = vrot.lane.b32.xlu1 %v2819_v56, %s13303_s30  ;;  %2773 = vrot.lane.b32.xlu0 %v2756_v30, %s13305_s2 }
 0x6c0   : > { %2887 = vrot.lane.b32.xlu1 %v2871_v2, %s13304_s5  ;;  %2893 = vrot.lane.b32.xlu0 %v2874_v42, %s13304_s5 }
 0x6c4   : > { %2771 = vrot.lane.b32.xlu1 %v2755_v1, %s13305_s2  ;;  %2843 = vrot.lane.b32.xlu0 %v2820_v10, %s13303_s30  ;;  %s13309_s30 = smov 56  }
 0x6c8   : > { %2891 = vrot.lane.b32.xlu1 %v2873_v13, %s13304_s5  ;;  %2777 = vrot.lane.b32.xlu0 %v2758_v54, %s13305_s2 }
 0x6cc   : > { %2775 = vrot.lane.b32.xlu1 %v2757_v14, %s13305_s2  ;;  %2897 = vrot.lane.b32.xlu0 %v2876_v41, %s13304_s5 }
 0x6d0   : > { %2895 = vrot.lane.b32.xlu1 %v2875_v16, %s13304_s5  ;;  %2781 = vrot.lane.b32.xlu0 %v2760_v22, %s13305_s2 }
 0x6d4   : > { %2779 = vrot.lane.b32.xlu1 %v2759_v48, %s13305_s2  ;;  %2901 = vrot.lane.b32.xlu0 %v2878_v51, %s13304_s5 }
 0x6d8   : > { %2899 = vrot.lane.b32.xlu1 %v2877_v55, %s13304_s5  ;;  %2785 = vrot.lane.b32.xlu0 %v2762_v25, %s13305_s2  ;;  %s13310_s5 = smov 57  }
 0x6dc   : > { %2783 = vrot.lane.b32.xlu1 %v2761_v4, %s13305_s2  ;;  %2947 = vrot.lane.b32.xlu0 %v2930_v27, %s13306_s9 }
 0x6de   : > { %v2648_v43 = vpop.permute.xlu0 %2647 }
 0x6df   : > { %2671 = vst.msk [vmem:[#allocation2 + $0x400] sm:$0xff] %vm1033_vm0, %v2648_v43 }
 0x6e0   : > { %2945 = vrot.lane.b32.xlu1 %v2929_v47, %s13306_s9  ;;  %2951 = vrot.lane.b32.xlu0 %v2932_v44, %s13306_s9 }
 0x6e2   : > { %v2532_v37 = vpop.permute.xlu0 %2531  ;;  %v2650_v31 = vpop.permute.xlu1 %2649 }
 0x6e3   : > { %2555 = vst.msk [vmem:[#allocation2] sm:$0xff] %vm1033_vm0, %v2532_v37  ;;  %2672 = vst.msk [vmem:[#allocation2 + $0x440] sm:$0xff] %vm1033_vm0, %v2650_v31 }
 0x6e4   : > { %2949 = vrot.lane.b32.xlu1 %v2931_v32, %s13306_s9  ;;  %2955 = vrot.lane.b32.xlu0 %v2934_v33, %s13306_s9 }
 0x6e6   : > { %v2706_v49 = vpop.permute.xlu0 %2705  ;;  %v2534_v15 = vpop.permute.xlu1 %2533  ;;  %v2993_v35 = vld [vmem:[#allocation2 + $0x400] sm:$0xff] }
 0x6e7   : > { %2729 = vst.msk [vmem:[#allocation2 + $0x600] sm:$0xff] %vm1033_vm0, %v2706_v49  ;;  %2556 = vst.msk [vmem:[#allocation2 + $0x40] sm:$0xff] %vm1033_vm0, %v2534_v15 }
 0x6e8   : > { %2953 = vrot.lane.b32.xlu1 %v2933_v52, %s13306_s9  ;;  %2959 = vrot.lane.b32.xlu0 %v2936_v50, %s13306_s9 }
 0x6ea   : > { %v2590_v63 = vpop.permute.xlu0 %2589  ;;  %v2708_v6 = vpop.permute.xlu1 %2707  ;;  %v2994_v36 = vld [vmem:[#allocation2 + $0x440] sm:$0xff] }
 0x6eb   : > { %2613 = vst.msk [vmem:[#allocation2 + $0x200] sm:$0xff] %vm1033_vm0, %v2590_v63  ;;  %2730 = vst.msk [vmem:[#allocation2 + $0x640] sm:$0xff] %vm1033_vm0, %v2708_v6  ;;  %v3057_v24 = vpack.c.bf16 %v2994_v36, %v2993_v35  ;;  %v2977_v38 = vld [vmem:[#allocation2] sm:$0xff] }
 0x6ec   : > { %2957 = vrot.lane.b32.xlu1 %v2935_v34, %s13306_s9  ;;  %s13314_s9 = smov 9  }
 0x6ed   : > { %11813 = vmatprep.subr.bf16.mxu0 %v3057_v24 }
 0x6ee   : > { %v2652_v9 = vpop.permute.xlu0 %2651  ;;  %v2592_v26 = vpop.permute.xlu1 %2591  ;;  %v2978_v39 = vld [vmem:[#allocation2 + $0x40] sm:$0xff] }
 0x6ef   : > { %2673 = vst.msk [vmem:[#allocation2 + $0x480] sm:$0xff] %vm1033_vm0, %v2652_v9  ;;  %2614 = vst.msk [vmem:[#allocation2 + $0x240] sm:$0xff] %vm1033_vm0, %v2592_v26  ;;  %v3049_v19 = vpack.c.bf16 %v2978_v39, %v2977_v38  ;;  %v3001_v36 = vld [vmem:[#allocation2 + $0x600] sm:$0xff] }
 0x6f0   : > { %v3010_v38 = vld [vmem:[#allocation2 + $0x840] sm:$0xff] }
 0x6f1   : > { %11814 = vmatpush3.bf16.msra.mxu0 %v3049_v19 }
 0x6f2   : > { %v2536_v45 = vpop.permute.xlu0 %2535  ;;  %v2594_v53 = vpop.permute.xlu1 %2593  ;;  %v3002_v52 = vld [vmem:[#allocation2 + $0x640] sm:$0xff] }
 0x6f3   : > { %2557 = vst.msk [vmem:[#allocation2 + $0x80] sm:$0xff] %vm1033_vm0, %v2536_v45  ;;  %2615 = vst.msk [vmem:[#allocation2 + $0x280] sm:$0xff] %vm1033_vm0, %v2594_v53  ;;  %v3061_v24 = vpack.c.bf16 %v3002_v52, %v3001_v36  ;;  %v2985_v45 = vld [vmem:[#allocation2 + $0x200] sm:$0xff] }
 0x6f6   : > { %v2710_v46 = vpop.permute.xlu0 %2709  ;;  %v2654_v57 = vpop.permute.xlu1 %2653  ;;  %v2995_v20 = vld [vmem:[#allocation2 + $0x480] sm:$0xff] }
 0x6f7   : > { %2731 = vst.msk [vmem:[#allocation2 + $0x680] sm:$0xff] %vm1033_vm0, %v2710_v46  ;;  %2674 = vst.msk [vmem:[#allocation2 + $0x4c0] sm:$0xff] %vm1033_vm0, %v2654_v57  ;;  %v2986_v9 = vld [vmem:[#allocation2 + $0x240] sm:$0xff] }
 0x6f8   : > { %v3053_v57 = vpack.c.bf16 %v2986_v9, %v2985_v45 }
 0x6fa   : > { %v2596_v60 = vpop.permute.xlu0 %2595  ;;  %v2538_v23 = vpop.permute.xlu1 %2537  ;;  %v2979_v30 = vld [vmem:[#allocation2 + $0x80] sm:$0xff] }
 0x6fb   : > { %2616 = vst.msk [vmem:[#allocation2 + $0x2c0] sm:$0xff] %vm1033_vm0, %v2596_v60  ;;  %2558 = vst.msk [vmem:[#allocation2 + $0xc0] sm:$0xff] %vm1033_vm0, %v2538_v23 }
 0x6fe   : > { %v2656_v40 = vpop.permute.xlu0 %2655  ;;  %v2712_v58 = vpop.permute.xlu1 %2711  ;;  %v2996_v59 = vld [vmem:[#allocation2 + $0x4c0] sm:$0xff] }
 0x6ff   : > { %2675 = vst.msk [vmem:[#allocation2 + $0x500] sm:$0xff] %vm1033_vm0, %v2656_v40  ;;  %2732 = vst.msk [vmem:[#allocation2 + $0x6c0] sm:$0xff] %vm1033_vm0, %v2712_v58  ;;  %v3058_v17 = vpack.c.bf16 %v2996_v59, %v2995_v20  ;;  %v3003_v23 = vld [vmem:[#allocation2 + $0x680] sm:$0xff] }
 0x700   : > { %v3009_v40 = vld [vmem:[#allocation2 + $0x800] sm:$0xff] }
 0x701   : > { %11815 = vmatprep.subr.bf16.mxu0 %v3058_v17  ;;  %v3065_v20 = vpack.c.bf16 %v3010_v38, %v3009_v40 }
 0x702   : > { %v2540_v61 = vpop.permute.xlu0 %2539  ;;  %v2714_v56 = vpop.permute.xlu1 %2713  ;;  %v2980_v18 = vld [vmem:[#allocation2 + $0xc0] sm:$0xff] }
 0x703   : > { %2559 = vst.msk [vmem:[#allocation2 + $0x100] sm:$0xff] %vm1033_vm0, %v2540_v61  ;;  %2733 = vst.msk [vmem:[#allocation2 + $0x700] sm:$0xff] %vm1033_vm0, %v2714_v56  ;;  %v3050_v2 = vpack.c.bf16 %v2980_v18, %v2979_v30  ;;  %v2988_v59 = vld [vmem:[#allocation2 + $0x2c0] sm:$0xff] }
 0x704   : > { %v3012_v61 = vld [vmem:[#allocation2 + $0x8c0] sm:$0xff] }
 0x705   : > { %11816 = vmatpush3.bf16.msra.mxu0 %v3050_v2  ;;  %v2987_v18 = vld [vmem:[#allocation2 + $0x280] sm:$0xff] }
 0x706   : > { %v2716_v42 = vpop.permute.xlu0 %2715  ;;  %v2598_v1 = vpop.permute.xlu1 %2597  ;;  %v2997_v22 = vld [vmem:[#allocation2 + $0x500] sm:$0xff] }
 0x707   : > { %2734 = vst.msk [vmem:[#allocation2 + $0x740] sm:$0xff] %vm1033_vm0, %v2716_v42  ;;  %2617 = vst.msk [vmem:[#allocation2 + $0x300] sm:$0xff] %vm1033_vm0, %v2598_v1  ;;  %v3004_v26 = vld [vmem:[#allocation2 + $0x6c0] sm:$0xff]  ;;  %v3054_v1 = vpack.c.bf16 %v2988_v59, %v2987_v18 }
 0x708   : > { %v3062_v58 = vpack.c.bf16 %v3004_v26, %v3003_v23  ;;  %v12487_v23 = vld [vmem:[%s16630_s11 + $0x54] ss:$20 sps:$4 sm:$0xff]  }
 0x70a   : > { %v2600_v10 = vpop.permute.xlu0 %2599  ;;  %v2658_v13 = vpop.permute.xlu1 %2657  ;;  %v2981_v4 = vld [vmem:[#allocation2 + $0x100] sm:$0xff] }
 0x70b   : > { %2618 = vst.msk [vmem:[#allocation2 + $0x340] sm:$0xff] %vm1033_vm0, %v2600_v10  ;;  %2676 = vst.msk [vmem:[#allocation2 + $0x540] sm:$0xff] %vm1033_vm0, %v2658_v13  ;;  %v3005_v13 = vld [vmem:[#allocation2 + $0x700] sm:$0xff] }
 0x70e   : > { %v2660_v54 = vpop.permute.xlu0 %2659  ;;  %v2542_v14 = vpop.permute.xlu1 %2541  ;;  %v3006_v17 = vld [vmem:[#allocation2 + $0x740] sm:$0xff] }
 0x70f   : > { %2677 = vst.msk [vmem:[#allocation2 + $0x580] sm:$0xff] %vm1033_vm0, %v2660_v54  ;;  %2560 = vst.msk [vmem:[#allocation2 + $0x140] sm:$0xff] %vm1033_vm0, %v2542_v14  ;;  %v3011_v54 = vld [vmem:[#allocation2 + $0x880] sm:$0xff]  ;;  %v3063_v14 = vpack.c.bf16 %v3006_v17, %v3005_v13  ;;  %v12490_v13 = vld [vmem:[%s16630_s11 + $0x7c] ss:$20 sps:$4 sm:$0xff]  }
 0x712   : > { %v2544_v41 = vpop.permute.xlu0 %2543  ;;  %v2718_v16 = vpop.permute.xlu1 %2717  ;;  %v2998_v48 = vld [vmem:[#allocation2 + $0x540] sm:$0xff] }
 0x713   : > { %2561 = vst.msk [vmem:[#allocation2 + $0x180] sm:$0xff] %vm1033_vm0, %v2544_v41  ;;  %2735 = vst.msk [vmem:[#allocation2 + $0x780] sm:$0xff] %vm1033_vm0, %v2718_v16  ;;  %v3059_v51 = vpack.c.bf16 %v2998_v48, %v2997_v22  ;;  %v3066_v41 = vpack.c.bf16 %v3012_v61, %v3011_v54  ;;  %v2990_v16 = vld [vmem:[#allocation2 + $0x340] sm:$0xff] }
 0x714   : > { %v3014_v48 = vld [vmem:[#allocation2 + $0x940] sm:$0xff] }
 0x715   : > { %11817 = vmatprep.subr.bf16.mxu0 %v3059_v51 }
 0x716   : > { %v2832_v55 = vpop.permute.xlu0 %2831  ;;  %v2602_v25 = vpop.permute.xlu1 %2601  ;;  %v2982_v27 = vld [vmem:[#allocation2 + $0x140] sm:$0xff] }
 0x717   : > { %2854 = vst.msk [vmem:[#allocation2 + $0xc40] sm:$0xff] %vm1033_vm0, %v2832_v55  ;;  %2619 = vst.msk [vmem:[#allocation2 + $0x380] sm:$0xff] %vm1033_vm0, %v2602_v25  ;;  %v3051_v29 = vpack.c.bf16 %v2982_v27, %v2981_v4  ;;  %v2999_v33 = vld [vmem:[#allocation2 + $0x580] sm:$0xff] }
 0x718   : > { %v2989_v25 = vld [vmem:[#allocation2 + $0x300] sm:$0xff] }
 0x719   : > { %11818 = vmatpush3.bf16.msra.mxu0 %v3051_v29  ;;  %v3055_v29 = vpack.c.bf16 %v2990_v16, %v2989_v25 }
 0x71a   : > { %v2836_v43 = vpop.permute.xlu0 %2835  ;;  %v2662_v47 = vpop.permute.xlu1 %2661  ;;  %v2983_v6 = vld [vmem:[#allocation2 + $0x180] sm:$0xff] }
 0x71b   : > { %2856 = vst.msk [vmem:[#allocation2 + $0xcc0] sm:$0xff] %vm1033_vm0, %v2836_v43  ;;  %2678 = vst.msk [vmem:[#allocation2 + $0x5c0] sm:$0xff] %vm1033_vm0, %v2662_v47  ;;  %v3007_v47 = vld [vmem:[#allocation2 + $0x780] sm:$0xff] }
 0x71e   : > { %v2840_v44 = vpop.permute.xlu0 %2839  ;;  %v2546_v37 = vpop.permute.xlu1 %2545  ;;  %v3026_v46 = vld [vmem:[#allocation2 + $0xc40] sm:$0xff] }
 0x71f   : > { %2858 = vst.msk [vmem:[#allocation2 + $0xd40] sm:$0xff] %vm1033_vm0, %v2840_v44  ;;  %2562 = vst.msk [vmem:[#allocation2 + $0x1c0] sm:$0xff] %vm1033_vm0, %v2546_v37  ;;  %v3013_v44 = vld [vmem:[#allocation2 + $0x900] sm:$0xff] }
 0x722   : > { %v2890_v31 = vpop.permute.xlu0 %2889  ;;  %v2830_v32 = vpop.permute.xlu1 %2829  ;;  %v3000_v49 = vld [vmem:[#allocation2 + $0x5c0] sm:$0xff] }
 0x723   : > { %2912 = vst.msk [vmem:[#allocation2 + $0xe40] sm:$0xff] %vm1033_vm0, %v2890_v31  ;;  %2853 = vst.msk [vmem:[#allocation2 + $0xc00] sm:$0xff] %vm1033_vm0, %v2830_v32  ;;  %v3060_v15 = vpack.c.bf16 %v3000_v49, %v2999_v33  ;;  %v3028_v42 = vld [vmem:[#allocation2 + $0xcc0] sm:$0xff]  ;;  %v3067_v31 = vpack.c.bf16 %v3014_v48, %v3013_v44 }
 0x725   : > { %11819 = vmatprep.subr.bf16.mxu0 %v3060_v15  ;;  %v2991_v15 = vld [vmem:[#allocation2 + $0x380] sm:$0xff] }
 0x726   : > { %v2720_v50 = vpop.permute.xlu0 %2719  ;;  %v2834_v63 = vpop.permute.xlu1 %2833  ;;  %v2984_v34 = vld [vmem:[#allocation2 + $0x1c0] sm:$0xff] }
 0x727   : > { %2736 = vst.msk [vmem:[#allocation2 + $0x7c0] sm:$0xff] %vm1033_vm0, %v2720_v50  ;;  %2855 = vst.msk [vmem:[#allocation2 + $0xc80] sm:$0xff] %vm1033_vm0, %v2834_v63  ;;  %v3052_v35 = vpack.c.bf16 %v2984_v34, %v2983_v6  ;;  %v3030_v27 = vld [vmem:[#allocation2 + $0xd40] sm:$0xff] }
 0x728   : > { %v12481_v50 = vld [vmem:[%s16630_s11] ss:$20 sps:$4 sm:$0xff]  }
 0x729   : > { %11820 = vmatpush3.bf16.msra.mxu0 %v3052_v35  ;;  %v12484_v63 = vld [vmem:[%s16630_s11 + $0x2c] ss:$20 sps:$4 sm:$0xff]  }
 0x72a   : > { %v2604_v39 = vpop.permute.xlu0 %2603  ;;  %11821 = vmatprep.subr.bf16.mxu0 %v3061_v24  ;;  %v2838_v19 = vpop.permute.xlu1 %2837  ;;  %v3025_v53 = vld [vmem:[#allocation2 + $0xc00] sm:$0xff] }
 0x72b   : > { %2620 = vst.msk [vmem:[#allocation2 + $0x3c0] sm:$0xff] %vm1033_vm0, %v2604_v39  ;;  %2857 = vst.msk [vmem:[#allocation2 + $0xd00] sm:$0xff] %vm1033_vm0, %v2838_v19  ;;  %v3073_v60 = vpack.c.bf16 %v3026_v46, %v3025_v53  ;;  %v3016_v35 = vld [vmem:[#allocation2 + $0x9c0] sm:$0xff]  ;;  %v12486_v46 = vld [vmem:[%s16630_s11 + $0x28] ss:$20 sps:$4 sm:$0xff]  }
 0x72c   : > { %v3015_v19 = vld [vmem:[#allocation2 + $0x980] sm:$0xff] }
 0x72d   : > { %11822 = vmatpush3.bf16.msra.mxu0 %v3053_v57  ;;  %11877 = vmatprep.subr.bf16.mxu1 %v3073_v60  ;;  %v3068_v45 = vpack.c.bf16 %v3016_v35, %v3015_v19  ;;  %v3034_v53 = vld [vmem:[#allocation2 + $0xe40] sm:$0xff] }
 0x72e   : > { %v2774_v56 = vpop.permute.xlu0 %2773  ;;  %11823 = vmatprep.subr.bf16.mxu0 %v3062_v58  ;;  %v2842_v30 = vpop.permute.xlu1 %2841  ;;  %11878 = vmatpush3.bf16.msra.mxu1 %v3065_v20  ;;  %v3027_v2 = vld [vmem:[#allocation2 + $0xc80] sm:$0xff] }
 0x72f   : > { %2796 = vst.msk [vmem:[#allocation2 + $0xa40] sm:$0xff] %vm1033_vm0, %v2774_v56  ;;  %2859 = vst.msk [vmem:[#allocation2 + $0xd80] sm:$0xff] %vm1033_vm0, %v2842_v30  ;;  %v3074_v10 = vpack.c.bf16 %v3028_v42, %v3027_v2  ;;  %v3008_v22 = vld [vmem:[#allocation2 + $0x7c0] sm:$0xff] }
 0x730   : > { %v3064_v37 = vpack.c.bf16 %v3008_v22, %v3007_v47 }
 0x731   : > { %11824 = vmatpush3.bf16.msra.mxu0 %v3054_v1  ;;  %11879 = vmatprep.subr.bf16.mxu1 %v3074_v10  ;;  %v12489_v10 = vld [vmem:[%s16630_s11 + $0x50] ss:$20 sps:$4 sm:$0xff]  }
 0x732   : > { %v2894_v51 = vpop.permute.xlu0 %2893  ;;  %11825 = vmatprep.subr.bf16.mxu0 %v3063_v14  ;;  %v2888_v55 = vpop.permute.xlu1 %2887  ;;  %11880 = vmatpush3.bf16.msra.mxu1 %v3066_v41  ;;  %v3029_v4 = vld [vmem:[#allocation2 + $0xd00] sm:$0xff] }
 0x733   : > { %2914 = vst.msk [vmem:[#allocation2 + $0xec0] sm:$0xff] %vm1033_vm0, %v2894_v51  ;;  %2911 = vst.msk [vmem:[#allocation2 + $0xe00] sm:$0xff] %vm1033_vm0, %v2888_v55  ;;  %v3075_v43 = vpack.c.bf16 %v3030_v27, %v3029_v4  ;;  %v2992_v32 = vld [vmem:[#allocation2 + $0x3c0] sm:$0xff]  ;;  %v12492_v27 = vld [vmem:[%s16630_s11 + $0x78] ss:$20 sps:$4 sm:$0xff]  }
 0x734   : > { %v3056_v52 = vpack.c.bf16 %v2992_v32, %v2991_v15 }
 0x735   : > { %11826 = vmatpush3.bf16.msra.mxu0 %v3055_v29  ;;  %11881 = vmatprep.subr.bf16.mxu1 %v3075_v43  ;;  %v12493_v29 = vld [vmem:[%s16630_s11 + $0xa4] ss:$20 sps:$4 sm:$0xff]  }
 0x736   : > { %v2844_v33 = vpop.permute.xlu0 %2843  ;;  %11827 = vmatprep.subr.bf16.mxu0 %v3064_v37  ;;  %v2772_v49 = vpop.permute.xlu1 %2771  ;;  %11882 = vmatpush3.bf16.msra.mxu1 %v3067_v31  ;;  %v3031_v9 = vld [vmem:[#allocation2 + $0xd80] sm:$0xff] }
 0x737   : > { %2860 = vst.msk [vmem:[#allocation2 + $0xdc0] sm:$0xff] %vm1033_vm0, %v2844_v33  ;;  %2795 = vst.msk [vmem:[#allocation2 + $0xa00] sm:$0xff] %vm1033_vm0, %v2772_v49  ;;  %v3018_v59 = vld [vmem:[#allocation2 + $0xa40] sm:$0xff] }
 0x739   : > { %11828 = vmatpush3.bf16.msra.mxu0 %v3056_v52 }
 0x73a   : > { %v2778_v6 = vpop.permute.xlu0 %2777  ;;  %v2892_v34 = vpop.permute.xlu1 %2891  ;;  %v3033_v38 = vld [vmem:[#allocation2 + $0xe00] sm:$0xff] }
 0x73b   : > { %2798 = vst.msk [vmem:[#allocation2 + $0xac0] sm:$0xff] %vm1033_vm0, %v2778_v6  ;;  %2913 = vst.msk [vmem:[#allocation2 + $0xe80] sm:$0xff] %vm1033_vm0, %v2892_v34  ;;  %v3077_v57 = vpack.c.bf16 %v3034_v53, %v3033_v38  ;;  %v3036_v61 = vld [vmem:[#allocation2 + $0xec0] sm:$0xff]  ;;  %v12503_v53 = vld [vmem:[%s16630_s11 + $0xc8] ss:$20 sps:$4 sm:$0xff]  }
 0x73c   : > { %3391 = vmatmul.mubr.bf16.vlgmr.msra.gmra.mrb[36].mxu0 %v12481_v50  ;;  %v12495_v50 = vld [vmem:[%s16630_s11 + $0x8] ss:$20 sps:$4 sm:$0xff]   ;;  %v12499_v6 = vld [vmem:[%s16630_s11 + $0xcc] ss:$20 sps:$4 sm:$0xff]  }
 0x73d   : > { %3398 = vmatprep.mubr.bf16.mxu0 %v12484_v63  ;;  %v12498_v63 = vld [vmem:[%s16630_s11 + $0xa0] ss:$20 sps:$4 sm:$0xff]  }
 0x73e   : > { %v2898_v36 = vpop.permute.xlu0 %2897  ;;  %v2776_v24 = vpop.permute.xlu1 %2775  ;;  %v3032_v26 = vld [vmem:[#allocation2 + $0xdc0] sm:$0xff] }
 0x73f   : > { %2916 = vst.msk [vmem:[#allocation2 + $0xf40] sm:$0xff] %vm1033_vm0, %v2898_v36  ;;  %2797 = vst.msk [vmem:[#allocation2 + $0xa80] sm:$0xff] %vm1033_vm0, %v2776_v24  ;;  %v3076_v39 = vpack.c.bf16 %v3032_v26, %v3031_v9  ;;  %v3017_v60 = vld [vmem:[#allocation2 + $0xa00] sm:$0xff]  ;;  %v12501_v9 = vld [vmem:[%s16630_s11 + $0x34] ss:$20 sps:$4 sm:$0xff]  }
 0x740   : > { %v3069_v17 = vpack.c.bf16 %v3018_v59, %v3017_v60 }
 0x741   : > { %11883 = vmatprep.subr.bf16.mxu1 %v3076_v39 }
 0x742   : > { %v2782_v40 = vpop.permute.xlu0 %2781  ;;  %v2896_v58 = vpop.permute.xlu1 %2895  ;;  %11884 = vmatpush3.bf16.msra.mxu1 %v3068_v45  ;;  %v3035_v20 = vld [vmem:[#allocation2 + $0xe80] sm:$0xff] }
 0x743   : > { %2800 = vst.msk [vmem:[#allocation2 + $0xb40] sm:$0xff] %vm1033_vm0, %v2782_v40  ;;  %2915 = vst.msk [vmem:[#allocation2 + $0xf00] sm:$0xff] %vm1033_vm0, %v2896_v58  ;;  %11885 = vmatprep.subr.bf16.mxu1 %v3077_v57  ;;  %v3078_v56 = vpack.c.bf16 %v3036_v61, %v3035_v20  ;;  %v3020_v42 = vld [vmem:[#allocation2 + $0xac0] sm:$0xff]  ;;  %v12505_v57 = vld [vmem:[%s16630_s11 + $0xf4] ss:$20 sps:$4 sm:$0xff]  }
 0x744   : > { %3399 = vmatmul.mubr.bf16.gmra.mrb[40].mxu0 %v12486_v46  ;;  %v12504_v46 = vld [vmem:[%s16630_s11 + $0x30] ss:$20 sps:$4 sm:$0xff]  }
 0x745   : > { %3406 = vmatprep.mubr.bf16.mxu0 %v12487_v23  ;;  %v12507_v40 = vld [vmem:[%s16630_s11 + $0x5c] ss:$20 sps:$4 sm:$0xff]  }
 0x746   : > { %v2902_v30 = vpop.permute.xlu0 %2901  ;;  %v2780_v18 = vpop.permute.xlu1 %2779  ;;  %11886 = vmatpush3.bf16.msra.mxu1 %v3069_v17  ;;  %v3019_v2 = vld [vmem:[#allocation2 + $0xa80] sm:$0xff] }
 0x747   : > { %2918 = vst.msk [vmem:[#allocation2 + $0xfc0] sm:$0xff] %vm1033_vm0, %v2902_v30  ;;  %2799 = vst.msk [vmem:[#allocation2 + $0xb00] sm:$0xff] %vm1033_vm0, %v2780_v18  ;;  %11887 = vmatprep.subr.bf16.mxu1 %v3078_v56  ;;  %v3070_v1 = vpack.c.bf16 %v3020_v42, %v3019_v2  ;;  %v3038_v16 = vld [vmem:[#allocation2 + $0xf40] sm:$0xff]  ;;  %v12510_v56 = vld [vmem:[%s16630_s11 + $0x58] ss:$20 sps:$4 sm:$0xff]  }
 0x748   : > { %v12509_v61 = vld [vmem:[%s16630_s11 + $0xf0] ss:$20 sps:$4 sm:$0xff]   ;;  %v12515_v2 = vld [vmem:[%s16630_s11 + $0x118] ss:$20 sps:$4 sm:$0xff]   ;;  %v12516_v42 = vld [vmem:[%s16630_s11 + $0x80] ss:$20 sps:$4 sm:$0xff]  }
 0x749   : > { %v12511_v30 = vld [vmem:[%s16630_s11 + $0x11c] ss:$20 sps:$4 sm:$0xff]   ;;  %v12513_v18 = vld [vmem:[%s16630_s11 + $0x84] ss:$20 sps:$4 sm:$0xff]  }
 0x74a   : > { %v2786_v54 = vpop.permute.xlu0 %2785  ;;  %v2900_v14 = vpop.permute.xlu1 %2899  ;;  %11888 = vmatpush3.bf16.msra.mxu1 %v3070_v1  ;;  %v3037_v41 = vld [vmem:[#allocation2 + $0xf00] sm:$0xff] }
 0x74b   : > { %2802 = vst.msk [vmem:[#allocation2 + $0xbc0] sm:$0xff] %vm1033_vm0, %v2786_v54  ;;  %2917 = vst.msk [vmem:[#allocation2 + $0xf80] sm:$0xff] %vm1033_vm0, %v2900_v14  ;;  %v3079_v22 = vpack.c.bf16 %v3038_v16, %v3037_v41  ;;  %v3022_v25 = vld [vmem:[#allocation2 + $0xb40] sm:$0xff]  ;;  %v12521_v54 = vld [vmem:[%s16630_s11 + $0x38] ss:$20 sps:$4 sm:$0xff]  }
 0x74c   : > { %3407 = vmatmul.mubr.bf16.gmra.mrb[44].mxu0 %v12489_v10  ;;  %v12517_v1 = vld [vmem:[%s16630_s11 + $0xac] ss:$20 sps:$4 sm:$0xff]   ;;  %v12519_v10 = vld [vmem:[%s16630_s11 + $0x10] ss:$20 sps:$4 sm:$0xff]   ;;  %v12522_v14 = vld [vmem:[%s16630_s11 + $0xd4] ss:$20 sps:$4 sm:$0xff]  }
 0x74d   : > { %11889 = vmatprep.subr.bf16.mxu1 %v3079_v22  ;;  %3414 = vmatprep.mubr.bf16.mxu0 %v12490_v13  ;;  %v12520_v13 = vld [vmem:[%s16630_s11 + $0xa8] ss:$20 sps:$4 sm:$0xff]   ;;  %v12524_v41 = vld [vmem:[%s16630_s11 + $0x60] ss:$20 sps:$4 sm:$0xff]   ;;  %v12525_v16 = vld [vmem:[%s16630_s11 + $0xd0] ss:$20 sps:$4 sm:$0xff]  }
 0x74e   : > { %v2948_v48 = vpop.permute.xlu0 %2947  ;;  %v2784_v51 = vpop.permute.xlu1 %2783  ;;  %v3021_v55 = vld [vmem:[#allocation2 + $0xb00] sm:$0xff]  ;;  %v12526_v22 = vld [vmem:[%s16630_s11 + $0x88] ss:$20 sps:$4 sm:$0xff]  }
 0x74f   : > { %2970 = vst.msk [vmem:[#allocation2 + $0x1040] sm:$0xff] %vm1033_vm0, %v2948_v48  ;;  %2801 = vst.msk [vmem:[#allocation2 + $0xb80] sm:$0xff] %vm1033_vm0, %v2784_v51  ;;  %v3071_v4 = vpack.c.bf16 %v3022_v25, %v3021_v55  ;;  %v3040_v37 = vld [vmem:[#allocation2 + $0xfc0] sm:$0xff]  ;;  %v12527_v48 = vld [vmem:[%s16630_s11 + $0xfc] ss:$20 sps:$4 sm:$0xff]  }
 0x750   : > { %v12529_v51 = vld [vmem:[%s16630_s11 + $0xb0] ss:$20 sps:$4 sm:$0xff]   ;;  %v12530_v55 = vld [vmem:[%s16630_s11 + $0xf8] ss:$20 sps:$4 sm:$0xff]  }
 0x751   : > { %11890 = vmatpush3.bf16.msra.mxu1 %v3071_v4  ;;  %v12531_v25 = vld [vmem:[%s16630_s11 + $0xd8] ss:$20 sps:$4 sm:$0xff]  }
 0x752   : > { %v2952_v43 = vpop.permute.xlu0 %2951  ;;  %v2946_v47 = vpop.permute.xlu1 %2945  ;;  %v3039_v44 = vld [vmem:[#allocation2 + $0xf80] sm:$0xff] }
 0x753   : > { %2972 = vst.msk [vmem:[#allocation2 + $0x10c0] sm:$0xff] %vm1033_vm0, %v2952_v43  ;;  %2969 = vst.msk [vmem:[#allocation2 + $0x1000] sm:$0xff] %vm1033_vm0, %v2946_v47  ;;  %v3080_v31 = vpack.c.bf16 %v3040_v37, %v3039_v44  ;;  %v3024_v15 = vld [vmem:[#allocation2 + $0xbc0] sm:$0xff]  ;;  %v12536_v43 = vld [vmem:[%s16630_s11 + $0x128] ss:$20 sps:$4 sm:$0xff]  }
 0x754   : > { %3415 = vmatmul.mubr.bf16.gmra.mrb[48].mxu0 %v12492_v27  ;;  %v12532_v4 = vld [vmem:[%s16630_s11 + $0x124] ss:$20 sps:$4 sm:$0xff]   ;;  %v12534_v27 = vld [vmem:[%s16630_s11 + $0x100] ss:$20 sps:$4 sm:$0xff]  }
 0x755   : > { %11891 = vmatprep.subr.bf16.mxu1 %v3080_v31  ;;  %3422 = vmatprep.mubr.bf16.mxu0 %v12493_v29  ;;  %v12535_v29 = vld [vmem:[%s16630_s11 + $0x120] ss:$20 sps:$4 sm:$0xff]  }
 0x756   : > { %v2956_v32 = vpop.permute.xlu0 %2955  ;;  %v2950_v33 = vpop.permute.xlu1 %2949  ;;  %v3023_v49 = vld [vmem:[#allocation2 + $0xb80] sm:$0xff] }
 0x757   : > { %2974 = vst.msk [vmem:[#allocation2 + $0x1140] sm:$0xff] %vm1033_vm0, %v2956_v32  ;;  %2971 = vst.msk [vmem:[#allocation2 + $0x1080] sm:$0xff] %vm1033_vm0, %v2950_v33  ;;  %v3072_v52 = vpack.c.bf16 %v3024_v15, %v3023_v49  ;;  %v3042_v24 = vld [vmem:[#allocation2 + $0x1040] sm:$0xff] }
 0x759   : > { %11892 = vmatpush3.bf16.msra.mxu1 %v3072_v52 }
 0x75a   : > { %v2960_v34 = vpop.permute.xlu0 %2959  ;;  %v2954_v35 = vpop.permute.xlu1 %2953  ;;  %v3041_v36 = vld [vmem:[#allocation2 + $0x1000] sm:$0xff] }
 0x75b   : > { %2976 = vst.msk [vmem:[#allocation2 + $0x11c0] sm:$0xff] %vm1033_vm0, %v2960_v34  ;;  %2973 = vst.msk [vmem:[#allocation2 + $0x1100] sm:$0xff] %vm1033_vm0, %v2954_v35  ;;  %v3081_v26 = vpack.c.bf16 %v3042_v24, %v3041_v36  ;;  %v3044_v19 = vld [vmem:[#allocation2 + $0x10c0] sm:$0xff] }
 0x75c   : > { %3423 = vmatmul.mubr.bf16.gmra.mrb[52].mxu0 %v12498_v63  ;;  %3488 = vmatmul.mubr.bf16.vlgmr.msra.gmra.mrb[44].mxu1 %v12495_v50 }
 0x75d   : > { %12011 = vmatprep.subr.bf16.mxu0 %v3081_v26  ;;  %3430 = vmatprep.mubr.bf16.mxu0 %v12499_v6 }
 0x75e   : > { %12012 = vmatpush3.bf16.msra.mxu0 %v3081_v26  ;;  %v2958_v38 = vpop.permute.xlu1 %2957  ;;  %v3043_v39 = vld [vmem:[#allocation2 + $0x1080] sm:$0xff]  ;;  %3495 = vmatprep.mubr.bf16.mxu1 %v12501_v9 }
 0x75f   : > { %2975 = vst.msk [vmem:[#allocation2 + $0x1180] sm:$0xff] %vm1033_vm0, %v2958_v38  ;;  %v3082_v45 = vpack.c.bf16 %v3044_v19, %v3043_v39  ;;  %v3046_v23 = vld [vmem:[#allocation2 + $0x1140] sm:$0xff] }
 0x761   : > { %12013 = vmatprep.subr.bf16.mxu0 %v3082_v45 }
 0x762   : > { %12014 = vmatpush3.bf16.msra.mxu0 %v3082_v45  ;;  %v3045_v60 = vld [vmem:[#allocation2 + $0x1100] sm:$0xff] }
 0x763   : > { %v3083_v58 = vpack.c.bf16 %v3046_v23, %v3045_v60  ;;  %v3048_v59 = vld [vmem:[#allocation2 + $0x11c0] sm:$0xff] }
 0x764   : > { %3431 = vmatmul.mubr.bf16.gmra.mrb[56].mxu0 %v12503_v53  ;;  %3496 = vmatmul.mubr.bf16.gmra.mrb[48].mxu1 %v12504_v46 }
 0x765   : > { %12015 = vmatprep.subr.bf16.mxu0 %v3083_v58  ;;  %3438 = vmatprep.mubr.bf16.mxu0 %v12505_v57 }
 0x766   : > { %12016 = vmatpush3.bf16.msra.mxu0 %v3083_v58  ;;  %v3047_v20 = vld [vmem:[#allocation2 + $0x1180] sm:$0xff]  ;;  %3503 = vmatprep.mubr.bf16.mxu1 %v12507_v40 }
 0x767   : > { %v3084_v17 = vpack.c.bf16 %v3048_v59, %v3047_v20 }
 0x769   : > { %12017 = vmatprep.subr.bf16.mxu0 %v3084_v17 }
 0x76a   : > { %12018 = vmatpush3.bf16.msra.mxu0 %v3084_v17 }
 0x76c   : > { %3439 = vmatmul.mubr.bf16.gmra.mrb[60].mxu0 %v12509_v61  ;;  %3504 = vmatmul.mubr.bf16.gmra.mrb[52].mxu1 %v12510_v56 }
 0x76d   : > { %3446 = vmatprep.mubr.bf16.mxu0 %v12511_v30  ;;  %3511 = vmatprep.mubr.bf16.mxu1 %v12513_v18 }
 0x774   : > { %3447 = vmatmul.mubr.bf16.gmra.mrb[64].mxu0 %v12515_v2  ;;  %3512 = vmatmul.mubr.bf16.gmra.mrb[56].mxu1 %v12516_v42 }
 0x775   : > { %3519 = vmatprep.mubr.bf16.mxu1 %v12517_v1  ;;  %12019 = vmatprep.mubr.msk.bf16.mxu0 %vm3333_vm3, %v12519_v10 }
 0x77c   : > { %3520 = vmatmul.mubr.bf16.gmra.mrb[60].mxu1 %v12520_v13  ;;  %12020 = vmatmul.mubr.msk.bf16.vlgmr.msra.gmra.mrb[68].mxu0 %vm3333_vm3, %v12521_v54 }
 0x77d   : > { %3527 = vmatprep.mubr.bf16.mxu1 %v12522_v14  ;;  %12023 = vmatprep.mubr.msk.bf16.mxu0 %vm3333_vm3, %v12524_v41 }
 0x784   : > { %3528 = vmatmul.mubr.bf16.gmra.mrb[64].mxu1 %v12525_v16  ;;  %12024 = vmatmul.mubr.msk.bf16.gmra.mrb[72].mxu0 %vm3333_vm3, %v12526_v22 }
 0x785   : > { %3535 = vmatprep.mubr.bf16.mxu1 %v12527_v48  ;;  %12027 = vmatprep.mubr.msk.bf16.mxu0 %vm3333_vm3, %v12529_v51 }
 0x78c   : > { %3536 = vmatmul.mubr.bf16.gmra.mrb[68].mxu1 %v12530_v55  ;;  %12028 = vmatmul.mubr.msk.bf16.gmra.mrb[76].mxu0 %vm3333_vm3, %v12531_v25 }
 0x78d   : > { %3543 = vmatprep.mubr.bf16.mxu1 %v12532_v4  ;;  %12031 = vmatprep.mubr.msk.bf16.mxu0 %vm3333_vm3, %v12534_v27 }
 0x794   : > { %3544 = vmatmul.mubr.bf16.gmra.mrb[72].mxu1 %v12535_v29  ;;  %12032 = vmatmul.mubr.msk.bf16.gmra.mrb[80].mxu0 %vm3333_vm3, %v12536_v43 }
 0x80f   : > { %v11829_v47 = vpop.f32.mrb[36].mxu0 }
 0x810   : > { %v11830_v44 = vpop.f32.mrb[37].mxu0 }
 0x811   : > { %v11831_v37 = vadd.f32 %v11830_v44, %v11829_v47  ;;  %v11832_v31 = vpop.f32.mrb[38].mxu0 }
 0x812   : > { %v11833_v32 = vpop.f32.mrb[39].mxu0 }
 0x813   : > { %v11834_v33 = vadd.f32 %v11833_v32, %v11832_v31 }
 0x817   : > { %v11835_v49 = vpop.f32.mrb[40].mxu0 }
 0x818   : > { %v11836_v15 = vpop.f32.mrb[41].mxu0 }
 0x819   : > { %v11837_v52 = vadd.f32 %v11836_v15, %v11835_v49  ;;  %v11838_v50 = vpop.f32.mrb[42].mxu0 }
 0x81a   : > { %v11839_v63 = vpop.f32.mrb[43].mxu0 }
 0x81b   : > { %v11840_v6 = vadd.f32 %v11839_v63, %v11838_v50 }
 0x81f   : > { %v11841_v34 = vpop.f32.mrb[44].mxu0 }
 0x820   : > { %v11842_v35 = vpop.f32.mrb[45].mxu0 }
 0x821   : > { %v11843_v36 = vadd.f32 %v11842_v35, %v11841_v34  ;;  %v11844_v24 = vpop.f32.mrb[46].mxu0 }
 0x822   : > { %v11845_v9 = vpop.f32.mrb[47].mxu0 }
 0x823   : > { %v11846_v26 = vadd.f32 %v11845_v9, %v11844_v24 }
 0x827   : > { %v11847_v38 = vpop.f32.mrb[48].mxu0 }
 0x828   : > { %v11848_v39 = vpop.f32.mrb[49].mxu0 }
 0x829   : > { %v11849_v19 = vadd.f32 %v11848_v39, %v11847_v38  ;;  %v11850_v45 = vpop.f32.mrb[50].mxu0 }
 0x82a   : > { %v11851_v53 = vpop.f32.mrb[51].mxu0 }
 0x82b   : > { %v11852_v46 = vadd.f32 %v11851_v53, %v11850_v45 }
 0x82f   : > { %v11893_v57 = vpop.f32.mrb[44].mxu1  ;;  %v11853_v60 = vpop.f32.mrb[52].mxu0 }
 0x830   : > { %v11894_v23 = vpop.f32.mrb[45].mxu1  ;;  %v11854_v40 = vpop.f32.mrb[53].mxu0 }
 0x831   : > { %v11895_v58 = vadd.f32 %v11894_v23, %v11893_v57  ;;  %v11896_v20 = vpop.f32.mrb[46].mxu1  ;;  %v14894_v59 = vadd.f32 %v11854_v40, %v11853_v60  ;;  %v11856_v17 = vpop.f32.mrb[54].mxu0 }
 0x832   : > { %v11897_v61 = vpop.f32.mrb[47].mxu1  ;;  %v11857_v56 = vpop.f32.mrb[55].mxu0 }
 0x833   : > { %v11898_v30 = vadd.f32 %v11897_v61, %v11896_v20  ;;  %v14896_v18 = vadd.f32 %v11857_v56, %v11856_v17  ;;  %v3490_v2 = vadd.f32 %v11895_v58, %v11831_v37 }
 0x835   : > { %v3493_v42 = vadd.f32 %v11898_v30, %v11834_v33 }
 0x837   : > { %v11899_v1 = vpop.f32.mrb[48].mxu1  ;;  %v11859_v10 = vpop.f32.mrb[56].mxu0 }
 0x838   : > { %v11900_v13 = vpop.f32.mrb[49].mxu1  ;;  %v11860_v54 = vpop.f32.mrb[57].mxu0 }
 0x839   : > { %v11901_v14 = vadd.f32 %v11900_v13, %v11899_v1  ;;  %v11902_v41 = vpop.f32.mrb[50].mxu1  ;;  %v14898_v16 = vadd.f32 %v11860_v54, %v11859_v10  ;;  %v11862_v22 = vpop.f32.mrb[58].mxu0 }
 0x83a   : > { %v11903_v48 = vpop.f32.mrb[51].mxu1  ;;  %v11863_v51 = vpop.f32.mrb[59].mxu0 }
 0x83b   : > { %v11904_v55 = vadd.f32 %v11903_v48, %v11902_v41  ;;  %v14900_v25 = vadd.f32 %v11863_v51, %v11862_v22  ;;  %v3498_v4 = vadd.f32 %v11901_v14, %v11837_v52 }
 0x83d   : > { %v3501_v27 = vadd.f32 %v11904_v55, %v11840_v6 }
 0x83f   : > { %v11905_v29 = vpop.f32.mrb[52].mxu1  ;;  %v11865_v43 = vpop.f32.mrb[60].mxu0 }
 0x840   : > { %v11906_v47 = vpop.f32.mrb[53].mxu1  ;;  %v11866_v44 = vpop.f32.mrb[61].mxu0 }
 0x841   : > { %v11907_v37 = vadd.f32 %v11906_v47, %v11905_v29  ;;  %v11908_v31 = vpop.f32.mrb[54].mxu1  ;;  %v14902_v32 = vadd.f32 %v11866_v44, %v11865_v43  ;;  %v11868_v33 = vpop.f32.mrb[62].mxu0 }
 0x842   : > { %v11909_v49 = vpop.f32.mrb[55].mxu1  ;;  %v11869_v15 = vpop.f32.mrb[63].mxu0 }
 0x843   : > { %v11910_v50 = vadd.f32 %v11909_v49, %v11908_v31  ;;  %v14904_v63 = vadd.f32 %v11869_v15, %v11868_v33  ;;  %v3506_v34 = vadd.f32 %v11907_v37, %v11843_v36 }
 0x845   : > { %v3509_v35 = vadd.f32 %v11910_v50, %v11846_v26 }
 0x847   : > { %v11911_v24 = vpop.f32.mrb[56].mxu1  ;;  %v11871_v9 = vpop.f32.mrb[64].mxu0 }
 0x848   : > { %v11912_v52 = vpop.f32.mrb[57].mxu1  ;;  %v11872_v6 = vpop.f32.mrb[65].mxu0 }
 0x849   : > { %v11913_v38 = vadd.f32 %v11912_v52, %v11911_v24  ;;  %v11914_v39 = vpop.f32.mrb[58].mxu1  ;;  %v14906_v45 = vadd.f32 %v11872_v6, %v11871_v9  ;;  %v11874_v53 = vpop.f32.mrb[66].mxu0 }
 0x84a   : > { %v11915_v57 = vpop.f32.mrb[59].mxu1  ;;  %v11875_v60 = vpop.f32.mrb[67].mxu0 }
 0x84b   : > { %v11916_v23 = vadd.f32 %v11915_v57, %v11914_v39  ;;  %v14908_v40 = vadd.f32 %v11875_v60, %v11874_v53  ;;  %v3514_v58 = vadd.f32 %v11913_v38, %v11849_v19 }
 0x84d   : > { %v3517_v20 = vadd.f32 %v11916_v23, %v11852_v46 }
 0x84f   : > { %v11917_v17 = vpop.f32.mrb[60].mxu1  ;;  %v12021_v61 = vpop.f32.mrb[68].mxu0 }
 0x850   : > { %v14910_v36 = vadd.f32 %v12021_v61, %v3498_v4  ;;  %v11918_v26 = vpop.f32.mrb[61].mxu1  ;;  %v3586_v56 = vpop.f32.mrb[69].mxu0 }
 0x851   : > { %v11919_v30 = vadd.f32 %v11918_v26, %v11917_v17  ;;  %v14912_v1 = vadd.f32 %v3586_v56, %v3490_v2  ;;  %v11920_v10 = vpop.f32.mrb[62].mxu1  ;;  %v12022_v13 = vpop.f32.mrb[70].mxu0 }
 0x852   : > { %v14914_v54 = vadd.f32 %v12022_v13, %v3501_v27  ;;  %v11921_v14 = vpop.f32.mrb[63].mxu1  ;;  %v3589_v41 = vpop.f32.mrb[71].mxu0  ;;  %v3655_v31 = vsel %vm1033_vm0, %v14910_v36, 0.0 }
 0x853   : > { %v11922_v22 = vadd.f32 %v11921_v14, %v11920_v10  ;;  %v14916_v48 = vadd.f32 %v3589_v41, %v3493_v42  ;;  %v3649_v19 = vsel %vm1033_vm0, %v14912_v1, 0.0  ;;  %v3522_v46 = vadd.f32 %v11919_v30, %v14894_v59 }
 0x854   : > { %3650 = vadd.xlane.f32.xlu1 %v3649_v19  ;;  %v3658_v27 = vsel %vm1033_vm0, %v14914_v54, 0.0 }
 0x855   : > { %v3652_v51 = vsel %vm1033_vm0, %v14916_v48, 0.0  ;;  %v3525_v2 = vadd.f32 %v11922_v22, %v14896_v18 }
 0x856   : > { %3653 = vadd.xlane.f32.xlu0 %v3652_v51 }
 0x857   : > { %v11923_v55 = vpop.f32.mrb[64].mxu1  ;;  %v12025_v4 = vpop.f32.mrb[72].mxu0 }
 0x858   : > { %v14926_v29 = vadd.f32 %v12025_v4, %v3514_v58  ;;  %v11924_v42 = vpop.f32.mrb[65].mxu1  ;;  %v3602_v43 = vpop.f32.mrb[73].mxu0  ;;  %3659 = vadd.xlane.f32.xlu1 %v3658_v27 }
 0x859   : > { %v11925_v47 = vadd.f32 %v11924_v42, %v11923_v55  ;;  %v14928_v44 = vadd.f32 %v3602_v43, %v3506_v34  ;;  %v11926_v59 = vpop.f32.mrb[66].mxu1  ;;  %v12026_v37 = vpop.f32.mrb[74].mxu0 }
 0x85a   : > { %v14932_v18 = vadd.f32 %v12026_v37, %v3517_v20  ;;  %v11927_v33 = vpop.f32.mrb[67].mxu1  ;;  %v3605_v49 = vpop.f32.mrb[75].mxu0  ;;  %3656 = vadd.xlane.f32.xlu0 %v3655_v31  ;;  %v3667_v58 = vsel %vm1033_vm0, %v14926_v29, 0.0 }
 0x85b   : > { %v11928_v15 = vadd.f32 %v11927_v33, %v11926_v59  ;;  %v14934_v50 = vadd.f32 %v3605_v49, %v3509_v35  ;;  %v3530_v24 = vadd.f32 %v11925_v47, %v14898_v16  ;;  %v3661_v9 = vsel %vm1033_vm0, %v14928_v44, 0.0 }
 0x85c   : > { %v3670_v20 = vsel %vm1033_vm0, %v14932_v18, 0.0 }
 0x85d   : > { %v3664_v34 = vsel %vm1033_vm0, %v14934_v50, 0.0  ;;  %v3533_v52 = vadd.f32 %v11928_v15, %v14900_v25 }
 0x85e   : > { %3662 = vadd.xlane.f32.xlu0 %v3661_v9  ;;  %3665 = vadd.xlane.f32.xlu1 %v3664_v34 }
 0x85f   : > { %v11929_v6 = vpop.f32.mrb[68].mxu1  ;;  %v12029_v38 = vpop.f32.mrb[76].mxu0 }
 0x860   : > { %v14942_v39 = vadd.f32 %v12029_v38, %v3530_v24  ;;  %v11930_v53 = vpop.f32.mrb[69].mxu1  ;;  %v3618_v57 = vpop.f32.mrb[77].mxu0 }
 0x861   : > { %v11931_v35 = vadd.f32 %v11930_v53, %v11929_v6  ;;  %v14944_v60 = vadd.f32 %v3618_v57, %v3522_v46  ;;  %v11932_v16 = vpop.f32.mrb[70].mxu1  ;;  %v12030_v23 = vpop.f32.mrb[78].mxu0 }
 0x862   : > { %v14950_v25 = vadd.f32 %v12030_v23, %v3533_v52  ;;  %v11933_v17 = vpop.f32.mrb[71].mxu1  ;;  %v3621_v61 = vpop.f32.mrb[79].mxu0  ;;  %3668 = vadd.xlane.f32.xlu0 %v3667_v58  ;;  %3671 = vadd.xlane.f32.xlu1 %v3670_v20 }
 0x863   : > { %v11934_v26 = vadd.f32 %v11933_v17, %v11932_v16  ;;  %v14952_v56 = vadd.f32 %v3621_v61, %v3525_v2  ;;  %v3538_v30 = vadd.f32 %v11931_v35, %v14902_v32  ;;  %v3673_v10 = vsel %vm1033_vm0, %v14944_v60, 0.0 }
 0x864   : > { %v3679_v32 = vsel %vm1033_vm0, %v14942_v39, 0.0  ;;  %v3682_v27 = vsel %vm1033_vm0, %v14950_v25, 0.0 }
 0x865   : > { %v3676_v13 = vsel %vm1033_vm0, %v14952_v56, 0.0  ;;  %v3541_v14 = vadd.f32 %v11934_v26, %v14904_v63 }
 0x866   : > { %3674 = vadd.xlane.f32.xlu0 %v3673_v10  ;;  %3677 = vadd.xlane.f32.xlu1 %v3676_v13 }
 0x867   : > { %v11935_v41 = vpop.f32.mrb[72].mxu1  ;;  %v12033_v22 = vpop.f32.mrb[80].mxu0 }
 0x868   : > { %v11936_v19 = vpop.f32.mrb[73].mxu1  ;;  %v3634_v46 = vpop.f32.mrb[81].mxu0 }
 0x869   : > { %v11937_v51 = vadd.f32 %v11936_v19, %v11935_v41  ;;  %v14960_v55 = vadd.f32 %v3634_v46, %v3538_v30  ;;  %v11938_v2 = vpop.f32.mrb[74].mxu1  ;;  %v12034_v4 = vpop.f32.mrb[82].mxu0 }
 0x86a   : > { %v11939_v42 = vpop.f32.mrb[75].mxu1  ;;  %v3637_v43 = vpop.f32.mrb[83].mxu0  ;;  %3680 = vadd.xlane.f32.xlu0 %v3679_v32  ;;  %3683 = vadd.xlane.f32.xlu1 %v3682_v27 }
 0x86b   : > { %v3546_v63 = vadd.f32 %v11937_v51, %v14906_v45  ;;  %v11940_v47 = vadd.f32 %v11939_v42, %v11938_v2  ;;  %v14967_v59 = vadd.f32 %v3637_v43, %v3541_v14  ;;  %v3685_v31 = vsel %vm1033_vm0, %v14960_v55, 0.0 }
 0x86d   : > { %v3549_v37 = vadd.f32 %v11940_v47, %v14908_v40  ;;  %v3688_v33 = vsel %vm1033_vm0, %v14967_v59, 0.0  ;;  %v14974_v49 = vadd.f32 %v12033_v22, %v3546_v63 }
 0x86e   : > { %3686 = vadd.xlane.f32.xlu0 %v3685_v31  ;;  %3689 = vadd.xlane.f32.xlu1 %v3688_v33 }
 0x86f   : > { %v14976_v15 = vadd.f32 %v12034_v4, %v3549_v37  ;;  %v3691_v45 = vsel %vm1033_vm0, %v14974_v49, 0.0 }
 0x871   : > { %v3694_v24 = vsel %vm1033_vm0, %v14976_v15, 0.0 }
 0x872   : > { %3692 = vadd.xlane.f32.xlu0 %v3691_v45  ;;  %3695 = vadd.xlane.f32.xlu1 %v3694_v24 }
 0x8e1   : > { %v3651_v40 = vpop.xlane.xlu1 %3650 }
 0x8e3   : > { %v3654_v9 = vpop.xlane.xlu0 %3653 }
 0x8e4   : > { %v3697_v34 = vadd.f32 %v3654_v9, %v3651_v40 }
 0x8e5   : > { %v3660_v52 = vpop.xlane.xlu1 %3659 }
 0x8e7   : > { %v3657_v6 = vpop.xlane.xlu0 %3656 }
 0x8e8   : > { %v3698_v38 = vadd.f32 %v3697_v34, %v3657_v6 }
 0x8ea   : > { %v3699_v53 = vadd.f32 %v3698_v38, %v3660_v52 }
 0x8eb   : > { %v3663_v57 = vpop.xlane.xlu0 %3662  ;;  %v3666_v35 = vpop.xlane.xlu1 %3665 }
 0x8ec   : > { %v3700_v16 = vadd.f32 %v3699_v53, %v3663_v57 }
 0x8ee   : > { %v3701_v23 = vadd.f32 %v3700_v16, %v3666_v35 }
 0x8ef   : > { %v3669_v58 = vpop.xlane.xlu0 %3668  ;;  %v3672_v20 = vpop.xlane.xlu1 %3671 }
 0x8f0   : > { %v3702_v17 = vadd.f32 %v3701_v23, %v3669_v58 }
 0x8f2   : > { %v3703_v61 = vadd.f32 %v3702_v17, %v3672_v20 }
 0x8f3   : > { %v3675_v26 = vpop.xlane.xlu0 %3674  ;;  %v3678_v30 = vpop.xlane.xlu1 %3677 }
 0x8f4   : > { %v3704_v10 = vadd.f32 %v3703_v61, %v3675_v26 }
 0x8f6   : > { %v3705_v13 = vadd.f32 %v3704_v10, %v3678_v30 }
 0x8f7   : > { %v3681_v14 = vpop.xlane.xlu0 %3680  ;;  %v3684_v41 = vpop.xlane.xlu1 %3683 }
 0x8f8   : > { %v3706_v22 = vadd.f32 %v3705_v13, %v3681_v14 }
 0x8fa   : > { %v3707_v19 = vadd.f32 %v3706_v22, %v3684_v41 }
 0x8fb   : > { %v3687_v46 = vpop.xlane.xlu0 %3686  ;;  %v3690_v51 = vpop.xlane.xlu1 %3689 }
 0x8fc   : > { %v3708_v2 = vadd.f32 %v3707_v19, %v3687_v46 }
 0x8fe   : > { %v3709_v4 = vadd.f32 %v3708_v2, %v3690_v51 }
 0x8ff   : > { %v3693_v32 = vpop.xlane.xlu0 %3692  ;;  %v3696_v42 = vpop.xlane.xlu1 %3695 }
 0x900   : > { %v3710_v27 = vadd.f32 %v3709_v4, %v3693_v32 }
 0x902   : > { %v3711_v43 = vadd.f32 %v3710_v27, %v3696_v42 }
 0x904   : > { %v3712_v63 = vrot.slane %v3711_v43, 4 }
 0x906   : > { %v3713_v47 = vadd.f32 %v3712_v63, %v3711_v43 }
 0x908   : > { %v3714_v37 = vrot.slane %v3713_v47, 2 }
 0x90a   : > { %v3715_v31 = vadd.f32 %v3714_v37, %v3713_v47  ;;  %v12537_v47 = vld [vmem:[#allocation13 + $0x8] sm:$0xff]   ;;  %v15078_v37 = vld [vmem:[#allocation13] sm:$0xff]  }
 0x90b   : > { %12035 = vmatprep.subr.bf16.mxu1 %v12537_v47 }
 0x90c   : > { %v3716_v33 = vrot.slane %v3715_v31, 1  ;;  %12036 = vmatpush3.bf16.msra.mxu1 %v12537_v47 }
 0x90d   : > { %12041 = vmatprep.subr.bf16.mxu1 %v15078_v37 }
 0x90e   : > { %v3717_v45 = vadd.f32 %v3716_v33, %v3715_v31 }
 0x910   : > { %v3719_v24 = vmul.f32 0.00048828125, %v3717_v45 }
 0x912   : > { %v14983_v40 = vsub.f32 %v14916_v48, %v3719_v24  ;;  %v14986_v9 = vsub.f32 %v14912_v1, %v3719_v24  ;;  %v14989_v34 = vsub.f32 %v14914_v54, %v3719_v24  ;;  %v14992_v52 = vsub.f32 %v14910_v36, %v3719_v24 }
 0x913   : > { %v14999_v53 = vsub.f32 %v14934_v50, %v3719_v24  ;;  %v15002_v48 = vsub.f32 %v14928_v44, %v3719_v24  ;;  %v15011_v35 = vsub.f32 %v14932_v18, %v3719_v24  ;;  %v15014_v50 = vsub.f32 %v14926_v29, %v3719_v24 }
 0x914   : > { %v3737_v6 = vmul.f32 %v14983_v40, %v14983_v40  ;;  %v3736_v38 = vmul.f32 %v14986_v9, %v14986_v9  ;;  %v3739_v36 = vmul.f32 %v14989_v34, %v14989_v34  ;;  %v3738_v57 = vmul.f32 %v14992_v52, %v14992_v52 }
 0x915   : > { %v3741_v23 = vmul.f32 %v14999_v53, %v14999_v53  ;;  %v3740_v58 = vmul.f32 %v15002_v48, %v15002_v48  ;;  %v3743_v20 = vmul.f32 %v15011_v35, %v15011_v35  ;;  %v3742_v18 = vmul.f32 %v15014_v50, %v15014_v50 }
 0x916   : > { %v3755_v1 = vsel %vm1033_vm0, %v3737_v6, 0.0  ;;  %v3752_v54 = vsel %vm1033_vm0, %v3736_v38, 0.0  ;;  %v3761_v44 = vsel %vm1033_vm0, %v3739_v36, 0.0  ;;  %v3758_v16 = vsel %vm1033_vm0, %v3738_v57, 0.0 }
 0x917   : > { %3756 = vadd.xlane.f32.xlu1 %v3755_v1  ;;  %3753 = vadd.xlane.f32.xlu0 %v3752_v54  ;;  %v3767_v29 = vsel %vm1033_vm0, %v3741_v23, 0.0  ;;  %v3764_v17 = vsel %vm1033_vm0, %v3740_v58, 0.0  ;;  %v15029_v61 = vsub.f32 %v14952_v56, %v3719_v24  ;;  %v15032_v26 = vsub.f32 %v14944_v60, %v3719_v24 }
 0x918   : > { %v3773_v30 = vsel %vm1033_vm0, %v3743_v20, 0.0  ;;  %v3770_v10 = vsel %vm1033_vm0, %v3742_v18, 0.0  ;;  %v15041_v41 = vsub.f32 %v14950_v25, %v3719_v24  ;;  %v15044_v56 = vsub.f32 %v14942_v39, %v3719_v24 }
 0x919   : > { %v3745_v13 = vmul.f32 %v15029_v61, %v15029_v61  ;;  %v3744_v14 = vmul.f32 %v15032_v26, %v15032_v26  ;;  %v15047_v60 = vsub.f32 %v14967_v59, %v3719_v24  ;;  %v15050_v22 = vsub.f32 %v14960_v55, %v3719_v24 }
 0x91a   : > { %v3747_v51 = vmul.f32 %v15041_v41, %v15041_v41  ;;  %v3746_v25 = vmul.f32 %v15044_v56, %v15044_v56  ;;  %v15059_v39 = vsub.f32 %v14976_v15, %v3719_v24  ;;  %v15062_v59 = vsub.f32 %v14974_v49, %v3719_v24 }
 0x91b   : > { %3762 = vadd.xlane.f32.xlu1 %v3761_v44  ;;  %3759 = vadd.xlane.f32.xlu0 %v3758_v16  ;;  %v3779_v19 = vsel %vm1033_vm0, %v3745_v13, 0.0  ;;  %v3776_v46 = vsel %vm1033_vm0, %v3744_v14, 0.0  ;;  %v3749_v4 = vmul.f32 %v15047_v60, %v15047_v60  ;;  %v3748_v32 = vmul.f32 %v15050_v22, %v15050_v22 }
 0x91c   : > { %v3785_v55 = vsel %vm1033_vm0, %v3747_v51, 0.0  ;;  %v3782_v2 = vsel %vm1033_vm0, %v3746_v25, 0.0  ;;  %v3751_v49 = vmul.f32 %v15059_v39, %v15059_v39  ;;  %v3750_v42 = vmul.f32 %v15062_v59, %v15062_v59 }
 0x91d   : > { %v3791_v27 = vsel %vm1033_vm0, %v3749_v4, 0.0  ;;  %v3788_v15 = vsel %vm1033_vm0, %v3748_v32, 0.0 }
 0x91e   : > { %v3797_v43 = vsel %vm1033_vm0, %v3751_v49, 0.0  ;;  %v3794_v63 = vsel %vm1033_vm0, %v3750_v42, 0.0 }
 0x91f   : > { %3768 = vadd.xlane.f32.xlu1 %v3767_v29  ;;  %3765 = vadd.xlane.f32.xlu0 %v3764_v17 }
 0x923   : > { %3774 = vadd.xlane.f32.xlu1 %v3773_v30  ;;  %3771 = vadd.xlane.f32.xlu0 %v3770_v10 }
 0x927   : > { %3780 = vadd.xlane.f32.xlu1 %v3779_v19  ;;  %3777 = vadd.xlane.f32.xlu0 %v3776_v46 }
 0x92b   : > { %3786 = vadd.xlane.f32.xlu1 %v3785_v55  ;;  %3783 = vadd.xlane.f32.xlu0 %v3782_v2 }
 0x92f   : > { %3792 = vadd.xlane.f32.xlu1 %v3791_v27  ;;  %3789 = vadd.xlane.f32.xlu0 %v3788_v15 }
 0x933   : > { %3798 = vadd.xlane.f32.xlu1 %v3797_v43  ;;  %3795 = vadd.xlane.f32.xlu0 %v3794_v63 }
 0x9a4   : > { %v3757_v31 = vpop.xlane.xlu1 %3756  ;;  %v3754_v33 = vpop.xlane.xlu0 %3753 }
 0x9a5   : > { %v3800_v45 = vadd.f32 %v3757_v31, %v3754_v33 }
 0x9a8   : > { %v3763_v24 = vpop.xlane.xlu1 %3762  ;;  %v3760_v6 = vpop.xlane.xlu0 %3759 }
 0x9a9   : > { %v3801_v38 = vadd.f32 %v3800_v45, %v3760_v6  ;;  %v3844_v45 = vld [vmem:[%s16631_s0 + $0x20] sm:$0xff]  ;;  %v3845_v6 = vld [vmem:[%s16631_s0 + $0x28] sm:$0xff] }
 0x9ab   : > { %v3802_v1 = vadd.f32 %v3801_v38, %v3763_v24  ;;  %v3846_v38 = vld [vmem:[%s16631_s0 + $0x30] sm:$0xff] }
 0x9ac   : > { %v3769_v54 = vpop.xlane.xlu1 %3768  ;;  %v3766_v36 = vpop.xlane.xlu0 %3765 }
 0x9ad   : > { %v3803_v57 = vadd.f32 %v3802_v1, %v3766_v36  ;;  %v3847_v1 = vld [vmem:[%s16631_s0 + $0x38] sm:$0xff] }
 0x9af   : > { %v3804_v44 = vadd.f32 %v3803_v57, %v3769_v54  ;;  %v3876_v57 = vld [vmem:[%s16632_s10 + $0x20] sm:$0xff] }
 0x9b0   : > { %v3775_v16 = vpop.xlane.xlu1 %3774  ;;  %v3772_v23 = vpop.xlane.xlu0 %3771 }
 0x9b1   : > { %v3805_v58 = vadd.f32 %v3804_v44, %v3772_v23  ;;  %v3840_v23 = vld [vmem:[%s16631_s0] sm:$0xff] }
 0x9b3   : > { %v3806_v20 = vadd.f32 %v3805_v58, %v3775_v16  ;;  %v3878_v58 = vld [vmem:[%s16632_s10 + $0x30] sm:$0xff] }
 0x9b4   : > { %v3781_v18 = vpop.xlane.xlu1 %3780  ;;  %v3778_v29 = vpop.xlane.xlu0 %3777 }
 0x9b5   : > { %v3807_v17 = vadd.f32 %v3806_v20, %v3778_v29 }
 0x9b7   : > { %v3808_v30 = vadd.f32 %v3807_v17, %v3781_v18 }
 0x9b8   : > { %v3787_v10 = vpop.xlane.xlu1 %3786  ;;  %v3784_v13 = vpop.xlane.xlu0 %3783 }
 0x9b9   : > { %v3809_v14 = vadd.f32 %v3808_v30, %v3784_v13  ;;  %v3873_v13 = vld [vmem:[%s16632_s10 + $0x8] sm:$0xff] }
 0x9bb   : > { %v3810_v19 = vadd.f32 %v3809_v14, %v3787_v10  ;;  %v3872_v10 = vld [vmem:[%s16632_s10] sm:$0xff] }
 0x9bc   : > { %v3793_v46 = vpop.xlane.xlu1 %3792  ;;  %v3790_v51 = vpop.xlane.xlu0 %3789 }
 0x9bd   : > { %v3811_v25 = vadd.f32 %v3810_v19, %v3790_v51 }
 0x9bf   : > { %v3812_v55 = vadd.f32 %v3811_v25, %v3793_v46 }
 0x9c0   : > { %v3796_v2 = vpop.xlane.xlu0 %3795  ;;  %v3799_v32 = vpop.xlane.xlu1 %3798 }
 0x9c1   : > { %v3813_v4 = vadd.f32 %v3812_v55, %v3796_v2 }
 0x9c3   : > { %v3814_v27 = vadd.f32 %v3813_v4, %v3799_v32 }
 0x9c5   : > { %v3815_v15 = vrot.slane %v3814_v27, 4 }
 0x9c7   : > { %v3816_v49 = vadd.f32 %v3815_v15, %v3814_v27 }
 0x9c9   : > { %v3817_v42 = vrot.slane %v3816_v49, 2 }
 0x9cb   : > { %v3818_v43 = vadd.f32 %v3817_v42, %v3816_v49  ;;  %v3842_v42 = vld [vmem:[%s16631_s0 + $0x10] sm:$0xff] }
 0x9cd   : > { %v3819_v63 = vrot.slane %v3818_v43, 1 }
 0x9cf   : > { %v3820_v47 = vadd.f32 %v3819_v63, %v3818_v43  ;;  %v3843_v43 = vld [vmem:[%s16631_s0 + $0x18] sm:$0xff] }
 0x9d1   : > { %v3821_v31 = vmul.f32 0.00048828125, %v3820_v47 }
 0x9d3   : > { %v3822_v33 = vadd.f32 1e-05, %v3821_v31 }
 0x9d5   : > { %12614 = vrsqrt.f32 %v3822_v33 }
 0x9df   : > { %v15084_v24 = vpop.eup %12614 }
 0x9e0   : > { %v3828_v54 = vmul.f32 %v15084_v24, %v15002_v48  ;;  %v3829_v36 = vmul.f32 %v15084_v24, %v14999_v53  ;;  %v3830_v44 = vmul.f32 %v15084_v24, %v15014_v50  ;;  %v3831_v16 = vmul.f32 %v15084_v24, %v15011_v35  ;;  %v3841_v48 = vld [vmem:[%s16631_s0 + $0x8] sm:$0xff]  ;;  %v3879_v35 = vld [vmem:[%s16632_s10 + $0x38] sm:$0xff] }
 0x9e1   : > { %v3877_v53 = vld [vmem:[%s16632_s10 + $0x28] sm:$0xff]  ;;  %v3824_v50 = vmul.f32 %v15084_v24, %v14986_v9  ;;  %v3825_v20 = vmul.f32 %v15084_v24, %v14983_v40  ;;  %v3826_v2 = vmul.f32 %v15084_v24, %v14992_v52  ;;  %v3827_v4 = vmul.f32 %v15084_v24, %v14989_v34  ;;  %v3848_v52 = vld [vmem:[%s16631_s0 + $0x40] sm:$0xff] }
 0x9e2   : > { %v3860_v18 = vmul.f32 %v3844_v45, %v3828_v54  ;;  %v3861_v29 = vmul.f32 %v3845_v6, %v3829_v36  ;;  %v3862_v17 = vmul.f32 %v3846_v38, %v3830_v44  ;;  %v3863_v30 = vmul.f32 %v3847_v1, %v3831_v16  ;;  %v3849_v34 = vld [vmem:[%s16631_s0 + $0x48] sm:$0xff]  ;;  %v3875_v44 = vld [vmem:[%s16632_s10 + $0x18] sm:$0xff] }
 0x9e3   : > { %v3856_v14 = vmul.f32 %v3840_v23, %v3824_v50  ;;  %v3857_v19 = vmul.f32 %v3841_v48, %v3825_v20  ;;  %v3832_v45 = vmul.f32 %v15084_v24, %v15032_v26  ;;  %v3833_v6 = vmul.f32 %v15084_v24, %v15029_v61  ;;  %v12539_v54 = vld [vmem:[#allocation13 + $0x10] sm:$0xff]   ;;  %v3880_v61 = vld [vmem:[%s16632_s10 + $0x40] sm:$0xff] }
 0x9e4   : > { %v3892_v46 = vadd.f32 %v3876_v57, %v3860_v18  ;;  %v3893_v51 = vadd.f32 %v3877_v53, %v3861_v29  ;;  %v3894_v9 = vadd.f32 %v3878_v58, %v3862_v17  ;;  %v3895_v25 = vadd.f32 %v3879_v35, %v3863_v30  ;;  %v3874_v57 = vld [vmem:[%s16632_s10 + $0x10] sm:$0xff]  ;;  %v3881_v26 = vld [vmem:[%s16632_s10 + $0x48] sm:$0xff] }
 0x9e5   : > { %v3888_v55 = vadd.f32 %v3872_v10, %v3856_v14  ;;  %v3889_v40 = vadd.f32 %v3873_v13, %v3857_v19  ;;  %v3858_v38 = vmul.f32 %v3842_v42, %v3826_v2  ;;  %v3859_v1 = vmul.f32 %v3843_v43, %v3827_v4  ;;  %v3850_v10 = vld [vmem:[%s16631_s0 + $0x50] sm:$0xff]  ;;  %v3884_v2 = vld [vmem:[%s16632_s10 + $0x60] sm:$0xff]  ;;  %v3885_v4 = vld [vmem:[%s16632_s10 + $0x68] sm:$0xff] }
 0x9e6   : > { %v3908_v32 = vmax.f32 %v3892_v46, 0.0  ;;  %v3909_v27 = vmax.f32 %v3893_v51, 0.0  ;;  %v3910_v15 = vmax.f32 %v3894_v9, 0.0  ;;  %v3911_v49 = vmax.f32 %v3895_v25, 0.0  ;;  %v12540_v9 = vld [vmem:[#allocation13 + $0x18] sm:$0xff]  }
 0x9e7   : > { %v3904_v63 = vmax.f32 %v3888_v55, 0.0  ;;  %v3905_v47 = vmax.f32 %v3889_v40, 0.0  ;;  %v3864_v16 = vmul.f32 %v3848_v52, %v3832_v45  ;;  %v3865_v23 = vmul.f32 %v3849_v34, %v3833_v6 }
 0x9e8   : > { %v3924_v31 = vpack.c.bf16 %v3909_v27, %v3908_v32  ;;  %v3925_v33 = vpack.c.bf16 %v3911_v49, %v3910_v15  ;;  %v3890_v48 = vadd.f32 %v3874_v57, %v3858_v38  ;;  %v3891_v53 = vadd.f32 %v3875_v44, %v3859_v1 }
 0x9e9   : > { %v3920_v36 = vpack.c.bf16 %v3905_v47, %v3904_v63  ;;  %v3896_v58 = vadd.f32 %v3880_v61, %v3864_v16  ;;  %v3897_v35 = vadd.f32 %v3881_v26, %v3865_v23  ;;  %v3834_v18 = vmul.f32 %v15084_v24, %v15044_v56  ;;  %v3853_v56 = vld [vmem:[%s16631_s0 + $0x68] sm:$0xff] }
 0x9ea   : > { %12037 = vmatprep.mubr.msk.bf16.mxu1 %vm1033_vm0, %v3924_v31  ;;  %v3906_v50 = vmax.f32 %v3890_v48, 0.0  ;;  %v3907_v20 = vmax.f32 %v3891_v53, 0.0  ;;  %v3835_v29 = vmul.f32 %v15084_v24, %v15041_v41  ;;  %v3836_v13 = vmul.f32 %v15084_v24, %v15050_v22  ;;  %v3852_v41 = vld [vmem:[%s16631_s0 + $0x60] sm:$0xff]  ;;  %v3882_v22 = vld [vmem:[%s16632_s10 + $0x50] sm:$0xff]  ;;  %v11063_v48 = vld [vmem:[#allocation16] ss:$0 sm:$0xff] }
 0x9eb   : > { %12038 = vmatmul.mubr.msk.bf16.vlgmr.msra.gmra.mrb[76].mxu1 %vm1033_vm0, %v3925_v33  ;;  %v3912_v17 = vmax.f32 %v3896_v58, 0.0  ;;  %v3913_v30 = vmax.f32 %v3897_v35, 0.0  ;;  %v3837_v14 = vmul.f32 %v15084_v24, %v15047_v60  ;;  %v3866_v46 = vmul.f32 %v3850_v10, %v3834_v18  ;;  %v3883_v60 = vld [vmem:[%s16632_s10 + $0x58] sm:$0xff]  ;;  %v3854_v31 = vld [vmem:[%s16631_s0 + $0x70] sm:$0xff] }
 0x9ec   : > { %12043 = vmatprep.mubr.msk.bf16.mxu1 %vm1033_vm0, %v3920_v36  ;;  %12042 = vmatpush3.bf16.msra.mxu1 %v15078_v37  ;;  %v3851_v37 = vld [vmem:[%s16631_s0 + $0x58] sm:$0xff]  ;;  %v3921_v19 = vpack.c.bf16 %v3907_v20, %v3906_v50  ;;  %v3868_v55 = vmul.f32 %v3852_v41, %v3836_v13  ;;  %v3838_v63 = vmul.f32 %v15084_v24, %v15062_v59  ;;  %v3886_v59 = vld [vmem:[%s16632_s10 + $0x70] sm:$0xff] }
 0x9ed   : > { %12047 = vmatprep.subr.bf16.mxu1 %v12539_v54  ;;  %v3867_v51 = vmul.f32 %v3851_v37, %v3835_v29  ;;  %v4051_v25 = vpack.c.bf16 %v3913_v30, %v3912_v17  ;;  %v3869_v40 = vmul.f32 %v3853_v56, %v3837_v14  ;;  %v3898_v32 = vadd.f32 %v3882_v22, %v3866_v46  ;;  %v3855_v33 = vld [vmem:[%s16631_s0 + $0x78] sm:$0xff]  ;;  %v11067_v14 = vld [vmem:[#allocation16 + $0x5] ss:$0 sm:$0xff]  ;;  %v11068_v56 = vld [vmem:[#allocation16 + $0x6] ss:$0 sm:$0xff] }
 0x9ee   : > { %v3900_v15 = vadd.f32 %v3884_v2, %v3868_v55  ;;  %v3839_v47 = vmul.f32 %v15084_v24, %v15059_v39  ;;  %v3870_v6 = vmul.f32 %v3854_v31, %v3838_v63  ;;  %v3887_v39 = vld [vmem:[%s16632_s10 + $0x78] sm:$0xff]  ;;  %v11069_v46 = vld [vmem:[#allocation16 + $0x7] ss:$0 sm:$0xff] }
 0x9ef   : > { %v3899_v27 = vadd.f32 %v3883_v60, %v3867_v51  ;;  %v3901_v49 = vadd.f32 %v3885_v4, %v3869_v40  ;;  %v3914_v42 = vmax.f32 %v3898_v32, 0.0  ;;  %v11064_v13 = vld [vmem:[#allocation16 + $0x1] ss:$0 sm:$0xff]  ;;  %v11065_v41 = vld [vmem:[#allocation16 + $0x2] ss:$0 sm:$0xff] }
 0x9f0   : > { %v3916_v52 = vmax.f32 %v3900_v15, 0.0  ;;  %v3871_v38 = vmul.f32 %v3855_v33, %v3839_v47  ;;  %v3902_v24 = vadd.f32 %v3886_v59, %v3870_v6  ;;  %v11070_v51 = vld [vmem:[#allocation16 + $0x8] ss:$0 sm:$0xff] }
 0x9f1   : > { %v3915_v43 = vmax.f32 %v3899_v27, 0.0  ;;  %v3917_v34 = vmax.f32 %v3901_v49, 0.0 }
 0x9f2   : > { %v3918_v36 = vmax.f32 %v3902_v24, 0.0 }
 0x9f3   : > { %v4052_v45 = vpack.c.bf16 %v3915_v43, %v3914_v42  ;;  %v4121_v1 = vpack.c.bf16 %v3917_v34, %v3916_v52 }
 0x9f7   : > { %12044 = vmatmul.mubr.msk.bf16.vlgmr.msra.gmra.mrb[76].mxu1 %vm1033_vm0, %v3921_v19  ;;  %v11066_v19 = vld [vmem:[#allocation16 + $0x3] ss:$0 sm:$0xff] }
 0x9f8   : > { %12049 = vmatprep.mubr.msk.bf16.mxu1 %vm1033_vm0, %v4051_v25  ;;  %12048 = vmatpush3.bf16.msra.mxu1 %v12539_v54  ;;  %v3903_v54 = vadd.f32 %v3887_v39, %v3871_v38 }
 0x9f9   : > { %12053 = vmatprep.subr.bf16.mxu1 %v12540_v9 }
 0x9fa   : > { %v3919_v57 = vmax.f32 %v3903_v54, 0.0 }
 0x9fc   : > { %v4122_v44 = vpack.c.bf16 %v3919_v57, %v3918_v36 }
 0xa03   : > { %12050 = vmatmul.mubr.msk.bf16.vlgmr.msra.gmra.mrb[76].mxu1 %vm1033_vm0, %v4052_v45 }
 0xa04   : > { %12055 = vmatprep.mubr.msk.bf16.mxu1 %vm1033_vm0, %v4121_v1  ;;  %12054 = vmatpush3.bf16.msra.mxu1 %v12540_v9 }
 0xa0f   : > { %12056 = vmatmul.mubr.msk.bf16.vlgmr.msra.gmra.mrb[76].mxu1 %vm1033_vm0, %v4122_v44 }
 0xae2   : > { %v12057_v16 = vpop.f32.mrb[76].mxu1 }
 0xae3   : > { %4353 = vst.msk [vmem:[#allocation2 + $0x480] sm:$0xff] %vm3333_vm3, %v12057_v16  ;;  %v15221_v23 = vpop.f32.mrb[77].mxu1 }
 0xae4   : > { %4351 = vst.msk [vmem:[#allocation2 + $0x400] sm:$0xff] %vm3333_vm3, %v15221_v23  ;;  %4192 = vrot.lane.b32.xlu0 %v15221_v23, %s13307_s24  ;;  %v12058_v61 = vpop.f32.mrb[78].mxu1 }
 0xae5   : > { %4354 = vst.msk [vmem:[#allocation2 + $0x4c0] sm:$0xff] %vm3333_vm3, %v12058_v61  ;;  %v15227_v26 = vpop.f32.mrb[79].mxu1 }
 0xae6   : > { %4352 = vst.msk [vmem:[#allocation2 + $0x440] sm:$0xff] %vm3333_vm3, %v15227_v26  ;;  %4195 = vrot.lane.b32.xlu1 %v15227_v26, %s13307_s24 }
 0xae8   : > { %4201 = vrot.lane.b32.xlu0 %v12058_v61, %s13307_s24 }
 0xaea   : > { %4198 = vrot.lane.b32.xlu1 %v12057_v16, %s13307_s24 }
 0xaeb   : > { %v4507_v53 = vld [vmem:[#allocation2 + $0x400] sm:$0xff] }
 0xaed   : > { %v4508_v58 = vld [vmem:[#allocation2 + $0x440] sm:$0xff] }
 0xaee   : > { %v4535_v35 = vpack.c.bf16 %v4508_v58, %v4507_v53  ;;  %4222 = vrot.lane.b32.xlu1 %v11063_v48, %s13308_s6  ;;  %s13318_s6 = smov 71  }
 0xaf0   : > { %11965 = vmatprep.subr.bf16.mxu0 %v4535_v35 }
 0xb56   : > { %v4193_v50 = vpop.permute.xlu0 %4192 }
 0xb57   : > { %v4194_v20 = vsel %vm4191_vm4, %v4193_v50, %v15221_v23 }
 0xb58   : > { %4204 = vrot.lane.b32.xlu1 %v4194_v20, %s13307_s24  ;;  %v4196_v18 = vpop.permute.xlu1 %4195 }
 0xb59   : > { %v4197_v29 = vsel %vm4191_vm4, %v4196_v18, %v15227_v26 }
 0xb5a   : > { %v4202_v17 = vpop.permute.xlu0 %4201  ;;  %4206 = vrot.lane.b32.xlu0 %v4197_v29, %s13307_s24  ;;  %v12543_v29 = vld [vmem:[#allocation14 + $0x4] ss:$12 sps:$4 sm:$0xff]  }
 0xb5b   : > { %v4203_v30 = vsel %vm4191_vm4, %v4202_v17, %v12058_v61  ;;  %4666 = vmatprep.mubr.bf16.mxu0 %v12543_v29 }
 0xb5c   : > { %4210 = vrot.lane.b32.xlu1 %v4203_v30, %s13307_s24  ;;  %v4199_v10 = vpop.permute.xlu1 %4198 }
 0xb5d   : > { %v4200_v37 = vsel %vm4191_vm4, %v4199_v10, %v12057_v16 }
 0xb5e   : > { %4208 = vrot.lane.b32.xlu0 %v4200_v37, %s13307_s24  ;;  %s13317_s24 = smov 121  }
 0xb60   : > { %4256 = vrot.lane.b32.xlu1 %v11064_v13, %s13309_s30  ;;  %v4223_v9 = vpop.permute.xlu1 %4222  ;;  %s13319_s30 = smov 120  }
 0xb62   : > { %4362 = vrot.lane.b32.xlu0 %v11067_v14, %s13298_s1 }
 0xb64   : > { %4290 = vrot.lane.b32.xlu1 %v11065_v41, %s13310_s5  ;;  %s13320_s5 = smov 65   ;;  %v12547_v41 = vld [vmem:[#allocation14 + $0x8] ss:$12 sps:$4 sm:$0xff]  }
 0xb65   : > { %12063 = vmatprep.mubr.msk.bf16.mxu1 %vm4621_vm5, %v12547_v41 }
 0xb66   : > { %4396 = vrot.lane.b32.xlu0 %v11068_v56, %s13311_s3  ;;  %s13321_s3 = smov 119  }
 0xb68   : > { %4324 = vrot.lane.b32.xlu1 %v11066_v19, %s13312_s29  ;;  %s16633_s29 = smov 16  }
 0xb6a   : > { %4430 = vrot.lane.b32.xlu0 %v11069_v46, %s13313_s4  ;;  %s13322_s4 = smov 17  }
 0xb6e   : > { %4464 = vrot.lane.b32.xlu0 %v11070_v51, %s13314_s9  ;;  %s16634_s9 = smov 15  }
 0xbca   : > { %v4205_v25 = vpop.permute.xlu1 %4204 }
 0xbcb   : > { %v4212_v39 = vsel %vm4191_vm4, %v4205_v25, %v15221_v23 }
 0xbcc   : > { %v4207_v22 = vpop.permute.xlu0 %4206  ;;  %v4225_v54 = vmul.f32 %v4223_v9, %v4212_v39 }
 0xbcd   : > { %v4213_v1 = vsel %vm4191_vm4, %v4207_v22, %v15227_v26 }
 0xbce   : > { %v4211_v60 = vpop.permute.xlu1 %4210  ;;  %v4226_v24 = vmul.f32 %v4223_v9, %v4213_v1 }
 0xbcf   : > { %v15240_v55 = vsel %vm4191_vm4, %v4211_v60, %v12058_v61 }
 0xbd0   : > { %v4209_v40 = vpop.permute.xlu0 %4208  ;;  %v4228_v2 = vmul.f32 %v4223_v9, %v15240_v55 }
 0xbd1   : > { %v15244_v4 = vsel %vm4191_vm4, %v4209_v40, %v12057_v16  ;;  %vm10376_vm4 = vcmask 1043456  }
 0xbd2   : > { %4239 = vrot.lane.b32.xlu0 %v4228_v2, %s13315_s27  ;;  %v4227_v32 = vmul.f32 %v4223_v9, %v15244_v4  ;;  %v4257_v42 = vpop.permute.xlu1 %4256 }
 0xbd3   : > { %v4262_v43 = vmul.f32 %v4257_v42, %v15240_v55  ;;  %v4261_v47 = vmul.f32 %v4257_v42, %v15244_v4  ;;  %v4260_v44 = vmul.f32 %v4257_v42, %v4213_v1  ;;  %v4259_v16 = vmul.f32 %v4257_v42, %v4212_v39 }
 0xbd4   : > { %v4363_v27 = vpop.permute.xlu0 %4362  ;;  %4237 = vrot.lane.b32.xlu1 %v4227_v32, %s13315_s27 }
 0xbd5   : > { %v4368_v15 = vmul.f32 %v4363_v27, %v15240_v55  ;;  %v4367_v49 = vmul.f32 %v4363_v27, %v15244_v4  ;;  %v4366_v36 = vmul.f32 %v4363_v27, %v4213_v1  ;;  %v4365_v57 = vmul.f32 %v4363_v27, %v4212_v39 }
 0xbd6   : > { %v4291_v34 = vpop.permute.xlu1 %4290 }
 0xbd7   : > { %4379 = vrot.lane.b32.xlu0 %v4368_v15, %s13305_s2  ;;  %v4296_v33 = vmul.f32 %v4291_v34, %v15240_v55  ;;  %v4295_v6 = vmul.f32 %v4291_v34, %v15244_v4  ;;  %v4294_v26 = vmul.f32 %v4291_v34, %v4213_v1  ;;  %v4293_v48 = vmul.f32 %v4291_v34, %v4212_v39 }
 0xbd8   : > { %4377 = vrot.lane.b32.xlu1 %v4367_v49, %s13305_s2  ;;  %v4397_v63 = vpop.permute.xlu0 %4396 }
 0xbd9   : > { %v4402_v52 = vmul.f32 %v4397_v63, %v15240_v55  ;;  %v4401_v31 = vmul.f32 %v4397_v63, %v15244_v4  ;;  %v4400_v23 = vmul.f32 %v4397_v63, %v4213_v1  ;;  %v4399_v61 = vmul.f32 %v4397_v63, %v4212_v39  ;;  %v4510_v63 = vld [vmem:[#allocation2 + $0x4c0] sm:$0xff] }
 0xbda   : > { %v4325_v58 = vpop.permute.xlu1 %4324 }
 0xbdb   : > { %4273 = vrot.lane.b32.xlu0 %v4262_v43, %s13316_s8  ;;  %v4328_v50 = vmul.f32 %v4325_v58, %v4213_v1  ;;  %v4327_v20 = vmul.f32 %v4325_v58, %v4212_v39  ;;  %v4330_v18 = vmul.f32 %v4325_v58, %v15240_v55  ;;  %v4329_v30 = vmul.f32 %v4325_v58, %v15244_v4 }
 0xbdc   : > { %4271 = vrot.lane.b32.xlu1 %v4261_v47, %s13316_s8  ;;  %v4431_v45 = vpop.permute.xlu0 %4430 }
 0xbdd   : > { %v4436_v38 = vmul.f32 %v4431_v45, %v15240_v55  ;;  %v4435_v59 = vmul.f32 %v4431_v45, %v15244_v4  ;;  %v4434_v53 = vmul.f32 %v4431_v45, %v4213_v1  ;;  %v4433_v35 = vmul.f32 %v4431_v45, %v4212_v39 }
 0xbdf   : > { %4413 = vrot.lane.b32.xlu0 %v4402_v52, %s13317_s24 }
 0xbe0   : > { %4411 = vrot.lane.b32.xlu1 %v4401_v31, %s13317_s24  ;;  %v4465_v17 = vpop.permute.xlu0 %4464  ;;  %v4509_v31 = vld [vmem:[#allocation2 + $0x480] sm:$0xff] }
 0xbe1   : > { %v4468_v10 = vmul.f32 %v4465_v17, %v4213_v1  ;;  %v4467_v37 = vmul.f32 %v4465_v17, %v4212_v39  ;;  %v4470_v13 = vmul.f32 %v4465_v17, %v15240_v55  ;;  %v4469_v14 = vmul.f32 %v4465_v17, %v15244_v4 }
 0xbe3   : > { %4307 = vrot.lane.b32.xlu0 %v4296_v33, %s13318_s6  ;;  %v4536_v33 = vpack.c.bf16 %v4510_v63, %v4509_v31 }
 0xbe4   : > { %4305 = vrot.lane.b32.xlu1 %v4295_v6, %s13318_s6 }
 0xbe7   : > { %4447 = vrot.lane.b32.xlu0 %v4436_v38, %s13319_s30 }
 0xbe8   : > { %4445 = vrot.lane.b32.xlu1 %v4435_v59, %s13319_s30 }
 0xbeb   : > { %4235 = vrot.lane.b32.xlu0 %v4226_v24, %s13315_s27 }
 0xbec   : > { %4233 = vrot.lane.b32.xlu1 %v4225_v54, %s13315_s27  ;;  %s16635_s27 = smov 113  }
 0xbef   : > { %4375 = vrot.lane.b32.xlu0 %v4366_v36, %s13305_s2 }
 0xbf0   : > { %4373 = vrot.lane.b32.xlu1 %v4365_v57, %s13305_s2 }
 0xbf3   : > { %4269 = vrot.lane.b32.xlu0 %v4260_v44, %s13316_s8 }
 0xbf4   : > { %4267 = vrot.lane.b32.xlu1 %v4259_v16, %s13316_s8  ;;  %s13323_s8 = smov 112  }
 0xbf7   : > { %4409 = vrot.lane.b32.xlu0 %v4400_v23, %s13317_s24 }
 0xbf8   : > { %4407 = vrot.lane.b32.xlu1 %v4399_v61, %s13317_s24  ;;  %s13324_s24 = smov 111  }
 0xbfb   : > { %4303 = vrot.lane.b32.xlu0 %v4294_v26, %s13318_s6 }
 0xbfc   : > { %4301 = vrot.lane.b32.xlu1 %v4293_v48, %s13318_s6  ;;  %s13325_s6 = smov 32  }
 0xbff   : > { %4443 = vrot.lane.b32.xlu0 %v4434_v53, %s13319_s30 }
 0xc00   : > { %4441 = vrot.lane.b32.xlu1 %v4433_v35, %s13319_s30  ;;  %s13326_s30 = smov 33  }
 0xc03   : > { %4337 = vrot.lane.b32.xlu0 %v4328_v50, %s13320_s5 }
 0xc04   : > { %4335 = vrot.lane.b32.xlu1 %v4327_v20, %s13320_s5 }
 0xc07   : > { %4341 = vrot.lane.b32.xlu0 %v4330_v18, %s13320_s5 }
 0xc08   : > { %4339 = vrot.lane.b32.xlu1 %v4329_v30, %s13320_s5  ;;  %s13327_s5 = smov 31  }
 0xc0b   : > { %4477 = vrot.lane.b32.xlu0 %v4468_v10, %s13321_s3 }
 0xc0c   : > { %4475 = vrot.lane.b32.xlu1 %v4467_v37, %s13321_s3 }
 0xc0f   : > { %4481 = vrot.lane.b32.xlu0 %v4470_v13, %s13321_s3 }
 0xc10   : > { %4479 = vrot.lane.b32.xlu1 %v4469_v14, %s13321_s3  ;;  %s13328_s3 = smov 97  }
 0xc44   : > { %v4240_v56 = vpop.permute.xlu0 %4239 }
 0xc45   : > { %4248 = vst.msk [vmem:[#allocation2 + $0xc0] sm:$0xff] %vm3333_vm3, %v4240_v56 }
 0xc46   : > { %v4238_v19 = vpop.permute.xlu1 %4237 }
 0xc47   : > { %4247 = vst.msk [vmem:[#allocation2 + $0x80] sm:$0xff] %vm3333_vm3, %v4238_v19 }
 0xc49   : > { %v4380_v46 = vpop.permute.xlu0 %4379 }
 0xc4a   : > { %4388 = vst.msk [vmem:[#allocation2 + $0x5c0] sm:$0xff] %vm3333_vm3, %v4380_v46  ;;  %v4378_v51 = vpop.permute.xlu1 %4377 }
 0xc4b   : > { %4387 = vst.msk [vmem:[#allocation2 + $0x580] sm:$0xff] %vm3333_vm3, %v4378_v51 }
 0xc4c   : > { %v4494_v59 = vld [vmem:[#allocation2 + $0xc0] sm:$0xff] }
 0xc4d   : > { %v4274_v9 = vpop.permute.xlu0 %4273 }
 0xc4e   : > { %4282 = vst.msk [vmem:[#allocation2 + $0x1c0] sm:$0xff] %vm3333_vm3, %v4274_v9  ;;  %v4272_v25 = vpop.permute.xlu1 %4271  ;;  %v4493_v45 = vld [vmem:[#allocation2 + $0x80] sm:$0xff] }
 0xc4f   : > { %4281 = vst.msk [vmem:[#allocation2 + $0x180] sm:$0xff] %vm3333_vm3, %v4272_v25  ;;  %v4528_v24 = vpack.c.bf16 %v4494_v59, %v4493_v45 }
 0xc51   : > { %v4414_v22 = vpop.permute.xlu0 %4413  ;;  %v4514_v16 = vld [vmem:[#allocation2 + $0x5c0] sm:$0xff] }
 0xc52   : > { %4422 = vst.msk [vmem:[#allocation2 + $0x6c0] sm:$0xff] %vm3333_vm3, %v4414_v22  ;;  %v4412_v60 = vpop.permute.xlu1 %4411  ;;  %v4513_v44 = vld [vmem:[#allocation2 + $0x580] sm:$0xff] }
 0xc53   : > { %4421 = vst.msk [vmem:[#allocation2 + $0x680] sm:$0xff] %vm3333_vm3, %v4412_v60  ;;  %v4538_v48 = vpack.c.bf16 %v4514_v16, %v4513_v44  ;;  %v12552_v44 = vld [vmem:[#allocation14 + $0x38] ss:$12 sps:$4 sm:$0xff]   ;;  %v12551_v16 = vld [vmem:[#allocation14 + $0x30] ss:$12 sps:$4 sm:$0xff]  }
 0xc55   : > { %v4308_v55 = vpop.permute.xlu0 %4307  ;;  %v4498_v58 = vld [vmem:[#allocation2 + $0x1c0] sm:$0xff] }
 0xc56   : > { %4316 = vst.msk [vmem:[#allocation2 + $0x2c0] sm:$0xff] %vm3333_vm3, %v4308_v55  ;;  %v4306_v40 = vpop.permute.xlu1 %4305  ;;  %v4497_v53 = vld [vmem:[#allocation2 + $0x180] sm:$0xff] }
 0xc57   : > { %4315 = vst.msk [vmem:[#allocation2 + $0x280] sm:$0xff] %vm3333_vm3, %v4306_v40  ;;  %v4530_v29 = vpack.c.bf16 %v4498_v58, %v4497_v53 }
 0xc59   : > { %v4448_v2 = vpop.permute.xlu0 %4447  ;;  %v4518_v13 = vld [vmem:[#allocation2 + $0x6c0] sm:$0xff] }
 0xc5a   : > { %4456 = vst.msk [vmem:[#allocation2 + $0x7c0] sm:$0xff] %vm3333_vm3, %v4448_v2  ;;  %v4446_v4 = vpop.permute.xlu1 %4445  ;;  %v4517_v37 = vld [vmem:[#allocation2 + $0x680] sm:$0xff] }
 0xc5b   : > { %4455 = vst.msk [vmem:[#allocation2 + $0x780] sm:$0xff] %vm3333_vm3, %v4446_v4  ;;  %v4540_v19 = vpack.c.bf16 %v4518_v13, %v4517_v37 }
 0xc5d   : > { %v4236_v32 = vpop.permute.xlu0 %4235  ;;  %v4502_v51 = vld [vmem:[#allocation2 + $0x2c0] sm:$0xff] }
 0xc5e   : > { %4246 = vst.msk [vmem:[#allocation2 + $0x40] sm:$0xff] %vm3333_vm3, %v4236_v32  ;;  %v4234_v27 = vpop.permute.xlu1 %4233  ;;  %v4501_v46 = vld [vmem:[#allocation2 + $0x280] sm:$0xff] }
 0xc5f   : > { %4245 = vst.msk [vmem:[#allocation2] sm:$0xff] %vm3333_vm3, %v4234_v27  ;;  %v4532_v55 = vpack.c.bf16 %v4502_v51, %v4501_v46 }
 0xc61   : > { %v4376_v15 = vpop.permute.xlu0 %4375  ;;  %v4522_v27 = vld [vmem:[#allocation2 + $0x7c0] sm:$0xff] }
 0xc62   : > { %4386 = vst.msk [vmem:[#allocation2 + $0x540] sm:$0xff] %vm3333_vm3, %v4376_v15  ;;  %v4374_v49 = vpop.permute.xlu1 %4373  ;;  %v4521_v32 = vld [vmem:[#allocation2 + $0x780] sm:$0xff] }
 0xc63   : > { %4385 = vst.msk [vmem:[#allocation2 + $0x500] sm:$0xff] %vm3333_vm3, %v4374_v49 }
 0xc65   : > { %v4270_v42 = vpop.permute.xlu0 %4269  ;;  %v4492_v43 = vld [vmem:[#allocation2 + $0x40] sm:$0xff] }
 0xc66   : > { %4280 = vst.msk [vmem:[#allocation2 + $0x140] sm:$0xff] %vm3333_vm3, %v4270_v42  ;;  %v4268_v47 = vpop.permute.xlu1 %4267  ;;  %v4491_v52 = vld [vmem:[#allocation2] sm:$0xff] }
 0xc67   : > { %4279 = vst.msk [vmem:[#allocation2 + $0x100] sm:$0xff] %vm3333_vm3, %v4268_v47  ;;  %v4527_v34 = vpack.c.bf16 %v4492_v43, %v4491_v52  ;;  %v4542_v43 = vpack.c.bf16 %v4522_v27, %v4521_v32 }
 0xc69   : > { %v4410_v6 = vpop.permute.xlu0 %4409  ;;  %11966 = vmatpush3.bf16.msra.mxu0 %v4527_v34  ;;  %v4512_v38 = vld [vmem:[#allocation2 + $0x540] sm:$0xff] }
 0xc6a   : > { %4420 = vst.msk [vmem:[#allocation2 + $0x640] sm:$0xff] %vm3333_vm3, %v4410_v6  ;;  %v4408_v1 = vpop.permute.xlu1 %4407  ;;  %11967 = vmatprep.subr.bf16.mxu0 %v4536_v33  ;;  %v4511_v39 = vld [vmem:[#allocation2 + $0x500] sm:$0xff]  ;;  %v12541_v33 = vld [vmem:[#allocation14] ss:$12 sps:$4 sm:$0xff]  }
 0xc6b   : > { %4419 = vst.msk [vmem:[#allocation2 + $0x600] sm:$0xff] %vm3333_vm3, %v4408_v1  ;;  %v4537_v54 = vpack.c.bf16 %v4512_v38, %v4511_v39  ;;  %v12544_v6 = vld [vmem:[#allocation14 + $0x1c] ss:$12 sps:$4 sm:$0xff]  }
 0xc6d   : > { %v4304_v36 = vpop.permute.xlu0 %4303  ;;  %11968 = vmatpush3.bf16.msra.mxu0 %v4528_v24  ;;  %v4496_v57 = vld [vmem:[#allocation2 + $0x140] sm:$0xff] }
 0xc6e   : > { %4314 = vst.msk [vmem:[#allocation2 + $0x240] sm:$0xff] %vm3333_vm3, %v4304_v36  ;;  %v4302_v23 = vpop.permute.xlu1 %4301  ;;  %11969 = vmatprep.subr.bf16.mxu0 %v4537_v54  ;;  %v4495_v61 = vld [vmem:[#allocation2 + $0x100] sm:$0xff]  ;;  %v12548_v36 = vld [vmem:[#allocation14 + $0x20] ss:$12 sps:$4 sm:$0xff]  }
 0xc6f   : > { %4313 = vst.msk [vmem:[#allocation2 + $0x200] sm:$0xff] %vm3333_vm3, %v4302_v23  ;;  %v4529_v26 = vpack.c.bf16 %v4496_v57, %v4495_v61  ;;  %v12546_v54 = vld [vmem:[#allocation14 + $0x18] ss:$12 sps:$4 sm:$0xff]   ;;  %v12549_v57 = vld [vmem:[#allocation14 + $0x34] ss:$12 sps:$4 sm:$0xff]  }
 0xc70   : > { %v12553_v23 = vld [vmem:[#allocation14 + $0x50] ss:$12 sps:$4 sm:$0xff]   ;;  %v12554_v61 = vld [vmem:[#allocation14 + $0x4c] ss:$12 sps:$4 sm:$0xff]  }
 0xc71   : > { %v4444_v35 = vpop.permute.xlu0 %4443  ;;  %11970 = vmatpush3.bf16.msra.mxu0 %v4529_v26  ;;  %v4516_v50 = vld [vmem:[#allocation2 + $0x640] sm:$0xff] }
 0xc72   : > { %4454 = vst.msk [vmem:[#allocation2 + $0x740] sm:$0xff] %vm3333_vm3, %v4444_v35  ;;  %v4442_v20 = vpop.permute.xlu1 %4441  ;;  %11971 = vmatprep.subr.bf16.mxu0 %v4538_v48  ;;  %v4515_v18 = vld [vmem:[#allocation2 + $0x600] sm:$0xff] }
 0xc73   : > { %4453 = vst.msk [vmem:[#allocation2 + $0x700] sm:$0xff] %vm3333_vm3, %v4442_v20  ;;  %v4539_v17 = vpack.c.bf16 %v4516_v50, %v4515_v18  ;;  %v12556_v26 = vld [vmem:[#allocation14 + $0x48] ss:$12 sps:$4 sm:$0xff]  }
 0xc75   : > { %v4338_v30 = vpop.permute.xlu0 %4337  ;;  %11972 = vmatpush3.bf16.msra.mxu0 %v4530_v29  ;;  %v4500_v10 = vld [vmem:[#allocation2 + $0x240] sm:$0xff] }
 0xc76   : > { %4348 = vst.msk [vmem:[#allocation2 + $0x340] sm:$0xff] %vm3333_vm3, %v4338_v30  ;;  %v4336_v14 = vpop.permute.xlu1 %4335  ;;  %11973 = vmatprep.subr.bf16.mxu0 %v4539_v17  ;;  %v4499_v41 = vld [vmem:[#allocation2 + $0x200] sm:$0xff] }
 0xc77   : > { %4347 = vst.msk [vmem:[#allocation2 + $0x300] sm:$0xff] %vm3333_vm3, %v4336_v14  ;;  %v4531_v56 = vpack.c.bf16 %v4500_v10, %v4499_v41 }
 0xc79   : > { %v4342_v9 = vpop.permute.xlu0 %4341  ;;  %11974 = vmatpush3.bf16.msra.mxu0 %v4531_v56  ;;  %v4520_v25 = vld [vmem:[#allocation2 + $0x740] sm:$0xff] }
 0xc7a   : > { %4350 = vst.msk [vmem:[#allocation2 + $0x3c0] sm:$0xff] %vm3333_vm3, %v4342_v9  ;;  %v4340_v22 = vpop.permute.xlu1 %4339  ;;  %11975 = vmatprep.subr.bf16.mxu0 %v4540_v19  ;;  %v4519_v60 = vld [vmem:[#allocation2 + $0x700] sm:$0xff] }
 0xc7b   : > { %4349 = vst.msk [vmem:[#allocation2 + $0x380] sm:$0xff] %vm3333_vm3, %v4340_v22  ;;  %v4541_v40 = vpack.c.bf16 %v4520_v25, %v4519_v60 }
 0xc7d   : > { %v4478_v2 = vpop.permute.xlu0 %4477  ;;  %11976 = vmatpush3.bf16.msra.mxu0 %v4532_v55  ;;  %v4504_v4 = vld [vmem:[#allocation2 + $0x340] sm:$0xff] }
 0xc7e   : > { %4488 = vst.msk [vmem:[#allocation2 + $0x840] sm:$0xff] %vm3333_vm3, %v4478_v2  ;;  %v4476_v15 = vpop.permute.xlu1 %4475  ;;  %11977 = vmatprep.subr.bf16.mxu0 %v4541_v40  ;;  %v4503_v49 = vld [vmem:[#allocation2 + $0x300] sm:$0xff] }
 0xc7f   : > { %4487 = vst.msk [vmem:[#allocation2 + $0x800] sm:$0xff] %vm3333_vm3, %v4476_v15  ;;  %v4533_v42 = vpack.c.bf16 %v4504_v4, %v4503_v49 }
 0xc81   : > { %v4482_v63 = vpop.permute.xlu0 %4481  ;;  %11978 = vmatpush3.bf16.msra.mxu0 %v4533_v42  ;;  %v4506_v47 = vld [vmem:[#allocation2 + $0x3c0] sm:$0xff] }
 0xc82   : > { %4490 = vst.msk [vmem:[#allocation2 + $0x8c0] sm:$0xff] %vm3333_vm3, %v4482_v63  ;;  %v4480_v52 = vpop.permute.xlu1 %4479  ;;  %11979 = vmatprep.subr.bf16.mxu0 %v4542_v43  ;;  %v4505_v34 = vld [vmem:[#allocation2 + $0x380] sm:$0xff] }
 0xc83   : > { %4489 = vst.msk [vmem:[#allocation2 + $0x880] sm:$0xff] %vm3333_vm3, %v4480_v52  ;;  %v4534_v31 = vpack.c.bf16 %v4506_v47, %v4505_v34 }
 0xc85   : > { %11980 = vmatpush3.bf16.msra.mxu0 %v4534_v31  ;;  %v4524_v45 = vld [vmem:[#allocation2 + $0x840] sm:$0xff] }
 0xc86   : > { %v4523_v38 = vld [vmem:[#allocation2 + $0x800] sm:$0xff] }
 0xc87   : > { %v4543_v1 = vpack.c.bf16 %v4524_v45, %v4523_v38 }
 0xc88   : > { %4667 = vmatmul.mubr.bf16.vlgmr.msra.gmra.mrb[84].mxu0 %v12541_v33 }
 0xc89   : > { %12059 = vmatprep.subr.bf16.mxu1 %v4543_v1  ;;  %v4526_v59 = vld [vmem:[#allocation2 + $0x8c0] sm:$0xff]  ;;  %4674 = vmatprep.mubr.bf16.mxu0 %v12544_v6 }
 0xc8a   : > { %12060 = vmatpush3.bf16.msra.mxu1 %v4543_v1  ;;  %v4525_v39 = vld [vmem:[#allocation2 + $0x880] sm:$0xff] }
 0xc8b   : > { %v4544_v24 = vpack.c.bf16 %v4526_v59, %v4525_v39 }
 0xc8d   : > { %12061 = vmatprep.subr.bf16.mxu1 %v4544_v24 }
 0xc8e   : > { %12062 = vmatpush3.bf16.msra.mxu1 %v4544_v24 }
 0xc90   : > { %4675 = vmatmul.mubr.bf16.gmra.mrb[88].mxu0 %v12546_v54 }
 0xc91   : > { %12064 = vmatmul.mubr.msk.bf16.vlgmr.msra.gmra.mrb[80].mxu1 %vm4621_vm5, %v12548_v36  ;;  %4682 = vmatprep.mubr.bf16.mxu0 %v12549_v57 }
 0xc92   : > { %12067 = vmatprep.mubr.msk.bf16.mxu1 %vm4621_vm5, %v12552_v44 }
 0xc98   : > { %4683 = vmatmul.mubr.bf16.gmra.mrb[92].mxu0 %v12551_v16 }
 0xc99   : > { %12068 = vmatmul.mubr.msk.bf16.gmra.mrb[84].mxu1 %vm4621_vm5, %v12553_v23  ;;  %4690 = vmatprep.mubr.bf16.mxu0 %v12554_v61  ;;  %vm10372_vm5 = vcmask 588800  }
 0xc9a   : > { %5001 = vmatprep.mubr.bf16.mxu1 %v16542_v0 }
 0xca0   : > { %4691 = vmatmul.mubr.bf16.gmra.mrb[96].mxu0 %v12556_v26 }
 0xd5b   : > { %v11981_v48 = vpop.f32.mrb[84].mxu0 }
 0xd5c   : > { %v11982_v53 = vpop.f32.mrb[85].mxu0 }
 0xd5d   : > { %v11983_v58 = vadd.f32 %v11982_v53, %v11981_v48  ;;  %v11984_v35 = vpop.f32.mrb[86].mxu0 }
 0xd5e   : > { %v11985_v50 = vpop.f32.mrb[87].mxu0 }
 0xd5f   : > { %v11986_v20 = vadd.f32 %v11985_v50, %v11984_v35 }
 0xd63   : > { %v11987_v18 = vpop.f32.mrb[88].mxu0 }
 0xd64   : > { %v12065_v29 = vpop.f32.mrb[80].mxu1  ;;  %v11988_v17 = vpop.f32.mrb[89].mxu0 }
 0xd65   : > { %v4733_v30 = vpop.f32.mrb[81].mxu1  ;;  %v11989_v10 = vadd.f32 %v11988_v17, %v11987_v18  ;;  %v11990_v37 = vpop.f32.mrb[90].mxu0 }
 0xd66   : > { %v15318_v13 = vadd.f32 %v11983_v58, %v4733_v30  ;;  %v12066_v14 = vpop.f32.mrb[82].mxu1  ;;  %v11991_v41 = vpop.f32.mrb[91].mxu0 }
 0xd67   : > { %v4736_v56 = vpop.f32.mrb[83].mxu1  ;;  %v15320_v19 = vadd.f32 %v12065_v29, %v11989_v10  ;;  %v11992_v46 = vadd.f32 %v11991_v41, %v11990_v37 }
 0xd68   : > { %v4737_v51 = vadd.f32 %v11986_v20, %v4736_v56  ;;  %v4764_v9 = vsel %vm3333_vm3, %v15318_v13, 0.0 }
 0xd69   : > { %v4745_v25 = vadd.f32 %v12066_v14, %v11992_v46  ;;  %4765 = vadd.xlane.f32.xlu1 %v4764_v9  ;;  %v4770_v49 = vsel %vm3333_vm3, %v15320_v19, 0.0 }
 0xd6a   : > { %v4767_v22 = vsel %vm3333_vm3, %v4737_v51, 0.0 }
 0xd6b   : > { %4768 = vadd.xlane.f32.xlu0 %v4767_v22  ;;  %v11993_v60 = vpop.f32.mrb[92].mxu0  ;;  %v4773_v55 = vsel %vm3333_vm3, %v4745_v25, 0.0 }
 0xd6c   : > { %v11994_v40 = vpop.f32.mrb[93].mxu0  ;;  %v12069_v2 = vpop.f32.mrb[84].mxu1 }
 0xd6d   : > { %v11995_v4 = vadd.f32 %v11994_v40, %v11993_v60  ;;  %v11996_v32 = vpop.f32.mrb[94].mxu0  ;;  %v4749_v27 = vpop.f32.mrb[85].mxu1  ;;  %4774 = vadd.xlane.f32.xlu1 %v4773_v55 }
 0xd6e   : > { %v11997_v15 = vpop.f32.mrb[95].mxu0  ;;  %v12070_v42 = vpop.f32.mrb[86].mxu1 }
 0xd6f   : > { %v11998_v43 = vadd.f32 %v11997_v15, %v11996_v32  ;;  %v4750_v63 = vadd.f32 %v11995_v4, %v4749_v27  ;;  %4771 = vadd.xlane.f32.xlu0 %v4770_v49  ;;  %v4752_v47 = vpop.f32.mrb[87].mxu1 }
 0xd71   : > { %v4753_v52 = vadd.f32 %v11998_v43, %v4752_v47  ;;  %v4776_v34 = vsel %vm3333_vm3, %v4750_v63, 0.0 }
 0xd73   : > { %v11999_v31 = vpop.f32.mrb[96].mxu0  ;;  %4777 = vadd.xlane.f32.xlu0 %v4776_v34  ;;  %v4779_v33 = vsel %vm3333_vm3, %v4753_v52, 0.0 }
 0xd74   : > { %v12000_v45 = vpop.f32.mrb[97].mxu0  ;;  %4780 = vadd.xlane.f32.xlu1 %v4779_v33 }
 0xd75   : > { %v12001_v6 = vadd.f32 %v12000_v45, %v11999_v31  ;;  %v12002_v38 = vpop.f32.mrb[98].mxu0 }
 0xd76   : > { %v12003_v1 = vpop.f32.mrb[99].mxu0 }
 0xd77   : > { %v4758_v59 = vadd.f32 %v12069_v2, %v12001_v6  ;;  %v12004_v39 = vadd.f32 %v12003_v1, %v12002_v38  ;;  %v12557_v6 = vld [vmem:[#allocation20 + $0x40] ss:$8 sps:$4 sm:$0xff]   ;;  %v12559_v38 = vld [vmem:[#allocation20 + $0x44] ss:$8 sps:$4 sm:$0xff]   ;;  %v12562_v1 = vld [vmem:[#allocation20 + $0x54] ss:$8 sps:$4 sm:$0xff]  }
 0xd78   : > { %4969 = vmatprep.subr.bf16.mxu1 %v12559_v38  ;;  %v12574_v38 = vld [vmem:[#allocation20 + $0x14] ss:$8 sps:$4 sm:$0xff]  }
 0xd79   : > { %v4761_v24 = vadd.f32 %v12070_v42, %v12004_v39  ;;  %v4782_v54 = vsel %vm3333_vm3, %v4758_v59, 0.0  ;;  %4970 = vmatpush1.bf16.msra.mxu1 %v12557_v6  ;;  %v12565_v39 = vld [vmem:[#allocation20 + $0x64] ss:$8 sps:$4 sm:$0xff]  }
 0xd7a   : > { %4783 = vadd.xlane.f32.xlu0 %v4782_v54  ;;  %4971 = vmatprep.subr.bf16.mxu1 %v12562_v1  ;;  %v12568_v54 = vld [vmem:[#allocation20 + $0x74] ss:$8 sps:$4 sm:$0xff]  }
 0xd7b   : > { %v4785_v36 = vsel %vm3333_vm3, %v4761_v24, 0.0 }
 0xd7c   : > { %4786 = vadd.xlane.f32.xlu1 %v4785_v36  ;;  %v12566_v36 = vld [vmem:[#allocation20 + $0x70] ss:$8 sps:$4 sm:$0xff]  }
 0xdf6   : > { %v4766_v44 = vpop.xlane.xlu1 %4765 }
 0xdf8   : > { %v4769_v57 = vpop.xlane.xlu0 %4768 }
 0xdf9   : > { %v4788_v16 = vadd.f32 %v4769_v57, %v4766_v44  ;;  %v12571_v57 = vld [vmem:[#allocation20 + $0x4] ss:$8 sps:$4 sm:$0xff]  }
 0xdfa   : > { %v4775_v26 = vpop.xlane.xlu1 %4774 }
 0xdfc   : > { %v4772_v23 = vpop.xlane.xlu0 %4771 }
 0xdfd   : > { %v4789_v61 = vadd.f32 %v4788_v16, %v4772_v23 }
 0xdff   : > { %v4790_v48 = vadd.f32 %v4789_v61, %v4775_v26 }
 0xe00   : > { %v4778_v53 = vpop.xlane.xlu0 %4777 }
 0xe01   : > { %v4791_v58 = vadd.f32 %v4790_v48, %v4778_v53  ;;  %v4781_v35 = vpop.xlane.xlu1 %4780 }
 0xe03   : > { %v4792_v50 = vadd.f32 %v4791_v58, %v4781_v35 }
 0xe07   : > { %v4784_v20 = vpop.xlane.xlu0 %4783 }
 0xe08   : > { %v4793_v18 = vadd.f32 %v4792_v50, %v4784_v20 }
 0xe09   : > { %v4787_v29 = vpop.xlane.xlu1 %4786 }
 0xe0a   : > { %v4794_v17 = vadd.f32 %v4793_v18, %v4787_v29 }
 0xe0c   : > { %v4795_v30 = vrot.slane %v4794_v17, 4 }
 0xe0e   : > { %v4796_v10 = vadd.f32 %v4795_v30, %v4794_v17 }
 0xe10   : > { %v4797_v37 = vrot.slane %v4796_v10, 2 }
 0xe12   : > { %v4798_v14 = vadd.f32 %v4797_v37, %v4796_v10 }
 0xe14   : > { %v4799_v41 = vrot.slane %v4798_v14, 1 }
 0xe16   : > { %v4800_v56 = vadd.f32 %v4799_v41, %v4798_v14 }
 0xe18   : > { %v4802_v46 = vmul.f32 0.00024414063, %v4800_v56 }
 0xe1a   : > { %v15332_v9 = vsub.f32 %v4737_v51, %v4802_v46  ;;  %v15335_v22 = vsub.f32 %v15318_v13, %v4802_v46  ;;  %v15337_v60 = vsub.f32 %v4745_v25, %v4802_v46  ;;  %v15340_v55 = vsub.f32 %v15320_v19, %v4802_v46 }
 0xe1b   : > { %v15346_v4 = vsub.f32 %v4753_v52, %v4802_v46  ;;  %v15348_v32 = vsub.f32 %v4750_v63, %v4802_v46  ;;  %v15356_v27 = vsub.f32 %v4761_v24, %v4802_v46  ;;  %v15358_v15 = vsub.f32 %v4758_v59, %v4802_v46  ;;  %v12560_v59 = vld [vmem:[#allocation20 + $0x50] ss:$8 sps:$4 sm:$0xff]   ;;  %v12563_v24 = vld [vmem:[#allocation20 + $0x60] ss:$8 sps:$4 sm:$0xff]  }
 0xe1c   : > { %v4812_v40 = vmul.f32 %v15332_v9, %v15332_v9  ;;  %v4811_v2 = vmul.f32 %v15335_v22, %v15335_v22  ;;  %v4814_v25 = vmul.f32 %v15337_v60, %v15337_v60  ;;  %v4813_v19 = vmul.f32 %v15340_v55, %v15340_v55  ;;  %4972 = vmatpush1.bf16.msra.mxu1 %v12560_v59  ;;  %v4867_v59 = vld [vmem:[#allocation17] sm:$0xff] }
 0xe1d   : > { %v4816_v43 = vmul.f32 %v15346_v4, %v15346_v4  ;;  %v4815_v63 = vmul.f32 %v15348_v32, %v15348_v32  ;;  %v4818_v34 = vmul.f32 %v15356_v27, %v15356_v27  ;;  %v4817_v31 = vmul.f32 %v15358_v15, %v15358_v15  ;;  %4973 = vmatprep.subr.bf16.mxu1 %v12565_v39  ;;  %v4868_v39 = vld [vmem:[#allocation17 + $0x8] sm:$0xff] }
 0xe1e   : > { %v4822_v51 = vsel %vm3333_vm3, %v4812_v40, 0.0  ;;  %v4819_v13 = vsel %vm3333_vm3, %v4811_v2, 0.0  ;;  %v4828_v49 = vsel %vm3333_vm3, %v4814_v25, 0.0  ;;  %v4825_v42 = vsel %vm3333_vm3, %v4813_v19, 0.0  ;;  %v4870_v25 = vld [vmem:[#allocation17 + $0x18] sm:$0xff] }
 0xe1f   : > { %4823 = vadd.xlane.f32.xlu1 %v4822_v51  ;;  %4820 = vadd.xlane.f32.xlu0 %v4819_v13  ;;  %v4834_v47 = vsel %vm3333_vm3, %v4816_v43, 0.0  ;;  %v4831_v52 = vsel %vm3333_vm3, %v4815_v63, 0.0  ;;  %v4840_v33 = vsel %vm3333_vm3, %v4818_v34, 0.0  ;;  %v4837_v45 = vsel %vm3333_vm3, %v4817_v31, 0.0  ;;  %v4869_v13 = vld [vmem:[#allocation17 + $0x10] sm:$0xff]  ;;  %v4886_v43 = vld [vmem:[#allocation19 + $0x18] sm:$0xff] }
 0xe20   : > { %4974 = vmatpush1.bf16.msra.mxu1 %v12563_v24  ;;  %v12577_v24 = vld [vmem:[#allocation20 + $0x24] ss:$8 sps:$4 sm:$0xff]  }
 0xe21   : > { %4975 = vmatprep.subr.bf16.mxu1 %v12568_v54 }
 0xe23   : > { %4829 = vadd.xlane.f32.xlu1 %v4828_v49  ;;  %4826 = vadd.xlane.f32.xlu0 %v4825_v42  ;;  %v4885_v42 = vld [vmem:[#allocation19 + $0x10] sm:$0xff] }
 0xe24   : > { %4976 = vmatpush1.bf16.msra.mxu1 %v12566_v36 }
 0xe25   : > { %5055 = vmatprep.subr.bf16.mxu1 %v12571_v57  ;;  %v4883_v57 = vld [vmem:[#allocation19] sm:$0xff] }
 0xe27   : > { %4835 = vadd.xlane.f32.xlu1 %v4834_v47  ;;  %4832 = vadd.xlane.f32.xlu0 %v4831_v52 }
 0xe2b   : > { %4841 = vadd.xlane.f32.xlu1 %v4840_v33  ;;  %4838 = vadd.xlane.f32.xlu0 %v4837_v45  ;;  %v12569_v45 = vld [vmem:[#allocation20] ss:$8 sps:$4 sm:$0xff]  }
 0xeac   : > { %v4824_v44 = vpop.xlane.xlu1 %4823  ;;  %v4821_v16 = vpop.xlane.xlu0 %4820 }
 0xead   : > { %v4843_v23 = vadd.f32 %v4824_v44, %v4821_v16  ;;  %v4884_v44 = vld [vmem:[#allocation19 + $0x8] sm:$0xff] }
 0xeae   : > { %v12575_v16 = vld [vmem:[#allocation20 + $0x20] ss:$8 sps:$4 sm:$0xff]  }
 0xeb0   : > { %v4830_v61 = vpop.xlane.xlu1 %4829  ;;  %v4827_v26 = vpop.xlane.xlu0 %4826 }
 0xeb1   : > { %v4844_v48 = vadd.f32 %v4843_v23, %v4827_v26 }
 0xeb3   : > { %v4845_v53 = vadd.f32 %v4844_v48, %v4830_v61  ;;  %v12578_v61 = vld [vmem:[#allocation20 + $0x30] ss:$8 sps:$4 sm:$0xff]  }
 0xeb4   : > { %v4836_v58 = vpop.xlane.xlu1 %4835  ;;  %v4833_v35 = vpop.xlane.xlu0 %4832 }
 0xeb5   : > { %v4846_v50 = vadd.f32 %v4845_v53, %v4833_v35  ;;  %v12583_v53 = vld [vmem:[#allocation20 + $0x84] ss:$8 sps:$4 sm:$0xff]  }
 0xeb7   : > { %v4847_v20 = vadd.f32 %v4846_v50, %v4836_v58  ;;  %v12581_v58 = vld [vmem:[#allocation20 + $0x80] ss:$8 sps:$4 sm:$0xff]   ;;  %v12586_v50 = vld [vmem:[#allocation20 + $0x94] ss:$8 sps:$4 sm:$0xff]  }
 0xeb8   : > { %v4839_v18 = vpop.xlane.xlu0 %4838  ;;  %v4842_v17 = vpop.xlane.xlu1 %4841 }
 0xeb9   : > { %v4848_v29 = vadd.f32 %v4847_v20, %v4839_v18 }
 0xebb   : > { %v4849_v30 = vadd.f32 %v4848_v29, %v4842_v17  ;;  %v4871_v29 = vld [vmem:[#allocation17 + $0x20] sm:$0xff]  ;;  %v4872_v17 = vld [vmem:[#allocation17 + $0x28] sm:$0xff] }
 0xebd   : > { %v4850_v10 = vrot.slane %v4849_v30, 4 }
 0xebf   : > { %v4851_v37 = vadd.f32 %v4850_v10, %v4849_v30  ;;  %v12584_v30 = vld [vmem:[#allocation20 + $0x90] ss:$8 sps:$4 sm:$0xff]   ;;  %v12589_v10 = vld [vmem:[#allocation20 + $0xa4] ss:$8 sps:$4 sm:$0xff]  }
 0xec1   : > { %v4852_v14 = vrot.slane %v4851_v37, 2 }
 0xec3   : > { %v4853_v41 = vadd.f32 %v4852_v14, %v4851_v37 }
 0xec5   : > { %v4854_v56 = vrot.slane %v4853_v41, 1 }
 0xec7   : > { %v4855_v46 = vadd.f32 %v4854_v56, %v4853_v41  ;;  %v4887_v41 = vld [vmem:[#allocation19 + $0x20] sm:$0xff]  ;;  %v4888_v56 = vld [vmem:[#allocation19 + $0x28] sm:$0xff] }
 0xec9   : > { %v4856_v40 = vmul.f32 0.00024414063, %v4855_v46  ;;  %v12587_v46 = vld [vmem:[#allocation20 + $0xa0] ss:$8 sps:$4 sm:$0xff]  }
 0xecb   : > { %v4857_v2 = vadd.f32 1e-05, %v4856_v40 }
 0xecd   : > { %12616 = vrsqrt.f32 %v4857_v2  ;;  %v12590_v2 = vld [vmem:[#allocation20 + $0xb0] ss:$8 sps:$4 sm:$0xff]  }
 0xed7   : > { %v15374_v51 = vpop.eup %12616 }
 0xed8   : > { %v4861_v19 = vmul.f32 %v15374_v51, %v15340_v55  ;;  %v4862_v49 = vmul.f32 %v15374_v51, %v15337_v60  ;;  %v4859_v1 = vmul.f32 %v15374_v51, %v15335_v22  ;;  %v4860_v55 = vmul.f32 %v15374_v51, %v15332_v9  ;;  %v12572_v60 = vld [vmem:[#allocation20 + $0x10] ss:$8 sps:$4 sm:$0xff]   ;;  %v12580_v22 = vld [vmem:[#allocation20 + $0x34] ss:$8 sps:$4 sm:$0xff]  }
 0xed9   : > { %v4863_v20 = vmul.f32 %v15374_v51, %v15348_v32  ;;  %v4864_v18 = vmul.f32 %v15374_v51, %v15346_v4  ;;  %v12592_v32 = vld [vmem:[#allocation20 + $0xb4] ss:$8 sps:$4 sm:$0xff]  }
 0xeda   : > { %v4877_v63 = vmul.f32 %v4869_v13, %v4861_v19  ;;  %v4878_v47 = vmul.f32 %v4870_v25, %v4862_v49  ;;  %v4875_v54 = vmul.f32 %v4867_v59, %v4859_v1  ;;  %v4876_v36 = vmul.f32 %v4868_v39, %v4860_v55  ;;  %v12595_v19 = vld [vmem:[#allocation20 + $0xc4] ss:$8 sps:$4 sm:$0xff]   ;;  %v12593_v49 = vld [vmem:[#allocation20 + $0xc0] ss:$8 sps:$4 sm:$0xff]   ;;  %v4890_v1 = vld [vmem:[#allocation19 + $0x38] sm:$0xff] }
 0xedb   : > { %v4879_v37 = vmul.f32 %v4871_v29, %v4863_v20  ;;  %v4880_v14 = vmul.f32 %v4872_v17, %v4864_v18  ;;  %v12599_v55 = vld [vmem:[#allocation20 + $0xe0] ss:$8 sps:$4 sm:$0xff]   ;;  %v15474_v29 = vand.u32 127, %v1267_v62 }
 0xedc   : > { %v4893_v52 = vadd.f32 %v4885_v42, %v4877_v63  ;;  %v4894_v34 = vadd.f32 %v4886_v43, %v4878_v47  ;;  %v4891_v23 = vadd.f32 %v4883_v57, %v4875_v54  ;;  %v4892_v9 = vadd.f32 %v4884_v44, %v4876_v36  ;;  %v12598_v43 = vld [vmem:[#allocation20 + $0xd4] ss:$8 sps:$4 sm:$0xff]  }
 0xedd   : > { %v4895_v40 = vadd.f32 %v4887_v41, %v4879_v37  ;;  %v4896_v4 = vadd.f32 %v4888_v56, %v4880_v14  ;;  %v4865_v63 = vmul.f32 %v15374_v51, %v15358_v15  ;;  %v4866_v47 = vmul.f32 %v15374_v51, %v15356_v27  ;;  %v12604_v15 = vld [vmem:[#allocation20 + $0xf4] ss:$8 sps:$4 sm:$0xff]   ;;  %v12602_v51 = vld [vmem:[#allocation20 + $0xf0] ss:$8 sps:$4 sm:$0xff]   ;;  %v5347_v41 = vld [vmem:[#allocation23 + $0x2] sm:$0x3] }
 0xede   : > { %v4901_v31 = vmax.f32 %v4893_v52, 0.0  ;;  %v4902_v33 = vmax.f32 %v4894_v34, 0.0  ;;  %v4899_v26 = vmax.f32 %v4891_v23, 0.0  ;;  %v4900_v48 = vmax.f32 %v4892_v9, 0.0  ;;  %v4873_v52 = vld [vmem:[#allocation17 + $0x30] sm:$0xff]  ;;  %v4874_v34 = vld [vmem:[#allocation17 + $0x38] sm:$0xff] }
 0xedf   : > { %v4903_v13 = vmax.f32 %v4895_v40, 0.0  ;;  %v4904_v25 = vmax.f32 %v4896_v4, 0.0  ;;  %v12607_v23 = vld [vmem:[#allocation22 + $0x4] ss:$8 sps:$4 sm:$0xff]   ;;  %vm5308_vm6 = vcmp.lt.s32.totalorder %v15474_v29, 17  ;;  %vm5341_vm7 = vcmp.lt.s32.totalorder %v15474_v29, 16 }
 0xee0   : > { %v4916_v6 = vpack.c.bf16 %v4902_v33, %v4901_v31  ;;  %v4907_v35 = vpack.c.bf16 %v4900_v48, %v4899_v26  ;;  %v12596_v31 = vld [vmem:[#allocation20 + $0xd0] ss:$8 sps:$4 sm:$0xff]   ;;  %v12601_v33 = vld [vmem:[#allocation20 + $0xe4] ss:$8 sps:$4 sm:$0xff]   ;;  %11127 = vmatprep.mubr.msk.bf16.mxu0 %vm1033_vm0, %v12607_v23  ;;  %v5352_v4 = vrot.slane %v5347_v41, %v14181_v3  ;;  %vm5375_vm8 = vcmp.lt.s32.totalorder %v15474_v29, 15 }
 0xee1   : > { %v5098_v42 = vpack.c.bf16 %v4904_v25, %v4903_v13  ;;  %vm5447_vm9 = vcmp.lt.s32.totalorder %v15474_v29, 127  ;;  %vm5409_vm10 = vcmp.lt.s32.totalorder %v15474_v29, 1  ;;  %vm5481_vm11 = vcmp.lt.s32.totalorder %v15474_v29, 113 }
 0xee2   : > { %11095 = vmatmul.mubr.msk.bf16.vlgmr.msra.gmra.mrb[88].mxu1 %vm3333_vm3, %v4916_v6  ;;  %v4882_v6 = vmul.f32 %v4874_v34, %v4866_v47  ;;  %vm5515_vm12 = vcmp.lt.s32.totalorder %v15474_v29, 112  ;;  %vm5549_vm13 = vcmp.lt.s32.totalorder %v15474_v29, 111  ;;  %vm9675_vm14 = vcmp.lt.s32.totalorder %v15474_v29, 32 }
 0xee3   : > { %5056 = vmatpush1.bf16.msra.mxu1 %v12569_v45  ;;  %5087 = vmatprep.mubr.bf16.mxu1 %v16542_v0  ;;  %v4881_v45 = vmul.f32 %v4873_v52, %v4865_v63  ;;  %vm9759_vm15 = vcmp.lt.s32.totalorder %v15474_v29, 31  ;;  %vm10101_vm1 = vcmp.lt.s32.totalorder %v15474_v29, 96  ;;  %vm9592_vm2 = vcmp.lt.s32.totalorder %v15474_v29, 33 }
 0xee4   : > { %5057 = vmatprep.subr.bf16.mxu1 %v12574_v38  ;;  %v4889_v38 = vld [vmem:[#allocation19 + $0x30] sm:$0xff]  ;;  %v4898_v27 = vadd.f32 %v4890_v1, %v4882_v6  ;;  %v5415_v6 = vld [vmem:[#allocation23 + $0x6] sm:$0x3] }
 0xee5   : > { %v4897_v59 = vadd.f32 %v4889_v38, %v4881_v45 }
 0xee7   : > { %5058 = vmatpush1.bf16.msra.mxu1 %v12572_v60  ;;  %v4905_v39 = vmax.f32 %v4897_v59, 0.0  ;;  %v4906_v60 = vmax.f32 %v4898_v27, 0.0 }
 0xee8   : > { %5059 = vmatprep.subr.bf16.mxu1 %v12577_v24 }
 0xee9   : > { %v5198_v24 = vpack.c.bf16 %v4906_v60, %v4905_v39 }
 0xeeb   : > { %5060 = vmatpush1.bf16.msra.mxu1 %v12575_v16 }
 0xeec   : > { %5061 = vmatprep.subr.bf16.mxu1 %v12580_v22 }
 0xeef   : > { %5062 = vmatpush1.bf16.msra.mxu1 %v12578_v61 }
 0xef0   : > { %5151 = vmatprep.subr.bf16.mxu1 %v12583_v53 }
 0xef2   : > { %11104 = vmatmul.mubr.msk.bf16.vlgmr.msra.gmra.mrb[88].mxu1 %vm3333_vm3, %v4907_v35 }
 0xef3   : > { %5152 = vmatpush1.bf16.msra.mxu1 %v12581_v58  ;;  %5183 = vmatprep.mubr.bf16.mxu1 %v16542_v0 }
 0xef4   : > { %5153 = vmatprep.subr.bf16.mxu1 %v12586_v50 }
 0xef7   : > { %5154 = vmatpush1.bf16.msra.mxu1 %v12584_v30 }
 0xef8   : > { %5155 = vmatprep.subr.bf16.mxu1 %v12589_v10  ;;  %v5313_v10 = vld [vmem:[#allocation23] sm:$0x3] }
 0xef9   : > { %v5318_v56 = vrot.slane %v5313_v10, %v14181_v3 }
 0xefb   : > { %5156 = vmatpush1.bf16.msra.mxu1 %v12587_v46  ;;  %v5322_v46 = vrot.slane %v5313_v10, %v14183_v5  ;;  %v5424_v10 = vrot.slane %v5415_v6, %v14183_v5 }
 0xefc   : > { %5157 = vmatprep.subr.bf16.mxu1 %v12592_v32  ;;  %v5381_v32 = vld [vmem:[#allocation23 + $0x4] sm:$0x3] }
 0xefd   : > { %v5390_v45 = vrot.slane %v5381_v32, %v14183_v5 }
 0xeff   : > { %5158 = vmatpush1.bf16.msra.mxu1 %v12590_v2  ;;  %v5356_v2 = vrot.slane %v5347_v41, %v14183_v5 }
 0xf00   : > { %5251 = vmatprep.subr.bf16.mxu1 %v12595_v19  ;;  %v5386_v19 = vrot.slane %v5381_v32, %v14181_v3 }
 0xf02   : > { %11113 = vmatmul.mubr.msk.bf16.vlgmr.msra.gmra.mrb[88].mxu1 %vm3333_vm3, %v5098_v42 }
 0xf03   : > { %5252 = vmatpush1.bf16.msra.mxu1 %v12593_v49  ;;  %5283 = vmatprep.mubr.bf16.mxu1 %v16542_v0 }
 0xf04   : > { %5253 = vmatprep.subr.bf16.mxu1 %v12598_v43  ;;  %v5453_v43 = vld [vmem:[#allocation23 + $0xa] sm:$0x3] }
 0xf07   : > { %5254 = vmatpush1.bf16.msra.mxu1 %v12596_v31 }
 0xf08   : > { %5255 = vmatprep.subr.bf16.mxu1 %v12601_v33 }
 0xf0b   : > { %5256 = vmatpush1.bf16.msra.mxu1 %v12599_v55  ;;  %v15505_v55 = vrot.slane %v5453_v43, %v14181_v3 }
 0xf0c   : > { %5257 = vmatprep.subr.bf16.mxu1 %v12604_v15  ;;  %v15508_v15 = vrot.slane %v5453_v43, %v14183_v5 }
 0xf0f   : > { %5258 = vmatpush1.bf16.msra.mxu1 %v12602_v51 }
 0xf12   : > { %11122 = vmatmul.mubr.msk.bf16.vlgmr.msra.gmra.mrb[88].mxu1 %vm3333_vm3, %v5198_v24  ;;  %vm10185_vm3 = vcmp.lt.s32.totalorder %v15474_v29, 95 }
 0xfe5   : > { %v15399_v54 = vpop.f32.mrb[88].mxu1 }
 0xfe6   : > { %5333 = vrot.lane.b32.xlu1 %v15399_v54, %s16633_s29  ;;  %5298 = vrot.lane.b32.xlu0 %v15399_v54, %s13322_s4  ;;  %v15404_v36 = vpop.f32.mrb[89].mxu1 }
 0xfe7   : > { %v15406_v57 = vpop.f32.mrb[90].mxu1 }
 0xfe8   : > { %5437 = vst [vmem:[#allocation2 + $0x240] sm:$0xff] %v15406_v57  ;;  %v15409_v44 = vpop.f32.mrb[91].mxu1  ;;  %v5619_v16 = vpack.c.bf16 %v15406_v57, %v15399_v54 }
 0xfe9   : > { %v5620_v22 = vpack.c.bf16 %v15409_v44, %v15404_v36 }
 0xfea   : > { %5367 = vrot.lane.b32.xlu1 %v15399_v54, %s16634_s9  ;;  %5335 = vrot.lane.b32.xlu0 %v15406_v57, %s16633_s29 }
 0xfee   : > { %5401 = vrot.lane.b32.xlu1 %v15399_v54, %s13298_s1  ;;  %5369 = vrot.lane.b32.xlu0 %v15406_v57, %s16634_s9 }
 0xff2   : > { %5302 = vrot.lane.b32.xlu1 %v15404_v36, %s13322_s4  ;;  %5403 = vrot.lane.b32.xlu0 %v15406_v57, %s13298_s1 }
 0xff6   : > { %5337 = vrot.lane.b32.xlu1 %v15404_v36, %s16633_s29  ;;  %5441 = vrot.lane.b32.xlu0 %v15406_v57, %s13305_s2 }
 0xffa   : > { %5371 = vrot.lane.b32.xlu1 %v15404_v36, %s16634_s9  ;;  %5475 = vrot.lane.b32.xlu0 %v15406_v57, %s16635_s27 }
 0xffe   : > { %5405 = vrot.lane.b32.xlu1 %v15404_v36, %s13298_s1  ;;  %5509 = vrot.lane.b32.xlu0 %v15406_v57, %s13323_s8 }
0x1002   : > { %5300 = vrot.lane.b32.xlu1 %v15406_v57, %s13322_s4  ;;  %5304 = vrot.lane.b32.xlu0 %v15409_v44, %s13322_s4  ;;  %s13330_s4 = smov 96  }
0x1006   : > { %5439 = vrot.lane.b32.xlu1 %v15399_v54, %s13305_s2  ;;  %5339 = vrot.lane.b32.xlu0 %v15409_v44, %s16633_s29  ;;  %s13329_s29 = smov 95  }
0x100a   : > { %5443 = vrot.lane.b32.xlu1 %v15404_v36, %s13305_s2  ;;  %5373 = vrot.lane.b32.xlu0 %v15409_v44, %s16634_s9 }
0x100e   : > { %5473 = vrot.lane.b32.xlu1 %v15399_v54, %s16635_s27  ;;  %5407 = vrot.lane.b32.xlu0 %v15409_v44, %s13298_s1 }
0x1012   : > { %5477 = vrot.lane.b32.xlu1 %v15404_v36, %s16635_s27  ;;  %5543 = vrot.lane.b32.xlu0 %v15406_v57, %s13324_s24 }
0x1016   : > { %5507 = vrot.lane.b32.xlu1 %v15399_v54, %s13323_s8  ;;  %5445 = vrot.lane.b32.xlu0 %v15409_v44, %s13305_s2 }
0x101a   : > { %5511 = vrot.lane.b32.xlu1 %v15404_v36, %s13323_s8  ;;  %5479 = vrot.lane.b32.xlu0 %v15409_v44, %s16635_s27  ;;  %s16665_s27 = sld [smem:[#allocation75_spill]] }
0x101e   : > { %5541 = vrot.lane.b32.xlu1 %v15399_v54, %s13324_s24  ;;  %5513 = vrot.lane.b32.xlu0 %v15409_v44, %s13323_s8 }
0x1022   : > { %5545 = vrot.lane.b32.xlu1 %v15404_v36, %s13324_s24  ;;  %5547 = vrot.lane.b32.xlu0 %v15409_v44, %s13324_s24 }
0x1058   : > { %v5334_v9 = vpop.permute.xlu1 %5333  ;;  %v5299_v61 = vpop.permute.xlu0 %5298 }
0x105c   : > { %v5368_v26 = vpop.permute.xlu1 %5367  ;;  %v5336_v48 = vpop.permute.xlu0 %5335 }
0x1060   : > { %v15465_v53 = vpop.permute.xlu1 %5401  ;;  %v15467_v58 = vpop.permute.xlu0 %5369 }
0x1064   : > { %v5303_v35 = vpop.permute.xlu1 %5302  ;;  %v15469_v50 = vpop.permute.xlu0 %5403 }
0x1065   : > { %v5309_v62 = vsel %vm5308_vm6, %v5299_v61, %v5303_v35  ;;  %v5311_v40 = vsel %vm5308_vm6, %v5303_v35, %v5299_v61 }
0x1066   : > { %v5325_v63 = vmul.f32 %v5318_v56, %v5311_v40  ;;  %v5326_v47 = vmul.f32 %v5322_v46, %v5309_v62 }
0x1068   : > { %v5338_v20 = vpop.permute.xlu1 %5337  ;;  %v15471_v18 = vpop.permute.xlu0 %5441 }
0x1069   : > { %v5342_v31 = vsel %vm5341_vm7, %v5334_v9, %v5338_v20  ;;  %v5344_v33 = vsel %vm5341_vm7, %v5338_v20, %v5334_v9  ;;  %v5420_v20 = vrot.slane %v5415_v6, %v14181_v3 }
0x106a   : > { %v5359_v23 = vmul.f32 %v5352_v4, %v5344_v33  ;;  %v5360_v9 = vmul.f32 %v5356_v2, %v5342_v31 }
0x106c   : > { %v5372_v17 = vpop.permute.xlu1 %5371  ;;  %v15476_v30 = vpop.permute.xlu0 %5475 }
0x106d   : > { %v5376_v51 = vsel %vm5375_vm8, %v5368_v26, %v5372_v17  ;;  %v5378_v39 = vsel %vm5375_vm8, %v5372_v17, %v5368_v26 }
0x106e   : > { %v5393_v41 = vmul.f32 %v5386_v19, %v5378_v39  ;;  %v5394_v26 = vmul.f32 %v5390_v45, %v5376_v51 }
0x1070   : > { %v15479_v37 = vpop.permute.xlu1 %5405  ;;  %v15481_v14 = vpop.permute.xlu0 %5509 }
0x1071   : > { %v5410_v43 = vsel %vm5409_vm10, %v15465_v53, %v15479_v37 }
0x1074   : > { %v5301_v13 = vpop.permute.xlu1 %5300  ;;  %v5305_v25 = vpop.permute.xlu0 %5304 }
0x1075   : > { %v5310_v49 = vsel %vm5308_vm6, %v5301_v13, %v5305_v25  ;;  %v5312_v42 = vsel %vm5308_vm6, %v5305_v25, %v5301_v13 }
0x1076   : > { %v5327_v52 = vmul.f32 %v5318_v56, %v5312_v42  ;;  %v5328_v34 = vmul.f32 %v5322_v46, %v5310_v49  ;;  %v5487_v42 = vld [vmem:[#allocation23 + $0xc] sm:$0x3] }
0x1077   : > { %v5492_v33 = vrot.slane %v5487_v42, %v14181_v3 }
0x1078   : > { %v5440_v38 = vpop.permute.xlu1 %5439  ;;  %v5340_v1 = vpop.permute.xlu0 %5339  ;;  %v5612_v59 = vpack.c.bf16 %v5328_v34, %v5326_v47  ;;  %v5611_v27 = vpack.c.bf16 %v5327_v52, %v5325_v63  ;;  %v5412_v63 = vsel %vm5409_vm10, %v15479_v37, %v15465_v53  ;;  %v5496_v53 = vrot.slane %v5487_v42, %v14183_v5 }
0x1079   : > { %v5343_v60 = vsel %vm5341_vm7, %v5336_v48, %v5340_v1  ;;  %v5345_v24 = vsel %vm5341_vm7, %v5340_v1, %v5336_v48  ;;  %v5427_v37 = vmul.f32 %v5420_v20, %v5412_v63 }
0x107a   : > { %v5361_v61 = vmul.f32 %v5352_v4, %v5345_v24  ;;  %v5362_v35 = vmul.f32 %v5356_v2, %v5343_v60  ;;  %5657 = vmatprep.subr.bf16.mxu0 %v5612_v59 }
0x107b   : > { %5658 = vmatpush1.bf16.msra.mxu0 %v5611_v27 }
0x107c   : > { %v5444_v17 = vpop.permute.xlu1 %5443  ;;  %v5374_v56 = vpop.permute.xlu0 %5373  ;;  %v5614_v46 = vpack.c.bf16 %v5362_v35, %v5360_v9  ;;  %v5613_v32 = vpack.c.bf16 %v5361_v61, %v5359_v23  ;;  %v5521_v23 = vld [vmem:[#allocation23 + $0xe] sm:$0x3] }
0x107d   : > { %v5448_v48 = vsel %vm5447_vm9, %v5440_v38, %v5444_v17  ;;  %v5450_v62 = vsel %vm5447_vm9, %v5444_v17, %v5440_v38  ;;  %v5377_v40 = vsel %vm5375_vm8, %v15467_v58, %v5374_v56  ;;  %v5379_v4 = vsel %vm5375_vm8, %v5374_v56, %v15467_v58 }
0x107e   : > { %v15532_v2 = vmul.f32 %v15505_v55, %v5448_v48  ;;  %v5466_v13 = vmul.f32 %v15508_v15, %v5450_v62  ;;  %v5395_v25 = vmul.f32 %v5386_v19, %v5379_v4  ;;  %v5396_v49 = vmul.f32 %v5390_v45, %v5377_v40  ;;  %5659 = vmatprep.subr.bf16.mxu0 %v5614_v46  ;;  %v5555_v48 = vld [vmem:[#allocation23 + $0x10] sm:$0x3] }
0x107f   : > { %5660 = vmatpush1.bf16.msra.mxu0 %v5613_v32  ;;  %v5428_v45 = vmul.f32 %v5424_v10, %v5410_v43  ;;  %v5530_v17 = vrot.slane %v5521_v23, %v14183_v5  ;;  %v5560_v42 = vrot.slane %v5555_v48, %v14181_v3  ;;  %v5564_v43 = vrot.slane %v5555_v48, %v14183_v5 }
0x1080   : > { %5469 = vst [vmem:[#allocation2 + $0x280] sm:$0xff] %v15532_v2  ;;  %v5474_v58 = vpop.permute.xlu1 %5473  ;;  %v5408_v47 = vpop.permute.xlu0 %5407  ;;  %v5616_v19 = vpack.c.bf16 %v5396_v49, %v5394_v26  ;;  %v5615_v52 = vpack.c.bf16 %v5395_v25, %v5393_v41  ;;  %v5526_v26 = vrot.slane %v5521_v23, %v14181_v3 }
0x1081   : > { %v5411_v34 = vsel %vm5409_vm10, %v15469_v50, %v5408_v47  ;;  %v5413_v31 = vsel %vm5409_vm10, %v5408_v47, %v15469_v50 }
0x1082   : > { %v5429_v6 = vmul.f32 %v5420_v20, %v5413_v31  ;;  %v5430_v38 = vmul.f32 %v5424_v10, %v5411_v34  ;;  %5661 = vmatprep.subr.bf16.mxu0 %v5616_v19 }
0x1083   : > { %5662 = vmatpush1.bf16.msra.mxu0 %v5615_v52 }
0x1084   : > { %v5478_v1 = vpop.permute.xlu1 %5477  ;;  %v5544_v59 = vpop.permute.xlu0 %5543  ;;  %v5618_v27 = vpack.c.bf16 %v5430_v38, %v5428_v45  ;;  %v5617_v51 = vpack.c.bf16 %v5429_v6, %v5427_v37 }
0x1085   : > { %v5482_v39 = vsel %vm5481_vm11, %v5474_v58, %v5478_v1  ;;  %v5484_v50 = vsel %vm5481_vm11, %v5478_v1, %v5474_v58  ;;  %v12605_v1 = vld [vmem:[#allocation22] ss:$8 sps:$4 sm:$0xff]  }
0x1086   : > { %v5499_v60 = vmul.f32 %v5492_v33, %v5482_v39  ;;  %v5500_v24 = vmul.f32 %v5496_v53, %v5484_v50  ;;  %5663 = vmatprep.subr.bf16.mxu0 %v5618_v27  ;;  %v12608_v27 = vld [vmem:[#allocation22 + $0x14] ss:$8 sps:$4 sm:$0xff]  }
0x1087   : > { %5664 = vmatpush1.bf16.msra.mxu0 %v5617_v51  ;;  %v12610_v51 = vld [vmem:[#allocation22 + $0x10] ss:$8 sps:$4 sm:$0xff]  }
0x1088   : > { %5503 = vst [vmem:[#allocation2 + $0x300] sm:$0xff] %v5499_v60  ;;  %v5508_v9 = vpop.permute.xlu1 %5507  ;;  %v5446_v61 = vpop.permute.xlu0 %5445  ;;  %5665 = vmatprep.subr.bf16.mxu0 %v5620_v22 }
0x1089   : > { %v5449_v35 = vsel %vm5447_vm9, %v15471_v18, %v5446_v61  ;;  %v5451_v20 = vsel %vm5447_vm9, %v5446_v61, %v15471_v18 }
0x108a   : > { %v5467_v10 = vmul.f32 %v15505_v55, %v5449_v35  ;;  %v5468_v41 = vmul.f32 %v15508_v15, %v5451_v20 }
0x108b   : > { %5666 = vmatpush1.bf16.msra.mxu0 %v5619_v16 }
0x108c   : > { %5471 = vst [vmem:[#allocation2 + $0x2c0] sm:$0xff] %v5467_v10  ;;  %v5512_v36 = vpop.permute.xlu1 %5511  ;;  %v5480_v44 = vpop.permute.xlu0 %5479  ;;  %v5622_v22 = vpack.c.bf16 %v5468_v41, %v5466_v13  ;;  %v5621_v18 = vpack.c.bf16 %v5467_v10, %v15532_v2 }
0x108d   : > { %v5516_v56 = vsel %vm5515_vm12, %v5508_v9, %v5512_v36  ;;  %v5518_v55 = vsel %vm5515_vm12, %v5512_v36, %v5508_v9  ;;  %v5483_v15 = vsel %vm5481_vm11, %v15476_v30, %v5480_v44  ;;  %v5485_v54 = vsel %vm5481_vm11, %v5480_v44, %v15476_v30  ;;  %v5955_v36 = vld [vmem:[#allocation28 + $0x408] sm:$0xff] }
0x108e   : > { %v5533_v57 = vmul.f32 %v5526_v26, %v5516_v56  ;;  %v5534_v16 = vmul.f32 %v5530_v17, %v5518_v55  ;;  %v5501_v46 = vmul.f32 %v5492_v33, %v5483_v15  ;;  %v5502_v32 = vmul.f32 %v5496_v53, %v5485_v54  ;;  %5667 = vmatprep.subr.bf16.mxu0 %v5622_v22  ;;  %v5962_v56 = vld [vmem:[#allocation28 + $0x440] sm:$0xff] }
0x108f   : > { %5668 = vmatpush1.bf16.msra.mxu0 %v5621_v18  ;;  %v5959_v18 = vld [vmem:[#allocation28 + $0x428] sm:$0xff]  ;;  %v5966_v55 = vld [vmem:[#allocation28 + $0x460] sm:$0xff] }
0x1090   : > { %5537 = vst [vmem:[#allocation2 + $0x380] sm:$0xff] %v5533_v57  ;;  %5505 = vst [vmem:[#allocation2 + $0x340] sm:$0xff] %v5501_v46  ;;  %v5542_v62 = vpop.permute.xlu1 %5541  ;;  %v5514_v40 = vpop.permute.xlu0 %5513  ;;  %v5624_v4 = vpack.c.bf16 %v5502_v32, %v5500_v24  ;;  %v5623_v2 = vpack.c.bf16 %v5501_v46, %v5499_v60  ;;  %v11131_v15 = vcombine.low %v5955_v36, %v5959_v18  ;;  %v5967_v46 = vld [vmem:[#allocation28 + $0x468] sm:$0xff]  ;;  %v5970_v32 = vld [vmem:[#allocation28 + $0x480] sm:$0xff] }
0x1091   : > { %v5517_v13 = vsel %vm5515_vm12, %v15481_v14, %v5514_v40  ;;  %v5519_v30 = vsel %vm5515_vm12, %v5514_v40, %v15481_v14  ;;  %v11132_v54 = vcombine.high %v5955_v36, %v5959_v18  ;;  %v5971_v40 = vld [vmem:[#allocation28 + $0x488] sm:$0xff] }
0x1092   : > { %v5535_v25 = vmul.f32 %v5526_v26, %v5517_v13  ;;  %v5536_v49 = vmul.f32 %v5530_v17, %v5519_v30  ;;  %5669 = vmatprep.subr.bf16.mxu0 %v5624_v4  ;;  %v5954_v26 = vld [vmem:[#allocation28 + $0x400] sm:$0xff]  ;;  %v5975_v4 = vld [vmem:[#allocation28 + $0x4a8] sm:$0xff] }
0x1093   : > { %5670 = vmatpush1.bf16.msra.mxu0 %v5623_v2  ;;  %v5958_v17 = vld [vmem:[#allocation28 + $0x420] sm:$0xff]  ;;  %6763 = vmatprep.subr.bf16.mxu1 %v11132_v54  ;;  %v11137_v2 = vcombine.low %v5962_v56, %v5966_v55 }
0x1094   : > { %5539 = vst [vmem:[#allocation2 + $0x3c0] sm:$0xff] %v5535_v25  ;;  %v5546_v63 = vpop.permute.xlu1 %5545  ;;  %v5548_v58 = vpop.permute.xlu0 %5547  ;;  %v5626_v47 = vpack.c.bf16 %v5536_v49, %v5534_v16  ;;  %v5625_v19 = vpack.c.bf16 %v5535_v25, %v5533_v57  ;;  %v11129_v44 = vcombine.low %v5954_v26, %v5958_v17  ;;  %v11130_v22 = vcombine.high %v5954_v26, %v5958_v17  ;;  %v5963_v16 = vld [vmem:[#allocation28 + $0x448] sm:$0xff]  ;;  %v5978_v49 = vld [vmem:[#allocation28 + $0x4c0] sm:$0xff] }
0x1095   : > { %v5550_v52 = vsel %vm5549_vm13, %v5542_v62, %v5546_v63  ;;  %v5552_v34 = vsel %vm5549_vm13, %v5546_v63, %v5542_v62  ;;  %v5551_v31 = vsel %vm5549_vm13, %v5544_v59, %v5548_v58  ;;  %v5553_v33 = vsel %vm5549_vm13, %v5548_v58, %v5544_v59  ;;  %v5974_v62 = vld [vmem:[#allocation28 + $0x4a0] sm:$0xff]  ;;  %6764 = vmatpush1.bf16.msra.mxu1 %v11131_v15  ;;  %v5983_v63 = vld [vmem:[#allocation28 + $0x4e8] sm:$0xff] }
0x1096   : > { %v5567_v14 = vmul.f32 %v5560_v42, %v5550_v52  ;;  %v5568_v53 = vmul.f32 %v5564_v43, %v5552_v34  ;;  %v5569_v37 = vmul.f32 %v5560_v42, %v5551_v31  ;;  %v5570_v45 = vmul.f32 %v5564_v43, %v5553_v33  ;;  %5671 = vmatprep.subr.bf16.mxu0 %v5626_v47  ;;  %v5982_v42 = vld [vmem:[#allocation28 + $0x4e0] sm:$0xff]  ;;  %v5979_v43 = vld [vmem:[#allocation28 + $0x4c8] sm:$0xff] }
0x1097   : > { %5672 = vmatpush1.bf16.msra.mxu0 %v5625_v19  ;;  %v11138_v57 = vcombine.high %v5962_v56, %v5966_v55  ;;  %v11140_v48 = vcombine.high %v5963_v16, %v5967_v46  ;;  %v11139_v13 = vcombine.low %v5963_v16, %v5967_v46  ;;  %v11146_v30 = vcombine.high %v5970_v32, %v5974_v62  ;;  %v5986_v34 = vld [vmem:[#allocation28 + $0x500] sm:$0xff]  ;;  %v5987_v33 = vld [vmem:[#allocation28 + $0x508] sm:$0xff] }
0x1098   : > { %5571 = vst [vmem:[#allocation2 + $0x400] sm:$0xff] %v5567_v14  ;;  %5573 = vst [vmem:[#allocation2 + $0x440] sm:$0xff] %v5569_v37  ;;  %v5628_v6 = vpack.c.bf16 %v5570_v45, %v5568_v53  ;;  %v5627_v38 = vpack.c.bf16 %v5569_v37, %v5567_v14  ;;  %v11148_v25 = vcombine.high %v5971_v40, %v5975_v4  ;;  %v5990_v31 = vld [vmem:[#allocation28 + $0x520] sm:$0xff]  ;;  %v5991_v14 = vld [vmem:[#allocation28 + $0x528] sm:$0xff] }
0x1099   : > { %6765 = vmatprep.subr.bf16.mxu1 %v11140_v48  ;;  %v11145_v58 = vcombine.low %v5970_v32, %v5974_v62  ;;  %v11147_v47 = vcombine.low %v5971_v40, %v5975_v4  ;;  %v11154_v19 = vcombine.high %v5978_v49, %v5982_v42  ;;  %v11156_v52 = vcombine.high %v5979_v43, %v5983_v63 }
0x109a   : > { %5673 = vmatprep.subr.bf16.mxu0 %v5628_v6  ;;  %6766 = vmatpush1.bf16.msra.mxu1 %v11139_v13  ;;  %v11153_v53 = vcombine.low %v5978_v49, %v5982_v42  ;;  %v11155_v37 = vcombine.low %v5979_v43, %v5983_v63  ;;  %v11162_v45 = vcombine.high %v5986_v34, %v5990_v31  ;;  %v5995_v49 = vld [vmem:[#allocation28 + $0x548] sm:$0xff] }
0x109b   : > { %5674 = vmatpush1.bf16.msra.mxu0 %v5627_v38  ;;  %6767 = vmatprep.subr.bf16.mxu1 %v11148_v25  ;;  %v11164_v6 = vcombine.high %v5987_v33, %v5991_v14  ;;  %v11161_v38 = vcombine.low %v5986_v34, %v5990_v31  ;;  %v5998_v25 = vld [vmem:[#allocation28 + $0x560] sm:$0xff]  ;;  %v5999_v63 = vld [vmem:[#allocation28 + $0x568] sm:$0xff] }
0x109c   : > { %6722 = vmatprep.subr.bf16.mxu0 %v11130_v22  ;;  %v6003_v34 = vld [vmem:[#allocation28 + $0x588] sm:$0xff] }
0x109e   : > { %5690 = vmatmul.mubr.bf16.vlgmr.msra.gmra.mrb[100].mxu0 %v12605_v1  ;;  %6768 = vmatpush1.bf16.msra.mxu1 %v11147_v47  ;;  %v11163_v1 = vcombine.low %v5987_v33, %v5991_v14  ;;  %v11172_v47 = vcombine.high %v5995_v49, %v5999_v63  ;;  %v6007_v33 = vld [vmem:[#allocation28 + $0x5a8] sm:$0xff] }
0x109f   : > { %11128 = vmatprep.mubr.msk.bf16.mxu0 %vm1033_vm0, %v12608_v27  ;;  %6723 = vmatpush1.bf16.msra.mxu0 %v11129_v44  ;;  %vm10017_vm0 = vcmp.lt.s32.totalorder %v15474_v29, 97 }
0x10a0   : > { %6724 = vmatprep.subr.bf16.mxu0 %v11138_v57  ;;  %6769 = vmatprep.subr.bf16.mxu1 %v11156_v52  ;;  %v6006_v52 = vld [vmem:[#allocation28 + $0x5a0] sm:$0xff] }
0x10a2   : > { %6770 = vmatpush1.bf16.msra.mxu1 %v11155_v37  ;;  %v11180_v37 = vcombine.high %v6003_v34, %v6007_v33 }
0x10a3   : > { %6725 = vmatpush1.bf16.msra.mxu0 %v11137_v2  ;;  %6771 = vmatprep.subr.bf16.mxu1 %v11164_v6  ;;  %v6014_v6 = vld [vmem:[#allocation28 + $0x5e0] sm:$0xff] }
0x10a4   : > { %6726 = vmatprep.subr.bf16.mxu0 %v11146_v30  ;;  %v5994_v30 = vld [vmem:[#allocation28 + $0x540] sm:$0xff] }
0x10a5   : > { %v11169_v42 = vcombine.low %v5994_v30, %v5998_v25  ;;  %v11170_v43 = vcombine.high %v5994_v30, %v5998_v25  ;;  %v6042_v30 = vld [vmem:[#allocation28 + $0x6c0] sm:$0xff] }
0x10a6   : > { %5700 = vmatmul.mubr.bf16.gmra.mrb[104].mxu0 %v12610_v51  ;;  %6772 = vmatpush1.bf16.msra.mxu1 %v11163_v1  ;;  %v6046_v25 = vld [vmem:[#allocation28 + $0x6e0] sm:$0xff] }
0x10a7   : > { %6727 = vmatpush1.bf16.msra.mxu0 %v11145_v58  ;;  %v11171_v58 = vcombine.low %v5995_v49, %v5999_v63  ;;  %6773 = vmatprep.subr.bf16.mxu1 %v11172_v47  ;;  %v6043_v49 = vld [vmem:[#allocation28 + $0x6c8] sm:$0xff] }
0x10a8   : > { %6728 = vmatprep.subr.bf16.mxu0 %v11154_v19  ;;  %v6002_v19 = vld [vmem:[#allocation28 + $0x580] sm:$0xff] }
0x10a9   : > { %v11178_v31 = vcombine.high %v6002_v19, %v6006_v52  ;;  %v11177_v14 = vcombine.low %v6002_v19, %v6006_v52  ;;  %v6050_v19 = vld [vmem:[#allocation28 + $0x700] sm:$0xff] }
0x10aa   : > { %6774 = vmatpush1.bf16.msra.mxu1 %v11171_v58  ;;  %v11218_v58 = vcombine.high %v6042_v30, %v6046_v25  ;;  %v6054_v52 = vld [vmem:[#allocation28 + $0x720] sm:$0xff] }
0x10ab   : > { %6729 = vmatpush1.bf16.msra.mxu0 %v11153_v53  ;;  %v11179_v53 = vcombine.low %v6003_v34, %v6007_v33  ;;  %6775 = vmatprep.subr.bf16.mxu1 %v11180_v37  ;;  %v6051_v34 = vld [vmem:[#allocation28 + $0x708] sm:$0xff]  ;;  %v11217_v33 = vcombine.low %v6042_v30, %v6046_v25 }
0x10ac   : > { %6730 = vmatprep.subr.bf16.mxu0 %v11162_v45  ;;  %v6010_v45 = vld [vmem:[#allocation28 + $0x5c0] sm:$0xff] }
0x10ad   : > { %v11186_v1 = vcombine.high %v6010_v45, %v6014_v6 }
0x10ae   : > { %6776 = vmatpush1.bf16.msra.mxu1 %v11179_v53  ;;  %v11226_v53 = vcombine.high %v6050_v19, %v6054_v52 }
0x10af   : > { %6731 = vmatpush1.bf16.msra.mxu0 %v11161_v38  ;;  %v6011_v38 = vld [vmem:[#allocation28 + $0x5c8] sm:$0xff] }
0x10b0   : > { %6732 = vmatprep.subr.bf16.mxu0 %v11170_v43 }
0x10b3   : > { %6733 = vmatpush1.bf16.msra.mxu0 %v11169_v42  ;;  %v6047_v42 = vld [vmem:[#allocation28 + $0x6e8] sm:$0xff] }
0x10b4   : > { %6734 = vmatprep.subr.bf16.mxu0 %v11178_v31  ;;  %v11220_v47 = vcombine.high %v6043_v49, %v6047_v42  ;;  %v6055_v31 = vld [vmem:[#allocation28 + $0x728] sm:$0xff] }
0x10b5   : > { %v11228_v37 = vcombine.high %v6051_v34, %v6055_v31 }
0x10b7   : > { %6735 = vmatpush1.bf16.msra.mxu0 %v11177_v14  ;;  %v11219_v14 = vcombine.low %v6043_v49, %v6047_v42 }
0x10b8   : > { %6736 = vmatprep.subr.bf16.mxu0 %v11186_v1  ;;  %v6063_v1 = vld [vmem:[#allocation28 + $0x768] sm:$0xff] }
0x1171   : > { %v15595_v59 = vpop.f32.mrb[100].mxu0 }
0x1172   : > { %v15597_v39 = vpop.f32.mrb[101].mxu0 }
0x1173   : > { %v5710_v50 = vadd.f32 %v15597_v39, %v15595_v59  ;;  %v15601_v60 = vpop.f32.mrb[102].mxu0 }
0x1174   : > { %v15603_v24 = vpop.f32.mrb[103].mxu0 }
0x1175   : > { %v5713_v23 = vadd.f32 %v15603_v24, %v15601_v60  ;;  %5711 = vadd.xlane.f32.xlu1 %v5710_v50 }
0x1177   : > { %5714 = vadd.xlane.f32.xlu0 %v5713_v23 }
0x1179   : > { %v15607_v9 = vpop.f32.mrb[104].mxu0 }
0x117a   : > { %v15609_v61 = vpop.f32.mrb[105].mxu0 }
0x117b   : > { %v5716_v35 = vadd.f32 %v15609_v61, %v15607_v9  ;;  %v15613_v20 = vpop.f32.mrb[106].mxu0 }
0x117c   : > { %v15615_v10 = vpop.f32.mrb[107].mxu0 }
0x117d   : > { %v5719_v41 = vadd.f32 %v15615_v10, %v15613_v20  ;;  %5717 = vadd.xlane.f32.xlu0 %v5716_v35 }
0x117f   : > { %5720 = vadd.xlane.f32.xlu1 %v5719_v41 }
0x1202   : > { %v5712_v51 = vpop.xlane.xlu1 %5711 }
0x1204   : > { %v5715_v27 = vpop.xlane.xlu0 %5714 }
0x1205   : > { %v5722_v50 = vadd.f32 %v5715_v27, %v5712_v51  ;;  %v6015_v27 = vld [vmem:[#allocation28 + $0x5e8] sm:$0xff]  ;;  %v11185_v51 = vcombine.low %v6010_v45, %v6014_v6  ;;  %v6058_v45 = vld [vmem:[#allocation28 + $0x740] sm:$0xff] }
0x1206   : > { %v6062_v6 = vld [vmem:[#allocation28 + $0x760] sm:$0xff] }
0x1207   : > { %6737 = vmatpush1.bf16.msra.mxu0 %v11185_v51  ;;  %v11227_v51 = vcombine.low %v6051_v34, %v6055_v31 }
0x120a   : > { %v5718_v23 = vpop.xlane.xlu0 %5717 }
0x120b   : > { %v5723_v35 = vadd.f32 %v5722_v50, %v5718_v23  ;;  %v11187_v50 = vcombine.low %v6011_v38, %v6015_v27  ;;  %v11188_v23 = vcombine.high %v6011_v38, %v6015_v27  ;;  %v6059_v38 = vld [vmem:[#allocation28 + $0x748] sm:$0xff]  ;;  %v11225_v27 = vcombine.low %v6050_v19, %v6054_v52 }
0x120c   : > { %v5721_v41 = vpop.xlane.xlu1 %5720 }
0x120d   : > { %v5724_v26 = vadd.f32 %v5723_v35, %v5721_v41  ;;  %v6018_v35 = vld [vmem:[#allocation28 + $0x600] sm:$0xff]  ;;  %6777 = vmatprep.subr.bf16.mxu1 %v11188_v23  ;;  %v11236_v23 = vcombine.high %v6059_v38, %v6063_v1 }
0x120e   : > { %v6022_v41 = vld [vmem:[#allocation28 + $0x620] sm:$0xff]  ;;  %6778 = vmatpush1.bf16.msra.mxu1 %v11187_v50  ;;  %v11234_v50 = vcombine.high %v6058_v45, %v6062_v6 }
0x120f   : > { %v5725_v17 = vrot.slane %v5724_v26, 4 }
0x1211   : > { %v5726_v36 = vadd.f32 %v5725_v17, %v5724_v26  ;;  %v6019_v26 = vld [vmem:[#allocation28 + $0x608] sm:$0xff]  ;;  %v11193_v17 = vcombine.low %v6018_v35, %v6022_v41 }
0x1213   : > { %v5727_v44 = vrot.slane %v5726_v36, 2 }
0x1215   : > { %v5728_v22 = vadd.f32 %v5727_v44, %v5726_v36  ;;  %v11194_v36 = vcombine.high %v6018_v35, %v6022_v41  ;;  %v6023_v44 = vld [vmem:[#allocation28 + $0x628] sm:$0xff]  ;;  %v6066_v35 = vld [vmem:[#allocation28 + $0x780] sm:$0xff] }
0x1216   : > { %v6070_v41 = vld [vmem:[#allocation28 + $0x7a0] sm:$0xff] }
0x1217   : > { %v5729_v18 = vrot.slane %v5728_v22, 1  ;;  %6738 = vmatprep.subr.bf16.mxu0 %v11194_v36  ;;  %v11233_v36 = vcombine.low %v6058_v45, %v6062_v6 }
0x1218   : > { %6739 = vmatpush1.bf16.msra.mxu0 %v11193_v17  ;;  %v6071_v17 = vld [vmem:[#allocation28 + $0x7a8] sm:$0xff] }
0x1219   : > { %v5730_v56 = vadd.f32 %v5729_v18, %v5728_v22  ;;  %v6026_v22 = vld [vmem:[#allocation28 + $0x640] sm:$0xff] }
0x121a   : > { %v6030_v18 = vld [vmem:[#allocation28 + $0x660] sm:$0xff] }
0x121b   : > { %v5732_v55 = vmul.f32 0.00012207031, %v5730_v56  ;;  %v11195_v56 = vcombine.low %v6019_v26, %v6023_v44 }
0x121d   : > { %v15620_v15 = vsub.f32 %v15601_v60, %v5732_v55  ;;  %v15623_v54 = vsub.f32 %v15603_v24, %v5732_v55  ;;  %v15626_v57 = vsub.f32 %v15595_v59, %v5732_v55  ;;  %v15629_v16 = vsub.f32 %v15597_v39, %v5732_v55 }
0x121e   : > { %v15632_v46 = vsub.f32 %v15613_v20, %v5732_v55  ;;  %v15635_v32 = vsub.f32 %v15615_v10, %v5732_v55  ;;  %v15638_v48 = vsub.f32 %v15607_v9, %v5732_v55  ;;  %v15641_v60 = vsub.f32 %v15609_v61, %v5732_v55 }
0x121f   : > { %v5743_v24 = vmul.f32 %v15620_v15, %v15620_v15  ;;  %v5744_v59 = vmul.f32 %v15623_v54, %v15623_v54  ;;  %v5741_v39 = vmul.f32 %v15626_v57, %v15626_v57  ;;  %v5742_v20 = vmul.f32 %v15629_v16, %v15629_v16 }
0x1220   : > { %v5747_v10 = vmul.f32 %v15632_v46, %v15632_v46  ;;  %v5748_v9 = vmul.f32 %v15635_v32, %v15635_v32  ;;  %v5745_v40 = vmul.f32 %v15638_v48, %v15638_v48  ;;  %v5746_v4 = vmul.f32 %v15641_v60, %v15641_v60 }
0x1221   : > { %v5752_v61 = vadd.f32 %v5744_v59, %v5743_v24  ;;  %v5749_v62 = vadd.f32 %v5742_v20, %v5741_v39  ;;  %v11196_v55 = vcombine.high %v6019_v26, %v6023_v44  ;;  %v11202_v24 = vcombine.high %v6026_v22, %v6030_v18  ;;  %v6027_v59 = vld [vmem:[#allocation28 + $0x648] sm:$0xff]  ;;  %v15659_v44 = vld [vmem:[#allocation28 + $0x410] sm:$0xff] }
0x1222   : > { %v5758_v2 = vadd.f32 %v5748_v9, %v5747_v10  ;;  %v5755_v13 = vadd.f32 %v5746_v4, %v5745_v40  ;;  %v6031_v39 = vld [vmem:[#allocation28 + $0x668] sm:$0xff]  ;;  %v6034_v10 = vld [vmem:[#allocation28 + $0x680] sm:$0xff]  ;;  %v11201_v40 = vcombine.low %v6026_v22, %v6030_v18  ;;  %v15661_v22 = vld [vmem:[#allocation28 + $0x430] sm:$0xff] }
0x1223   : > { %5753 = vadd.xlane.f32.xlu1 %v5752_v61  ;;  %5750 = vadd.xlane.f32.xlu0 %v5749_v62  ;;  %v11204_v20 = vcombine.high %v6027_v59, %v6031_v39  ;;  %v6038_v9 = vld [vmem:[#allocation28 + $0x6a0] sm:$0xff]  ;;  %v6035_v61 = vld [vmem:[#allocation28 + $0x688] sm:$0xff]  ;;  %v11203_v4 = vcombine.low %v6027_v59, %v6031_v39  ;;  %v15663_v18 = vld [vmem:[#allocation28 + $0x418] sm:$0xff]  ;;  %v11134_v49 = vcombine.high %v15659_v44, %v15661_v22 }
0x1224   : > { %6779 = vmatprep.subr.bf16.mxu1 %v11196_v55  ;;  %v6039_v62 = vld [vmem:[#allocation28 + $0x6a8] sm:$0xff]  ;;  %6740 = vmatprep.subr.bf16.mxu0 %v11202_v24  ;;  %v11209_v43 = vcombine.low %v6034_v10, %v6038_v9  ;;  %v11242_v55 = vcombine.high %v6066_v35, %v6070_v41  ;;  %v11133_v24 = vcombine.low %v15659_v44, %v15661_v22  ;;  %v15667_v59 = vld [vmem:[#allocation28 + $0x438] sm:$0xff] }
0x1225   : > { %6780 = vmatpush1.bf16.msra.mxu1 %v11195_v56  ;;  %6741 = vmatpush1.bf16.msra.mxu0 %v11201_v40  ;;  %v11211_v63 = vcombine.low %v6035_v61, %v6039_v62  ;;  %v6067_v26 = vld [vmem:[#allocation28 + $0x788] sm:$0xff]  ;;  %v11235_v56 = vcombine.low %v6059_v38, %v6063_v1  ;;  %v11241_v40 = vcombine.low %v6066_v35, %v6070_v41  ;;  %v5800_v35 = vld [vmem:[#allocation26 + $0x18] sm:$0xff]  ;;  %v5799_v41 = vld [vmem:[#allocation26 + $0x10] sm:$0xff] }
0x1226   : > { %6781 = vmatprep.subr.bf16.mxu1 %v11204_v20  ;;  %v11244_v39 = vcombine.high %v6067_v26, %v6071_v17  ;;  %v6074_v20 = vld [vmem:[#allocation28 + $0x7c0] sm:$0xff]  ;;  %v11136_v42 = vcombine.high %v15663_v18, %v15667_v59 }
0x1227   : > { %5759 = vadd.xlane.f32.xlu1 %v5758_v2  ;;  %5756 = vadd.xlane.f32.xlu0 %v5755_v13  ;;  %v11210_v2 = vcombine.high %v6034_v10, %v6038_v9  ;;  %v11212_v13 = vcombine.high %v6035_v61, %v6039_v62  ;;  %v6078_v10 = vld [vmem:[#allocation28 + $0x7e0] sm:$0xff]  ;;  %v11135_v9 = vcombine.low %v15663_v18, %v15667_v59  ;;  %v6075_v61 = vld [vmem:[#allocation28 + $0x7c8] sm:$0xff]  ;;  %v5988_v59 = vld [vmem:[#allocation28 + $0x510] sm:$0xff] }
0x1228   : > { %v6079_v62 = vld [vmem:[#allocation28 + $0x7e8] sm:$0xff]  ;;  %v11249_v30 = vcombine.low %v6074_v20, %v6078_v10 }
0x1229   : > { %6782 = vmatpush1.bf16.msra.mxu1 %v11203_v4  ;;  %6742 = vmatprep.subr.bf16.mxu0 %v11210_v2  ;;  %v11243_v4 = vcombine.low %v6067_v26, %v6071_v17  ;;  %v11250_v2 = vcombine.high %v6074_v20, %v6078_v10  ;;  %v11251_v25 = vcombine.low %v6075_v61, %v6079_v62  ;;  %v5964_v20 = vld [vmem:[#allocation28 + $0x450] sm:$0xff] }
0x122a   : > { %6783 = vmatprep.subr.bf16.mxu1 %v11212_v13  ;;  %6743 = vmatpush1.bf16.msra.mxu0 %v11209_v43  ;;  %v11252_v13 = vcombine.high %v6075_v61, %v6079_v62  ;;  %v5968_v10 = vld [vmem:[#allocation28 + $0x470] sm:$0xff]  ;;  %v5965_v61 = vld [vmem:[#allocation28 + $0x458] sm:$0xff] }
0x122b   : > { %6744 = vmatprep.subr.bf16.mxu0 %v11218_v58  ;;  %v5969_v62 = vld [vmem:[#allocation28 + $0x478] sm:$0xff] }
0x122d   : > { %6784 = vmatpush1.bf16.msra.mxu1 %v11211_v63 }
0x122e   : > { %6785 = vmatprep.subr.bf16.mxu1 %v11220_v47  ;;  %6745 = vmatpush1.bf16.msra.mxu0 %v11217_v33 }
0x122f   : > { %6746 = vmatprep.subr.bf16.mxu0 %v11226_v53 }
0x1231   : > { %6786 = vmatpush1.bf16.msra.mxu1 %v11219_v14 }
0x1232   : > { %6787 = vmatprep.subr.bf16.mxu1 %v11228_v37  ;;  %6747 = vmatpush1.bf16.msra.mxu0 %v11225_v27  ;;  %v5784_v27 = vld [vmem:[#allocation25 + $0x18] sm:$0xff] }
0x1233   : > { %6748 = vmatprep.subr.bf16.mxu0 %v11234_v50 }
0x1235   : > { %6788 = vmatpush1.bf16.msra.mxu1 %v11227_v51  ;;  %v5783_v51 = vld [vmem:[#allocation25 + $0x10] sm:$0xff] }
0x1236   : > { %6789 = vmatprep.subr.bf16.mxu1 %v11236_v23  ;;  %6749 = vmatpush1.bf16.msra.mxu0 %v11233_v36 }
0x1237   : > { %6750 = vmatprep.subr.bf16.mxu0 %v11242_v55 }
0x1239   : > { %6790 = vmatpush1.bf16.msra.mxu1 %v11235_v56 }
0x123a   : > { %6791 = vmatprep.subr.bf16.mxu1 %v11244_v39  ;;  %6751 = vmatpush1.bf16.msra.mxu0 %v11241_v40 }
0x123b   : > { %6752 = vmatprep.subr.bf16.mxu0 %v11250_v2  ;;  %v5972_v2 = vld [vmem:[#allocation28 + $0x490] sm:$0xff] }
0x123d   : > { %6792 = vmatpush1.bf16.msra.mxu1 %v11243_v4 }
0x123e   : > { %6793 = vmatprep.subr.bf16.mxu1 %v11252_v13  ;;  %6753 = vmatpush1.bf16.msra.mxu0 %v11249_v30  ;;  %v5976_v13 = vld [vmem:[#allocation28 + $0x4b0] sm:$0xff]  ;;  %v5973_v30 = vld [vmem:[#allocation28 + $0x498] sm:$0xff] }
0x123f   : > { %6804 = vmatprep.subr.bf16.mxu0 %v11134_v49  ;;  %v11141_v49 = vcombine.low %v5964_v20, %v5968_v10  ;;  %v11149_v44 = vcombine.low %v5972_v2, %v5976_v13 }
0x1241   : > { %6794 = vmatpush1.bf16.msra.mxu1 %v11251_v25  ;;  %v5977_v25 = vld [vmem:[#allocation28 + $0x4b8] sm:$0xff] }
0x1242   : > { %6845 = vmatprep.subr.bf16.mxu1 %v11136_v42  ;;  %v11143_v42 = vcombine.low %v5965_v61, %v5969_v62  ;;  %v11151_v22 = vcombine.low %v5973_v30, %v5977_v25 }
0x12b0   : > { %v5754_v43 = vpop.xlane.xlu1 %5753  ;;  %v5751_v63 = vpop.xlane.xlu0 %5750 }
0x12b1   : > { %v5761_v58 = vadd.f32 %v5754_v43, %v5751_v63  ;;  %v11150_v43 = vcombine.high %v5972_v2, %v5976_v13  ;;  %v11152_v63 = vcombine.high %v5973_v30, %v5977_v25  ;;  %v6020_v30 = vld [vmem:[#allocation28 + $0x610] sm:$0xff] }
0x12b2   : > { %v6024_v25 = vld [vmem:[#allocation28 + $0x630] sm:$0xff] }
0x12b4   : > { %v5757_v47 = vpop.xlane.xlu0 %5756  ;;  %v5760_v52 = vpop.xlane.xlu1 %5759 }
0x12b5   : > { %v5762_v19 = vadd.f32 %v5761_v58, %v5757_v47  ;;  %v5980_v58 = vld [vmem:[#allocation28 + $0x4d0] sm:$0xff] }
0x12b6   : > { %v5984_v47 = vld [vmem:[#allocation28 + $0x4f0] sm:$0xff] }
0x12b7   : > { %v5763_v34 = vadd.f32 %v5762_v19, %v5760_v52  ;;  %v5981_v19 = vld [vmem:[#allocation28 + $0x4d8] sm:$0xff]  ;;  %v11158_v18 = vcombine.high %v5980_v58, %v5984_v47 }
0x12b8   : > { %v5985_v52 = vld [vmem:[#allocation28 + $0x4f8] sm:$0xff] }
0x12b9   : > { %v5764_v31 = vrot.slane %v5763_v34, 4 }
0x12bb   : > { %v5765_v33 = vadd.f32 %v5764_v31, %v5763_v34  ;;  %v5989_v34 = vld [vmem:[#allocation28 + $0x518] sm:$0xff] }
0x12bc   : > { %v5993_v31 = vld [vmem:[#allocation28 + $0x538] sm:$0xff] }
0x12bd   : > { %v5766_v14 = vrot.slane %v5765_v33, 2 }
0x12bf   : > { %v5767_v53 = vadd.f32 %v5766_v14, %v5765_v33  ;;  %v11157_v33 = vcombine.low %v5980_v58, %v5984_v47  ;;  %v11159_v14 = vcombine.low %v5981_v19, %v5985_v52  ;;  %v11198_v58 = vcombine.high %v6020_v30, %v6024_v25 }
0x12c1   : > { %v5768_v37 = vrot.slane %v5767_v53, 1 }
0x12c3   : > { %v5769_v45 = vadd.f32 %v5768_v37, %v5767_v53  ;;  %v11168_v37 = vcombine.high %v5989_v34, %v5993_v31 }
0x12c5   : > { %v5770_v6 = vmul.f32 0.00012207031, %v5769_v45  ;;  %v5996_v45 = vld [vmem:[#allocation28 + $0x550] sm:$0xff] }
0x12c7   : > { %v5771_v38 = vadd.f32 1e-05, %v5770_v6  ;;  %v6000_v6 = vld [vmem:[#allocation28 + $0x570] sm:$0xff] }
0x12c9   : > { %12618 = vrsqrt.f32 %v5771_v38  ;;  %v5997_v38 = vld [vmem:[#allocation28 + $0x558] sm:$0xff] }
0x12d3   : > { %v15675_v1 = vpop.eup %12618 }
0x12d4   : > { %v5776_v50 = vmul.f32 %v15675_v1, %v15623_v54  ;;  %v5775_v23 = vmul.f32 %v15675_v1, %v15620_v15  ;;  %v11142_v54 = vcombine.high %v5964_v20, %v5968_v10  ;;  %v11144_v15 = vcombine.high %v5965_v61, %v5969_v62  ;;  %v6012_v10 = vld [vmem:[#allocation28 + $0x5d0] sm:$0xff]  ;;  %v6013_v62 = vld [vmem:[#allocation28 + $0x5d8] sm:$0xff] }
0x12d5   : > { %v6016_v61 = vld [vmem:[#allocation28 + $0x5f0] sm:$0xff] }
0x12d6   : > { %v5792_v26 = vmul.f32 %v5784_v27, %v5776_v50  ;;  %v5791_v17 = vmul.f32 %v5783_v51, %v5775_v23  ;;  %v6001_v27 = vld [vmem:[#allocation28 + $0x578] sm:$0xff]  ;;  %v11167_v50 = vcombine.low %v5989_v34, %v5993_v31  ;;  %v11174_v23 = vcombine.high %v5996_v45, %v6000_v6  ;;  %v6036_v34 = vld [vmem:[#allocation28 + $0x690] sm:$0xff] }
0x12d7   : > { %v6040_v31 = vld [vmem:[#allocation28 + $0x6b0] sm:$0xff] }
0x12d8   : > { %v5808_v36 = vadd.f32 %v5800_v35, %v5792_v26  ;;  %v5807_v56 = vadd.f32 %v5799_v41, %v5791_v17  ;;  %v11176_v35 = vcombine.high %v5997_v38, %v6001_v27  ;;  %v6004_v41 = vld [vmem:[#allocation28 + $0x590] sm:$0xff]  ;;  %v6005_v17 = vld [vmem:[#allocation28 + $0x598] sm:$0xff] }
0x12d9   : > { %v6008_v26 = vld [vmem:[#allocation28 + $0x5b0] sm:$0xff] }
0x12da   : > { %v5816_v55 = vmax.f32 %v5808_v36, 0.0  ;;  %v5815_v39 = vmax.f32 %v5807_v56, 0.0  ;;  %v6009_v36 = vld [vmem:[#allocation28 + $0x5b8] sm:$0xff]  ;;  %v11173_v56 = vcombine.low %v5996_v45, %v6000_v6  ;;  %v11181_v2 = vcombine.low %v6004_v41, %v6008_v26 }
0x12db   : > { %v11184_v20 = vcombine.high %v6005_v17, %v6009_v36  ;;  %v11214_v45 = vcombine.high %v6036_v34, %v6040_v31 }
0x12dc   : > { %v5952_v40 = vpack.c.bf16 %v5816_v55, %v5816_v55  ;;  %v15681_v4 = vpack.c.bf16 %v5815_v39, %v5815_v39  ;;  %v11175_v55 = vcombine.low %v5997_v38, %v6001_v27  ;;  %v11182_v39 = vcombine.high %v6004_v41, %v6008_v26  ;;  %v6044_v38 = vld [vmem:[#allocation28 + $0x6d0] sm:$0xff] }
0x12dd   : > { %v6048_v27 = vld [vmem:[#allocation28 + $0x6f0] sm:$0xff] }
0x12de   : > { %6754 = vmatprep.mubr.bf16.mxu0 %v5952_v40  ;;  %6795 = vmatprep.mubr.bf16.mxu1 %v5952_v40  ;;  %v11222_v41 = vcombine.high %v6044_v38, %v6048_v27 }
0x12df   : > { %6755 = vmatmul.mubr.bf16.vlgmr.msra.gmra.mrb[108].mxu0 %v15681_v4  ;;  %6796 = vmatmul.mubr.bf16.vlgmr.msra.gmra.mrb[92].mxu1 %v15681_v4 }
0x12e0   : > { %6805 = vmatpush1.bf16.msra.mxu0 %v11133_v24  ;;  %6846 = vmatpush1.bf16.msra.mxu1 %v11135_v9  ;;  %v11160_v24 = vcombine.high %v5981_v19, %v5985_v52  ;;  %v5992_v9 = vld [vmem:[#allocation28 + $0x530] sm:$0xff] }
0x12e1   : > { %6836 = vmatprep.mubr.bf16.mxu0 %v5952_v40  ;;  %6877 = vmatprep.mubr.bf16.mxu1 %v5952_v40  ;;  %v11166_v53 = vcombine.high %v5988_v59, %v5992_v9  ;;  %v11165_v51 = vcombine.low %v5988_v59, %v5992_v9  ;;  %v6017_v40 = vld [vmem:[#allocation28 + $0x5f8] sm:$0xff]  ;;  %v6028_v19 = vld [vmem:[#allocation28 + $0x650] sm:$0xff] }
0x12e2   : > { %6806 = vmatprep.subr.bf16.mxu0 %v11142_v54  ;;  %6847 = vmatprep.subr.bf16.mxu1 %v11144_v15  ;;  %v11183_v54 = vcombine.low %v6005_v17, %v6009_v36  ;;  %v11190_v15 = vcombine.high %v6012_v10, %v6016_v61  ;;  %v11192_v13 = vcombine.high %v6013_v62, %v6017_v40  ;;  %v6032_v52 = vld [vmem:[#allocation28 + $0x670] sm:$0xff] }
0x12e3   : > { %v11206_v59 = vcombine.high %v6028_v19, %v6032_v52  ;;  %v6052_v17 = vld [vmem:[#allocation28 + $0x710] sm:$0xff] }
0x12e4   : > { %6807 = vmatpush1.bf16.msra.mxu0 %v11141_v49  ;;  %6848 = vmatpush1.bf16.msra.mxu1 %v11143_v42  ;;  %v6021_v49 = vld [vmem:[#allocation28 + $0x618] sm:$0xff]  ;;  %v6056_v36 = vld [vmem:[#allocation28 + $0x730] sm:$0xff] }
0x12e5   : > { %6808 = vmatprep.subr.bf16.mxu0 %v11150_v43  ;;  %6849 = vmatprep.subr.bf16.mxu1 %v11152_v63  ;;  %v6025_v42 = vld [vmem:[#allocation28 + $0x638] sm:$0xff]  ;;  %v11189_v43 = vcombine.low %v6012_v10, %v6016_v61  ;;  %v11191_v63 = vcombine.low %v6013_v62, %v6017_v40  ;;  %v11230_v10 = vcombine.high %v6052_v17, %v6056_v36  ;;  %v6060_v62 = vld [vmem:[#allocation28 + $0x750] sm:$0xff] }
0x12e6   : > { %v11200_v47 = vcombine.high %v6021_v49, %v6025_v42  ;;  %v6064_v40 = vld [vmem:[#allocation28 + $0x770] sm:$0xff] }
0x12e8   : > { %6809 = vmatpush1.bf16.msra.mxu0 %v11149_v44  ;;  %6850 = vmatpush1.bf16.msra.mxu1 %v11151_v22  ;;  %v6029_v44 = vld [vmem:[#allocation28 + $0x658] sm:$0xff] }
0x12e9   : > { %6810 = vmatprep.subr.bf16.mxu0 %v11158_v18  ;;  %6851 = vmatprep.subr.bf16.mxu1 %v11160_v24  ;;  %v6033_v22 = vld [vmem:[#allocation28 + $0x678] sm:$0xff]  ;;  %v11197_v18 = vcombine.low %v6020_v30, %v6024_v25  ;;  %v11199_v24 = vcombine.low %v6021_v49, %v6025_v42  ;;  %v11238_v30 = vcombine.high %v6060_v62, %v6064_v40  ;;  %v6068_v49 = vld [vmem:[#allocation28 + $0x790] sm:$0xff] }
0x12ea   : > { %v11208_v9 = vcombine.high %v6029_v44, %v6033_v22  ;;  %v6072_v42 = vld [vmem:[#allocation28 + $0x7b0] sm:$0xff] }
0x12ec   : > { %6811 = vmatpush1.bf16.msra.mxu0 %v11157_v33  ;;  %6852 = vmatpush1.bf16.msra.mxu1 %v11159_v14  ;;  %v6037_v33 = vld [vmem:[#allocation28 + $0x698] sm:$0xff] }
0x12ed   : > { %6812 = vmatprep.subr.bf16.mxu0 %v11166_v53  ;;  %6853 = vmatprep.subr.bf16.mxu1 %v11168_v37  ;;  %v6041_v14 = vld [vmem:[#allocation28 + $0x6b8] sm:$0xff]  ;;  %v11205_v53 = vcombine.low %v6028_v19, %v6032_v52  ;;  %v11207_v37 = vcombine.low %v6029_v44, %v6033_v22  ;;  %v11237_v19 = vcombine.low %v6060_v62, %v6064_v40  ;;  %v5839_v62 = vld [vmem:[#allocation28 + $0x80] sm:$0xff] }
0x12ee   : > { %v11216_v6 = vcombine.high %v6037_v33, %v6041_v14  ;;  %v11246_v44 = vcombine.high %v6068_v49, %v6072_v42  ;;  %v5843_v40 = vld [vmem:[#allocation28 + $0xa0] sm:$0xff] }
0x12f0   : > { %6813 = vmatpush1.bf16.msra.mxu0 %v11165_v51  ;;  %6854 = vmatpush1.bf16.msra.mxu1 %v11167_v50  ;;  %v6045_v51 = vld [vmem:[#allocation28 + $0x6d8] sm:$0xff] }
0x12f1   : > { %6814 = vmatprep.subr.bf16.mxu0 %v11174_v23  ;;  %6855 = vmatprep.subr.bf16.mxu1 %v11176_v35  ;;  %v6049_v50 = vld [vmem:[#allocation28 + $0x6f8] sm:$0xff]  ;;  %v11213_v23 = vcombine.low %v6036_v34, %v6040_v31  ;;  %v11215_v35 = vcombine.low %v6037_v33, %v6041_v14  ;;  %v5798_v31 = vld [vmem:[#allocation26 + $0x8] sm:$0xff]  ;;  %v11245_v33 = vcombine.low %v6068_v49, %v6072_v42  ;;  %v5847_v49 = vld [vmem:[#allocation28 + $0xc0] sm:$0xff] }
0x12f2   : > { %v11224_v26 = vcombine.high %v6045_v51, %v6049_v50  ;;  %v5851_v42 = vld [vmem:[#allocation28 + $0xe0] sm:$0xff] }
0x12f4   : > { %6815 = vmatpush1.bf16.msra.mxu0 %v11173_v56  ;;  %6856 = vmatpush1.bf16.msra.mxu1 %v11175_v55  ;;  %v6053_v56 = vld [vmem:[#allocation28 + $0x718] sm:$0xff] }
0x12f5   : > { %6816 = vmatprep.subr.bf16.mxu0 %v11182_v39  ;;  %6857 = vmatprep.subr.bf16.mxu1 %v11184_v20  ;;  %v6057_v55 = vld [vmem:[#allocation28 + $0x738] sm:$0xff]  ;;  %v11221_v39 = vcombine.low %v6044_v38, %v6048_v27  ;;  %v11223_v20 = vcombine.low %v6045_v51, %v6049_v50  ;;  %v5828_v38 = vld [vmem:[#allocation28 + $0x28] sm:$0xff] }
0x12f6   : > { %v11232_v61 = vcombine.high %v6053_v56, %v6057_v55 }
0x12f8   : > { %6817 = vmatpush1.bf16.msra.mxu0 %v11181_v2  ;;  %6858 = vmatpush1.bf16.msra.mxu1 %v11183_v54  ;;  %v6061_v2 = vld [vmem:[#allocation28 + $0x758] sm:$0xff] }
0x12f9   : > { %6818 = vmatprep.subr.bf16.mxu0 %v11190_v15  ;;  %6859 = vmatprep.subr.bf16.mxu1 %v11192_v13  ;;  %v6065_v54 = vld [vmem:[#allocation28 + $0x778] sm:$0xff]  ;;  %v11229_v15 = vcombine.low %v6052_v17, %v6056_v36  ;;  %v11231_v13 = vcombine.low %v6053_v56, %v6057_v55  ;;  %v5835_v17 = vld [vmem:[#allocation28 + $0x60] sm:$0xff]  ;;  %v5832_v36 = vld [vmem:[#allocation28 + $0x48] sm:$0xff] }
0x12fa   : > { %v11240_v25 = vcombine.high %v6061_v2, %v6065_v54  ;;  %v11239_v52 = vcombine.low %v6061_v2, %v6065_v54  ;;  %v5836_v56 = vld [vmem:[#allocation28 + $0x68] sm:$0xff] }
0x12fb   : > { %v5840_v2 = vld [vmem:[#allocation28 + $0x88] sm:$0xff] }
0x12fc   : > { %6819 = vmatpush1.bf16.msra.mxu0 %v11189_v43  ;;  %6860 = vmatpush1.bf16.msra.mxu1 %v11191_v63  ;;  %v6069_v43 = vld [vmem:[#allocation28 + $0x798] sm:$0xff]  ;;  %v5844_v54 = vld [vmem:[#allocation28 + $0xa8] sm:$0xff] }
0x12fd   : > { %6820 = vmatprep.subr.bf16.mxu0 %v11198_v58  ;;  %6861 = vmatprep.subr.bf16.mxu1 %v11200_v47  ;;  %v6073_v63 = vld [vmem:[#allocation28 + $0x7b8] sm:$0xff]  ;;  %v5774_v58 = vmul.f32 %v15675_v1, %v15629_v16  ;;  %v5782_v47 = vld [vmem:[#allocation25 + $0x8] sm:$0xff] }
0x12fe   : > { %v11248_v22 = vcombine.high %v6069_v43, %v6073_v63  ;;  %v11247_v14 = vcombine.low %v6069_v43, %v6073_v63  ;;  %v5848_v43 = vld [vmem:[#allocation28 + $0xc8] sm:$0xff] }
0x12ff   : > { %v5790_v34 = vmul.f32 %v5782_v47, %v5774_v58  ;;  %v5852_v63 = vld [vmem:[#allocation28 + $0xe8] sm:$0xff]  ;;  %v11275_v58 = vcombine.low %v5840_v2, %v5844_v54  ;;  %v11282_v47 = vcombine.high %v5847_v49, %v5851_v42 }
0x1300   : > { %6821 = vmatpush1.bf16.msra.mxu0 %v11197_v18  ;;  %6862 = vmatpush1.bf16.msra.mxu1 %v11199_v24  ;;  %v6076_v18 = vld [vmem:[#allocation28 + $0x7d0] sm:$0xff] }
0x1301   : > { %6822 = vmatprep.subr.bf16.mxu0 %v11206_v59  ;;  %6863 = vmatprep.subr.bf16.mxu1 %v11208_v9  ;;  %v6080_v24 = vld [vmem:[#allocation28 + $0x7f0] sm:$0xff]  ;;  %v6077_v59 = vld [vmem:[#allocation28 + $0x7d8] sm:$0xff]  ;;  %v5806_v27 = vadd.f32 %v5798_v31, %v5790_v34  ;;  %v5863_v31 = vld [vmem:[#allocation28 + $0x140] sm:$0xff] }
0x1302   : > { %v6081_v9 = vld [vmem:[#allocation28 + $0x7f8] sm:$0xff]  ;;  %v11254_v16 = vcombine.high %v6076_v18, %v6080_v24  ;;  %v11253_v51 = vcombine.low %v6076_v18, %v6080_v24  ;;  %v5860_v18 = vld [vmem:[#allocation28 + $0x128] sm:$0xff]  ;;  %v11281_v24 = vcombine.low %v5847_v49, %v5851_v42  ;;  %v5895_v42 = vld [vmem:[#allocation28 + $0x240] sm:$0xff] }
0x1303   : > { %v11255_v50 = vcombine.low %v6077_v59, %v6081_v9 }
0x1304   : > { %6823 = vmatpush1.bf16.msra.mxu0 %v11205_v53  ;;  %6864 = vmatpush1.bf16.msra.mxu1 %v11207_v37  ;;  %v11256_v53 = vcombine.high %v6077_v59, %v6081_v9  ;;  %v5823_v37 = vld [vmem:[#allocation28] sm:$0xff]  ;;  %v11283_v59 = vcombine.low %v5848_v43, %v5852_v63 }
0x1305   : > { %6824 = vmatprep.subr.bf16.mxu0 %v11214_v45  ;;  %6865 = vmatprep.subr.bf16.mxu1 %v11216_v6  ;;  %v5827_v45 = vld [vmem:[#allocation28 + $0x20] sm:$0xff]  ;;  %v5824_v6 = vld [vmem:[#allocation28 + $0x8] sm:$0xff] }
0x1306   : > { %v11257_v55 = vcombine.low %v5823_v37, %v5827_v45 }
0x1308   : > { %6825 = vmatpush1.bf16.msra.mxu0 %v11213_v23  ;;  %6866 = vmatpush1.bf16.msra.mxu1 %v11215_v35  ;;  %v11258_v23 = vcombine.high %v5823_v37, %v5827_v45  ;;  %v11260_v35 = vcombine.high %v5824_v6, %v5828_v38 }
0x1309   : > { %6826 = vmatprep.subr.bf16.mxu0 %v11222_v41  ;;  %6867 = vmatprep.subr.bf16.mxu1 %v11224_v26  ;;  %v5814_v41 = vmax.f32 %v5806_v27, 0.0  ;;  %v5831_v26 = vld [vmem:[#allocation28 + $0x40] sm:$0xff] }
0x130a   : > { %v5875_v27 = vld [vmem:[#allocation28 + $0x1a0] sm:$0xff] }
0x130c   : > { %6827 = vmatpush1.bf16.msra.mxu0 %v11221_v39  ;;  %6868 = vmatpush1.bf16.msra.mxu1 %v11223_v20  ;;  %v11259_v39 = vcombine.low %v5824_v6, %v5828_v38  ;;  %v15693_v20 = vpack.c.bf16 %v5814_v41, %v5814_v41  ;;  %v5871_v38 = vld [vmem:[#allocation28 + $0x180] sm:$0xff] }
0x130d   : > { %6828 = vmatprep.subr.bf16.mxu0 %v11230_v10  ;;  %6869 = vmatprep.subr.bf16.mxu1 %v11232_v61  ;;  %v11266_v10 = vcombine.high %v5831_v26, %v5835_v17  ;;  %v11268_v61 = vcombine.high %v5832_v36, %v5836_v56  ;;  %v11306_v41 = vcombine.high %v5871_v38, %v5875_v27 }
0x1310   : > { %6829 = vmatpush1.bf16.msra.mxu0 %v11229_v15  ;;  %6870 = vmatpush1.bf16.msra.mxu1 %v11231_v13  ;;  %v11265_v15 = vcombine.low %v5831_v26, %v5835_v17  ;;  %v11267_v13 = vcombine.low %v5832_v36, %v5836_v56  ;;  %v5879_v17 = vld [vmem:[#allocation28 + $0x1c0] sm:$0xff]  ;;  %v5880_v56 = vld [vmem:[#allocation28 + $0x1c8] sm:$0xff] }
0x1311   : > { %6830 = vmatprep.subr.bf16.mxu0 %v11238_v30  ;;  %6871 = vmatprep.subr.bf16.mxu1 %v11240_v25  ;;  %v11274_v30 = vcombine.high %v5839_v62, %v5843_v40  ;;  %v11276_v25 = vcombine.high %v5840_v2, %v5844_v54  ;;  %v5883_v36 = vld [vmem:[#allocation28 + $0x1e0] sm:$0xff]  ;;  %v5888_v54 = vld [vmem:[#allocation28 + $0x208] sm:$0xff] }
0x1312   : > { %v5891_v2 = vld [vmem:[#allocation28 + $0x220] sm:$0xff] }
0x1314   : > { %6831 = vmatpush1.bf16.msra.mxu0 %v11237_v19  ;;  %6872 = vmatpush1.bf16.msra.mxu1 %v11239_v52  ;;  %v11284_v19 = vcombine.high %v5848_v43, %v5852_v63  ;;  %v5855_v52 = vld [vmem:[#allocation28 + $0x100] sm:$0xff]  ;;  %v5896_v63 = vld [vmem:[#allocation28 + $0x248] sm:$0xff] }
0x1315   : > { %6832 = vmatprep.subr.bf16.mxu0 %v11246_v44  ;;  %6873 = vmatprep.subr.bf16.mxu1 %v11248_v22  ;;  %v5859_v44 = vld [vmem:[#allocation28 + $0x120] sm:$0xff]  ;;  %v5856_v22 = vld [vmem:[#allocation28 + $0x108] sm:$0xff] }
0x1316   : > { %v11290_v9 = vcombine.high %v5855_v52, %v5859_v44  ;;  %v11292_v34 = vcombine.high %v5856_v22, %v5860_v18  ;;  %v11291_v37 = vcombine.low %v5856_v22, %v5860_v18  ;;  %v5899_v43 = vld [vmem:[#allocation28 + $0x260] sm:$0xff]  ;;  %v5904_v18 = vld [vmem:[#allocation28 + $0x288] sm:$0xff] }
0x1317   : > { %v5907_v22 = vld [vmem:[#allocation28 + $0x2a0] sm:$0xff] }
0x1318   : > { %6833 = vmatpush1.bf16.msra.mxu0 %v11245_v33  ;;  %6874 = vmatpush1.bf16.msra.mxu1 %v11247_v14  ;;  %v5867_v33 = vld [vmem:[#allocation28 + $0x160] sm:$0xff]  ;;  %v5864_v14 = vld [vmem:[#allocation28 + $0x148] sm:$0xff] }
0x1319   : > { %6834 = vmatprep.subr.bf16.mxu0 %v11254_v16  ;;  %6875 = vmatprep.subr.bf16.mxu1 %v11256_v53  ;;  %v5868_v16 = vld [vmem:[#allocation28 + $0x168] sm:$0xff]  ;;  %v11289_v53 = vcombine.low %v5855_v52, %v5859_v44  ;;  %v11298_v45 = vcombine.high %v5863_v31, %v5867_v33  ;;  %v5903_v44 = vld [vmem:[#allocation28 + $0x280] sm:$0xff] }
0x131a   : > { %v11300_v6 = vcombine.high %v5864_v14, %v5868_v16 }
0x131c   : > { %6835 = vmatpush1.bf16.msra.mxu0 %v11253_v51  ;;  %6876 = vmatpush1.bf16.msra.mxu1 %v11255_v50  ;;  %v5872_v51 = vld [vmem:[#allocation28 + $0x188] sm:$0xff] }
0x131d   : > { %7526 = vmatprep.subr.bf16.mxu0 %v11258_v23  ;;  %7567 = vmatprep.subr.bf16.mxu1 %v11260_v35  ;;  %v5876_v50 = vld [vmem:[#allocation28 + $0x1a8] sm:$0xff]  ;;  %v11297_v23 = vcombine.low %v5863_v31, %v5867_v33  ;;  %v11299_v35 = vcombine.low %v5864_v14, %v5868_v16  ;;  %v5911_v33 = vld [vmem:[#allocation28 + $0x2c0] sm:$0xff] }
0x131e   : > { %v11308_v26 = vcombine.high %v5872_v51, %v5876_v50  ;;  %v5915_v14 = vld [vmem:[#allocation28 + $0x2e0] sm:$0xff]  ;;  %v5912_v16 = vld [vmem:[#allocation28 + $0x2c8] sm:$0xff] }
0x131f   : > { %6837 = vmatmul.mubr.bf16.vlgmr.msra.gmra.mrb[112].mxu0 %v15681_v4  ;;  %6878 = vmatmul.mubr.bf16.vlgmr.msra.gmra.mrb[96].mxu1 %v15681_v4  ;;  %v11273_v4 = vcombine.low %v5839_v62, %v5843_v40  ;;  %v5887_v40 = vld [vmem:[#allocation28 + $0x200] sm:$0xff] }
0x1320   : > { %7527 = vmatpush1.bf16.msra.mxu0 %v11257_v55  ;;  %7558 = vmatprep.mubr.bf16.mxu0 %v15693_v20  ;;  %v5884_v55 = vld [vmem:[#allocation28 + $0x1e8] sm:$0xff] }
0x1321   : > { %7568 = vmatpush1.bf16.msra.mxu1 %v11259_v39  ;;  %7599 = vmatprep.mubr.bf16.mxu1 %v15693_v20  ;;  %v11305_v39 = vcombine.low %v5871_v38, %v5875_v27  ;;  %v11316_v62 = vcombine.high %v5880_v56, %v5884_v55  ;;  %v5919_v27 = vld [vmem:[#allocation28 + $0x300] sm:$0xff] }
0x1322   : > { %7528 = vmatprep.subr.bf16.mxu0 %v11266_v10  ;;  %7569 = vmatprep.subr.bf16.mxu1 %v11268_v61  ;;  %v11307_v10 = vcombine.low %v5872_v51, %v5876_v50  ;;  %v11314_v61 = vcombine.high %v5879_v17, %v5883_v36  ;;  %v5923_v51 = vld [vmem:[#allocation28 + $0x320] sm:$0xff]  ;;  %v5920_v50 = vld [vmem:[#allocation28 + $0x308] sm:$0xff] }
0x1324   : > { %7529 = vmatpush1.bf16.msra.mxu0 %v11265_v15  ;;  %v5892_v15 = vld [vmem:[#allocation28 + $0x228] sm:$0xff] }
0x1325   : > { %7570 = vmatpush1.bf16.msra.mxu1 %v11267_v13  ;;  %7530 = vmatprep.subr.bf16.mxu0 %v11274_v30  ;;  %v11313_v13 = vcombine.low %v5879_v17, %v5883_v36  ;;  %v11315_v30 = vcombine.low %v5880_v56, %v5884_v55  ;;  %v11324_v49 = vcombine.high %v5888_v54, %v5892_v15  ;;  %v5927_v36 = vld [vmem:[#allocation28 + $0x340] sm:$0xff]  ;;  %v5928_v55 = vld [vmem:[#allocation28 + $0x348] sm:$0xff] }
0x1326   : > { %7571 = vmatprep.subr.bf16.mxu1 %v11276_v25  ;;  %v11322_v25 = vcombine.high %v5887_v40, %v5891_v2  ;;  %v5931_v56 = vld [vmem:[#allocation28 + $0x360] sm:$0xff] }
0x1328   : > { %7531 = vmatpush1.bf16.msra.mxu0 %v11273_v4  ;;  %v5900_v4 = vld [vmem:[#allocation28 + $0x268] sm:$0xff] }
0x1329   : > { %7572 = vmatpush1.bf16.msra.mxu1 %v11275_v58  ;;  %7532 = vmatprep.subr.bf16.mxu0 %v11282_v47  ;;  %v11321_v58 = vcombine.low %v5887_v40, %v5891_v2  ;;  %v11323_v47 = vcombine.low %v5888_v54, %v5892_v15  ;;  %v11332_v52 = vcombine.high %v5896_v63, %v5900_v4  ;;  %v5935_v54 = vld [vmem:[#allocation28 + $0x380] sm:$0xff] }
0x132a   : > { %7573 = vmatprep.subr.bf16.mxu1 %v11284_v19  ;;  %v11330_v19 = vcombine.high %v5895_v42, %v5899_v43  ;;  %v5773_v40 = vmul.f32 %v15675_v1, %v15626_v57  ;;  %v5939_v15 = vld [vmem:[#allocation28 + $0x3a0] sm:$0xff]  ;;  %v5944_v57 = vld [vmem:[#allocation28 + $0x3c8] sm:$0xff] }
0x132c   : > { %7533 = vmatpush1.bf16.msra.mxu0 %v11281_v24  ;;  %v5908_v24 = vld [vmem:[#allocation28 + $0x2a8] sm:$0xff] }
0x132d   : > { %7574 = vmatpush1.bf16.msra.mxu1 %v11283_v59  ;;  %7534 = vmatprep.subr.bf16.mxu0 %v11290_v9  ;;  %v11329_v59 = vcombine.low %v5895_v42, %v5899_v43  ;;  %v11331_v9 = vcombine.low %v5896_v63, %v5900_v4  ;;  %v11340_v31 = vcombine.high %v5904_v18, %v5908_v24 }
0x132e   : > { %7575 = vmatprep.subr.bf16.mxu1 %v11292_v34  ;;  %v11338_v34 = vcombine.high %v5903_v44, %v5907_v22  ;;  %v11370_v43 = vcombine.high %v5935_v54, %v5939_v15 }
0x1330   : > { %7535 = vmatpush1.bf16.msra.mxu0 %v11289_v53  ;;  %v5916_v53 = vld [vmem:[#allocation28 + $0x2e8] sm:$0xff] }
0x1331   : > { %7576 = vmatpush1.bf16.msra.mxu1 %v11291_v37  ;;  %7536 = vmatprep.subr.bf16.mxu0 %v11298_v45  ;;  %v11337_v37 = vcombine.low %v5903_v44, %v5907_v22  ;;  %v11339_v45 = vcombine.low %v5904_v18, %v5908_v24  ;;  %v11348_v38 = vcombine.high %v5912_v16, %v5916_v53 }
0x1332   : > { %7577 = vmatprep.subr.bf16.mxu1 %v11300_v6  ;;  %v11346_v6 = vcombine.high %v5911_v33, %v5915_v14  ;;  %v11369_v44 = vcombine.low %v5935_v54, %v5939_v15  ;;  %v5850_v54 = vld [vmem:[#allocation28 + $0xd8] sm:$0xff] }
0x1333   : > { %v5854_v15 = vld [vmem:[#allocation28 + $0xf8] sm:$0xff] }
0x1334   : > { %7537 = vmatpush1.bf16.msra.mxu0 %v11297_v23  ;;  %v5924_v23 = vld [vmem:[#allocation28 + $0x328] sm:$0xff] }
0x1335   : > { %7578 = vmatpush1.bf16.msra.mxu1 %v11299_v35  ;;  %7538 = vmatprep.subr.bf16.mxu0 %v11306_v41  ;;  %v11345_v35 = vcombine.low %v5911_v33, %v5915_v14  ;;  %v11347_v41 = vcombine.low %v5912_v16, %v5916_v53  ;;  %v11356_v17 = vcombine.high %v5920_v50, %v5924_v23  ;;  %v5830_v33 = vld [vmem:[#allocation28 + $0x38] sm:$0xff] }
0x1336   : > { %7579 = vmatprep.subr.bf16.mxu1 %v11308_v26  ;;  %v11354_v26 = vcombine.high %v5919_v27, %v5923_v51 }
0x1338   : > { %7539 = vmatpush1.bf16.msra.mxu0 %v11305_v39  ;;  %v5932_v39 = vld [vmem:[#allocation28 + $0x368] sm:$0xff] }
0x1339   : > { %7580 = vmatpush1.bf16.msra.mxu1 %v11307_v10  ;;  %7540 = vmatprep.subr.bf16.mxu0 %v11314_v61  ;;  %v11353_v10 = vcombine.low %v5919_v27, %v5923_v51  ;;  %v11355_v61 = vcombine.low %v5920_v50, %v5924_v23  ;;  %v11364_v2 = vcombine.high %v5928_v55, %v5932_v39  ;;  %v5834_v51 = vld [vmem:[#allocation28 + $0x58] sm:$0xff] }
0x133a   : > { %7581 = vmatprep.subr.bf16.mxu1 %v11316_v62  ;;  %v11362_v62 = vcombine.high %v5927_v36, %v5931_v56  ;;  %v11363_v42 = vcombine.low %v5928_v55, %v5932_v39  ;;  %v5838_v50 = vld [vmem:[#allocation28 + $0x78] sm:$0xff] }
0x133b   : > { %v5846_v55 = vld [vmem:[#allocation28 + $0xb8] sm:$0xff] }
0x133c   : > { %7541 = vmatpush1.bf16.msra.mxu0 %v11313_v13  ;;  %v5781_v13 = vld [vmem:[#allocation25] sm:$0xff] }
0x133d   : > { %7582 = vmatpush1.bf16.msra.mxu1 %v11315_v30  ;;  %7542 = vmatprep.subr.bf16.mxu0 %v11322_v25  ;;  %v5936_v30 = vld [vmem:[#allocation28 + $0x388] sm:$0xff]  ;;  %v5789_v63 = vmul.f32 %v5781_v13, %v5773_v40  ;;  %v5849_v40 = vld [vmem:[#allocation28 + $0xd0] sm:$0xff] }
0x133e   : > { %7583 = vmatprep.subr.bf16.mxu1 %v11324_v49  ;;  %v5940_v25 = vld [vmem:[#allocation28 + $0x3a8] sm:$0xff]  ;;  %v11361_v49 = vcombine.low %v5927_v36, %v5931_v56  ;;  %v11272_v36 = vcombine.high %v5834_v51, %v5838_v50  ;;  %v5842_v56 = vld [vmem:[#allocation28 + $0x98] sm:$0xff] }
0x133f   : > { %v11372_v4 = vcombine.high %v5936_v30, %v5940_v25  ;;  %v11371_v22 = vcombine.low %v5936_v30, %v5940_v25  ;;  %v11279_v30 = vcombine.low %v5842_v56, %v5846_v55 }
0x1340   : > { %7543 = vmatpush1.bf16.msra.mxu0 %v11321_v58  ;;  %v5943_v58 = vld [vmem:[#allocation28 + $0x3c0] sm:$0xff] }
0x1341   : > { %7584 = vmatpush1.bf16.msra.mxu1 %v11323_v47  ;;  %7544 = vmatprep.subr.bf16.mxu0 %v11330_v19  ;;  %v5947_v47 = vld [vmem:[#allocation28 + $0x3e0] sm:$0xff] }
0x1342   : > { %7585 = vmatprep.subr.bf16.mxu1 %v11332_v52  ;;  %v5797_v19 = vld [vmem:[#allocation26] sm:$0xff]  ;;  %v5948_v52 = vld [vmem:[#allocation28 + $0x3e8] sm:$0xff]  ;;  %v11378_v18 = vcombine.high %v5943_v58, %v5947_v47  ;;  %v11377_v14 = vcombine.low %v5943_v58, %v5947_v47  ;;  %v11287_v58 = vcombine.low %v5850_v54, %v5854_v15 }
0x1343   : > { %v5805_v24 = vadd.f32 %v5797_v19, %v5789_v63  ;;  %v11379_v16 = vcombine.low %v5944_v57, %v5948_v52  ;;  %v5858_v63 = vld [vmem:[#allocation28 + $0x118] sm:$0xff] }
0x1344   : > { %7545 = vmatpush1.bf16.msra.mxu0 %v11329_v59  ;;  %v11380_v59 = vcombine.high %v5944_v57, %v5948_v52  ;;  %v5865_v57 = vld [vmem:[#allocation28 + $0x150] sm:$0xff] }
0x1345   : > { %7586 = vmatpush1.bf16.msra.mxu1 %v11331_v9  ;;  %7546 = vmatprep.subr.bf16.mxu0 %v11338_v34  ;;  %v5825_v9 = vld [vmem:[#allocation28 + $0x10] sm:$0xff]  ;;  %v5813_v53 = vmax.f32 %v5805_v24, 0.0 }
0x1346   : > { %7587 = vmatprep.subr.bf16.mxu1 %v11340_v31  ;;  %v5829_v34 = vld [vmem:[#allocation28 + $0x30] sm:$0xff]  ;;  %v5826_v31 = vld [vmem:[#allocation28 + $0x18] sm:$0xff] }
0x1347   : > { %v11261_v27 = vcombine.low %v5825_v9, %v5829_v34  ;;  %v15701_v23 = vpack.c.bf16 %v5813_v53, %v5813_v53  ;;  %v5869_v52 = vld [vmem:[#allocation28 + $0x170] sm:$0xff] }
0x1348   : > { %7547 = vmatpush1.bf16.msra.mxu0 %v11337_v37  ;;  %v11262_v37 = vcombine.high %v5825_v9, %v5829_v34  ;;  %v5873_v34 = vld [vmem:[#allocation28 + $0x190] sm:$0xff] }
0x1349   : > { %7588 = vmatpush1.bf16.msra.mxu1 %v11339_v45  ;;  %7548 = vmatprep.subr.bf16.mxu0 %v11346_v6  ;;  %v11264_v45 = vcombine.high %v5826_v31, %v5830_v33  ;;  %v5833_v6 = vld [vmem:[#allocation28 + $0x50] sm:$0xff] }
0x134a   : > { %7589 = vmatprep.subr.bf16.mxu1 %v11348_v38  ;;  %v5837_v38 = vld [vmem:[#allocation28 + $0x70] sm:$0xff] }
0x134b   : > { %v11269_v39 = vcombine.low %v5833_v6, %v5837_v38 }
0x134c   : > { %7549 = vmatpush1.bf16.msra.mxu0 %v11345_v35  ;;  %v11263_v35 = vcombine.low %v5826_v31, %v5830_v33  ;;  %v5877_v31 = vld [vmem:[#allocation28 + $0x1b0] sm:$0xff]  ;;  %v5874_v33 = vld [vmem:[#allocation28 + $0x198] sm:$0xff] }
0x134d   : > { %7590 = vmatpush1.bf16.msra.mxu1 %v11347_v41  ;;  %7550 = vmatprep.subr.bf16.mxu0 %v11354_v26  ;;  %v11270_v41 = vcombine.high %v5833_v6, %v5837_v38  ;;  %v5841_v26 = vld [vmem:[#allocation28 + $0x90] sm:$0xff] }
0x134e   : > { %7591 = vmatprep.subr.bf16.mxu1 %v11356_v17  ;;  %v5845_v17 = vld [vmem:[#allocation28 + $0xb0] sm:$0xff] }
0x134f   : > { %v11277_v13 = vcombine.low %v5841_v26, %v5845_v17  ;;  %v5881_v6 = vld [vmem:[#allocation28 + $0x1d0] sm:$0xff] }
0x1350   : > { %7551 = vmatpush1.bf16.msra.mxu0 %v11353_v10  ;;  %v11271_v10 = vcombine.low %v5834_v51, %v5838_v50  ;;  %v5885_v38 = vld [vmem:[#allocation28 + $0x1f0] sm:$0xff]  ;;  %v5886_v51 = vld [vmem:[#allocation28 + $0x1f8] sm:$0xff]  ;;  %v11309_v50 = vcombine.low %v5873_v34, %v5877_v31 }
0x1351   : > { %7592 = vmatpush1.bf16.msra.mxu1 %v11355_v61  ;;  %7552 = vmatprep.subr.bf16.mxu0 %v11362_v62  ;;  %v11278_v61 = vcombine.high %v5841_v26, %v5845_v17  ;;  %v11280_v62 = vcombine.high %v5842_v56, %v5846_v55  ;;  %v5889_v17 = vld [vmem:[#allocation28 + $0x210] sm:$0xff]  ;;  %v5890_v56 = vld [vmem:[#allocation28 + $0x218] sm:$0xff] }
0x1352   : > { %7593 = vmatprep.subr.bf16.mxu1 %v11364_v2  ;;  %v5853_v2 = vld [vmem:[#allocation28 + $0xf0] sm:$0xff]  ;;  %v5894_v55 = vld [vmem:[#allocation28 + $0x238] sm:$0xff] }
0x1353   : > { %v11286_v25 = vcombine.high %v5849_v40, %v5853_v2 }
0x1354   : > { %7553 = vmatpush1.bf16.msra.mxu0 %v11361_v49  ;;  %v11288_v49 = vcombine.high %v5850_v54, %v5854_v15  ;;  %v5898_v54 = vld [vmem:[#allocation28 + $0x258] sm:$0xff] }
0x1355   : > { %7594 = vmatpush1.bf16.msra.mxu1 %v11363_v42  ;;  %7554 = vmatprep.subr.bf16.mxu0 %v11370_v43  ;;  %v5857_v42 = vld [vmem:[#allocation28 + $0x110] sm:$0xff]  ;;  %v5902_v15 = vld [vmem:[#allocation28 + $0x278] sm:$0xff] }
0x1356   : > { %7595 = vmatprep.subr.bf16.mxu1 %v11372_v4  ;;  %v5861_v43 = vld [vmem:[#allocation28 + $0x130] sm:$0xff]  ;;  %v5862_v4 = vld [vmem:[#allocation28 + $0x138] sm:$0xff] }
0x1357   : > { %v11294_v47 = vcombine.high %v5857_v42, %v5861_v43  ;;  %v11296_v19 = vcombine.high %v5858_v63, %v5862_v4  ;;  %v11295_v24 = vcombine.low %v5858_v63, %v5862_v4  ;;  %v5906_v63 = vld [vmem:[#allocation28 + $0x298] sm:$0xff] }
0x1358   : > { %7555 = vmatpush1.bf16.msra.mxu0 %v11369_v44  ;;  %v5866_v44 = vld [vmem:[#allocation28 + $0x158] sm:$0xff] }
0x1359   : > { %7596 = vmatpush1.bf16.msra.mxu1 %v11371_v22  ;;  %7556 = vmatprep.subr.bf16.mxu0 %v11378_v18  ;;  %v5870_v22 = vld [vmem:[#allocation28 + $0x178] sm:$0xff]  ;;  %v11293_v18 = vcombine.low %v5857_v42, %v5861_v43  ;;  %v5905_v42 = vld [vmem:[#allocation28 + $0x290] sm:$0xff] }
0x135a   : > { %7597 = vmatprep.subr.bf16.mxu1 %v11380_v59  ;;  %v11302_v59 = vcombine.high %v5865_v57, %v5869_v52  ;;  %v11304_v9 = vcombine.high %v5866_v44, %v5870_v22  ;;  %v11303_v53 = vcombine.low %v5866_v44, %v5870_v22  ;;  %v5909_v43 = vld [vmem:[#allocation28 + $0x2b0] sm:$0xff]  ;;  %v5910_v4 = vld [vmem:[#allocation28 + $0x2b8] sm:$0xff] }
0x135b   : > { %v5914_v44 = vld [vmem:[#allocation28 + $0x2d8] sm:$0xff] }
0x135c   : > { %7557 = vmatpush1.bf16.msra.mxu0 %v11377_v14  ;;  %v5878_v14 = vld [vmem:[#allocation28 + $0x1b8] sm:$0xff] }
0x135d   : > { %7598 = vmatpush1.bf16.msra.mxu1 %v11379_v16  ;;  %7608 = vmatprep.subr.bf16.mxu0 %v11262_v37  ;;  %v11301_v16 = vcombine.low %v5865_v57, %v5869_v52  ;;  %v11310_v37 = vcombine.high %v5873_v34, %v5877_v31  ;;  %v5913_v57 = vld [vmem:[#allocation28 + $0x2d0] sm:$0xff]  ;;  %v5918_v22 = vld [vmem:[#allocation28 + $0x2f8] sm:$0xff] }
0x135e   : > { %7649 = vmatprep.subr.bf16.mxu1 %v11264_v45  ;;  %v11312_v45 = vcombine.high %v5874_v33, %v5878_v14  ;;  %v5917_v52 = vld [vmem:[#allocation28 + $0x2f0] sm:$0xff] }
0x135f   : > { %7559 = vmatmul.mubr.bf16.vlgmr.msra.gmra.mrb[108].mxu0 %v15701_v23  ;;  %v5921_v34 = vld [vmem:[#allocation28 + $0x310] sm:$0xff] }
0x1360   : > { %7600 = vmatmul.mubr.bf16.vlgmr.msra.gmra.mrb[92].mxu1 %v15701_v23  ;;  %7609 = vmatpush1.bf16.msra.mxu0 %v11261_v27  ;;  %v5882_v27 = vld [vmem:[#allocation28 + $0x1d8] sm:$0xff]  ;;  %v5925_v31 = vld [vmem:[#allocation28 + $0x330] sm:$0xff] }
0x1361   : > { %7640 = vmatprep.mubr.bf16.mxu0 %v15693_v20  ;;  %7650 = vmatpush1.bf16.msra.mxu1 %v11263_v35  ;;  %v11311_v35 = vcombine.low %v5874_v33, %v5878_v14  ;;  %v11320_v26 = vcombine.high %v5882_v27, %v5886_v51  ;;  %v5922_v33 = vld [vmem:[#allocation28 + $0x318] sm:$0xff] }
0x1362   : > { %7681 = vmatprep.mubr.bf16.mxu1 %v15693_v20  ;;  %7610 = vmatprep.subr.bf16.mxu0 %v11270_v41  ;;  %v11285_v20 = vcombine.low %v5849_v40, %v5853_v2  ;;  %v11318_v41 = vcombine.high %v5881_v6, %v5885_v38  ;;  %v5897_v40 = vld [vmem:[#allocation28 + $0x250] sm:$0xff]  ;;  %v5926_v14 = vld [vmem:[#allocation28 + $0x338] sm:$0xff] }
0x1363   : > { %7651 = vmatprep.subr.bf16.mxu1 %v11272_v36  ;;  %v5893_v36 = vld [vmem:[#allocation28 + $0x230] sm:$0xff] }
0x1364   : > { %7611 = vmatpush1.bf16.msra.mxu0 %v11269_v39  ;;  %v11317_v39 = vcombine.low %v5881_v6, %v5885_v38  ;;  %v5901_v2 = vld [vmem:[#allocation28 + $0x270] sm:$0xff] }
0x1365   : > { %7652 = vmatpush1.bf16.msra.mxu1 %v11271_v10  ;;  %7612 = vmatprep.subr.bf16.mxu0 %v11278_v61  ;;  %v11319_v10 = vcombine.low %v5882_v27, %v5886_v51  ;;  %v11326_v61 = vcombine.high %v5889_v17, %v5893_v36  ;;  %v5929_v6 = vld [vmem:[#allocation28 + $0x350] sm:$0xff]  ;;  %v5930_v27 = vld [vmem:[#allocation28 + $0x358] sm:$0xff] }
0x1366   : > { %7653 = vmatprep.subr.bf16.mxu1 %v11280_v62  ;;  %v11328_v62 = vcombine.high %v5890_v56, %v5894_v55  ;;  %v5933_v38 = vld [vmem:[#allocation28 + $0x370] sm:$0xff]  ;;  %v5934_v51 = vld [vmem:[#allocation28 + $0x378] sm:$0xff] }
0x1368   : > { %7613 = vmatpush1.bf16.msra.mxu0 %v11277_v13  ;;  %v11325_v13 = vcombine.low %v5889_v17, %v5893_v36  ;;  %v5937_v17 = vld [vmem:[#allocation28 + $0x390] sm:$0xff] }
0x1369   : > { %7654 = vmatpush1.bf16.msra.mxu1 %v11279_v30  ;;  %7614 = vmatprep.subr.bf16.mxu0 %v11286_v25  ;;  %v11327_v30 = vcombine.low %v5890_v56, %v5894_v55  ;;  %v11334_v25 = vcombine.high %v5897_v40, %v5901_v2  ;;  %v5941_v36 = vld [vmem:[#allocation28 + $0x3b0] sm:$0xff]  ;;  %v5938_v56 = vld [vmem:[#allocation28 + $0x398] sm:$0xff] }
0x136a   : > { %7655 = vmatprep.subr.bf16.mxu1 %v11288_v49  ;;  %v11336_v49 = vcombine.high %v5898_v54, %v5902_v15  ;;  %v5942_v55 = vld [vmem:[#allocation28 + $0x3b8] sm:$0xff] }
0x136c   : > { %7615 = vmatpush1.bf16.msra.mxu0 %v11285_v20  ;;  %v11333_v20 = vcombine.low %v5897_v40, %v5901_v2  ;;  %v11374_v40 = vcombine.high %v5937_v17, %v5941_v36  ;;  %v11376_v2 = vcombine.high %v5938_v56, %v5942_v55 }
0x136d   : > { %7656 = vmatpush1.bf16.msra.mxu1 %v11287_v58  ;;  %7616 = vmatprep.subr.bf16.mxu0 %v11294_v47  ;;  %v11335_v58 = vcombine.low %v5898_v54, %v5902_v15  ;;  %v11342_v47 = vcombine.high %v5905_v42, %v5909_v43  ;;  %v5945_v54 = vld [vmem:[#allocation28 + $0x3d0] sm:$0xff] }
0x136e   : > { %7657 = vmatprep.subr.bf16.mxu1 %v11296_v19  ;;  %v11344_v19 = vcombine.high %v5906_v63, %v5910_v4  ;;  %v5949_v15 = vld [vmem:[#allocation28 + $0x3f0] sm:$0xff] }
0x1370   : > { %7617 = vmatpush1.bf16.msra.mxu0 %v11293_v18  ;;  %v11341_v18 = vcombine.low %v5905_v42, %v5909_v43  ;;  %v5802_v42 = vld [vmem:[#allocation26 + $0x28] sm:$0xff]  ;;  %v11382_v43 = vcombine.high %v5945_v54, %v5949_v15 }
0x1371   : > { %7658 = vmatpush1.bf16.msra.mxu1 %v11295_v24  ;;  %7618 = vmatprep.subr.bf16.mxu0 %v11302_v59  ;;  %v11343_v24 = vcombine.low %v5906_v63, %v5910_v4  ;;  %v11350_v59 = vcombine.high %v5913_v57, %v5917_v52  ;;  %v7693_v4 = vld [vmem:[#allocation28 + $0x800] sm:$0xff] }
0x1372   : > { %7659 = vmatprep.subr.bf16.mxu1 %v11304_v9  ;;  %v11352_v9 = vcombine.high %v5914_v44, %v5918_v22 }
0x1374   : > { %7619 = vmatpush1.bf16.msra.mxu0 %v11301_v16  ;;  %v11349_v16 = vcombine.low %v5913_v57, %v5917_v52  ;;  %v11381_v57 = vcombine.low %v5945_v54, %v5949_v15 }
0x1375   : > { %7660 = vmatpush1.bf16.msra.mxu1 %v11303_v53  ;;  %7620 = vmatprep.subr.bf16.mxu0 %v11310_v37  ;;  %v11351_v53 = vcombine.low %v5914_v44, %v5918_v22  ;;  %v11358_v37 = vcombine.high %v5921_v34, %v5925_v31 }
0x1376   : > { %7661 = vmatprep.subr.bf16.mxu1 %v11312_v45  ;;  %v11360_v45 = vcombine.high %v5922_v33, %v5926_v14 }
0x1378   : > { %7621 = vmatpush1.bf16.msra.mxu0 %v11309_v50  ;;  %v11357_v50 = vcombine.low %v5921_v34, %v5925_v31  ;;  %v7702_v34 = vld [vmem:[#allocation28 + $0x848] sm:$0xff] }
0x1379   : > { %7662 = vmatpush1.bf16.msra.mxu1 %v11311_v35  ;;  %7622 = vmatprep.subr.bf16.mxu0 %v11318_v41  ;;  %v11359_v35 = vcombine.low %v5922_v33, %v5926_v14  ;;  %v11366_v41 = vcombine.high %v5929_v6, %v5933_v38  ;;  %v7706_v31 = vld [vmem:[#allocation28 + $0x868] sm:$0xff] }
0x137a   : > { %7663 = vmatprep.subr.bf16.mxu1 %v11320_v26  ;;  %v11368_v26 = vcombine.high %v5930_v27, %v5934_v51 }
0x137c   : > { %7623 = vmatpush1.bf16.msra.mxu0 %v11317_v39  ;;  %v5778_v39 = vmul.f32 %v15675_v1, %v15641_v60  ;;  %v11375_v60 = vcombine.low %v5938_v56, %v5942_v55 }
0x137d   : > { %7664 = vmatpush1.bf16.msra.mxu1 %v11319_v10  ;;  %7624 = vmatprep.subr.bf16.mxu0 %v11326_v61  ;;  %v11365_v10 = vcombine.low %v5929_v6, %v5933_v38  ;;  %v5786_v61 = vld [vmem:[#allocation25 + $0x28] sm:$0xff] }
0x137e   : > { %7665 = vmatprep.subr.bf16.mxu1 %v11328_v62  ;;  %v11367_v62 = vcombine.low %v5930_v27, %v5934_v51  ;;  %v7710_v6 = vld [vmem:[#allocation28 + $0x888] sm:$0xff]  ;;  %v11395_v51 = vcombine.low %v7702_v34, %v7706_v31 }
0x137f   : > { %v7714_v38 = vld [vmem:[#allocation28 + $0x8a8] sm:$0xff] }
0x1380   : > { %7625 = vmatpush1.bf16.msra.mxu0 %v11325_v13  ;;  %v5946_v13 = vld [vmem:[#allocation28 + $0x3d8] sm:$0xff] }
0x1381   : > { %7666 = vmatpush1.bf16.msra.mxu1 %v11327_v30  ;;  %7626 = vmatprep.subr.bf16.mxu0 %v11334_v25  ;;  %v5950_v30 = vld [vmem:[#allocation28 + $0x3f8] sm:$0xff]  ;;  %v5794_v25 = vmul.f32 %v5786_v61, %v5778_v39  ;;  %v7729_v61 = vld [vmem:[#allocation28 + $0x920] sm:$0xff] }
0x1382   : > { %7667 = vmatprep.subr.bf16.mxu1 %v11336_v49  ;;  %v11373_v49 = vcombine.low %v5937_v17, %v5941_v36  ;;  %v11384_v63 = vcombine.high %v5946_v13, %v5950_v30  ;;  %v11383_v52 = vcombine.low %v5946_v13, %v5950_v30  ;;  %v7718_v17 = vld [vmem:[#allocation28 + $0x8c8] sm:$0xff]  ;;  %v7733_v30 = vld [vmem:[#allocation28 + $0x940] sm:$0xff] }
0x1383   : > { %v7722_v36 = vld [vmem:[#allocation28 + $0x8e8] sm:$0xff] }
0x1384   : > { %7627 = vmatpush1.bf16.msra.mxu0 %v11333_v20  ;;  %v7697_v20 = vld [vmem:[#allocation28 + $0x820] sm:$0xff]  ;;  %v11412_v39 = vcombine.high %v7718_v17, %v7722_v36  ;;  %v11411_v54 = vcombine.low %v7718_v17, %v7722_v36  ;;  %v7770_v17 = vld [vmem:[#allocation28 + $0xa68] sm:$0xff] }
0x1385   : > { %7668 = vmatpush1.bf16.msra.mxu1 %v11335_v58  ;;  %7628 = vmatprep.subr.bf16.mxu0 %v11342_v47  ;;  %v7694_v58 = vld [vmem:[#allocation28 + $0x808] sm:$0xff]  ;;  %v11386_v44 = vcombine.high %v7693_v4, %v7697_v20 }
0x1386   : > { %7669 = vmatprep.subr.bf16.mxu1 %v11344_v19  ;;  %v7698_v47 = vld [vmem:[#allocation28 + $0x828] sm:$0xff]  ;;  %v5810_v19 = vadd.f32 %v5802_v42, %v5794_v25  ;;  %v7737_v25 = vld [vmem:[#allocation28 + $0x960] sm:$0xff] }
0x1387   : > { %v11388_v22 = vcombine.high %v7694_v58, %v7698_v47  ;;  %v11387_v33 = vcombine.low %v7694_v58, %v7698_v47  ;;  %v7738_v42 = vld [vmem:[#allocation28 + $0x968] sm:$0xff]  ;;  %v7745_v58 = vld [vmem:[#allocation28 + $0x9a0] sm:$0xff] }
0x1388   : > { %7629 = vmatpush1.bf16.msra.mxu0 %v11341_v18  ;;  %v5818_v18 = vmax.f32 %v5810_v19, 0.0  ;;  %v7742_v47 = vld [vmem:[#allocation28 + $0x988] sm:$0xff] }
0x1389   : > { %7670 = vmatpush1.bf16.msra.mxu1 %v11343_v24  ;;  %7630 = vmatprep.subr.bf16.mxu0 %v11350_v59  ;;  %v7701_v24 = vld [vmem:[#allocation28 + $0x840] sm:$0xff]  ;;  %v7746_v19 = vld [vmem:[#allocation28 + $0x9a8] sm:$0xff] }
0x138a   : > { %7671 = vmatprep.subr.bf16.mxu1 %v11352_v9  ;;  %v7705_v59 = vld [vmem:[#allocation28 + $0x860] sm:$0xff]  ;;  %v11385_v9 = vcombine.low %v7693_v4, %v7697_v20 }
0x138b   : > { %v11394_v14 = vcombine.high %v7701_v24, %v7705_v59  ;;  %v11393_v27 = vcombine.low %v7701_v24, %v7705_v59  ;;  %v7741_v20 = vld [vmem:[#allocation28 + $0x980] sm:$0xff]  ;;  %v7750_v59 = vld [vmem:[#allocation28 + $0x9c8] sm:$0xff] }
0x138c   : > { %7631 = vmatpush1.bf16.msra.mxu0 %v11349_v16  ;;  %v7709_v16 = vld [vmem:[#allocation28 + $0x880] sm:$0xff] }
0x138d   : > { %7672 = vmatpush1.bf16.msra.mxu1 %v11351_v53  ;;  %7632 = vmatprep.subr.bf16.mxu0 %v11358_v37  ;;  %v7713_v53 = vld [vmem:[#allocation28 + $0x8a0] sm:$0xff]  ;;  %v15710_v37 = vpack.c.bf16 %v5818_v18, %v5818_v18 }
0x138e   : > { %7673 = vmatprep.subr.bf16.mxu1 %v11360_v45  ;;  %v11396_v45 = vcombine.high %v7702_v34, %v7706_v31  ;;  %v11401_v56 = vcombine.low %v7709_v16, %v7713_v53  ;;  %v7749_v18 = vld [vmem:[#allocation28 + $0x9c0] sm:$0xff]  ;;  %v11433_v34 = vcombine.low %v7741_v20, %v7745_v58  ;;  %v11435_v31 = vcombine.low %v7742_v47, %v7746_v19 }
0x138f   : > { %v7753_v24 = vld [vmem:[#allocation28 + $0x9e0] sm:$0xff] }
0x1390   : > { %7633 = vmatpush1.bf16.msra.mxu0 %v11357_v50  ;;  %v11402_v50 = vcombine.high %v7709_v16, %v7713_v53  ;;  %v7757_v16 = vld [vmem:[#allocation28 + $0xa00] sm:$0xff] }
0x1391   : > { %7674 = vmatpush1.bf16.msra.mxu1 %v11359_v35  ;;  %7634 = vmatprep.subr.bf16.mxu0 %v11366_v41  ;;  %v11404_v35 = vcombine.high %v7710_v6, %v7714_v38  ;;  %v7717_v41 = vld [vmem:[#allocation28 + $0x8c0] sm:$0xff] }
0x1392   : > { %7675 = vmatprep.subr.bf16.mxu1 %v11368_v26  ;;  %v7721_v26 = vld [vmem:[#allocation28 + $0x8e0] sm:$0xff] }
0x1393   : > { %v11410_v55 = vcombine.high %v7717_v41, %v7721_v26  ;;  %v7761_v53 = vld [vmem:[#allocation28 + $0xa20] sm:$0xff] }
0x1394   : > { %7635 = vmatpush1.bf16.msra.mxu0 %v11365_v10  ;;  %v7725_v10 = vld [vmem:[#allocation28 + $0x900] sm:$0xff]  ;;  %v11449_v36 = vcombine.low %v7757_v16, %v7761_v53 }
0x1395   : > { %7676 = vmatpush1.bf16.msra.mxu1 %v11367_v62  ;;  %7636 = vmatprep.subr.bf16.mxu0 %v11374_v40  ;;  %v7726_v62 = vld [vmem:[#allocation28 + $0x908] sm:$0xff]  ;;  %v11418_v15 = vcombine.high %v7725_v10, %v7729_v61 }
0x1396   : > { %7677 = vmatprep.subr.bf16.mxu1 %v11376_v2  ;;  %v7730_v40 = vld [vmem:[#allocation28 + $0x928] sm:$0xff]  ;;  %v11409_v2 = vcombine.low %v7717_v41, %v7721_v26  ;;  %v7769_v41 = vld [vmem:[#allocation28 + $0xa60] sm:$0xff] }
0x1397   : > { %v11420_v13 = vcombine.high %v7726_v62, %v7730_v40  ;;  %v7766_v26 = vld [vmem:[#allocation28 + $0xa48] sm:$0xff] }
0x1398   : > { %7637 = vmatpush1.bf16.msra.mxu0 %v11373_v49  ;;  %v7734_v49 = vld [vmem:[#allocation28 + $0x948] sm:$0xff] }
0x1399   : > { %7678 = vmatpush1.bf16.msra.mxu1 %v11375_v60  ;;  %7638 = vmatprep.subr.bf16.mxu0 %v11382_v43  ;;  %v11417_v60 = vcombine.low %v7725_v10, %v7729_v61  ;;  %v11419_v43 = vcombine.low %v7726_v62, %v7730_v40  ;;  %v11428_v4 = vcombine.high %v7734_v49, %v7738_v42  ;;  %v7777_v10 = vld [vmem:[#allocation28 + $0xaa0] sm:$0xff]  ;;  %v7774_v61 = vld [vmem:[#allocation28 + $0xa88] sm:$0xff] }
0x139a   : > { %7679 = vmatprep.subr.bf16.mxu1 %v11384_v63  ;;  %v11426_v63 = vcombine.high %v7733_v30, %v7737_v25  ;;  %v7778_v62 = vld [vmem:[#allocation28 + $0xaa8] sm:$0xff] }
0x139c   : > { %7639 = vmatpush1.bf16.msra.mxu0 %v11381_v57  ;;  %v11425_v57 = vcombine.low %v7733_v30, %v7737_v25  ;;  %v7785_v30 = vld [vmem:[#allocation28 + $0xae0] sm:$0xff]  ;;  %v7782_v25 = vld [vmem:[#allocation28 + $0xac8] sm:$0xff] }
0x139d   : > { %7680 = vmatpush1.bf16.msra.mxu1 %v11383_v52  ;;  %8461 = vmatprep.subr.bf16.mxu0 %v11386_v44  ;;  %v11427_v52 = vcombine.low %v7734_v49, %v7738_v42  ;;  %v11434_v44 = vcombine.high %v7741_v20, %v7745_v58  ;;  %v7786_v49 = vld [vmem:[#allocation28 + $0xae8] sm:$0xff]  ;;  %v7793_v20 = vld [vmem:[#allocation28 + $0xb20] sm:$0xff] }
0x139e   : > { %8502 = vmatprep.subr.bf16.mxu1 %v11388_v22  ;;  %v11436_v22 = vcombine.high %v7742_v47, %v7746_v19  ;;  %v7790_v58 = vld [vmem:[#allocation28 + $0xb08] sm:$0xff] }
0x139f   : > { %7641 = vmatmul.mubr.bf16.vlgmr.msra.gmra.mrb[112].mxu0 %v15701_v23  ;;  %v7794_v47 = vld [vmem:[#allocation28 + $0xb28] sm:$0xff] }
0x13a0   : > { %7682 = vmatmul.mubr.bf16.vlgmr.msra.gmra.mrb[96].mxu1 %v15701_v23  ;;  %8462 = vmatpush1.bf16.msra.mxu0 %v11385_v9  ;;  %v11403_v23 = vcombine.low %v7710_v6, %v7714_v38  ;;  %v7754_v9 = vld [vmem:[#allocation28 + $0x9e8] sm:$0xff]  ;;  %v11441_v38 = vcombine.low %v7749_v18, %v7753_v24 }
0x13a1   : > { %8493 = vmatprep.mubr.bf16.mxu0 %v15710_v37  ;;  %8503 = vmatpush1.bf16.msra.mxu1 %v11387_v33  ;;  %v11442_v33 = vcombine.high %v7749_v18, %v7753_v24  ;;  %v7762_v6 = vld [vmem:[#allocation28 + $0xa28] sm:$0xff]  ;;  %v7801_v18 = vld [vmem:[#allocation28 + $0xb60] sm:$0xff] }
0x13a2   : > { %8534 = vmatprep.mubr.bf16.mxu1 %v15710_v37  ;;  %8463 = vmatprep.subr.bf16.mxu0 %v11394_v14  ;;  %v11444_v14 = vcombine.high %v7750_v59, %v7754_v9  ;;  %v7798_v24 = vld [vmem:[#allocation28 + $0xb48] sm:$0xff] }
0x13a3   : > { %8504 = vmatprep.subr.bf16.mxu1 %v11396_v45  ;;  %v7758_v45 = vld [vmem:[#allocation28 + $0xa08] sm:$0xff] }
0x13a4   : > { %8464 = vmatpush1.bf16.msra.mxu0 %v11393_v27  ;;  %v11443_v27 = vcombine.low %v7750_v59, %v7754_v9  ;;  %v7802_v59 = vld [vmem:[#allocation28 + $0xb68] sm:$0xff] }
0x13a5   : > { %8505 = vmatpush1.bf16.msra.mxu1 %v11395_v51  ;;  %8465 = vmatprep.subr.bf16.mxu0 %v11402_v50  ;;  %v11450_v51 = vcombine.high %v7757_v16, %v7761_v53  ;;  %v11452_v50 = vcombine.high %v7758_v45, %v7762_v6  ;;  %v7805_v16 = vld [vmem:[#allocation28 + $0xb80] sm:$0xff] }
0x13a6   : > { %8506 = vmatprep.subr.bf16.mxu1 %v11404_v35  ;;  %v7765_v35 = vld [vmem:[#allocation28 + $0xa40] sm:$0xff] }
0x13a7   : > { %v11457_v40 = vcombine.low %v7765_v35, %v7769_v41  ;;  %v7809_v53 = vld [vmem:[#allocation28 + $0xba0] sm:$0xff] }
0x13a8   : > { %8466 = vmatpush1.bf16.msra.mxu0 %v11401_v56  ;;  %v11451_v56 = vcombine.low %v7758_v45, %v7762_v6  ;;  %v5785_v45 = vld [vmem:[#allocation25 + $0x20] sm:$0xff]  ;;  %v7806_v6 = vld [vmem:[#allocation28 + $0xb88] sm:$0xff] }
0x13a9   : > { %8507 = vmatpush1.bf16.msra.mxu1 %v11403_v23  ;;  %8467 = vmatprep.subr.bf16.mxu0 %v11410_v55  ;;  %v11458_v23 = vcombine.high %v7765_v35, %v7769_v41  ;;  %v11460_v55 = vcombine.high %v7766_v26, %v7770_v17 }
0x13aa   : > { %8508 = vmatprep.subr.bf16.mxu1 %v11412_v39  ;;  %v7773_v39 = vld [vmem:[#allocation28 + $0xa80] sm:$0xff] }
0x13ab   : > { %v11465_v42 = vcombine.low %v7773_v39, %v7777_v10 }
0x13ac   : > { %8468 = vmatpush1.bf16.msra.mxu0 %v11409_v2  ;;  %v11459_v2 = vcombine.low %v7766_v26, %v7770_v17  ;;  %v7813_v26 = vld [vmem:[#allocation28 + $0xbc0] sm:$0xff] }
0x13ad   : > { %8509 = vmatpush1.bf16.msra.mxu1 %v11411_v54  ;;  %8469 = vmatprep.subr.bf16.mxu0 %v11418_v15  ;;  %v11466_v54 = vcombine.high %v7773_v39, %v7777_v10  ;;  %v11468_v15 = vcombine.high %v7774_v61, %v7778_v62  ;;  %v7817_v17 = vld [vmem:[#allocation28 + $0xbe0] sm:$0xff] }
0x13ae   : > { %8510 = vmatprep.subr.bf16.mxu1 %v11420_v13  ;;  %v7781_v13 = vld [vmem:[#allocation28 + $0xac0] sm:$0xff]  ;;  %v11506_v39 = vcombine.high %v7813_v26, %v7817_v17 }
0x13af   : > { %v11473_v19 = vcombine.low %v7781_v13, %v7785_v30 }
0x13b0   : > { %8470 = vmatpush1.bf16.msra.mxu0 %v11417_v60  ;;  %v11467_v60 = vcombine.low %v7774_v61, %v7778_v62  ;;  %v7695_v62 = vld [vmem:[#allocation28 + $0x810] sm:$0xff] }
0x13b1   : > { %8511 = vmatpush1.bf16.msra.mxu1 %v11419_v43  ;;  %8471 = vmatprep.subr.bf16.mxu0 %v11426_v63  ;;  %v11474_v43 = vcombine.high %v7781_v13, %v7785_v30  ;;  %v11476_v63 = vcombine.high %v7782_v25, %v7786_v49 }
0x13b2   : > { %8512 = vmatprep.subr.bf16.mxu1 %v11428_v4  ;;  %v7789_v4 = vld [vmem:[#allocation28 + $0xb00] sm:$0xff] }
0x13b3   : > { %v11481_v9 = vcombine.low %v7789_v4, %v7793_v20 }
0x13b4   : > { %8472 = vmatpush1.bf16.msra.mxu0 %v11425_v57  ;;  %v11475_v57 = vcombine.low %v7782_v25, %v7786_v49 }
0x13b5   : > { %8513 = vmatpush1.bf16.msra.mxu1 %v11427_v52  ;;  %8473 = vmatprep.subr.bf16.mxu0 %v11434_v44  ;;  %v11482_v52 = vcombine.high %v7789_v4, %v7793_v20  ;;  %v11484_v44 = vcombine.high %v7790_v58, %v7794_v47  ;;  %v7708_v4 = vld [vmem:[#allocation28 + $0x878] sm:$0xff] }
0x13b6   : > { %8514 = vmatprep.subr.bf16.mxu1 %v11436_v22  ;;  %v7797_v22 = vld [vmem:[#allocation28 + $0xb40] sm:$0xff] }
0x13b8   : > { %8474 = vmatpush1.bf16.msra.mxu0 %v11433_v34  ;;  %v11483_v34 = vcombine.low %v7790_v58, %v7794_v47 }
0x13b9   : > { %8515 = vmatpush1.bf16.msra.mxu1 %v11435_v31  ;;  %8475 = vmatprep.subr.bf16.mxu0 %v11442_v33  ;;  %v11490_v31 = vcombine.high %v7797_v22, %v7801_v18  ;;  %v5777_v33 = vmul.f32 %v15675_v1, %v15638_v48  ;;  %v7814_v48 = vld [vmem:[#allocation28 + $0xbc8] sm:$0xff] }
0x13ba   : > { %8516 = vmatprep.subr.bf16.mxu1 %v11444_v14  ;;  %v11492_v14 = vcombine.high %v7798_v24, %v7802_v59 }
0x13bb   : > { %v5793_v35 = vmul.f32 %v5785_v45, %v5777_v33  ;;  %v7720_v33 = vld [vmem:[#allocation28 + $0x8d8] sm:$0xff] }
0x13bc   : > { %8476 = vmatpush1.bf16.msra.mxu0 %v11441_v38  ;;  %v7810_v38 = vld [vmem:[#allocation28 + $0xba8] sm:$0xff] }
0x13bd   : > { %8517 = vmatpush1.bf16.msra.mxu1 %v11443_v27  ;;  %8477 = vmatprep.subr.bf16.mxu0 %v11450_v51  ;;  %v11489_v27 = vcombine.low %v7797_v22, %v7801_v18  ;;  %v11491_v51 = vcombine.low %v7798_v24, %v7802_v59  ;;  %v11500_v41 = vcombine.high %v7806_v6, %v7810_v38  ;;  %v7716_v22 = vld [vmem:[#allocation28 + $0x8b8] sm:$0xff] }
0x13be   : > { %8518 = vmatprep.subr.bf16.mxu1 %v11452_v50  ;;  %v11498_v50 = vcombine.high %v7805_v16, %v7809_v53 }
0x13c0   : > { %8478 = vmatpush1.bf16.msra.mxu0 %v11449_v36  ;;  %v5801_v36 = vld [vmem:[#allocation26 + $0x20] sm:$0xff] }
0x13c1   : > { %8519 = vmatpush1.bf16.msra.mxu1 %v11451_v56  ;;  %8479 = vmatprep.subr.bf16.mxu0 %v11458_v23  ;;  %v7818_v56 = vld [vmem:[#allocation28 + $0xbe8] sm:$0xff]  ;;  %v11497_v23 = vcombine.low %v7805_v16, %v7809_v53  ;;  %v5809_v10 = vadd.f32 %v5801_v36, %v5793_v35  ;;  %v7739_v36 = vld [vmem:[#allocation28 + $0x970] sm:$0xff] }
0x13c2   : > { %8520 = vmatprep.subr.bf16.mxu1 %v11460_v55  ;;  %v11499_v55 = vcombine.low %v7806_v6, %v7810_v38  ;;  %v11508_v61 = vcombine.high %v7814_v48, %v7818_v56  ;;  %v11507_v13 = vcombine.low %v7814_v48, %v7818_v56  ;;  %v7727_v38 = vld [vmem:[#allocation28 + $0x910] sm:$0xff]  ;;  %v7736_v48 = vld [vmem:[#allocation28 + $0x958] sm:$0xff] }
0x13c3   : > { %v5817_v30 = vmax.f32 %v5809_v10, 0.0  ;;  %v7740_v56 = vld [vmem:[#allocation28 + $0x978] sm:$0xff] }
0x13c4   : > { %8480 = vmatpush1.bf16.msra.mxu0 %v11457_v40  ;;  %v7699_v40 = vld [vmem:[#allocation28 + $0x830] sm:$0xff]  ;;  %v11432_v10 = vcombine.high %v7736_v48, %v7740_v56 }
0x13c5   : > { %8521 = vmatpush1.bf16.msra.mxu1 %v11459_v2  ;;  %8481 = vmatprep.subr.bf16.mxu0 %v11466_v54  ;;  %v7696_v2 = vld [vmem:[#allocation28 + $0x818] sm:$0xff]  ;;  %v11390_v25 = vcombine.high %v7695_v62, %v7699_v40  ;;  %v15717_v20 = vpack.c.bf16 %v5817_v30, %v5817_v30 }
0x13c6   : > { %8522 = vmatprep.subr.bf16.mxu1 %v11468_v15  ;;  %v7700_v54 = vld [vmem:[#allocation28 + $0x838] sm:$0xff]  ;;  %v11505_v15 = vcombine.low %v7813_v26, %v7817_v17  ;;  %v7735_v17 = vld [vmem:[#allocation28 + $0x950] sm:$0xff] }
0x13c7   : > { %v11392_v49 = vcombine.high %v7696_v2, %v7700_v54  ;;  %v11391_v58 = vcombine.low %v7696_v2, %v7700_v54  ;;  %v7748_v2 = vld [vmem:[#allocation28 + $0x9b8] sm:$0xff]  ;;  %v11429_v54 = vcombine.low %v7735_v17, %v7739_v36 }
0x13c8   : > { %8482 = vmatpush1.bf16.msra.mxu0 %v11465_v42  ;;  %v7703_v42 = vld [vmem:[#allocation28 + $0x850] sm:$0xff] }
0x13c9   : > { %8523 = vmatpush1.bf16.msra.mxu1 %v11467_v60  ;;  %8483 = vmatprep.subr.bf16.mxu0 %v11474_v43  ;;  %v7707_v60 = vld [vmem:[#allocation28 + $0x870] sm:$0xff]  ;;  %v11389_v43 = vcombine.low %v7695_v62, %v7699_v40  ;;  %v7744_v40 = vld [vmem:[#allocation28 + $0x998] sm:$0xff] }
0x13ca   : > { %8524 = vmatprep.subr.bf16.mxu1 %v11476_v63  ;;  %v7704_v63 = vld [vmem:[#allocation28 + $0x858] sm:$0xff]  ;;  %v11398_v47 = vcombine.high %v7703_v42, %v7707_v60  ;;  %v11397_v18 = vcombine.low %v7703_v42, %v7707_v60  ;;  %v7747_v62 = vld [vmem:[#allocation28 + $0x9b0] sm:$0xff]  ;;  %v11440_v30 = vcombine.high %v7744_v40, %v7748_v2 }
0x13cb   : > { %v11399_v24 = vcombine.low %v7704_v63, %v7708_v4  ;;  %v7752_v42 = vld [vmem:[#allocation28 + $0x9d8] sm:$0xff] }
0x13cc   : > { %8484 = vmatpush1.bf16.msra.mxu0 %v11473_v19  ;;  %v7711_v19 = vld [vmem:[#allocation28 + $0x890] sm:$0xff]  ;;  %v7756_v60 = vld [vmem:[#allocation28 + $0x9f8] sm:$0xff] }
0x13cd   : > { %8525 = vmatpush1.bf16.msra.mxu1 %v11475_v57  ;;  %8485 = vmatprep.subr.bf16.mxu0 %v11482_v52  ;;  %v7715_v57 = vld [vmem:[#allocation28 + $0x8b0] sm:$0xff]  ;;  %v11400_v52 = vcombine.high %v7704_v63, %v7708_v4  ;;  %v11439_v63 = vcombine.low %v7744_v40, %v7748_v2 }
0x13ce   : > { %8526 = vmatprep.subr.bf16.mxu1 %v11484_v44  ;;  %v7712_v44 = vld [vmem:[#allocation28 + $0x898] sm:$0xff]  ;;  %v11406_v59 = vcombine.high %v7711_v19, %v7715_v57  ;;  %v11405_v16 = vcombine.low %v7711_v19, %v7715_v57  ;;  %v7763_v19 = vld [vmem:[#allocation28 + $0xa30] sm:$0xff] }
0x13cf   : > { %v11407_v53 = vcombine.low %v7712_v44, %v7716_v22  ;;  %v7760_v57 = vld [vmem:[#allocation28 + $0xa18] sm:$0xff] }
0x13d0   : > { %8486 = vmatpush1.bf16.msra.mxu0 %v11481_v9  ;;  %v11408_v9 = vcombine.high %v7712_v44, %v7716_v22  ;;  %v11447_v22 = vcombine.low %v7752_v42, %v7756_v60 }
0x13d1   : > { %8527 = vmatpush1.bf16.msra.mxu1 %v11483_v34  ;;  %8487 = vmatprep.subr.bf16.mxu0 %v11490_v31  ;;  %v7719_v34 = vld [vmem:[#allocation28 + $0x8d0] sm:$0xff] }
0x13d2   : > { %8528 = vmatprep.subr.bf16.mxu1 %v11492_v14  ;;  %v7723_v31 = vld [vmem:[#allocation28 + $0x8f0] sm:$0xff]  ;;  %v7724_v14 = vld [vmem:[#allocation28 + $0x8f8] sm:$0xff] }
0x13d3   : > { %v11414_v45 = vcombine.high %v7719_v34, %v7723_v31  ;;  %v11416_v6 = vcombine.high %v7720_v33, %v7724_v14  ;;  %v11415_v35 = vcombine.low %v7720_v33, %v7724_v14 }
0x13d4   : > { %8488 = vmatpush1.bf16.msra.mxu0 %v11489_v27  ;;  %v7731_v27 = vld [vmem:[#allocation28 + $0x930] sm:$0xff] }
0x13d5   : > { %8529 = vmatpush1.bf16.msra.mxu1 %v11491_v51  ;;  %8489 = vmatprep.subr.bf16.mxu0 %v11498_v50  ;;  %v7728_v51 = vld [vmem:[#allocation28 + $0x918] sm:$0xff] }
0x13d6   : > { %8530 = vmatprep.subr.bf16.mxu1 %v11500_v41  ;;  %v7732_v50 = vld [vmem:[#allocation28 + $0x938] sm:$0xff]  ;;  %v11422_v41 = vcombine.high %v7727_v38, %v7731_v27 }
0x13d7   : > { %v11424_v26 = vcombine.high %v7728_v51, %v7732_v50 }
0x13d8   : > { %8490 = vmatpush1.bf16.msra.mxu0 %v11497_v23  ;;  %v11421_v23 = vcombine.low %v7727_v38, %v7731_v27  ;;  %v7776_v38 = vld [vmem:[#allocation28 + $0xa98] sm:$0xff] }
0x13d9   : > { %8531 = vmatpush1.bf16.msra.mxu1 %v11499_v55  ;;  %8491 = vmatprep.subr.bf16.mxu0 %v11506_v39  ;;  %v11423_v55 = vcombine.low %v7728_v51, %v7732_v50  ;;  %v11430_v39 = vcombine.high %v7735_v17, %v7739_v36  ;;  %v7780_v27 = vld [vmem:[#allocation28 + $0xab8] sm:$0xff] }
0x13da   : > { %8532 = vmatprep.subr.bf16.mxu1 %v11508_v61  ;;  %v7743_v61 = vld [vmem:[#allocation28 + $0x990] sm:$0xff]  ;;  %v7784_v17 = vld [vmem:[#allocation28 + $0xad8] sm:$0xff] }
0x13db   : > { %v7788_v36 = vld [vmem:[#allocation28 + $0xaf8] sm:$0xff] }
0x13dc   : > { %8492 = vmatpush1.bf16.msra.mxu0 %v11505_v15  ;;  %v11431_v15 = vcombine.low %v7736_v48, %v7740_v56  ;;  %v11471_v56 = vcombine.low %v7776_v38, %v7780_v27  ;;  %v11479_v2 = vcombine.low %v7784_v17, %v7788_v36 }
0x13dd   : > { %8533 = vmatpush1.bf16.msra.mxu1 %v11507_v13  ;;  %8543 = vmatprep.subr.bf16.mxu0 %v11390_v25  ;;  %v11438_v13 = vcombine.high %v7743_v61, %v7747_v62  ;;  %v7751_v25 = vld [vmem:[#allocation28 + $0x9d0] sm:$0xff] }
0x13de   : > { %8584 = vmatprep.subr.bf16.mxu1 %v11392_v49  ;;  %v7755_v49 = vld [vmem:[#allocation28 + $0x9f0] sm:$0xff] }
0x13df   : > { %8494 = vmatmul.mubr.bf16.vlgmr.msra.gmra.mrb[108].mxu0 %v15717_v20  ;;  %v11446_v4 = vcombine.high %v7751_v25, %v7755_v49  ;;  %v11445_v44 = vcombine.low %v7751_v25, %v7755_v49  ;;  %v7800_v25 = vld [vmem:[#allocation28 + $0xb58] sm:$0xff] }
0x13e0   : > { %8535 = vmatmul.mubr.bf16.vlgmr.msra.gmra.mrb[92].mxu1 %v15717_v20  ;;  %8544 = vmatpush1.bf16.msra.mxu0 %v11389_v43  ;;  %v11437_v43 = vcombine.low %v7743_v61, %v7747_v62  ;;  %v7792_v61 = vld [vmem:[#allocation28 + $0xb18] sm:$0xff] }
0x13e1   : > { %8575 = vmatprep.mubr.bf16.mxu0 %v15710_v37  ;;  %8585 = vmatpush1.bf16.msra.mxu1 %v11391_v58  ;;  %v11448_v58 = vcombine.high %v7752_v42, %v7756_v60  ;;  %v7796_v62 = vld [vmem:[#allocation28 + $0xb38] sm:$0xff] }
0x13e2   : > { %8616 = vmatprep.mubr.bf16.mxu1 %v15710_v37  ;;  %8545 = vmatprep.subr.bf16.mxu0 %v11398_v47  ;;  %v11413_v37 = vcombine.low %v7719_v34, %v7723_v31  ;;  %v7759_v47 = vld [vmem:[#allocation28 + $0xa10] sm:$0xff]  ;;  %v7768_v34 = vld [vmem:[#allocation28 + $0xa58] sm:$0xff]  ;;  %v11487_v60 = vcombine.low %v7792_v61, %v7796_v62 }
0x13e3   : > { %8586 = vmatprep.subr.bf16.mxu1 %v11400_v52  ;;  %v7764_v52 = vld [vmem:[#allocation28 + $0xa38] sm:$0xff]  ;;  %v11453_v33 = vcombine.low %v7759_v47, %v7763_v19 }
0x13e4   : > { %8546 = vmatpush1.bf16.msra.mxu0 %v11397_v18  ;;  %v11454_v18 = vcombine.high %v7759_v47, %v7763_v19  ;;  %v7772_v31 = vld [vmem:[#allocation28 + $0xa78] sm:$0xff]  ;;  %v11455_v14 = vcombine.low %v7760_v57, %v7764_v52 }
0x13e5   : > { %8587 = vmatpush1.bf16.msra.mxu1 %v11399_v24  ;;  %8547 = vmatprep.subr.bf16.mxu0 %v11406_v59  ;;  %v11456_v24 = vcombine.high %v7760_v57, %v7764_v52  ;;  %v7767_v59 = vld [vmem:[#allocation28 + $0xa50] sm:$0xff]  ;;  %v11463_v50 = vcombine.low %v7768_v34, %v7772_v31  ;;  %v7804_v49 = vld [vmem:[#allocation28 + $0xb78] sm:$0xff]  ;;  %v5780_v57 = vmul.f32 %v15675_v1, %v15635_v32 }
0x13e6   : > { %8588 = vmatprep.subr.bf16.mxu1 %v11408_v9  ;;  %v7771_v9 = vld [vmem:[#allocation28 + $0xa70] sm:$0xff]  ;;  %v7808_v47 = vld [vmem:[#allocation28 + $0xb98] sm:$0xff] }
0x13e7   : > { %v11461_v51 = vcombine.low %v7767_v59, %v7771_v9  ;;  %v7812_v19 = vld [vmem:[#allocation28 + $0xbb8] sm:$0xff] }
0x13e8   : > { %8548 = vmatpush1.bf16.msra.mxu0 %v11405_v16  ;;  %v11462_v16 = vcombine.high %v7767_v59, %v7771_v9  ;;  %v7815_v59 = vld [vmem:[#allocation28 + $0xbd0] sm:$0xff]  ;;  %v11503_v32 = vcombine.low %v7808_v47, %v7812_v19 }
0x13e9   : > { %8589 = vmatpush1.bf16.msra.mxu1 %v11407_v53  ;;  %8549 = vmatprep.subr.bf16.mxu0 %v11414_v45  ;;  %v11464_v53 = vcombine.high %v7768_v34, %v7772_v31  ;;  %v7775_v45 = vld [vmem:[#allocation28 + $0xa90] sm:$0xff]  ;;  %v7816_v34 = vld [vmem:[#allocation28 + $0xbd8] sm:$0xff] }
0x13ea   : > { %8590 = vmatprep.subr.bf16.mxu1 %v11416_v6  ;;  %v7779_v6 = vld [vmem:[#allocation28 + $0xab0] sm:$0xff]  ;;  %v7820_v31 = vld [vmem:[#allocation28 + $0xbf8] sm:$0xff] }
0x13eb   : > { %v11469_v48 = vcombine.low %v7775_v45, %v7779_v6  ;;  %v7819_v9 = vld [vmem:[#allocation28 + $0xbf0] sm:$0xff] }
0x13ec   : > { %8550 = vmatpush1.bf16.msra.mxu0 %v11413_v37  ;;  %v11470_v37 = vcombine.high %v7775_v45, %v7779_v6  ;;  %v11512_v45 = vcombine.high %v7816_v34, %v7820_v31  ;;  %v8636_v6 = vld [vmem:[#allocation28 + $0xc00] sm:$0xff] }
0x13ed   : > { %8591 = vmatpush1.bf16.msra.mxu1 %v11415_v35  ;;  %8551 = vmatprep.subr.bf16.mxu0 %v11422_v41  ;;  %v11472_v35 = vcombine.high %v7776_v38, %v7780_v27  ;;  %v7783_v41 = vld [vmem:[#allocation28 + $0xad0] sm:$0xff]  ;;  %v8640_v38 = vld [vmem:[#allocation28 + $0xc20] sm:$0xff]  ;;  %v8637_v27 = vld [vmem:[#allocation28 + $0xc08] sm:$0xff] }
0x13ee   : > { %8592 = vmatprep.subr.bf16.mxu1 %v11424_v26  ;;  %v7787_v26 = vld [vmem:[#allocation28 + $0xaf0] sm:$0xff] }
0x13ef   : > { %v11477_v40 = vcombine.low %v7783_v41, %v7787_v26 }
0x13f0   : > { %8552 = vmatpush1.bf16.msra.mxu0 %v11421_v23  ;;  %v11478_v23 = vcombine.high %v7783_v41, %v7787_v26  ;;  %v11514_v41 = vcombine.high %v8636_v6, %v8640_v38 }
0x13f1   : > { %8593 = vmatpush1.bf16.msra.mxu1 %v11423_v55  ;;  %8553 = vmatprep.subr.bf16.mxu0 %v11430_v39  ;;  %v11480_v55 = vcombine.high %v7784_v17, %v7788_v36  ;;  %v7791_v39 = vld [vmem:[#allocation28 + $0xb10] sm:$0xff]  ;;  %v8644_v36 = vld [vmem:[#allocation28 + $0xc40] sm:$0xff] }
0x13f2   : > { %8594 = vmatprep.subr.bf16.mxu1 %v11432_v10  ;;  %v7795_v10 = vld [vmem:[#allocation28 + $0xb30] sm:$0xff] }
0x13f3   : > { %v11485_v42 = vcombine.low %v7791_v39, %v7795_v10 }
0x13f4   : > { %8554 = vmatpush1.bf16.msra.mxu0 %v11429_v54  ;;  %v11486_v54 = vcombine.high %v7791_v39, %v7795_v10 }
0x13f5   : > { %8595 = vmatpush1.bf16.msra.mxu1 %v11431_v15  ;;  %8555 = vmatprep.subr.bf16.mxu0 %v11438_v13  ;;  %v11488_v15 = vcombine.high %v7792_v61, %v7796_v62  ;;  %v7799_v13 = vld [vmem:[#allocation28 + $0xb50] sm:$0xff]  ;;  %v8652_v61 = vld [vmem:[#allocation28 + $0xc80] sm:$0xff] }
0x13f6   : > { %8596 = vmatprep.subr.bf16.mxu1 %v11440_v30  ;;  %v7803_v30 = vld [vmem:[#allocation28 + $0xb70] sm:$0xff]  ;;  %v8656_v62 = vld [vmem:[#allocation28 + $0xca0] sm:$0xff] }
0x13f7   : > { %v11493_v52 = vcombine.low %v7799_v13, %v7803_v30 }
0x13f8   : > { %8556 = vmatpush1.bf16.msra.mxu0 %v11437_v43  ;;  %v11494_v43 = vcombine.high %v7799_v13, %v7803_v30 }
0x13f9   : > { %8597 = vmatpush1.bf16.msra.mxu1 %v11439_v63  ;;  %8557 = vmatprep.subr.bf16.mxu0 %v11446_v4  ;;  %v11496_v63 = vcombine.high %v7800_v25, %v7804_v49  ;;  %v7807_v4 = vld [vmem:[#allocation28 + $0xb90] sm:$0xff] }
0x13fa   : > { %8598 = vmatprep.subr.bf16.mxu1 %v11448_v58  ;;  %v7811_v58 = vld [vmem:[#allocation28 + $0xbb0] sm:$0xff] }
0x13fc   : > { %8558 = vmatpush1.bf16.msra.mxu0 %v11445_v44  ;;  %v5788_v44 = vld [vmem:[#allocation25 + $0x38] sm:$0xff] }
0x13fd   : > { %8599 = vmatpush1.bf16.msra.mxu1 %v11447_v22  ;;  %8559 = vmatprep.subr.bf16.mxu0 %v11454_v18  ;;  %v11495_v22 = vcombine.low %v7800_v25, %v7804_v49  ;;  %v11502_v18 = vcombine.high %v7807_v4, %v7811_v58  ;;  %v11530_v25 = vcombine.high %v8652_v61, %v8656_v62 }
0x13fe   : > { %8600 = vmatprep.subr.bf16.mxu1 %v11456_v24  ;;  %v11504_v24 = vcombine.high %v7808_v47, %v7812_v19  ;;  %v8668_v19 = vld [vmem:[#allocation28 + $0xd00] sm:$0xff] }
0x1400   : > { %8560 = vmatpush1.bf16.msra.mxu0 %v11453_v33  ;;  %v5796_v33 = vmul.f32 %v5788_v44, %v5780_v57  ;;  %v8672_v57 = vld [vmem:[#allocation28 + $0xd20] sm:$0xff]  ;;  %v8673_v44 = vld [vmem:[#allocation28 + $0xd28] sm:$0xff] }
0x1401   : > { %8601 = vmatpush1.bf16.msra.mxu1 %v11455_v14  ;;  %8561 = vmatprep.subr.bf16.mxu0 %v11462_v16  ;;  %v11501_v14 = vcombine.low %v7807_v4, %v7811_v58  ;;  %v5804_v16 = vld [vmem:[#allocation26 + $0x38] sm:$0xff]  ;;  %v11529_v4 = vcombine.low %v8652_v61, %v8656_v62  ;;  %v8701_v61 = vld [vmem:[#allocation28 + $0xe08] sm:$0xff] }
0x1402   : > { %8602 = vmatprep.subr.bf16.mxu1 %v11464_v53  ;;  %v11510_v53 = vcombine.high %v7815_v59, %v7819_v9  ;;  %v8705_v62 = vld [vmem:[#allocation28 + $0xe28] sm:$0xff] }
0x1404   : > { %8562 = vmatpush1.bf16.msra.mxu0 %v11461_v51  ;;  %v8641_v51 = vld [vmem:[#allocation28 + $0xc28] sm:$0xff] }
0x1405   : > { %8603 = vmatpush1.bf16.msra.mxu1 %v11463_v50  ;;  %8563 = vmatprep.subr.bf16.mxu0 %v11470_v37  ;;  %v5812_v50 = vadd.f32 %v5804_v16, %v5796_v33  ;;  %v11509_v37 = vcombine.low %v7815_v59, %v7819_v9  ;;  %v11516_v26 = vcombine.high %v8637_v27, %v8641_v51  ;;  %v8676_v9 = vld [vmem:[#allocation28 + $0xd40] sm:$0xff]  ;;  %v8681_v33 = vld [vmem:[#allocation28 + $0xd68] sm:$0xff] }
0x1406   : > { %8604 = vmatprep.subr.bf16.mxu1 %v11472_v35  ;;  %v11511_v35 = vcombine.low %v7816_v34, %v7820_v31  ;;  %v11515_v39 = vcombine.low %v8637_v27, %v8641_v51  ;;  %v8680_v34 = vld [vmem:[#allocation28 + $0xd60] sm:$0xff]  ;;  %v8677_v31 = vld [vmem:[#allocation28 + $0xd48] sm:$0xff] }
0x1407   : > { %v5820_v17 = vmax.f32 %v5812_v50, 0.0  ;;  %v8689_v27 = vld [vmem:[#allocation28 + $0xda8] sm:$0xff]  ;;  %v11553_v51 = vcombine.low %v8676_v9, %v8680_v34  ;;  %v11555_v50 = vcombine.low %v8677_v31, %v8681_v33 }
0x1408   : > { %8564 = vmatpush1.bf16.msra.mxu0 %v11469_v48  ;;  %v8648_v48 = vld [vmem:[#allocation28 + $0xc60] sm:$0xff] }
0x1409   : > { %8605 = vmatpush1.bf16.msra.mxu1 %v11471_v56  ;;  %8565 = vmatprep.subr.bf16.mxu0 %v11478_v23  ;;  %v11513_v56 = vcombine.low %v8636_v6, %v8640_v38  ;;  %v8645_v23 = vld [vmem:[#allocation28 + $0xc48] sm:$0xff]  ;;  %v11522_v10 = vcombine.high %v8644_v36, %v8648_v48  ;;  %v11521_v13 = vcombine.low %v8644_v36, %v8648_v48  ;;  %v8688_v6 = vld [vmem:[#allocation28 + $0xda0] sm:$0xff] }
0x140a   : > { %8606 = vmatprep.subr.bf16.mxu1 %v11480_v55  ;;  %v8649_v55 = vld [vmem:[#allocation28 + $0xc68] sm:$0xff] }
0x140b   : > { %v11523_v30 = vcombine.low %v8645_v23, %v8649_v55  ;;  %v8685_v38 = vld [vmem:[#allocation28 + $0xd88] sm:$0xff] }
0x140c   : > { %8566 = vmatpush1.bf16.msra.mxu0 %v11477_v40  ;;  %v15726_v40 = vpack.c.bf16 %v5820_v17, %v5820_v17  ;;  %v8693_v17 = vld [vmem:[#allocation28 + $0xdc8] sm:$0xff] }
0x140d   : > { %8607 = vmatpush1.bf16.msra.mxu1 %v11479_v2  ;;  %8567 = vmatprep.subr.bf16.mxu0 %v11486_v54  ;;  %v11524_v2 = vcombine.high %v8645_v23, %v8649_v55  ;;  %v8653_v54 = vld [vmem:[#allocation28 + $0xc88] sm:$0xff] }
0x140e   : > { %8608 = vmatprep.subr.bf16.mxu1 %v11488_v15  ;;  %v8657_v15 = vld [vmem:[#allocation28 + $0xca8] sm:$0xff] }
0x140f   : > { %v11532_v49 = vcombine.high %v8653_v54, %v8657_v15  ;;  %v8697_v36 = vld [vmem:[#allocation28 + $0xde8] sm:$0xff] }
0x1410   : > { %8568 = vmatpush1.bf16.msra.mxu0 %v11485_v42  ;;  %v8660_v42 = vld [vmem:[#allocation28 + $0xcc0] sm:$0xff]  ;;  %v11572_v55 = vcombine.high %v8693_v17, %v8697_v36 }
0x1411   : > { %8609 = vmatpush1.bf16.msra.mxu1 %v11487_v60  ;;  %8569 = vmatprep.subr.bf16.mxu0 %v11494_v43  ;;  %v8664_v60 = vld [vmem:[#allocation28 + $0xce0] sm:$0xff]  ;;  %v8661_v43 = vld [vmem:[#allocation28 + $0xcc8] sm:$0xff] }
0x1412   : > { %8610 = vmatprep.subr.bf16.mxu1 %v11496_v63  ;;  %v8665_v63 = vld [vmem:[#allocation28 + $0xce8] sm:$0xff]  ;;  %v11538_v58 = vcombine.high %v8660_v42, %v8664_v60 }
0x1413   : > { %v11540_v47 = vcombine.high %v8661_v43, %v8665_v63 }
0x1414   : > { %8570 = vmatpush1.bf16.msra.mxu0 %v11493_v52  ;;  %v8669_v52 = vld [vmem:[#allocation28 + $0xd08] sm:$0xff] }
0x1415   : > { %8611 = vmatpush1.bf16.msra.mxu1 %v11495_v22  ;;  %8571 = vmatprep.subr.bf16.mxu0 %v11502_v18  ;;  %v11537_v22 = vcombine.low %v8660_v42, %v8664_v60  ;;  %v11539_v18 = vcombine.low %v8661_v43, %v8665_v63  ;;  %v11548_v59 = vcombine.high %v8669_v52, %v8673_v44  ;;  %v8713_v42 = vld [vmem:[#allocation28 + $0xe68] sm:$0xff] }
0x1416   : > { %8612 = vmatprep.subr.bf16.mxu1 %v11504_v24  ;;  %v11546_v24 = vcombine.high %v8668_v19, %v8672_v57  ;;  %v11547_v16 = vcombine.low %v8669_v52, %v8673_v44  ;;  %v11579_v43 = vcombine.low %v8701_v61, %v8705_v62 }
0x1418   : > { %8572 = vmatpush1.bf16.msra.mxu0 %v11501_v14  ;;  %v11545_v14 = vcombine.low %v8668_v19, %v8672_v57  ;;  %v8721_v19 = vld [vmem:[#allocation28 + $0xea8] sm:$0xff] }
0x1419   : > { %8613 = vmatpush1.bf16.msra.mxu1 %v11503_v32  ;;  %8573 = vmatprep.subr.bf16.mxu0 %v11510_v53  ;;  %v11554_v32 = vcombine.high %v8676_v9, %v8680_v34  ;;  %v11556_v53 = vcombine.high %v8677_v31, %v8681_v33  ;;  %v8729_v9 = vld [vmem:[#allocation28 + $0xee8] sm:$0xff] }
0x141a   : > { %8614 = vmatprep.subr.bf16.mxu1 %v11512_v45  ;;  %v8684_v45 = vld [vmem:[#allocation28 + $0xd80] sm:$0xff] }
0x141b   : > { %v11561_v48 = vcombine.low %v8684_v45, %v8688_v6 }
0x141c   : > { %8574 = vmatpush1.bf16.msra.mxu0 %v11509_v37  ;;  %v11562_v37 = vcombine.high %v8684_v45, %v8688_v6  ;;  %v8737_v45 = vld [vmem:[#allocation28 + $0xf28] sm:$0xff] }
0x141d   : > { %8615 = vmatpush1.bf16.msra.mxu1 %v11511_v35  ;;  %9404 = vmatprep.subr.bf16.mxu0 %v11514_v41  ;;  %v11564_v35 = vcombine.high %v8685_v38, %v8689_v27  ;;  %v8692_v41 = vld [vmem:[#allocation28 + $0xdc0] sm:$0xff] }
0x141e   : > { %9445 = vmatprep.subr.bf16.mxu1 %v11516_v26  ;;  %v8696_v26 = vld [vmem:[#allocation28 + $0xde0] sm:$0xff] }
0x141f   : > { %8576 = vmatmul.mubr.bf16.vlgmr.msra.gmra.mrb[112].mxu0 %v15717_v20  ;;  %v11570_v23 = vcombine.high %v8692_v41, %v8696_v26 }
0x1420   : > { %8617 = vmatmul.mubr.bf16.vlgmr.msra.gmra.mrb[96].mxu1 %v15717_v20  ;;  %9405 = vmatpush1.bf16.msra.mxu0 %v11513_v56  ;;  %v11531_v20 = vcombine.low %v8653_v54, %v8657_v15  ;;  %v11563_v56 = vcombine.low %v8685_v38, %v8689_v27  ;;  %v11571_v54 = vcombine.low %v8693_v17, %v8697_v36 }
0x1421   : > { %9436 = vmatprep.mubr.bf16.mxu0 %v15726_v40  ;;  %9446 = vmatpush1.bf16.msra.mxu1 %v11515_v39  ;;  %v8700_v39 = vld [vmem:[#allocation28 + $0xe00] sm:$0xff] }
0x1422   : > { %9477 = vmatprep.mubr.bf16.mxu1 %v15726_v40  ;;  %9406 = vmatprep.subr.bf16.mxu0 %v11522_v10  ;;  %v8704_v10 = vld [vmem:[#allocation28 + $0xe20] sm:$0xff] }
0x1423   : > { %9447 = vmatprep.subr.bf16.mxu1 %v11524_v2  ;;  %v11569_v2 = vcombine.low %v8692_v41, %v8696_v26  ;;  %v11578_v15 = vcombine.high %v8700_v39, %v8704_v10  ;;  %v11577_v60 = vcombine.low %v8700_v39, %v8704_v10  ;;  %v8745_v41 = vld [vmem:[#allocation28 + $0xf68] sm:$0xff]  ;;  %v5787_v39 = vld [vmem:[#allocation25 + $0x30] sm:$0xff] }
0x1424   : > { %9407 = vmatpush1.bf16.msra.mxu0 %v11521_v13  ;;  %v11580_v13 = vcombine.high %v8701_v61, %v8705_v62  ;;  %v8749_v10 = vld [vmem:[#allocation28 + $0xf88] sm:$0xff] }
0x1425   : > { %9448 = vmatpush1.bf16.msra.mxu1 %v11523_v30  ;;  %9408 = vmatprep.subr.bf16.mxu0 %v11530_v25  ;;  %v8708_v30 = vld [vmem:[#allocation28 + $0xe40] sm:$0xff]  ;;  %v8753_v61 = vld [vmem:[#allocation28 + $0xfa8] sm:$0xff] }
0x1426   : > { %9449 = vmatprep.subr.bf16.mxu1 %v11532_v49  ;;  %v8712_v25 = vld [vmem:[#allocation28 + $0xe60] sm:$0xff]  ;;  %v8709_v49 = vld [vmem:[#allocation28 + $0xe48] sm:$0xff] }
0x1427   : > { %v11586_v63 = vcombine.high %v8708_v30, %v8712_v25  ;;  %v11585_v57 = vcombine.low %v8708_v30, %v8712_v25  ;;  %v11587_v52 = vcombine.low %v8709_v49, %v8713_v42  ;;  %v8756_v30 = vld [vmem:[#allocation28 + $0xfc0] sm:$0xff] }
0x1428   : > { %9409 = vmatpush1.bf16.msra.mxu0 %v11529_v4  ;;  %v11588_v4 = vcombine.high %v8709_v49, %v8713_v42  ;;  %v8760_v25 = vld [vmem:[#allocation28 + $0xfe0] sm:$0xff]  ;;  %v5803_v49 = vld [vmem:[#allocation26 + $0x30] sm:$0xff] }
0x1429   : > { %9450 = vmatpush1.bf16.msra.mxu1 %v11531_v20  ;;  %9410 = vmatprep.subr.bf16.mxu0 %v11538_v58  ;;  %v8716_v20 = vld [vmem:[#allocation28 + $0xe80] sm:$0xff] }
0x142a   : > { %9451 = vmatprep.subr.bf16.mxu1 %v11540_v47  ;;  %v8720_v58 = vld [vmem:[#allocation28 + $0xea0] sm:$0xff]  ;;  %v8717_v47 = vld [vmem:[#allocation28 + $0xe88] sm:$0xff] }
0x142b   : > { %v11594_v44 = vcombine.high %v8716_v20, %v8720_v58  ;;  %v11593_v34 = vcombine.low %v8716_v20, %v8720_v58  ;;  %v11595_v31 = vcombine.low %v8717_v47, %v8721_v19  ;;  %v8638_v20 = vld [vmem:[#allocation28 + $0xc10] sm:$0xff] }
0x142c   : > { %9411 = vmatpush1.bf16.msra.mxu0 %v11537_v22  ;;  %v11596_v22 = vcombine.high %v8717_v47, %v8721_v19  ;;  %v8642_v58 = vld [vmem:[#allocation28 + $0xc30] sm:$0xff]  ;;  %v8639_v47 = vld [vmem:[#allocation28 + $0xc18] sm:$0xff] }
0x142d   : > { %9452 = vmatpush1.bf16.msra.mxu1 %v11539_v18  ;;  %9412 = vmatprep.subr.bf16.mxu0 %v11546_v24  ;;  %v8724_v18 = vld [vmem:[#allocation28 + $0xec0] sm:$0xff]  ;;  %v8643_v19 = vld [vmem:[#allocation28 + $0xc38] sm:$0xff] }
0x142e   : > { %9453 = vmatprep.subr.bf16.mxu1 %v11548_v59  ;;  %v8728_v24 = vld [vmem:[#allocation28 + $0xee0] sm:$0xff]  ;;  %v8725_v59 = vld [vmem:[#allocation28 + $0xec8] sm:$0xff] }
0x142f   : > { %v11602_v33 = vcombine.high %v8724_v18, %v8728_v24  ;;  %v11601_v6 = vcombine.low %v8724_v18, %v8728_v24  ;;  %v11603_v38 = vcombine.low %v8725_v59, %v8729_v9  ;;  %v11520_v18 = vcombine.high %v8639_v47, %v8643_v19  ;;  %v8646_v24 = vld [vmem:[#allocation28 + $0xc50] sm:$0xff] }
0x1430   : > { %9413 = vmatpush1.bf16.msra.mxu0 %v11545_v14  ;;  %v11604_v14 = vcombine.high %v8725_v59, %v8729_v9  ;;  %v8650_v59 = vld [vmem:[#allocation28 + $0xc70] sm:$0xff]  ;;  %v11517_v9 = vcombine.low %v8638_v20, %v8642_v58 }
0x1431   : > { %9454 = vmatpush1.bf16.msra.mxu1 %v11547_v16  ;;  %9414 = vmatprep.subr.bf16.mxu0 %v11554_v32  ;;  %v8732_v16 = vld [vmem:[#allocation28 + $0xf00] sm:$0xff] }
0x1432   : > { %9455 = vmatprep.subr.bf16.mxu1 %v11556_v53  ;;  %v8736_v32 = vld [vmem:[#allocation28 + $0xf20] sm:$0xff]  ;;  %v8733_v53 = vld [vmem:[#allocation28 + $0xf08] sm:$0xff] }
0x1433   : > { %v11610_v27 = vcombine.high %v8732_v16, %v8736_v32  ;;  %v11609_v26 = vcombine.low %v8732_v16, %v8736_v32  ;;  %v11611_v17 = vcombine.low %v8733_v53, %v8737_v45  ;;  %v11526_v16 = vcombine.high %v8646_v24, %v8650_v59  ;;  %v8654_v32 = vld [vmem:[#allocation28 + $0xc90] sm:$0xff] }
0x1434   : > { %9415 = vmatpush1.bf16.msra.mxu0 %v11553_v51  ;;  %v11612_v51 = vcombine.high %v8733_v53, %v8737_v45  ;;  %v8658_v53 = vld [vmem:[#allocation28 + $0xcb0] sm:$0xff] }
0x1435   : > { %9456 = vmatpush1.bf16.msra.mxu1 %v11555_v50  ;;  %9416 = vmatprep.subr.bf16.mxu0 %v11562_v37  ;;  %v8740_v50 = vld [vmem:[#allocation28 + $0xf40] sm:$0xff] }
0x1436   : > { %9457 = vmatprep.subr.bf16.mxu1 %v11564_v35  ;;  %v8744_v37 = vld [vmem:[#allocation28 + $0xf60] sm:$0xff]  ;;  %v8741_v35 = vld [vmem:[#allocation28 + $0xf48] sm:$0xff] }
0x1437   : > { %v11618_v36 = vcombine.high %v8740_v50, %v8744_v37  ;;  %v11617_v62 = vcombine.low %v8740_v50, %v8744_v37  ;;  %v11534_v50 = vcombine.high %v8654_v32, %v8658_v53 }
0x1438   : > { %9417 = vmatpush1.bf16.msra.mxu0 %v11561_v48  ;;  %v5779_v48 = vmul.f32 %v15675_v1, %v15632_v46  ;;  %v8757_v46 = vld [vmem:[#allocation28 + $0xfc8] sm:$0xff] }
0x1439   : > { %9458 = vmatpush1.bf16.msra.mxu1 %v11563_v56  ;;  %9418 = vmatprep.subr.bf16.mxu0 %v11570_v23  ;;  %v11620_v56 = vcombine.high %v8741_v35, %v8745_v41  ;;  %v8748_v23 = vld [vmem:[#allocation28 + $0xf80] sm:$0xff]  ;;  %v8761_v1 = vld [vmem:[#allocation28 + $0xfe8] sm:$0xff] }
0x143a   : > { %9459 = vmatprep.subr.bf16.mxu1 %v11572_v55  ;;  %v8752_v55 = vld [vmem:[#allocation28 + $0xfa0] sm:$0xff] }
0x143b   : > { %v11625_v42 = vcombine.low %v8748_v23, %v8752_v55 }
0x143c   : > { %9419 = vmatpush1.bf16.msra.mxu0 %v11569_v2  ;;  %v11619_v2 = vcombine.low %v8741_v35, %v8745_v41  ;;  %v8662_v35 = vld [vmem:[#allocation28 + $0xcd0] sm:$0xff] }
0x143d   : > { %9460 = vmatpush1.bf16.msra.mxu1 %v11571_v54  ;;  %9420 = vmatprep.subr.bf16.mxu0 %v11578_v15  ;;  %v11626_v54 = vcombine.high %v8748_v23, %v8752_v55  ;;  %v5795_v15 = vmul.f32 %v5787_v39, %v5779_v48  ;;  %v8666_v41 = vld [vmem:[#allocation28 + $0xcf0] sm:$0xff] }
0x143e   : > { %9461 = vmatprep.subr.bf16.mxu1 %v11580_v13  ;;  %v11628_v13 = vcombine.high %v8749_v10, %v8753_v61  ;;  %v8670_v55 = vld [vmem:[#allocation28 + $0xd10] sm:$0xff] }
0x143f   : > { %v8674_v39 = vld [vmem:[#allocation28 + $0xd30] sm:$0xff] }
0x1440   : > { %9421 = vmatpush1.bf16.msra.mxu0 %v11577_v60  ;;  %v11627_v60 = vcombine.low %v8749_v10, %v8753_v61  ;;  %v8671_v10 = vld [vmem:[#allocation28 + $0xd18] sm:$0xff] }
0x1441   : > { %9462 = vmatpush1.bf16.msra.mxu1 %v11579_v43  ;;  %9422 = vmatprep.subr.bf16.mxu0 %v11586_v63  ;;  %v11634_v43 = vcombine.high %v8756_v30, %v8760_v25  ;;  %v5811_v63 = vadd.f32 %v5803_v49, %v5795_v15  ;;  %v8675_v61 = vld [vmem:[#allocation28 + $0xd38] sm:$0xff]  ;;  %v8678_v15 = vld [vmem:[#allocation28 + $0xd50] sm:$0xff]  ;;  %v11549_v49 = vcombine.low %v8670_v55, %v8674_v39 }
0x1442   : > { %9463 = vmatprep.subr.bf16.mxu1 %v11588_v4  ;;  %v11636_v4 = vcombine.high %v8757_v46, %v8761_v1 }
0x1444   : > { %9423 = vmatpush1.bf16.msra.mxu0 %v11585_v57  ;;  %v11633_v57 = vcombine.low %v8756_v30, %v8760_v25  ;;  %v8679_v30 = vld [vmem:[#allocation28 + $0xd58] sm:$0xff] }
0x1445   : > { %9464 = vmatpush1.bf16.msra.mxu1 %v11587_v52  ;;  %9424 = vmatprep.subr.bf16.mxu0 %v11594_v44  ;;  %v11635_v52 = vcombine.low %v8757_v46, %v8761_v1  ;;  %v5819_v44 = vmax.f32 %v5811_v63, 0.0  ;;  %v8683_v25 = vld [vmem:[#allocation28 + $0xd78] sm:$0xff]  ;;  %v11551_v46 = vcombine.low %v8671_v10, %v8675_v61 }
0x1446   : > { %9465 = vmatprep.subr.bf16.mxu1 %v11596_v22  ;;  %v11518_v22 = vcombine.high %v8638_v20, %v8642_v58  ;;  %v8687_v63 = vld [vmem:[#allocation28 + $0xd98] sm:$0xff]  ;;  %v11559_v58 = vcombine.low %v8679_v30, %v8683_v25 }
0x1448   : > { %9425 = vmatpush1.bf16.msra.mxu0 %v11593_v34  ;;  %v8647_v34 = vld [vmem:[#allocation28 + $0xc58] sm:$0xff] }
0x1449   : > { %9466 = vmatpush1.bf16.msra.mxu1 %v11595_v31  ;;  %9426 = vmatprep.subr.bf16.mxu0 %v11602_v33  ;;  %v8651_v31 = vld [vmem:[#allocation28 + $0xc78] sm:$0xff]  ;;  %v15733_v33 = vpack.c.bf16 %v5819_v44, %v5819_v44 }
0x144a   : > { %9467 = vmatprep.subr.bf16.mxu1 %v11604_v14  ;;  %v11519_v14 = vcombine.low %v8639_v47, %v8643_v19  ;;  %v11528_v45 = vcombine.high %v8647_v34, %v8651_v31  ;;  %v8695_v44 = vld [vmem:[#allocation28 + $0xdd8] sm:$0xff] }
0x144c   : > { %9427 = vmatpush1.bf16.msra.mxu0 %v11601_v6  ;;  %v8655_v6 = vld [vmem:[#allocation28 + $0xc98] sm:$0xff] }
0x144d   : > { %9468 = vmatpush1.bf16.msra.mxu1 %v11603_v38  ;;  %9428 = vmatprep.subr.bf16.mxu0 %v11610_v27  ;;  %v8659_v38 = vld [vmem:[#allocation28 + $0xcb8] sm:$0xff]  ;;  %v11525_v27 = vcombine.low %v8646_v24, %v8650_v59 }
0x144e   : > { %9469 = vmatprep.subr.bf16.mxu1 %v11612_v51  ;;  %v11527_v51 = vcombine.low %v8647_v34, %v8651_v31  ;;  %v11536_v37 = vcombine.high %v8655_v6, %v8659_v38  ;;  %v11535_v48 = vcombine.low %v8655_v6, %v8659_v38  ;;  %v8702_v34 = vld [vmem:[#allocation28 + $0xe10] sm:$0xff] }
0x144f   : > { %v8706_v31 = vld [vmem:[#allocation28 + $0xe30] sm:$0xff] }
0x1450   : > { %9429 = vmatpush1.bf16.msra.mxu0 %v11609_v26  ;;  %v8663_v26 = vld [vmem:[#allocation28 + $0xcd8] sm:$0xff]  ;;  %v8710_v38 = vld [vmem:[#allocation28 + $0xe50] sm:$0xff] }
0x1451   : > { %9470 = vmatpush1.bf16.msra.mxu1 %v11611_v17  ;;  %9430 = vmatprep.subr.bf16.mxu0 %v11618_v36  ;;  %v8667_v17 = vld [vmem:[#allocation28 + $0xcf8] sm:$0xff]  ;;  %v11533_v36 = vcombine.low %v8654_v32, %v8658_v53 }
0x1452   : > { %9471 = vmatprep.subr.bf16.mxu1 %v11620_v56  ;;  %v11542_v56 = vcombine.high %v8662_v35, %v8666_v41  ;;  %v11544_v23 = vcombine.high %v8663_v26, %v8667_v17 }
0x1454   : > { %9431 = vmatpush1.bf16.msra.mxu0 %v11617_v62  ;;  %v11543_v62 = vcombine.low %v8663_v26, %v8667_v17  ;;  %v8718_v17 = vld [vmem:[#allocation28 + $0xe90] sm:$0xff] }
0x1455   : > { %9472 = vmatpush1.bf16.msra.mxu1 %v11619_v2  ;;  %9432 = vmatprep.subr.bf16.mxu0 %v11626_v54  ;;  %v11550_v2 = vcombine.high %v8670_v55, %v8674_v39  ;;  %v11552_v54 = vcombine.high %v8671_v10, %v8675_v61  ;;  %v8726_v61 = vld [vmem:[#allocation28 + $0xed0] sm:$0xff] }
0x1456   : > { %9473 = vmatprep.subr.bf16.mxu1 %v11628_v13  ;;  %v8682_v13 = vld [vmem:[#allocation28 + $0xd70] sm:$0xff] }
0x1457   : > { %v11558_v1 = vcombine.high %v8678_v15, %v8682_v13  ;;  %v11557_v20 = vcombine.low %v8678_v15, %v8682_v13 }
0x1458   : > { %9433 = vmatpush1.bf16.msra.mxu0 %v11625_v42  ;;  %v11560_v42 = vcombine.high %v8679_v30, %v8683_v25  ;;  %v8734_v25 = vld [vmem:[#allocation28 + $0xf10] sm:$0xff] }
0x1459   : > { %9474 = vmatpush1.bf16.msra.mxu1 %v11627_v60  ;;  %9434 = vmatprep.subr.bf16.mxu0 %v11634_v43  ;;  %v8686_v60 = vld [vmem:[#allocation28 + $0xd90] sm:$0xff] }
0x145a   : > { %9475 = vmatprep.subr.bf16.mxu1 %v11636_v4  ;;  %v8690_v43 = vld [vmem:[#allocation28 + $0xdb0] sm:$0xff]  ;;  %v8691_v4 = vld [vmem:[#allocation28 + $0xdb8] sm:$0xff] }
0x145b   : > { %v11566_v47 = vcombine.high %v8686_v60, %v8690_v43  ;;  %v11568_v19 = vcombine.high %v8687_v63, %v8691_v4  ;;  %v11567_v24 = vcombine.low %v8687_v63, %v8691_v4  ;;  %v8742_v4 = vld [vmem:[#allocation28 + $0xf50] sm:$0xff] }
0x145c   : > { %9435 = vmatpush1.bf16.msra.mxu0 %v11633_v57  ;;  %v8694_v57 = vld [vmem:[#allocation28 + $0xdd0] sm:$0xff] }
0x145d   : > { %9476 = vmatpush1.bf16.msra.mxu1 %v11635_v52  ;;  %9486 = vmatprep.subr.bf16.mxu0 %v11518_v22  ;;  %v8698_v52 = vld [vmem:[#allocation28 + $0xdf0] sm:$0xff]  ;;  %v8699_v22 = vld [vmem:[#allocation28 + $0xdf8] sm:$0xff] }
0x145e   : > { %9527 = vmatprep.subr.bf16.mxu1 %v11520_v18  ;;  %v11565_v18 = vcombine.low %v8686_v60, %v8690_v43  ;;  %v11574_v59 = vcombine.high %v8694_v57, %v8698_v52  ;;  %v11573_v32 = vcombine.low %v8694_v57, %v8698_v52  ;;  %v11575_v53 = vcombine.low %v8695_v44, %v8699_v22 }
0x145f   : > { %9437 = vmatmul.mubr.bf16.vlgmr.msra.gmra.mrb[108].mxu0 %v15733_v33 }
0x1460   : > { %9478 = vmatmul.mubr.bf16.vlgmr.msra.gmra.mrb[92].mxu1 %v15733_v33  ;;  %9487 = vmatpush1.bf16.msra.mxu0 %v11517_v9  ;;  %v11576_v9 = vcombine.high %v8695_v44, %v8699_v22  ;;  %v8750_v22 = vld [vmem:[#allocation28 + $0xf90] sm:$0xff] }
0x1461   : > { %9518 = vmatprep.mubr.bf16.mxu0 %v15726_v40  ;;  %9528 = vmatpush1.bf16.msra.mxu1 %v11519_v14  ;;  %v8703_v14 = vld [vmem:[#allocation28 + $0xe18] sm:$0xff] }
0x1462   : > { %9559 = vmatprep.mubr.bf16.mxu1 %v15726_v40  ;;  %9488 = vmatprep.subr.bf16.mxu0 %v11526_v16  ;;  %v11541_v40 = vcombine.low %v8662_v35, %v8666_v41  ;;  %v8707_v16 = vld [vmem:[#allocation28 + $0xe38] sm:$0xff] }
0x1463   : > { %9529 = vmatprep.subr.bf16.mxu1 %v11528_v45  ;;  %v11582_v45 = vcombine.high %v8702_v34, %v8706_v31  ;;  %v11584_v6 = vcombine.high %v8703_v14, %v8707_v16  ;;  %v11583_v35 = vcombine.low %v8703_v14, %v8707_v16  ;;  %v8758_v16 = vld [vmem:[#allocation28 + $0xfd0] sm:$0xff] }
0x1464   : > { %9489 = vmatpush1.bf16.msra.mxu0 %v11525_v27  ;;  %v8714_v27 = vld [vmem:[#allocation28 + $0xe70] sm:$0xff] }
0x1465   : > { %9530 = vmatpush1.bf16.msra.mxu1 %v11527_v51  ;;  %9490 = vmatprep.subr.bf16.mxu0 %v11534_v50  ;;  %v8711_v51 = vld [vmem:[#allocation28 + $0xe58] sm:$0xff]  ;;  %v11590_v41 = vcombine.high %v8710_v38, %v8714_v27 }
0x1466   : > { %9531 = vmatprep.subr.bf16.mxu1 %v11536_v37  ;;  %v8715_v50 = vld [vmem:[#allocation28 + $0xe78] sm:$0xff]  ;;  %v11581_v37 = vcombine.low %v8702_v34, %v8706_v31 }
0x1467   : > { %v11592_v26 = vcombine.high %v8711_v51, %v8715_v50  ;;  %v11591_v55 = vcombine.low %v8711_v51, %v8715_v50 }
0x1468   : > { %9491 = vmatpush1.bf16.msra.mxu0 %v11533_v36  ;;  %v8722_v36 = vld [vmem:[#allocation28 + $0xeb0] sm:$0xff] }
0x1469   : > { %9532 = vmatpush1.bf16.msra.mxu1 %v11535_v48  ;;  %9492 = vmatprep.subr.bf16.mxu0 %v11542_v56  ;;  %v8719_v48 = vld [vmem:[#allocation28 + $0xe98] sm:$0xff]  ;;  %v11598_v39 = vcombine.high %v8718_v17, %v8722_v36 }
0x146a   : > { %9533 = vmatprep.subr.bf16.mxu1 %v11544_v23  ;;  %v8723_v56 = vld [vmem:[#allocation28 + $0xeb8] sm:$0xff]  ;;  %v11589_v23 = vcombine.low %v8710_v38, %v8714_v27 }
0x146b   : > { %v11600_v10 = vcombine.high %v8719_v48, %v8723_v56  ;;  %v11599_v15 = vcombine.low %v8719_v48, %v8723_v56 }
0x146c   : > { %9493 = vmatpush1.bf16.msra.mxu0 %v11541_v40  ;;  %v8730_v40 = vld [vmem:[#allocation28 + $0xef0] sm:$0xff] }
0x146d   : > { %9534 = vmatpush1.bf16.msra.mxu1 %v11543_v62  ;;  %9494 = vmatprep.subr.bf16.mxu0 %v11550_v2  ;;  %v8727_v62 = vld [vmem:[#allocation28 + $0xed8] sm:$0xff]  ;;  %v11606_v13 = vcombine.high %v8726_v61, %v8730_v40 }
0x146e   : > { %9535 = vmatprep.subr.bf16.mxu1 %v11552_v54  ;;  %v8731_v2 = vld [vmem:[#allocation28 + $0xef8] sm:$0xff]  ;;  %v11597_v54 = vcombine.low %v8718_v17, %v8722_v36 }
0x146f   : > { %v11608_v30 = vcombine.high %v8727_v62, %v8731_v2  ;;  %v11607_v60 = vcombine.low %v8727_v62, %v8731_v2 }
0x1470   : > { %9495 = vmatpush1.bf16.msra.mxu0 %v11549_v49  ;;  %v8738_v49 = vld [vmem:[#allocation28 + $0xf30] sm:$0xff] }
0x1471   : > { %9536 = vmatpush1.bf16.msra.mxu1 %v11551_v46  ;;  %9496 = vmatprep.subr.bf16.mxu0 %v11558_v1  ;;  %v8735_v46 = vld [vmem:[#allocation28 + $0xf18] sm:$0xff]  ;;  %v11614_v43 = vcombine.high %v8734_v25, %v8738_v49 }
0x1472   : > { %9537 = vmatprep.subr.bf16.mxu1 %v11560_v42  ;;  %v8739_v1 = vld [vmem:[#allocation28 + $0xf38] sm:$0xff]  ;;  %v11605_v42 = vcombine.low %v8726_v61, %v8730_v40 }
0x1473   : > { %v11616_v63 = vcombine.high %v8735_v46, %v8739_v1  ;;  %v11615_v57 = vcombine.low %v8735_v46, %v8739_v1 }
0x1474   : > { %9497 = vmatpush1.bf16.msra.mxu0 %v11557_v20  ;;  %v8746_v20 = vld [vmem:[#allocation28 + $0xf70] sm:$0xff] }
0x1475   : > { %9538 = vmatpush1.bf16.msra.mxu1 %v11559_v58  ;;  %9498 = vmatprep.subr.bf16.mxu0 %v11566_v47  ;;  %v8743_v58 = vld [vmem:[#allocation28 + $0xf58] sm:$0xff]  ;;  %v11622_v52 = vcombine.high %v8742_v4, %v8746_v20 }
0x1476   : > { %9539 = vmatprep.subr.bf16.mxu1 %v11568_v19  ;;  %v8747_v47 = vld [vmem:[#allocation28 + $0xf78] sm:$0xff]  ;;  %v11613_v19 = vcombine.low %v8734_v25, %v8738_v49 }
0x1477   : > { %v11624_v44 = vcombine.high %v8743_v58, %v8747_v47  ;;  %v11623_v34 = vcombine.low %v8743_v58, %v8747_v47 }
0x1478   : > { %9499 = vmatpush1.bf16.msra.mxu0 %v11565_v18  ;;  %v8754_v18 = vld [vmem:[#allocation28 + $0xfb0] sm:$0xff] }
0x1479   : > { %9540 = vmatpush1.bf16.msra.mxu1 %v11567_v24  ;;  %9500 = vmatprep.subr.bf16.mxu0 %v11574_v59  ;;  %v8751_v24 = vld [vmem:[#allocation28 + $0xf98] sm:$0xff]  ;;  %v11630_v31 = vcombine.high %v8750_v22, %v8754_v18 }
0x147a   : > { %9541 = vmatprep.subr.bf16.mxu1 %v11576_v9  ;;  %v8755_v59 = vld [vmem:[#allocation28 + $0xfb8] sm:$0xff]  ;;  %v11621_v9 = vcombine.low %v8742_v4, %v8746_v20 }
0x147b   : > { %v11632_v14 = vcombine.high %v8751_v24, %v8755_v59  ;;  %v11631_v38 = vcombine.low %v8751_v24, %v8755_v59  ;;  %v15913_v4 = vld [vmem:[#allocation31 + $0x10] sm:$0xff] }
0x147c   : > { %9501 = vmatpush1.bf16.msra.mxu0 %v11573_v32  ;;  %v8762_v32 = vld [vmem:[#allocation28 + $0xff0] sm:$0xff] }
0x147d   : > { %9542 = vmatpush1.bf16.msra.mxu1 %v11575_v53  ;;  %9502 = vmatprep.subr.bf16.mxu0 %v11582_v45  ;;  %v8759_v53 = vld [vmem:[#allocation28 + $0xfd8] sm:$0xff]  ;;  %v11638_v27 = vcombine.high %v8758_v16, %v8762_v32  ;;  %v11637_v50 = vcombine.low %v8758_v16, %v8762_v32 }
0x147e   : > { %9543 = vmatprep.subr.bf16.mxu1 %v11584_v6  ;;  %v8763_v45 = vld [vmem:[#allocation28 + $0xff8] sm:$0xff]  ;;  %v11629_v6 = vcombine.low %v8750_v22, %v8754_v18 }
0x147f   : > { %v11640_v51 = vcombine.high %v8759_v53, %v8763_v45 }
0x1480   : > { %9503 = vmatpush1.bf16.msra.mxu0 %v11581_v37  ;;  %v11639_v37 = vcombine.low %v8759_v53, %v8763_v45 }
0x1481   : > { %9544 = vmatpush1.bf16.msra.mxu1 %v11583_v35  ;;  %9504 = vmatprep.subr.bf16.mxu0 %v11590_v41 }
0x1482   : > { %9545 = vmatprep.subr.bf16.mxu1 %v11592_v26 }
0x1484   : > { %9505 = vmatpush1.bf16.msra.mxu0 %v11589_v23 }
0x1485   : > { %9546 = vmatpush1.bf16.msra.mxu1 %v11591_v55  ;;  %9506 = vmatprep.subr.bf16.mxu0 %v11598_v39 }
0x1486   : > { %9547 = vmatprep.subr.bf16.mxu1 %v11600_v10 }
0x1488   : > { %9507 = vmatpush1.bf16.msra.mxu0 %v11597_v54 }
0x1489   : > { %9548 = vmatpush1.bf16.msra.mxu1 %v11599_v15  ;;  %9508 = vmatprep.subr.bf16.mxu0 %v11606_v13 }
0x148a   : > { %9549 = vmatprep.subr.bf16.mxu1 %v11608_v30 }
0x148c   : > { %9509 = vmatpush1.bf16.msra.mxu0 %v11605_v42  ;;  %v15902_v42 = vld [vmem:[#allocation31 + $0x8] sm:$0xff] }
0x148d   : > { %9550 = vmatpush1.bf16.msra.mxu1 %v11607_v60  ;;  %9510 = vmatprep.subr.bf16.mxu0 %v11614_v43  ;;  %v9698_v16 = vrot.slane %v15902_v42, %v14185_v7 }
0x148e   : > { %9551 = vmatprep.subr.bf16.mxu1 %v11616_v63  ;;  %v9694_v63 = vrot.slane %v15902_v42, %v14183_v5 }
0x1490   : > { %9511 = vmatpush1.bf16.msra.mxu0 %v11613_v19 }
0x1491   : > { %9552 = vmatpush1.bf16.msra.mxu1 %v11615_v57  ;;  %9512 = vmatprep.subr.bf16.mxu0 %v11622_v52  ;;  %v9778_v57 = vrot.slane %v15913_v4, %v14183_v5  ;;  %v15925_v52 = vld [vmem:[#allocation31 + $0x18] sm:$0xff] }
0x1492   : > { %9553 = vmatprep.subr.bf16.mxu1 %v11624_v44  ;;  %v9861_v59 = vrot.slane %v15925_v52, %v14183_v5 }
0x1494   : > { %9513 = vmatpush1.bf16.msra.mxu0 %v11621_v9  ;;  %v15936_v9 = vld [vmem:[#allocation31 + $0x30] sm:$0xff] }
0x1495   : > { %9554 = vmatpush1.bf16.msra.mxu1 %v11623_v34  ;;  %9514 = vmatprep.subr.bf16.mxu0 %v11630_v31  ;;  %16644 = vst [vmem:[#allocation56_spill] sm:$0xff] %v15936_v9  ;;  %v10032_v53 = vrot.slane %v15936_v9, %v14181_v3  ;;  %v10036_v45 = vrot.slane %v15936_v9, %v14183_v5 }
0x1496   : > { %9555 = vmatprep.subr.bf16.mxu1 %v11632_v14 }
0x1498   : > { %9515 = vmatpush1.bf16.msra.mxu0 %v11629_v6  ;;  %v15950_v6 = vld [vmem:[#allocation31 + $0x38] sm:$0xff] }
0x1499   : > { %9556 = vmatpush1.bf16.msra.mxu1 %v11631_v38  ;;  %9516 = vmatprep.subr.bf16.mxu0 %v11638_v27  ;;  %16645 = vst [vmem:[#allocation57_spill] sm:$0xff] %v15950_v6 }
0x149a   : > { %9557 = vmatprep.subr.bf16.mxu1 %v11640_v51  ;;  %v9782_v51 = vrot.slane %v15913_v4, %v14185_v7 }
0x149c   : > { %9517 = vmatpush1.bf16.msra.mxu0 %v11637_v50 }
0x149d   : > { %9558 = vmatpush1.bf16.msra.mxu1 %v11639_v37 }
0x149f   : > { %9519 = vmatmul.mubr.bf16.vlgmr.msra.gmra.mrb[112].mxu0 %v15733_v33 }
0x14a0   : > { %9560 = vmatmul.mubr.bf16.vlgmr.msra.gmra.mrb[96].mxu1 %v15733_v33  ;;  %10433 = vmatprep.mubr.bf16.mxu0 %v16542_v0 }
0x14a1   : > { %10519 = vmatprep.mubr.bf16.mxu1 %v16542_v0 }
0x1532   : > { %v15743_v35 = vpop.f32.mrb[108].mxu0 }
0x1533   : > { %9910 = vst [vmem:[#allocation2 + $0x100] sm:$0xff] %v15743_v35  ;;  %v15746_v41 = vpop.f32.mrb[92].mxu1  ;;  %9659 = vrot.lane.b32.xlu1 %v15743_v35, %s13325_s6  ;;  %9576 = vrot.lane.b32.xlu0 %v15743_v35, %s13326_s30  ;;  %v15752_v26 = vpop.f32.mrb[109].mxu0 }
0x1534   : > { %v15754_v33 = vpop.f32.mrb[93].mxu1  ;;  %v9442_v17 = vpop.f32.mrb[110].mxu0 }
0x1535   : > { %v9483_v36 = vpop.f32.mrb[94].mxu1  ;;  %v9443_v48 = vpop.f32.mrb[111].mxu0 }
0x1536   : > { %v9484_v56 = vpop.f32.mrb[95].mxu1  ;;  %v10116_v36 = vrot.slane %v15950_v6, %v14181_v3 }
0x1537   : > { %9743 = vrot.lane.b32.xlu1 %v15743_v35, %s13327_s5  ;;  %9922 = vrot.lane.b32.xlu0 %v15746_v41, %s13305_s2 }
0x153b   : > { %9827 = vrot.lane.b32.xlu1 %v15743_v35, %s13298_s1  ;;  %10001 = vrot.lane.b32.xlu0 %v15743_v35, %s13328_s3 }
0x153f   : > { %9918 = vrot.lane.b32.xlu1 %v15743_v35, %s13305_s2  ;;  %10169 = vrot.lane.b32.xlu0 %v15743_v35, %s13329_s29 }
0x1543   : > { %10005 = vrot.lane.b32.xlu1 %v15746_v41, %s13328_s3  ;;  %10173 = vrot.lane.b32.xlu0 %v15746_v41, %s13329_s29 }
0x1547   : > { %10089 = vrot.lane.b32.xlu1 %v15746_v41, %s13330_s4  ;;  %9661 = vrot.lane.b32.xlu0 %v15752_v26, %s13325_s6 }
0x154b   : > { %10085 = vrot.lane.b32.xlu1 %v15743_v35, %s13330_s4  ;;  %9745 = vrot.lane.b32.xlu0 %v15752_v26, %s13327_s5 }
0x154f   : > { %9580 = vrot.lane.b32.xlu1 %v15746_v41, %s13326_s30  ;;  %9829 = vrot.lane.b32.xlu0 %v15752_v26, %s13298_s1 }
0x1553   : > { %9663 = vrot.lane.b32.xlu1 %v15746_v41, %s13325_s6  ;;  %10003 = vrot.lane.b32.xlu0 %v15752_v26, %s13328_s3 }
0x1557   : > { %9747 = vrot.lane.b32.xlu1 %v15746_v41, %s13327_s5  ;;  %10087 = vrot.lane.b32.xlu0 %v15752_v26, %s13330_s4 }
0x155b   : > { %9831 = vrot.lane.b32.xlu1 %v15746_v41, %s13298_s1  ;;  %9582 = vrot.lane.b32.xlu0 %v15754_v33, %s13326_s30 }
0x155f   : > { %9665 = vrot.lane.b32.xlu0 %v15754_v33, %s13325_s6  ;;  %9578 = vrot.lane.b32.xlu1 %v15752_v26, %s13326_s30 }
0x1563   : > { %9749 = vrot.lane.b32.xlu0 %v15754_v33, %s13327_s5  ;;  %9920 = vrot.lane.b32.xlu1 %v15752_v26, %s13305_s2 }
0x1567   : > { %9833 = vrot.lane.b32.xlu0 %v15754_v33, %s13298_s1  ;;  %10171 = vrot.lane.b32.xlu1 %v15752_v26, %s13329_s29 }
0x156b   : > { %9924 = vrot.lane.b32.xlu1 %v15754_v33, %s13305_s2 }
0x156f   : > { %10007 = vrot.lane.b32.xlu1 %v15754_v33, %s13328_s3 }
0x1572   : > { %v15812_v23 = vpop.f32.mrb[112].mxu0 }
0x1573   : > { %16636 = vst [vmem:[#allocation48_spill] sm:$0xff] %v15812_v23  ;;  %v15814_v55 = vpop.f32.mrb[96].mxu1  ;;  %10091 = vrot.lane.b32.xlu1 %v15754_v33, %s13330_s4  ;;  %9926 = vrot.lane.b32.xlu0 %v15812_v23, %s13305_s2  ;;  %v15820_v39 = vpop.f32.mrb[113].mxu0 }
0x1574   : > { %16637 = vst [vmem:[#allocation49_spill] sm:$0xff] %v15814_v55  ;;  %16638 = vst [vmem:[#allocation50_spill] sm:$0xff] %v15820_v39  ;;  %v15822_v10 = vpop.f32.mrb[97].mxu1  ;;  %v9524_v61 = vpop.f32.mrb[114].mxu0 }
0x1575   : > { %16639 = vst [vmem:[#allocation51_spill] sm:$0xff] %v15822_v10  ;;  %v9565_v40 = vpop.f32.mrb[98].mxu1  ;;  %v9525_v62 = vpop.f32.mrb[115].mxu0 }
0x1576   : > { %v9566_v2 = vpop.f32.mrb[99].mxu1  ;;  %v10120_v40 = vrot.slane %v15950_v6, %v14183_v5  ;;  %v15973_v62 = vld [vmem:[#allocation31] sm:$0xff] }
0x1577   : > { %9590 = vrot.lane.b32.xlu1 %v15822_v10, %s13326_s30  ;;  %10009 = vrot.lane.b32.xlu0 %v15812_v23, %s13328_s3 }
0x157b   : > { %9757 = vrot.lane.b32.xlu1 %v15822_v10, %s13327_s5  ;;  %10093 = vrot.lane.b32.xlu0 %v15812_v23, %s13330_s4 }
0x157f   : > { %10175 = vrot.lane.b32.xlu1 %v15754_v33, %s13329_s29  ;;  %9673 = vrot.lane.b32.xlu0 %v15822_v10, %s13325_s6 }
0x1583   : > { %9584 = vrot.lane.b32.xlu1 %v15812_v23, %s13326_s30  ;;  %9841 = vrot.lane.b32.xlu0 %v15822_v10, %s13298_s1 }
0x1587   : > { %9588 = vrot.lane.b32.xlu1 %v15814_v55, %s13326_s30  ;;  %10177 = vrot.lane.b32.xlu0 %v15812_v23, %s13329_s29 }
0x158b   : > { %9751 = vrot.lane.b32.xlu1 %v15812_v23, %s13327_s5  ;;  %9667 = vrot.lane.b32.xlu0 %v15812_v23, %s13325_s6 }
0x158f   : > { %9755 = vrot.lane.b32.xlu1 %v15814_v55, %s13327_s5  ;;  %9671 = vrot.lane.b32.xlu0 %v15814_v55, %s13325_s6 }
0x1593   : > { %10013 = vrot.lane.b32.xlu1 %v15814_v55, %s13328_s3  ;;  %9835 = vrot.lane.b32.xlu0 %v15812_v23, %s13298_s1 }
0x1597   : > { %9839 = vrot.lane.b32.xlu0 %v15814_v55, %s13298_s1  ;;  %9669 = vrot.lane.b32.xlu1 %v15820_v39, %s13325_s6 }
0x159b   : > { %9930 = vrot.lane.b32.xlu0 %v15814_v55, %s13305_s2  ;;  %9837 = vrot.lane.b32.xlu1 %v15820_v39, %s13298_s1  ;;  %s11652_s1 = sshll.u32 %s16671_s25, 7 }
0x159c   : > { %s16444_s8 = scalar_lea.vmem %s16665_s27, %s11652_s1 }
0x159f   : > { %10097 = vrot.lane.b32.xlu0 %v15814_v55, %s13330_s4  ;;  %9928 = vrot.lane.b32.xlu1 %v15820_v39, %s13305_s2 }
0x15a3   : > { %9932 = vrot.lane.b32.xlu1 %v15822_v10, %s13305_s2  ;;  %9586 = vrot.lane.b32.xlu0 %v15820_v39, %s13326_s30 }
0x15a5   : > { %v15872_v54 = vpop.permute.xlu1 %9659  ;;  %v15874_v15 = vpop.permute.xlu0 %9576 }
0x15a7   : > { %10095 = vrot.lane.b32.xlu1 %v15820_v39, %s13330_s4  ;;  %9753 = vrot.lane.b32.xlu0 %v15820_v39, %s13327_s5 }
0x15a9   : > { %v15880_v13 = vpop.permute.xlu1 %9743  ;;  %v15882_v30 = vpop.permute.xlu0 %9922 }
0x15ab   : > { %10099 = vrot.lane.b32.xlu1 %v15822_v10, %s13330_s4  ;;  %10011 = vrot.lane.b32.xlu0 %v15820_v39, %s13328_s3 }
0x15ad   : > { %v15888_v25 = vpop.permute.xlu1 %9827  ;;  %v15890_v49 = vpop.permute.xlu0 %10001 }
0x15ae   : > { %16640 = vst [vmem:[#allocation52_spill] sm:$0xff] %v15890_v49 }
0x15af   : > { %10181 = vrot.lane.b32.xlu1 %v15814_v55, %s13329_s29  ;;  %10015 = vrot.lane.b32.xlu0 %v15822_v10, %s13328_s3 }
0x15b1   : > { %v15896_v46 = vpop.permute.xlu1 %9918  ;;  %v15898_v1 = vpop.permute.xlu0 %10169 }
0x15b2   : > { %16641 = vst [vmem:[#allocation53_spill] sm:$0xff] %v15896_v46  ;;  %16642 = vst [vmem:[#allocation54_spill] sm:$0xff] %v15898_v1 }
0x15b3   : > { %10179 = vrot.lane.b32.xlu0 %v15820_v39, %s13329_s29  ;;  %v16035_v39 = vld [vmem:[#allocation31 + $0x40] sm:$0xff] }
0x15b5   : > { %v15904_v60 = vpop.permute.xlu1 %10005  ;;  %v15906_v43 = vpop.permute.xlu0 %10173 }
0x15b7   : > { %10183 = vrot.lane.b32.xlu0 %v15822_v10, %s13329_s29 }
0x15b9   : > { %v15915_v20 = vpop.permute.xlu1 %10089  ;;  %v9662_v58 = vpop.permute.xlu0 %9661 }
0x15ba   : > { %v9682_v47 = vsel %vm9675_vm14, %v15872_v54, %v9662_v58 }
0x15bb   : > { %v15920_v19 = vmul.f32 %v9694_v63, %v9682_v47 }
0x15bd   : > { %v15927_v44 = vpop.permute.xlu1 %10085  ;;  %v9746_v22 = vpop.permute.xlu0 %9745 }
0x15be   : > { %16643 = vst [vmem:[#allocation55_spill] sm:$0xff] %v15927_v44  ;;  %v9766_v18 = vsel %vm9759_vm15, %v15880_v13, %v9746_v22 }
0x15bf   : > { %v15932_v24 = vmul.f32 %v9778_v57, %v9766_v18 }
0x15c1   : > { %v9581_v34 = vpop.permute.xlu1 %9580  ;;  %v9830_v31 = vpop.permute.xlu0 %9829 }
0x15c2   : > { %v9849_v14 = vsel %vm5409_vm10, %v15888_v25, %v9830_v31 }
0x15c3   : > { %v15943_v32 = vmul.f32 %v9861_v59, %v9849_v14 }
0x15c5   : > { %v9664_v38 = vpop.permute.xlu1 %9663  ;;  %v10004_v27 = vpop.permute.xlu0 %10003 }
0x15c6   : > { %v9681_v50 = vsel %vm9675_vm14, %v9662_v58, %v9664_v38  ;;  %v10023_v37 = vsel %vm10017_vm0, %v10004_v27, %v15904_v60  ;;  %v10024_v17 = vsel %vm10017_vm0, %v15890_v49, %v10004_v27  ;;  %v9865_v58 = vrot.slane %v15925_v52, %v14185_v7 }
0x15c7   : > { %v15965_v48 = vmul.f32 %v9698_v16, %v9681_v50  ;;  %v15967_v56 = vmul.f32 %v10032_v53, %v10024_v17  ;;  %v15969_v61 = vmul.f32 %v10036_v45, %v10023_v37  ;;  %v9618_v53 = vrot.slane %v15973_v62, %v14187_v8 }
0x15c8   : > { %v9702_v50 = vrot.slane %v15902_v42, %v14187_v8 }
0x15c9   : > { %10077 = vst [vmem:[#allocation2 + $0x180] sm:$0xff] %v15967_v56  ;;  %v9748_v2 = vpop.permute.xlu1 %9747  ;;  %v10088_v63 = vpop.permute.xlu0 %10087 }
0x15ca   : > { %v9765_v47 = vsel %vm9759_vm15, %v9746_v22, %v9748_v2  ;;  %v10107_v57 = vsel %vm10101_vm1, %v10088_v63, %v15915_v20  ;;  %v10108_v18 = vsel %vm10101_vm1, %v15927_v44, %v10088_v63  ;;  %v16013_v63 = vld [vmem:[#allocation31 + $0x28] sm:$0xff]  ;;  %v9869_v44 = vrot.slane %v15925_v52, %v14187_v8 }
0x15cb   : > { %v15987_v59 = vmul.f32 %v9782_v51, %v9765_v47  ;;  %v15989_v14 = vmul.f32 %v10116_v36, %v10108_v18  ;;  %v15991_v16 = vmul.f32 %v10120_v40, %v10107_v57  ;;  %v9610_v36 = vrot.slane %v15973_v62, %v14183_v5 }
0x15cc   : > { %v9614_v40 = vrot.slane %v15973_v62, %v14185_v7  ;;  %v9786_v57 = vrot.slane %v15913_v4, %v14187_v8  ;;  %v9952_v49 = vrot.slane %v16013_v63, %v14183_v5 }
0x15cd   : > { %10161 = vst [vmem:[#allocation2 + $0x1c0] sm:$0xff] %v15989_v14  ;;  %v9832_v22 = vpop.permute.xlu1 %9831  ;;  %v15996_v45 = vpop.permute.xlu0 %9582 }
0x15ce   : > { %v9848_v27 = vsel %vm5409_vm10, %v9830_v31, %v9832_v22  ;;  %v9597_v51 = vsel %vm9592_vm2, %v9581_v34, %v15996_v45 }
0x15cf   : > { %v16005_v37 = vmul.f32 %v9865_v58, %v9848_v27  ;;  %v16007_v17 = vmul.f32 %v9618_v53, %v9597_v51  ;;  %v9948_v27 = vrot.slane %v16013_v63, %v14181_v3 }
0x15d1   : > { %v16015_v31 = vpop.permute.xlu0 %9665  ;;  %v9579_v47 = vpop.permute.xlu1 %9578 }
0x15d2   : > { %v9680_v58 = vsel %vm9675_vm14, %v9664_v38, %v16015_v31  ;;  %v9598_v18 = vsel %vm9592_vm2, %v9579_v47, %v9581_v34  ;;  %v9599_v53 = vsel %vm9592_vm2, %v15874_v15, %v9579_v47 }
0x15d3   : > { %v16029_v51 = vmul.f32 %v9702_v50, %v9680_v58  ;;  %v9644_v0 = vmul.f32 %v9610_v36, %v9599_v53  ;;  %v16031_v23 = vmul.f32 %v9614_v40, %v9598_v18  ;;  %v10200_v58 = vrot.slane %v16035_v39, %v14181_v3 }
0x15d5   : > { %v16037_v38 = vpop.permute.xlu0 %9749  ;;  %v9921_v34 = vpop.permute.xlu1 %9920  ;;  %v10326_v47 = vpack.c.bf16 %v15920_v19, %v9644_v0  ;;  %v10204_v19 = vrot.slane %v16035_v39, %v14183_v5 }
0x15d6   : > { %v9764_v50 = vsel %vm9759_vm15, %v9748_v2, %v16037_v38  ;;  %v9939_v36 = vsel %vm5447_vm9, %v9921_v34, %v15882_v30  ;;  %v9940_v40 = vsel %vm5447_vm9, %v15896_v46, %v9921_v34 }
0x15d7   : > { %v16054_v18 = vmul.f32 %v9786_v57, %v9764_v50  ;;  %v16056_v53 = vmul.f32 %v9948_v27, %v9940_v40  ;;  %v16058_v0 = vmul.f32 %v9952_v49, %v9939_v36  ;;  %10401 = vmatprep.subr.bf16.mxu0 %v10326_v47  ;;  %v9956_v50 = vrot.slane %v16013_v63, %v14185_v7 }
0x15d9   : > { %9993 = vst [vmem:[#allocation2 + $0x140] sm:$0xff] %v16056_v53  ;;  %v16063_v2 = vpop.permute.xlu0 %9833  ;;  %v10172_v55 = vpop.permute.xlu1 %10171 }
0x15da   : > { %v9847_v34 = vsel %vm5409_vm10, %v9832_v22, %v16063_v2  ;;  %v10191_v57 = vsel %vm10185_vm3, %v10172_v55, %v15906_v43  ;;  %v10192_v49 = vsel %vm10185_vm3, %v15898_v1, %v10172_v55  ;;  %v10040_v55 = vrot.slane %v15936_v9, %v14185_v7 }
0x15db   : > { %v16074_v27 = vmul.f32 %v9869_v44, %v9847_v34  ;;  %v16076_v5 = vmul.f32 %v10200_v58, %v10192_v49  ;;  %v16078_v47 = vmul.f32 %v10204_v19, %v10191_v57  ;;  %v10124_v34 = vrot.slane %v15950_v6, %v14185_v7 }
0x15dc   : > { %v9960_v57 = vrot.slane %v16013_v63, %v14187_v8  ;;  %v10044_v1 = vrot.slane %v15936_v9, %v14187_v8 }
0x15dd   : > { %10245 = vst [vmem:[#allocation2 + $0x200] sm:$0xff] %v16076_v5  ;;  %v9925_v22 = vpop.permute.xlu1 %9924 }
0x15de   : > { %v9938_v36 = vsel %vm5447_vm9, %v15882_v30, %v9925_v22 }
0x15df   : > { %v16086_v40 = vmul.f32 %v9956_v50, %v9938_v36 }
0x15e1   : > { %v10008_v44 = vpop.permute.xlu1 %10007 }
0x15e2   : > { %v10022_v58 = vsel %vm10017_vm0, %v15904_v60, %v10008_v44 }
0x15e3   : > { %v16093_v19 = vmul.f32 %v10040_v55, %v10022_v58  ;;  %v9606_v58 = vrot.slane %v15973_v62, %v14181_v3 }
0x15e5   : > { %16646 = vst [vmem:[#allocation58_spill] sm:$0xff] %v16093_v19  ;;  %v10092_v49 = vpop.permute.xlu1 %10091  ;;  %v16099_v30 = vpop.permute.xlu0 %9926 }
0x15e6   : > { %v10106_v50 = vsel %vm10101_vm1, %v15915_v20, %v10092_v49  ;;  %v9937_v36 = vsel %vm5447_vm9, %v9925_v22, %v16099_v30 }
0x15e7   : > { %v16107_v60 = vmul.f32 %v10124_v34, %v10106_v50  ;;  %v16109_v55 = vmul.f32 %v9960_v57, %v9937_v36  ;;  %v9774_v50 = vrot.slane %v15913_v4, %v14181_v3  ;;  %v10128_v36 = vrot.slane %v15950_v6, %v14187_v8 }
0x15e9   : > { %16647 = vst [vmem:[#allocation59_spill] sm:$0xff] %v16107_v60  ;;  %v9591_v10 = vpop.permute.xlu1 %9590  ;;  %v16115_v46 = vpop.permute.xlu0 %10009 }
0x15ea   : > { %16648 = vst [vmem:[#allocation60_spill] sm:$0xff] %v16115_v46  ;;  %v9600_v20 = vsel %vm9592_vm2, %v9591_v10, %v15874_v15  ;;  %v10021_v22 = vsel %vm10017_vm0, %v10008_v44, %v16115_v46 }
0x15eb   : > { %v9643_v34 = vmul.f32 %v9606_v58, %v9600_v20  ;;  %v16123_v57 = vmul.f32 %v10044_v1, %v10021_v22  ;;  %v10208_v20 = vrot.slane %v16035_v39, %v14185_v7  ;;  %v9690_v22 = vrot.slane %v15902_v42, %v14181_v3 }
0x15ec   : > { %v9622_v7 = vrot.slane %v15973_v62, %v14192_v11 }
0x15ed   : > { %9651 = vst [vmem:[#allocation2] sm:$0xff] %v9643_v34  ;;  %v9758_v9 = vpop.permute.xlu1 %9757  ;;  %v16129_v60 = vpop.permute.xlu0 %10093 }
0x15ee   : > { %16649 = vst [vmem:[#allocation61_spill] sm:$0xff] %v16129_v60  ;;  %v9767_v15 = vsel %vm9759_vm15, %v9758_v9, %v15880_v13  ;;  %v10105_v44 = vsel %vm10101_vm1, %v10092_v49, %v16129_v60 }
0x15ef   : > { %v9811_v1 = vmul.f32 %v9774_v50, %v9767_v15  ;;  %v16137_v58 = vmul.f32 %v10128_v36, %v10105_v44  ;;  %v9857_v15 = vrot.slane %v15925_v52, %v14181_v3 }
0x15f1   : > { %9819 = vst [vmem:[#allocation2 + $0x80] sm:$0xff] %v9811_v1  ;;  %v10176_v46 = vpop.permute.xlu1 %10175  ;;  %v9674_v19 = vpop.permute.xlu0 %9673 }
0x15f2   : > { %v10190_v13 = vsel %vm10185_vm3, %v15906_v43, %v10176_v46  ;;  %v9683_v49 = vsel %vm9675_vm14, %v9674_v19, %v15872_v54 }
0x15f3   : > { %v16149_v50 = vmul.f32 %v10208_v20, %v10190_v13  ;;  %v9727_v36 = vmul.f32 %v9690_v22, %v9683_v49  ;;  %v10334_v20 = vpack.c.bf16 %v15943_v32, %v15932_v24  ;;  %v9634_v13 = vrot.slane %v15973_v62, %v14215_v28 }
0x15f5   : > { %9735 = vst [vmem:[#allocation2 + $0x40] sm:$0xff] %v9727_v36  ;;  %v16155_v44 = vpop.permute.xlu1 %9584  ;;  %v16157_v60 = vpop.permute.xlu0 %9841  ;;  %v10325_v6 = vpack.c.bf16 %v9727_v36, %v9643_v34  ;;  %v10212_v34 = vrot.slane %v16035_v39, %v14187_v8  ;;  %v10342_v36 = vpack.c.bf16 %v16058_v0, %v15752_v26 }
0x15f6   : > { %v9596_v54 = vsel %vm9592_vm2, %v15996_v45, %v16155_v44  ;;  %v9850_v43 = vsel %vm5409_vm10, %v16157_v60, %v15888_v25 }
0x15f7   : > { %v16169_v3 = vmul.f32 %v9622_v7, %v9596_v54  ;;  %v9894_v22 = vmul.f32 %v9857_v15, %v9850_v43  ;;  %10402 = vmatpush1.bf16.msra.mxu0 %v10325_v6  ;;  %v9790_v7 = vrot.slane %v15913_v4, %v14192_v11  ;;  %v10350_v54 = vpack.c.bf16 %v15991_v16, %v15969_v61 }
0x15f8   : > { %10403 = vmatprep.subr.bf16.mxu0 %v10334_v20 }
0x15f9   : > { %9902 = vst [vmem:[#allocation2 + $0xc0] sm:$0xff] %v9894_v22  ;;  %v16175_v45 = vpop.permute.xlu1 %9588  ;;  %v16177_v49 = vpop.permute.xlu0 %10177  ;;  %v10333_v25 = vpack.c.bf16 %v9894_v22, %v9811_v1  ;;  %v9706_v1 = vrot.slane %v15902_v42, %v14192_v11  ;;  %v9802_v22 = vrot.slane %v15913_v4, %v14215_v28 }
0x15fa   : > { %v9593_v24 = vsel %vm9592_vm2, %v16175_v45, %v9591_v10  ;;  %v10189_v32 = vsel %vm10185_vm3, %v10176_v46, %v16177_v49  ;;  %v10341_v46 = vpack.c.bf16 %v16056_v53, %v15743_v35  ;;  %v9718_v35 = vrot.slane %v15902_v42, %v14215_v28 }
0x15fb   : > { %v16187_v8 = vmul.f32 %v9634_v13, %v9593_v24  ;;  %v16189_v6 = vmul.f32 %v10212_v34, %v10189_v32  ;;  %10404 = vmatpush1.bf16.msra.mxu0 %v10333_v25  ;;  %v10358_v13 = vpack.c.bf16 %v16078_v47, %v16078_v47  ;;  %v10357_v34 = vpack.c.bf16 %v16076_v5, %v16076_v5 }
0x15fc   : > { %10405 = vmatprep.subr.bf16.mxu0 %v10342_v36  ;;  %v9885_v5 = vrot.slane %v15925_v52, %v14215_v28  ;;  %v10328_v32 = vpack.c.bf16 %v16029_v51, %v16007_v17  ;;  %v16246_v36 = vld [vmem:[#allocation29] sm:$0x3f]   ;;  %v9881_v17 = vrot.slane %v15925_v52, %v14207_v21  ;;  %v10327_v51 = vpack.c.bf16 %v15965_v48, %v16031_v23 }
0x15fd   : > { %v16195_v10 = vpop.permute.xlu1 %9751  ;;  %v9668_v15 = vpop.permute.xlu0 %9667  ;;  %v16650_v48 = vmov 0  }
0x15fe   : > { %v9763_v26 = vsel %vm9759_vm15, %v16037_v38, %v16195_v10  ;;  %v9679_v0 = vsel %vm9675_vm14, %v16015_v31, %v9668_v15  ;;  %v10349_v31 = vpack.c.bf16 %v15989_v14, %v15967_v56  ;;  %v9873_v56 = vrot.slane %v15925_v52, %v14192_v11 }
0x15ff   : > { %v16208_v43 = vmul.f32 %v9790_v7, %v9763_v26  ;;  %v16210_v20 = vmul.f32 %v9706_v1, %v9679_v0  ;;  %10406 = vmatpush1.bf16.msra.mxu0 %v10341_v46  ;;  %v9710_v1 = vrot.slane %v15902_v42, %v14194_v12  ;;  %v9714_v46 = vrot.slane %v15902_v42, %v14207_v21 }
0x1600   : > { %10407 = vmatprep.subr.bf16.mxu0 %v10350_v54  ;;  %v9877_v0 = vrot.slane %v15925_v52, %v14194_v12 }
0x1601   : > { %v16216_v38 = vpop.permute.xlu1 %9755  ;;  %v9672_v53 = vpop.permute.xlu0 %9671 }
0x1602   : > { %v9760_v61 = vsel %vm9759_vm15, %v16216_v38, %v9758_v9  ;;  %v9676_v16 = vsel %vm9675_vm14, %v9672_v53, %v9674_v19  ;;  %v10378_v19 = vsel %vm10376_vm4, %v10357_v34, 0  ;;  %v9964_v34 = vrot.slane %v16013_v63, %v14192_v11 }
0x1603   : > { %v16229_v25 = vmul.f32 %v9802_v22, %v9760_v61  ;;  %v16231_v24 = vmul.f32 %v9718_v35, %v9676_v16  ;;  %10408 = vmatpush1.bf16.msra.mxu0 %v10349_v31  ;;  %v10336_v35 = vpack.c.bf16 %v16074_v27, %v16054_v18  ;;  %v10344_v27 = vpack.c.bf16 %v16109_v55, %v15754_v33 }
0x1604   : > { %11642 = vmatprep.subr.msk.bf16.mxu0 %vm10376_vm4, %v10358_v13  ;;  %v9976_v33 = vrot.slane %v16013_v63, %v14215_v28  ;;  %v10343_v55 = vpack.c.bf16 %v16086_v40, %v15746_v41  ;;  %v9630_v41 = vrot.slane %v15973_v62, %v14207_v21 }
0x1605   : > { %v16236_v9 = vpop.permute.xlu1 %10013  ;;  %v9836_v14 = vpop.permute.xlu0 %9835 }
0x1606   : > { %v9846_v47 = vsel %vm5409_vm10, %v16063_v2, %v9836_v14 }
0x1607   : > { %v16248_v7 = vmul.f32 %v9873_v56, %v9846_v47  ;;  %10410 = vmatpush1.bf16.msra.mxu0 %v10378_v19  ;;  %v9968_v56 = vrot.slane %v16013_v63, %v14194_v12  ;;  %v9626_v19 = vrot.slane %v15973_v62, %v14194_v12 }
0x1608   : > { %10444 = vmatprep.subr.bf16.mxu0 %v10328_v32  ;;  %v10352_v32 = vpack.c.bf16 %v16137_v58, %v16123_v57  ;;  %v9798_v57 = vrot.slane %v15913_v4, %v14207_v21  ;;  %v10359_v58 = vpack.c.bf16 %v16149_v50, %v16149_v50 }
0x1609   : > { %v9840_v2 = vpop.permute.xlu0 %9839  ;;  %v9670_v26 = vpop.permute.xlu1 %9669 }
0x160a   : > { %v9843_v54 = vsel %vm5409_vm10, %v9840_v2, %v16157_v60  ;;  %v9677_v42 = vsel %vm9675_vm14, %v9670_v26, %v9672_v53  ;;  %v9678_v22 = vsel %vm9675_vm14, %v9668_v15, %v9670_v26  ;;  %11643 = vmatmul.mubr.msk.bf16.vlgmr.msra.gmra.mrb[116].mxu0 %vm10372_vm5, %v16246_v36  ;;  %v10335_v15 = vpack.c.bf16 %v16005_v37, %v15987_v59 }
0x160b   : > { %v16271_v52 = vmul.f32 %v9885_v5, %v9843_v54  ;;  %v16273_v31 = vmul.f32 %v9710_v1, %v9678_v22  ;;  %v16275_v23 = vmul.f32 %v9714_v46, %v9677_v42  ;;  %10445 = vmatpush1.bf16.msra.mxu0 %v10327_v51  ;;  %10476 = vmatprep.mubr.bf16.mxu0 %v16650_v48  ;;  %v16652_v51 = vld [vmem:[#allocation58_spill] sm:$0xff]  ;;  %v16653_v54 = vld [vmem:[#allocation59_spill] sm:$0xff] }
0x160c   : > { %10446 = vmatprep.subr.bf16.mxu0 %v10336_v35  ;;  %v10351_v42 = vpack.c.bf16 %v16653_v54, %v16652_v51  ;;  %v10360_v22 = vpack.c.bf16 %v16189_v6, %v16189_v6  ;;  %v16654_v35 = vld [vmem:[#allocation53_spill] sm:$0xff] }
0x160d   : > { %v9931_v60 = vpop.permute.xlu0 %9930  ;;  %v9838_v53 = vpop.permute.xlu1 %9837 }
0x160e   : > { %v9844_v61 = vsel %vm5409_vm10, %v9838_v53, %v9840_v2  ;;  %v9845_v18 = vsel %vm5409_vm10, %v9836_v14, %v9838_v53  ;;  %v9972_v14 = vrot.slane %v16013_v63, %v14207_v21  ;;  %v16651_v63 = vld [vmem:[#allocation57_spill] sm:$0xff]  ;;  %v9794_v2 = vrot.slane %v15913_v4, %v14194_v12 }
0x160f   : > { %v16286_v16 = vmul.f32 %v9877_v0, %v9845_v18  ;;  %v16288_v13 = vmul.f32 %v9881_v17, %v9844_v61  ;;  %10447 = vmatpush1.bf16.msra.mxu0 %v10335_v15  ;;  %v10132_v40 = vrot.slane %v16651_v63, %v14192_v11  ;;  %v10140_v62 = vrot.slane %v16651_v63, %v14207_v21 }
0x1610   : > { %10448 = vmatprep.subr.bf16.mxu0 %v10344_v27  ;;  %v10144_v17 = vrot.slane %v16651_v63, %v14215_v28 }
0x1611   : > { %v16294_v59 = vpop.permute.xlu0 %10097  ;;  %v9929_v37 = vpop.permute.xlu1 %9928 }
0x1612   : > { %v9935_v47 = vsel %vm5447_vm9, %v9929_v37, %v9931_v60  ;;  %v9936_v5 = vsel %vm5447_vm9, %v16099_v30, %v9929_v37  ;;  %v10136_v30 = vrot.slane %v16651_v63, %v14194_v12  ;;  %v16658_v63 = vld [vmem:[#allocation61_spill] sm:$0xff] }
0x1613   : > { %v16311_v1 = vmul.f32 %v9964_v34, %v9936_v5  ;;  %v16313_v46 = vmul.f32 %v9968_v56, %v9935_v47  ;;  %10449 = vmatpush1.bf16.msra.mxu0 %v10343_v55  ;;  %v10332_v55 = vpack.c.bf16 %v16231_v24, %v16187_v8  ;;  %v16656_v47 = vld [vmem:[#allocation51_spill] sm:$0xff] }
0x1614   : > { %10450 = vmatprep.subr.bf16.mxu0 %v10352_v32 }
0x1615   : > { %v9933_v26 = vpop.permute.xlu1 %9932  ;;  %v9587_v0 = vpop.permute.xlu0 %9586 }
0x1616   : > { %v9934_v4 = vsel %vm5447_vm9, %v9931_v60, %v9933_v26  ;;  %v9941_v50 = vsel %vm5447_vm9, %v9933_v26, %v16654_v35  ;;  %v9594_v53 = vsel %vm9592_vm2, %v9587_v0, %v16175_v45  ;;  %v9595_v15 = vsel %vm9592_vm2, %v16155_v44, %v9587_v0  ;;  %v16655_v60 = vld [vmem:[#allocation56_spill] sm:$0xff] }
0x1617   : > { %v16346_v61 = vmul.f32 %v9972_v14, %v9934_v4  ;;  %v16348_v18 = vmul.f32 %v9976_v33, %v9941_v50  ;;  %v9648_v6 = vmul.f32 %v9626_v19, %v9595_v15  ;;  %v9649_v27 = vmul.f32 %v9630_v41, %v9594_v53  ;;  %10451 = vmatpush1.bf16.msra.mxu0 %v10351_v42  ;;  %v16657_v19 = vld [vmem:[#allocation49_spill] sm:$0xff]  ;;  %v16660_v4 = vld [vmem:[#allocation60_spill] sm:$0xff] }
0x1618   : > { %v10048_v34 = vrot.slane %v16655_v60, %v14192_v11  ;;  %v10052_v56 = vrot.slane %v16655_v60, %v14194_v12  ;;  %11644 = vmatprep.subr.msk.bf16.mxu0 %vm10376_vm4, %v10360_v22  ;;  %v10384_v45 = vsel %vm10376_vm4, %v10359_v58, 0  ;;  %v10329_v44 = vpack.c.bf16 %v16210_v20, %v16169_v3  ;;  %v16662_v15 = vld [vmem:[#allocation52_spill] sm:$0xff] }
0x1619   : > { %v10096_v37 = vpop.permute.xlu1 %10095  ;;  %v9754_v14 = vpop.permute.xlu0 %9753  ;;  %v10330_v33 = vpack.c.bf16 %v16273_v31, %v9648_v6  ;;  %v10348_v5 = vpack.c.bf16 %v16348_v18, %v16656_v47  ;;  %v10347_v32 = vpack.c.bf16 %v16346_v61, %v16657_v19  ;;  %v10056_v0 = vrot.slane %v16655_v60, %v14207_v21  ;;  %v16663_v6 = vld [vmem:[#allocation48_spill] sm:$0xff] }
0x161a   : > { %v10103_v41 = vsel %vm10101_vm1, %v10096_v37, %v16294_v59  ;;  %v10104_v3 = vsel %vm10101_vm1, %v16658_v63, %v10096_v37  ;;  %v9761_v20 = vsel %vm9759_vm15, %v9754_v14, %v16216_v38  ;;  %v9762_v8 = vsel %vm9759_vm15, %v16195_v10, %v9754_v14 }
0x161b   : > { %v10157_v24 = vmul.f32 %v10132_v40, %v10104_v3  ;;  %v10158_v31 = vmul.f32 %v10136_v30, %v10103_v41  ;;  %v9816_v58 = vmul.f32 %v9794_v2, %v9762_v8  ;;  %v9817_v26 = vmul.f32 %v9798_v57, %v9761_v20  ;;  %10453 = vmatpush1.bf16.msra.mxu0 %v10384_v45  ;;  %v16659_v57 = vld [vmem:[#allocation55_spill] sm:$0xff] }
0x161c   : > { %v10060_v51 = vrot.slane %v16655_v60, %v14215_v28  ;;  %10487 = vmatprep.subr.bf16.mxu1 %v10330_v33  ;;  %10530 = vmatprep.subr.bf16.mxu0 %v10332_v55  ;;  %v10331_v10 = vpack.c.bf16 %v16275_v23, %v9649_v27  ;;  %v10337_v40 = vpack.c.bf16 %v16248_v7, %v16208_v43 }
0x161d   : > { %v10100_v54 = vpop.permute.xlu1 %10099  ;;  %v10012_v42 = vpop.permute.xlu0 %10011  ;;  %10488 = vmatpush1.bf16.msra.mxu1 %v10329_v44  ;;  %v10338_v38 = vpack.c.bf16 %v16286_v16, %v9816_v58  ;;  %v10340_v30 = vpack.c.bf16 %v16271_v52, %v16229_v25  ;;  %v10339_v61 = vpack.c.bf16 %v16288_v13, %v9817_v26  ;;  %v10345_v27 = vpack.c.bf16 %v16311_v1, %v16663_v6 }
0x161e   : > { %v10102_v2 = vsel %vm10101_vm1, %v16294_v59, %v10100_v54  ;;  %v10109_v22 = vsel %vm10101_vm1, %v10100_v54, %v16659_v57  ;;  %v10019_v16 = vsel %vm10017_vm0, %v10012_v42, %v16236_v9  ;;  %v10020_v23 = vsel %vm10017_vm0, %v16660_v4, %v10012_v42  ;;  %11645 = vmatmul.mubr.msk.bf16.vlgmr.msra.gmra.mrb[120].mxu0 %vm10372_vm5, %v16246_v36  ;;  %v16661_v59 = vld [vmem:[#allocation50_spill] sm:$0xff] }
0x161f   : > { %v10159_v43 = vmul.f32 %v10140_v62, %v10102_v2  ;;  %v10160_v25 = vmul.f32 %v10144_v17, %v10109_v22  ;;  %v10073_v7 = vmul.f32 %v10048_v34, %v10020_v23  ;;  %v10074_v52 = vmul.f32 %v10052_v56, %v10019_v16  ;;  %10489 = vmatprep.subr.bf16.mxu1 %v10338_v38 }
0x1620   : > { %10531 = vmatpush1.bf16.msra.mxu0 %v10331_v10  ;;  %v10346_v35 = vpack.c.bf16 %v16313_v46, %v16661_v59  ;;  %10562 = vmatprep.mubr.bf16.mxu0 %v16650_v48  ;;  %v10216_v17 = vrot.slane %v16035_v39, %v14192_v11  ;;  %v10220_v48 = vrot.slane %v16035_v39, %v14194_v12 }
0x1621   : > { %v10016_v50 = vpop.permute.xlu0 %10015  ;;  %10490 = vmatpush1.bf16.msra.mxu1 %v10337_v40  ;;  %10532 = vmatprep.subr.bf16.mxu0 %v10340_v30  ;;  %v10182_v60 = vpop.permute.xlu1 %10181  ;;  %v10224_v12 = vrot.slane %v16035_v39, %v14207_v21  ;;  %v10228_v44 = vrot.slane %v16035_v39, %v14215_v28  ;;  %v10353_v37 = vpack.c.bf16 %v10157_v24, %v10073_v7 }
0x1622   : > { %v10018_v53 = vsel %vm10017_vm0, %v16236_v9, %v10016_v50  ;;  %v10025_v62 = vsel %vm10017_vm0, %v10016_v50, %v16662_v15  ;;  %10491 = vmatprep.subr.bf16.mxu1 %v10346_v35  ;;  %v10354_v9 = vpack.c.bf16 %v10158_v31, %v10074_v52 }
0x1623   : > { %v10075_v46 = vmul.f32 %v10056_v0, %v10018_v53  ;;  %v10076_v18 = vmul.f32 %v10060_v51, %v10025_v62 }
0x1624   : > { %10533 = vmatpush1.bf16.msra.mxu0 %v10339_v61 }
0x1625   : > { %v10180_v34 = vpop.permute.xlu0 %10179  ;;  %10492 = vmatpush1.bf16.msra.mxu1 %v10345_v27  ;;  %10534 = vmatprep.subr.bf16.mxu0 %v10348_v5  ;;  %v10356_v56 = vpack.c.bf16 %v10160_v25, %v10076_v18  ;;  %v10355_v5 = vpack.c.bf16 %v10159_v43, %v10075_v46 }
0x1626   : > { %v10187_v11 = vsel %vm10185_vm3, %v10180_v34, %v10182_v60  ;;  %v10188_v13 = vsel %vm10185_vm3, %v16177_v49, %v10180_v34  ;;  %10493 = vmatprep.subr.bf16.mxu1 %v10354_v9  ;;  %v16664_v49 = vld [vmem:[#allocation54_spill] sm:$0xff] }
0x1627   : > { %v10241_v45 = vmul.f32 %v10216_v17, %v10188_v13  ;;  %v10242_v1 = vmul.f32 %v10220_v48, %v10187_v11 }
0x1628   : > { %10535 = vmatpush1.bf16.msra.mxu0 %v10347_v32 }
0x1629   : > { %v10184_v14 = vpop.permute.xlu0 %10183  ;;  %10494 = vmatpush1.bf16.msra.mxu1 %v10353_v37  ;;  %10536 = vmatprep.subr.bf16.mxu0 %v10356_v56  ;;  %v10362_v33 = vpack.c.bf16 %v10242_v1, %v10242_v1  ;;  %v10361_v55 = vpack.c.bf16 %v10241_v45, %v10241_v45 }
0x162a   : > { %v10186_v47 = vsel %vm10185_vm3, %v10182_v60, %v10184_v14  ;;  %v10193_v21 = vsel %vm10185_vm3, %v10184_v14, %v16664_v49 }
0x162b   : > { %v10243_v19 = vmul.f32 %v10224_v12, %v10186_v47  ;;  %v10244_v41 = vmul.f32 %v10228_v44, %v10193_v21  ;;  %11646 = vmatprep.subr.msk.bf16.mxu1 %vm10376_vm4, %v10362_v33  ;;  %v10390_v28 = vsel %vm10376_vm4, %v10361_v55, 0 }
0x162c   : > { %10537 = vmatpush1.bf16.msra.mxu0 %v10355_v5 }
0x162d   : > { %10496 = vmatpush1.bf16.msra.mxu1 %v10390_v28  ;;  %v10364_v39 = vpack.c.bf16 %v10244_v41, %v10244_v41  ;;  %v10363_v32 = vpack.c.bf16 %v10243_v19, %v10243_v19 }
0x162f   : > { %11648 = vmatprep.subr.msk.bf16.mxu0 %vm10376_vm4, %v10364_v39  ;;  %v10396_v63 = vsel %vm10376_vm4, %v10363_v32, 0 }
0x1630   : > { %10539 = vmatpush1.bf16.msra.mxu0 %v10396_v63  ;;  %11647 = vmatmul.mubr.msk.bf16.vlgmr.msra.gmra.mrb[100].mxu1 %vm10372_vm5, %v16246_v36 }
0x1633   : > { %11649 = vmatmul.mubr.msk.bf16.vlgmr.msra.gmra.mrb[124].mxu0 %vm10372_vm5, %v16246_v36 }
0x16dd   : > { %v10435_v29 = vpop.f32.mrb[116].mxu0 }
0x16de   : > { %12620 = vtanh.f32 %v10435_v29  ;;  %v10437_v3 = vpop.f32.mrb[117].mxu0 }
0x16df   : > { %12622 = vtanh.f32 %v10437_v3  ;;  %v10439_v20 = vpop.f32.mrb[118].mxu0 }
0x16e0   : > { %12624 = vtanh.f32 %v10439_v20  ;;  %v10441_v8 = vpop.f32.mrb[119].mxu0 }
0x16e1   : > { %12626 = vtanh.f32 %v10441_v8 }
0x16e8   : > { %v12621_v36 = vpop.eup %12620 }
0x16e9   : > { %v12623_v24 = vpop.eup %12622  ;;  %10589 = vst [vmem:[%s16444_s8] sm:$0xff] %v12621_v36 }
0x16ea   : > { %v12625_v31 = vpop.eup %12624  ;;  %10590 = vst [vmem:[%s16444_s8 + $0x8] sm:$0xff] %v12623_v24 }
0x16eb   : > { %v12627_v58 = vpop.eup %12626  ;;  %10597 = vst [vmem:[%s16444_s8 + $0x40] sm:$0xf] %v12625_v31 }
0x16ec   : > { %10598 = vst [vmem:[%s16444_s8 + $0x48] sm:$0xf] %v12627_v58 }
0x16f1   : > { %v10478_v26 = vpop.f32.mrb[120].mxu0 }
0x16f2   : > { %12628 = vtanh.f32 %v10478_v26  ;;  %v10480_v0 = vpop.f32.mrb[121].mxu0 }
0x16f3   : > { %12630 = vtanh.f32 %v10480_v0  ;;  %v10482_v51 = vpop.f32.mrb[122].mxu0 }
0x16f4   : > { %12632 = vtanh.f32 %v10482_v51  ;;  %v10484_v54 = vpop.f32.mrb[123].mxu0 }
0x16f5   : > { %12634 = vtanh.f32 %v10484_v54 }
0x16fc   : > { %v12629_v42 = vpop.eup %12628 }
0x16fd   : > { %v12631_v38 = vpop.eup %12630  ;;  %10591 = vst [vmem:[%s16444_s8 + $0x10] sm:$0xff] %v12629_v42 }
0x16fe   : > { %v12633_v10 = vpop.eup %12632  ;;  %10592 = vst [vmem:[%s16444_s8 + $0x18] sm:$0xff] %v12631_v38 }
0x16ff   : > { %v12635_v40 = vpop.eup %12634  ;;  %10599 = vst [vmem:[%s16444_s8 + $0x50] sm:$0xf] %v12633_v10 }
0x1700   : > { %10600 = vst [vmem:[%s16444_s8 + $0x58] sm:$0xf] %v12635_v40 }
0x1703   : > { %v10521_v30 = vpop.f32.mrb[100].mxu1 }
0x1704   : > { %12636 = vtanh.f32 %v10521_v30  ;;  %v10523_v2 = vpop.f32.mrb[101].mxu1 }
0x1705   : > { %12638 = vtanh.f32 %v10523_v2  ;;  %v10525_v57 = vpop.f32.mrb[102].mxu1 }
0x1706   : > { %v10564_v22 = vpop.f32.mrb[124].mxu0  ;;  %12640 = vtanh.f32 %v10525_v57  ;;  %v10527_v16 = vpop.f32.mrb[103].mxu1 }
0x1707   : > { %12642 = vtanh.f32 %v10564_v22  ;;  %v10566_v4 = vpop.f32.mrb[125].mxu0 }
0x1708   : > { %12644 = vtanh.f32 %v10566_v4  ;;  %v10568_v23 = vpop.f32.mrb[126].mxu0 }
0x1709   : > { %12646 = vtanh.f32 %v10568_v23  ;;  %v10570_v43 = vpop.f32.mrb[127].mxu0 }
0x170a   : > { %12648 = vtanh.f32 %v10527_v16 }
0x170b   : > { %12650 = vtanh.f32 %v10570_v43 }
0x170e   : > { %v12637_v25 = vpop.eup %12636 }
0x170f   : > { %v12639_v7 = vpop.eup %12638  ;;  %10593 = vst [vmem:[%s16444_s8 + $0x20] sm:$0xff] %v12637_v25 }
0x1710   : > { %v12641_v52 = vpop.eup %12640  ;;  %10594 = vst [vmem:[%s16444_s8 + $0x28] sm:$0xff] %v12639_v7 }
0x1711   : > { %v12643_v59 = vpop.eup %12642  ;;  %10601 = vst [vmem:[%s16444_s8 + $0x60] sm:$0xf] %v12641_v52 }
0x1712   : > { %v12645_v35 = vpop.eup %12644  ;;  %10595 = vst [vmem:[%s16444_s8 + $0x30] sm:$0xff] %v12643_v59 }
0x1713   : > { %v12647_v50 = vpop.eup %12646  ;;  %10596 = vst [vmem:[%s16444_s8 + $0x38] sm:$0xff] %v12645_v35 }
0x1714   : > { %v12649_v53 = vpop.eup %12648  ;;  %10603 = vst [vmem:[%s16444_s8 + $0x70] sm:$0xf] %v12647_v50 }
0x1715   : > { %v12651_v15 = vpop.eup %12650  ;;  %10602 = vst [vmem:[%s16444_s8 + $0x68] sm:$0xf] %v12649_v53 }
0x1716   : > { %10604 = vst [vmem:[%s16444_s8 + $0x78] sm:$0xf] %v12651_v15 }
0x1717 PF: > { %s16666_s4 = sld [smem:[#allocation43_spill]]  ;;  %s16667_s30 = sld [smem:[#allocation44_spill]] }
0x1718   : > { %p42_p2 = scmp.ge.s32.totalorder %s13921_s7, 4   ;;  %s16668_s24 = smov %s13933_s23 }
0x1719   : > { %s16669_s25 = smov %s13921_s7 }
0x171a   :  { %44 = sbr.rel (!%p42_p2) target bundleno = 27 (0x1b), region = 261 }
0x1721   :  { %10626 = vsyncpa [#allocation4], 1 }
0x1722   :  { %10628 = vsyncpa [#allocation4 + $0x1], 1 }
0x1723   :  { %10629 = vsyncpa [#allocation6], 1 }
0x1724   :  { %10630 = vsyncpa [#allocation9], 1 }
0x1725   :  { %10631 = vsyncpa [#allocation12], 1 }
0x1726   :  { %10632 = vsyncpa [#allocation15], 1 }
0x1727   :  { %10633 = vsyncpa [#allocation18], 1 }
0x1728   :  { %10634 = vsyncpa [#allocation21], 1 }
0x1729   :  { %10635 = vsyncpa [#allocation24], 1 }
0x172a   :  { %10636 = vsyncpa [#allocation27], 1 }
0x172b   :  { %10637 = vsyncpa [#allocation30], 1 }

</bundles_post_ra>
